<compile_context>
chip_gen: v7x
topology: tpu7x:2x2x1
jax: 0.10.0
libtpu: 0.0.40
codegen_flags: <defaults>
</compile_context>

<pallas_src>
import math
import functools

import jax
import jax.numpy as jnp
from jax.experimental import pallas as pl
from jax.experimental.pallas import tpu as pltpu


# Block table: (layer name, has stride-1 MaxPool1d).  conv_00 is always built
# and applied; entries 1..11 are gated by active_layers[i] exactly like the
# PyTorch setup()/forward().
_BLOCK_DEFS = (("00", False), ("01", False), ("02", True),
               ("10", False), ("11", False), ("12", True),
               ("20", False), ("21", False), ("22", True),
               ("30", False), ("31", False), ("32", True))


def _block_layout(active_layers):
    layout = []
    for i, (name, has_pool) in enumerate(_BLOCK_DEFS):
        if i == 0 or active_layers[i] == 1:
            layout.append((name, has_pool))
    return tuple(layout)


# ----------------------------------------------------------------------------
# Pallas kernel: fused Conv1d (implicit-GEMM tap loop) -> stride-1 MaxPool1d
#                -> BatchNorm1d(eval, per-channel affine) -> ELU
# Channel-last layout (N, L, C); one grid step per batch element.
# ----------------------------------------------------------------------------
def _make_block_kernel(K, Cin, Cout, Lo, mp):
    Lp = Lo - mp + 1

    def kernel(x_ref, w_ref, b_ref, s_ref, t_ref, o_ref):
        x = x_ref[0]                                   # (L, Cin), resident in VMEM
        acc = jnp.zeros((Lo, Cout), jnp.float32)
        for dk in range(K):                            # implicit-GEMM over taps (no im2col)
            xs = x[dk:dk + Lo, :]                      # (Lo, Cin) static slice
            wk = w_ref[dk]                             # (Cin, Cout)
            if Cin == 1:                               # rank-1 tap: broadcast multiply (VPU)
                acc = acc + xs * wk
            else:                                      # MXU with f32 accumulation
                acc = acc + jnp.dot(xs, wk, preferred_element_type=jnp.float32)
        acc = acc + b_ref[...]                         # conv bias
        m = acc[0:Lp, :]                               # stride-1 MaxPool1d: running max
        for j in range(1, mp):
            m = jnp.maximum(m, acc[j:j + Lp, :])
        z = m * s_ref[...] + t_ref[...]                # BatchNorm1d (eval) as affine
        o_ref[0] = jnp.where(z > 0.0, z,               # ELU (alpha=1)
                             jnp.exp(jnp.minimum(z, 0.0)) - 1.0)

    return kernel


def pallas_conv_block(x_cl, blk, mp):
    """x_cl: (N, L, Cin) f32 channel-last.  Returns (N, Lp, Cout) f32."""
    N, L, Cin = x_cl.shape
    w = blk["w"]                                       # (Cout, Cin, K) PyTorch layout
    Cout, Cin_w, K = w.shape
    assert Cin_w == Cin
    Lo = L - K + 1
    Lp = Lo - mp + 1
    w_taps = jnp.transpose(w, (2, 1, 0)).astype(jnp.float32)        # (K, Cin, Cout)
    bias = blk["b"].reshape(1, Cout).astype(jnp.float32)
    scale = blk["scale"].reshape(1, Cout).astype(jnp.float32)
    shift = blk["shift"].reshape(1, Cout).astype(jnp.float32)
    kernel = _make_block_kernel(K, Cin, Cout, Lo, mp)
    return pl.pallas_call(
        kernel,
        out_shape=jax.ShapeDtypeStruct((N, Lp, Cout), jnp.float32),
        grid_spec=pltpu.PrefetchScalarGridSpec(
            num_scalar_prefetch=0,
            grid=(N,),                                  # >=2 programs: both v7x TCs busy
            in_specs=[
                pl.BlockSpec((1, L, Cin), lambda n: (n, 0, 0)),
                pl.BlockSpec((K, Cin, Cout), lambda n: (0, 0, 0)),
                pl.BlockSpec((1, Cout), lambda n: (0, 0)),
                pl.BlockSpec((1, Cout), lambda n: (0, 0)),
                pl.BlockSpec((1, Cout), lambda n: (0, 0)),
            ],
            out_specs=pl.BlockSpec((1, Lp, Cout), lambda n: (n, 0, 0)),
        ),
        # No vmem_limit override: feature maps are tiny; default scoped limit is
        # safe on v5e/v6e (128 MiB physical) and on v7x (64 MiB physical).
        compiler_params=pltpu.CompilerParams(dimension_semantics=("parallel",)),
    )(x_cl.astype(jnp.float32), w_taps, bias, scale, shift)


def reference_conv_block(x_cl, blk, mp):
    """Pure-jnp mirror of the fused block (numerical sanity check only)."""
    N, L, Cin = x_cl.shape
    w = blk["w"]
    Cout, _, K = w.shape
    Lo = L - K + 1
    acc = jnp.zeros((N, Lo, Cout), jnp.float32)
    for dk in range(K):
        acc = acc + jnp.einsum("nlc,co->nlo", x_cl[:, dk:dk + Lo, :],
                               jnp.transpose(w[:, :, dk]))
    acc = acc + blk["b"].reshape(1, 1, Cout)
    Lp = Lo - mp + 1
    m = acc[:, 0:Lp, :]
    for j in range(1, mp):
        m = jnp.maximum(m, acc[:, j:j + Lp, :])
    z = m * blk["scale"].reshape(1, 1, Cout) + blk["shift"].reshape(1, 1, Cout)
    return jnp.where(z > 0.0, z, jnp.exp(jnp.minimum(z, 0.0)) - 1.0)


# ----------------------------------------------------------------------------
# Parameter init (mirrors the PyTorch setup(); fresh running stats)
# ----------------------------------------------------------------------------
def _xavier_normal_conv1d(key, cout, cin, k, gain=1.0):
    fan_in, fan_out = cin * k, cout * k
    std = gain * math.sqrt(2.0 / (fan_in + fan_out))
    return std * jax.random.normal(key, (cout, cin, k), dtype=jnp.float32)


def _conv1d_bias(key, cout, cin, k):
    bound = 1.0 / math.sqrt(cin * k)
    return jax.random.uniform(key, (cout,), jnp.float32, -bound, bound)


def _bn_affine(key, c, eps=1e-5):
    # nn.init.normal_(bn.weight, 0, 0.1); bias = 0; running_mean=0, running_var=1.
    gamma = 0.1 * jax.random.normal(key, (c,), jnp.float32)
    beta = jnp.zeros((c,), jnp.float32)
    running_mean = jnp.zeros((c,), jnp.float32)
    running_var = jnp.ones((c,), jnp.float32)
    scale = gamma * jax.lax.rsqrt(running_var + eps)
    shift = beta - running_mean * scale
    return scale, shift


def init_params(key, active_layers, conv_kernel_size, conv_filter_size):
    K = int(conv_kernel_size)
    Cout = int(conv_filter_size)
    layout = _block_layout(active_layers)
    keys = iter(jax.random.split(key, 3 * len(layout) + 8))
    params = {}
    params["bn_in_scale"], params["bn_in_shift"] = _bn_affine(next(keys), 1)
    blocks = []
    cin = 1
    for _name, _has_pool in layout:
        w = _xavier_normal_conv1d(next(keys), Cout, cin, K)
        b = _conv1d_bias(next(keys), Cout, cin, K)
        s, t = _bn_affine(next(keys), Cout)
        blocks.append({"w": w, "b": b, "scale": s, "shift": t})
        cin = Cout
    params["blocks"] = blocks
    params["wl"] = _xavier_normal_conv1d(next(keys), 1, Cout, 1)   # conv_last
    params["bl"] = _conv1d_bias(next(keys), 1, Cout, 1)
    return params


# ----------------------------------------------------------------------------
# Full forward pass (eval mode)
# ----------------------------------------------------------------------------
def snr_forward(x, params, *, layout, mp, block_fn):
    """x: (N, 1, L) float32 (PyTorch NCL layout)."""
    N = x.shape[0]
    x = x.astype(jnp.float32)
    x_mean = jnp.mean(x)                               # x = x - torch.mean(x)
    x_cl = jnp.transpose(x, (0, 2, 1))                 # (N, L, 1) channel-last
    blocks = list(params["blocks"])

    # Fold (x - mean) and bn_input (eval affine) exactly into conv_00: valid
    # padding => conv00(a*x + c) = (a*w)*x + (b + c*sum_k w).  Saves a full pass.
    in_scale = params["bn_in_scale"]                   # (1,)
    c = params["bn_in_shift"] - in_scale * x_mean      # (1,)
    b0 = blocks[0]
    blocks[0] = dict(b0,
                     w=b0["w"] * in_scale.reshape(1, -1, 1),
                     b=b0["b"] + jnp.sum(b0["w"], axis=(1, 2)) * c[0])

    y = x_cl
    for (_name, has_pool), blk in zip(layout, blocks):
        y = block_fn(y, blk, mp if has_pool else 1)

    # conv_last (1x1, C->1) + AdaptiveAvgPool1d(1) commute: mean over time, then dot.
    pooled = jnp.mean(y, axis=1)                       # (N, Cout)
    wl = params["wl"][0, :, 0]                         # (Cout,)
    out = pooled @ wl[:, None] + params["bl"].reshape(1, 1)
    out = out.reshape(N, 1, 1)
    if sum(out.shape[1:]) > out.ndim - 1:              # PyTorch sanity check (static shapes)
        raise ValueError("Check your network idiot!")
    return out


if __name__ == "__main__":
    # setup() hyper-parameters: all 12 layers active, conv kernel 3, maxpool
    # kernel 2, 64 conv filters.  Small deterministic input: (N=2, C=1, L=64).
    active_layers = [1] * 12
    conv_kernel_size = 3
    max_pool_kernel_size = 2
    conv_filter_size = 64
    N, L = 2, 64

    layout = _block_layout(active_layers)
    key = jax.random.PRNGKey(0)
    kx, kp = jax.random.split(key)
    x = jax.random.normal(kx, (N, 1, L), dtype=jnp.float32)
    params = init_params(kp, active_layers, conv_kernel_size, conv_filter_size)

    fwd = jax.jit(functools.partial(snr_forward, layout=layout,
                                    mp=max_pool_kernel_size,
                                    block_fn=pallas_conv_block))
    out = jax.block_until_ready(fwd(x, params))
    assert out.shape == (N, 1, 1), out.shape
    assert bool(jnp.all(jnp.isfinite(out)))

    # Numerical sanity check against a pure-jnp (XLA) mirror of the same math.
    ref_fwd = jax.jit(functools.partial(snr_forward, layout=layout,
                                        mp=max_pool_kernel_size,
                                        block_fn=reference_conv_block))
    ref = jax.block_until_ready(ref_fwd(x, params))
    assert bool(jnp.allclose(out, ref, rtol=1e-3, atol=1e-5)), (out, ref)

    print("KERNEL_OK")
</pallas_src>

<mosaic_0001>
module attributes {stable_mosaic.version = 11 : i64} {
  func.func @kernel(%arg0: i32, %arg1: memref<1x64x1xf32, #tpu.memory_space<vmem>>, %arg2: memref<3x1x64xf32, #tpu.memory_space<vmem>>, %arg3: memref<1x64xf32, #tpu.memory_space<vmem>>, %arg4: memref<1x64xf32, #tpu.memory_space<vmem>>, %arg5: memref<1x64xf32, #tpu.memory_space<vmem>>, %arg6: memref<1x62x64xf32, #tpu.memory_space<vmem>>) attributes {dimension_semantics = [#tpu.dimension_semantics<parallel>], iteration_bounds = array<i64: 2>, scalar_prefetch = 0 : i64, scratch_operands = 0 : i64, tpu.core_type = #tpu.core_type<tc>, window_params = [{transform_indices = @transform_0, window_bounds = array<i64: 1, 64, 1>}, {pipeline_mode = #tpu.pipeline_mode<synchronous>, transform_indices = @transform_1, window_bounds = array<i64: 3, 1, 64>}, {pipeline_mode = #tpu.pipeline_mode<synchronous>, transform_indices = @transform_2, window_bounds = array<i64: 1, 64>}, {pipeline_mode = #tpu.pipeline_mode<synchronous>, transform_indices = @transform_3, window_bounds = array<i64: 1, 64>}, {pipeline_mode = #tpu.pipeline_mode<synchronous>, transform_indices = @transform_4, window_bounds = array<i64: 1, 64>}, {transform_indices = @transform_5, window_bounds = array<i64: 1, 62, 64>}]} {
    %c0 = arith.constant 0 : index
    %c0_0 = arith.constant 0 : index
    %c0_1 = arith.constant 0 : index
    %0 = vector.load %arg1[%c0, %c0_0, %c0_1] : memref<1x64x1xf32, #tpu.memory_space<vmem>>, vector<1x64x1xf32>
    %1 = vector.shape_cast %0 : vector<1x64x1xf32> to vector<64x1xf32>
    %cst = arith.constant 0.000000e+00 : f32
    %2 = vector.broadcast %cst : f32 to vector<62x64xf32>
    %3 = vector.extract_strided_slice %1 {offsets = [0, 0], sizes = [62, 1], strides = [1, 1]} : vector<64x1xf32> to vector<62x1xf32>
    %c0_2 = arith.constant 0 : index
    %c0_3 = arith.constant 0 : index
    %c0_4 = arith.constant 0 : index
    %4 = vector.load %arg2[%c0_2, %c0_3, %c0_4] : memref<3x1x64xf32, #tpu.memory_space<vmem>>, vector<1x1x64xf32>
    %5 = vector.shape_cast %4 : vector<1x1x64xf32> to vector<1x64xf32>
    %6 = vector.broadcast %3 : vector<62x1xf32> to vector<62x64xf32>
    %7 = vector.broadcast %5 : vector<1x64xf32> to vector<62x64xf32>
    %8 = arith.mulf %6, %7 : vector<62x64xf32>
    %9 = arith.addf %2, %8 : vector<62x64xf32>
    %10 = vector.extract_strided_slice %1 {offsets = [1, 0], sizes = [62, 1], strides = [1, 1]} : vector<64x1xf32> to vector<62x1xf32>
    %c1 = arith.constant 1 : index
    %c0_5 = arith.constant 0 : index
    %c0_6 = arith.constant 0 : index
    %11 = vector.load %arg2[%c1, %c0_5, %c0_6] : memref<3x1x64xf32, #tpu.memory_space<vmem>>, vector<1x1x64xf32>
    %12 = vector.shape_cast %11 : vector<1x1x64xf32> to vector<1x64xf32>
    %13 = vector.broadcast %10 : vector<62x1xf32> to vector<62x64xf32>
    %14 = vector.broadcast %12 : vector<1x64xf32> to vector<62x64xf32>
    %15 = arith.mulf %13, %14 : vector<62x64xf32>
    %16 = arith.addf %9, %15 : vector<62x64xf32>
    %17 = vector.extract_strided_slice %1 {offsets = [2, 0], sizes = [62, 1], strides = [1, 1]} : vector<64x1xf32> to vector<62x1xf32>
    %c2 = arith.constant 2 : index
    %c0_7 = arith.constant 0 : index
    %c0_8 = arith.constant 0 : index
    %18 = vector.load %arg2[%c2, %c0_7, %c0_8] : memref<3x1x64xf32, #tpu.memory_space<vmem>>, vector<1x1x64xf32>
    %19 = vector.shape_cast %18 : vector<1x1x64xf32> to vector<1x64xf32>
    %20 = vector.broadcast %17 : vector<62x1xf32> to vector<62x64xf32>
    %21 = vector.broadcast %19 : vector<1x64xf32> to vector<62x64xf32>
    %22 = arith.mulf %20, %21 : vector<62x64xf32>
    %23 = arith.addf %16, %22 : vector<62x64xf32>
    %c0_9 = arith.constant 0 : index
    %c0_10 = arith.constant 0 : index
    %24 = vector.load %arg3[%c0_9, %c0_10] : memref<1x64xf32, #tpu.memory_space<vmem>>, vector<1x64xf32>
    %25 = vector.broadcast %24 : vector<1x64xf32> to vector<62x64xf32>
    %26 = arith.addf %23, %25 : vector<62x64xf32>
    %c0_11 = arith.constant 0 : index
    %c0_12 = arith.constant 0 : index
    %27 = vector.load %arg4[%c0_11, %c0_12] : memref<1x64xf32, #tpu.memory_space<vmem>>, vector<1x64xf32>
    %28 = vector.broadcast %27 : vector<1x64xf32> to vector<62x64xf32>
    %29 = arith.mulf %26, %28 : vector<62x64xf32>
    %c0_13 = arith.constant 0 : index
    %c0_14 = arith.constant 0 : index
    %30 = vector.load %arg5[%c0_13, %c0_14] : memref<1x64xf32, #tpu.memory_space<vmem>>, vector<1x64xf32>
    %31 = vector.broadcast %30 : vector<1x64xf32> to vector<62x64xf32>
    %32 = arith.addf %29, %31 : vector<62x64xf32>
    %cst_15 = arith.constant 0.000000e+00 : f32
    %33 = vector.broadcast %cst_15 : f32 to vector<62x64xf32>
    %34 = arith.cmpf ogt, %32, %33 : vector<62x64xf32>
    %cst_16 = arith.constant 0.000000e+00 : f32
    %35 = vector.broadcast %cst_16 : f32 to vector<62x64xf32>
    %36 = arith.minimumf %32, %35 : vector<62x64xf32>
    %37 = math.exp %36 : vector<62x64xf32>
    %cst_17 = arith.constant 1.000000e+00 : f32
    %38 = vector.broadcast %cst_17 : f32 to vector<62x64xf32>
    %39 = arith.subf %37, %38 : vector<62x64xf32>
    %40 = arith.select %34, %32, %39 : vector<62x64xi1>, vector<62x64xf32>
    %c0_18 = arith.constant 0 : index
    %c0_19 = arith.constant 0 : index
    %c0_20 = arith.constant 0 : index
    %41 = vector.load %arg6[%c0_18, %c0_19, %c0_20] : memref<1x62x64xf32, #tpu.memory_space<vmem>>, vector<1x62x64xf32>
    %42 = vector.shape_cast %41 : vector<1x62x64xf32> to vector<62x64xf32>
    %43 = vector.shape_cast %40 : vector<62x64xf32> to vector<1x62x64xf32>
    tpu.vector_store %arg6[%c0_18, %c0_19, %c0_20], %43 {strides = array<i32>} : memref<1x62x64xf32, #tpu.memory_space<vmem>>, vector<1x62x64xf32>,
    return
  }
  func.func @transform_0(%arg0: i32) -> (i32, i32, i32) {
    %c0_i32 = arith.constant 0 : i32
    %c0_i32_0 = arith.constant 0 : i32
    %c0_i32_1 = arith.constant 0 : i32
    return %arg0, %c0_i32, %c0_i32_0 : i32, i32, i32
  }
  func.func @transform_1(%arg0: i32) -> (i32, i32, i32) {
    %c0_i32 = arith.constant 0 : i32
    %c0_i32_0 = arith.constant 0 : i32
    %c0_i32_1 = arith.constant 0 : i32
    %c0_i32_2 = arith.constant 0 : i32
    return %c0_i32, %c0_i32_0, %c0_i32_1 : i32, i32, i32
  }
  func.func @transform_2(%arg0: i32) -> (i32, i32) {
    %c0_i32 = arith.constant 0 : i32
    %c0_i32_0 = arith.constant 0 : i32
    %c0_i32_1 = arith.constant 0 : i32
    return %c0_i32, %c0_i32_0 : i32, i32
  }
  func.func @transform_3(%arg0: i32) -> (i32, i32) {
    %c0_i32 = arith.constant 0 : i32
    %c0_i32_0 = arith.constant 0 : i32
    %c0_i32_1 = arith.constant 0 : i32
    return %c0_i32, %c0_i32_0 : i32, i32
  }
  func.func @transform_4(%arg0: i32) -> (i32, i32) {
    %c0_i32 = arith.constant 0 : i32
    %c0_i32_0 = arith.constant 0 : i32
    %c0_i32_1 = arith.constant 0 : i32
    return %c0_i32, %c0_i32_0 : i32, i32
  }
  func.func @transform_5(%arg0: i32) -> (i32, i32, i32) {
    %c0_i32 = arith.constant 0 : i32
    %c0_i32_0 = arith.constant 0 : i32
    %c0_i32_1 = arith.constant 0 : i32
    return %arg0, %c0_i32, %c0_i32_0 : i32, i32, i32
  }
}

module attributes {stable_mosaic.version = 11 : i64} {
  func.func @kernel(%arg0: i32, %arg1: memref<1x60x64xf32, #tpu.memory_space<vmem>>, %arg2: memref<3x64x64xf32, #tpu.memory_space<vmem>>, %arg3: memref<1x64xf32, #tpu.memory_space<vmem>>, %arg4: memref<1x64xf32, #tpu.memory_space<vmem>>, %arg5: memref<1x64xf32, #tpu.memory_space<vmem>>, %arg6: memref<1x57x64xf32, #tpu.memory_space<vmem>>) attributes {dimension_semantics = [#tpu.dimension_semantics<parallel>], iteration_bounds = array<i64: 2>, scalar_prefetch = 0 : i64, scratch_operands = 0 : i64, tpu.core_type = #tpu.core_type<tc>, window_params = [{transform_indices = @transform_0, window_bounds = array<i64: 1, 60, 64>}, {pipeline_mode = #tpu.pipeline_mode<synchronous>, transform_indices = @transform_1, window_bounds = array<i64: 3, 64, 64>}, {pipeline_mode = #tpu.pipeline_mode<synchronous>, transform_indices = @transform_2, window_bounds = array<i64: 1, 64>}, {pipeline_mode = #tpu.pipeline_mode<synchronous>, transform_indices = @transform_3, window_bounds = array<i64: 1, 64>}, {pipeline_mode = #tpu.pipeline_mode<synchronous>, transform_indices = @transform_4, window_bounds = array<i64: 1, 64>}, {transform_indices = @transform_5, window_bounds = array<i64: 1, 57, 64>}]} {
    %c0 = arith.constant 0 : index
    %c0_0 = arith.constant 0 : index
    %c0_1 = arith.constant 0 : index
    %0 = vector.load %arg1[%c0, %c0_0, %c0_1] : memref<1x60x64xf32, #tpu.memory_space<vmem>>, vector<1x60x64xf32>
    %1 = vector.shape_cast %0 : vector<1x60x64xf32> to vector<60x64xf32>
    %cst = arith.constant 0.000000e+00 : f32
    %2 = vector.broadcast %cst : f32 to vector<58x64xf32>
    %3 = vector.extract_strided_slice %1 {offsets = [0, 0], sizes = [58, 64], strides = [1, 1]} : vector<60x64xf32> to vector<58x64xf32>
    %c0_2 = arith.constant 0 : index
    %c0_3 = arith.constant 0 : index
    %c0_4 = arith.constant 0 : index
    %4 = vector.load %arg2[%c0_2, %c0_3, %c0_4] : memref<3x64x64xf32, #tpu.memory_space<vmem>>, vector<1x64x64xf32>
    %5 = vector.shape_cast %4 : vector<1x64x64xf32> to vector<64x64xf32>
    %cst_5 = arith.constant dense<0.000000e+00> : vector<58x64xf32>
    %6 = tpu.matmul %3, %5, %cst_5 {dimension_numbers = #tpu.dot_dimension_numbers<[1], [0], [0], [1], [0, 0, 1, 1], [], []>} : vector<58x64xf32>, vector<64x64xf32>, vector<58x64xf32> -> vector<58x64xf32>
    %7 = arith.addf %2, %6 : vector<58x64xf32>
    %8 = vector.extract_strided_slice %1 {offsets = [1, 0], sizes = [58, 64], strides = [1, 1]} : vector<60x64xf32> to vector<58x64xf32>
    %c1 = arith.constant 1 : index
    %c0_6 = arith.constant 0 : index
    %c0_7 = arith.constant 0 : index
    %9 = vector.load %arg2[%c1, %c0_6, %c0_7] : memref<3x64x64xf32, #tpu.memory_space<vmem>>, vector<1x64x64xf32>
    %10 = vector.shape_cast %9 : vector<1x64x64xf32> to vector<64x64xf32>
    %cst_8 = arith.constant dense<0.000000e+00> : vector<58x64xf32>
    %11 = tpu.matmul %8, %10, %cst_8 {dimension_numbers = #tpu.dot_dimension_numbers<[1], [0], [0], [1], [0, 0, 1, 1], [], []>} : vector<58x64xf32>, vector<64x64xf32>, vector<58x64xf32> -> vector<58x64xf32>
    %12 = arith.addf %7, %11 : vector<58x64xf32>
    %13 = vector.extract_strided_slice %1 {offsets = [2, 0], sizes = [58, 64], strides = [1, 1]} : vector<60x64xf32> to vector<58x64xf32>
    %c2 = arith.constant 2 : index
    %c0_9 = arith.constant 0 : index
    %c0_10 = arith.constant 0 : index
    %14 = vector.load %arg2[%c2, %c0_9, %c0_10] : memref<3x64x64xf32, #tpu.memory_space<vmem>>, vector<1x64x64xf32>
    %15 = vector.shape_cast %14 : vector<1x64x64xf32> to vector<64x64xf32>
    %cst_11 = arith.constant dense<0.000000e+00> : vector<58x64xf32>
    %16 = tpu.matmul %13, %15, %cst_11 {dimension_numbers = #tpu.dot_dimension_numbers<[1], [0], [0], [1], [0, 0, 1, 1], [], []>} : vector<58x64xf32>, vector<64x64xf32>, vector<58x64xf32> -> vector<58x64xf32>
    %17 = arith.addf %12, %16 : vector<58x64xf32>
    %c0_12 = arith.constant 0 : index
    %c0_13 = arith.constant 0 : index
    %18 = vector.load %arg3[%c0_12, %c0_13] : memref<1x64xf32, #tpu.memory_space<vmem>>, vector<1x64xf32>
    %19 = vector.broadcast %18 : vector<1x64xf32> to vector<58x64xf32>
    %20 = arith.addf %17, %19 : vector<58x64xf32>
    %21 = vector.extract_strided_slice %20 {offsets = [0, 0], sizes = [57, 64], strides = [1, 1]} : vector<58x64xf32> to vector<57x64xf32>
    %22 = vector.extract_strided_slice %20 {offsets = [1, 0], sizes = [57, 64], strides = [1, 1]} : vector<58x64xf32> to vector<57x64xf32>
    %23 = arith.maximumf %21, %22 : vector<57x64xf32>
    %c0_14 = arith.constant 0 : index
    %c0_15 = arith.constant 0 : index
    %24 = vector.load %arg4[%c0_14, %c0_15] : memref<1x64xf32, #tpu.memory_space<vmem>>, vector<1x64xf32>
    %25 = vector.broadcast %24 : vector<1x64xf32> to vector<57x64xf32>
    %26 = arith.mulf %23, %25 : vector<57x64xf32>
    %c0_16 = arith.constant 0 : index
    %c0_17 = arith.constant 0 : index
    %27 = vector.load %arg5[%c0_16, %c0_17] : memref<1x64xf32, #tpu.memory_space<vmem>>, vector<1x64xf32>
    %28 = vector.broadcast %27 : vector<1x64xf32> to vector<57x64xf32>
    %29 = arith.addf %26, %28 : vector<57x64xf32>
    %cst_18 = arith.constant 0.000000e+00 : f32
    %30 = vector.broadcast %cst_18 : f32 to vector<57x64xf32>
    %31 = arith.cmpf ogt, %29, %30 : vector<57x64xf32>
    %cst_19 = arith.constant 0.000000e+00 : f32
    %32 = vector.broadcast %cst_19 : f32 to vector<57x64xf32>
    %33 = arith.minimumf %29, %32 : vector<57x64xf32>
    %34 = math.exp %33 : vector<57x64xf32>
    %cst_20 = arith.constant 1.000000e+00 : f32
    %35 = vector.broadcast %cst_20 : f32 to vector<57x64xf32>
    %36 = arith.subf %34, %35 : vector<57x64xf32>
    %37 = arith.select %31, %29, %36 : vector<57x64xi1>, vector<57x64xf32>
    %c0_21 = arith.constant 0 : index
    %c0_22 = arith.constant 0 : index
    %c0_23 = arith.constant 0 : index
    %38 = vector.load %arg6[%c0_21, %c0_22, %c0_23] : memref<1x57x64xf32, #tpu.memory_space<vmem>>, vector<1x57x64xf32>
    %39 = vector.shape_cast %38 : vector<1x57x64xf32> to vector<57x64xf32>
    %40 = vector.shape_cast %37 : vector<57x64xf32> to vector<1x57x64xf32>
    tpu.vector_store %arg6[%c0_21, %c0_22, %c0_23], %40 {strides = array<i32>} : memref<1x57x64xf32, #tpu.memory_space<vmem>>, vector<1x57x64xf32>,
    return
  }
  func.func @transform_0(%arg0: i32) -> (i32, i32, i32) {
    %c0_i32 = arith.constant 0 : i32
    %c0_i32_0 = arith.constant 0 : i32
    %c0_i32_1 = arith.constant 0 : i32
    return %arg0, %c0_i32, %c0_i32_0 : i32, i32, i32
  }
  func.func @transform_1(%arg0: i32) -> (i32, i32, i32) {
    %c0_i32 = arith.constant 0 : i32
    %c0_i32_0 = arith.constant 0 : i32
    %c0_i32_1 = arith.constant 0 : i32
    %c0_i32_2 = arith.constant 0 : i32
    return %c0_i32, %c0_i32_0, %c0_i32_1 : i32, i32, i32
  }
  func.func @transform_2(%arg0: i32) -> (i32, i32) {
    %c0_i32 = arith.constant 0 : i32
    %c0_i32_0 = arith.constant 0 : i32
    %c0_i32_1 = arith.constant 0 : i32
    return %c0_i32, %c0_i32_0 : i32, i32
  }
  func.func @transform_3(%arg0: i32) -> (i32, i32) {
    %c0_i32 = arith.constant 0 : i32
    %c0_i32_0 = arith.constant 0 : i32
    %c0_i32_1 = arith.constant 0 : i32
    return %c0_i32, %c0_i32_0 : i32, i32
  }
  func.func @transform_4(%arg0: i32) -> (i32, i32) {
    %c0_i32 = arith.constant 0 : i32
    %c0_i32_0 = arith.constant 0 : i32
    %c0_i32_1 = arith.constant 0 : i32
    return %c0_i32, %c0_i32_0 : i32, i32
  }
  func.func @transform_5(%arg0: i32) -> (i32, i32, i32) {
    %c0_i32 = arith.constant 0 : i32
    %c0_i32_0 = arith.constant 0 : i32
    %c0_i32_1 = arith.constant 0 : i32
    return %arg0, %c0_i32, %c0_i32_0 : i32, i32, i32
  }
}

module attributes {stable_mosaic.version = 11 : i64} {
  func.func @kernel(%arg0: i32, %arg1: memref<1x57x64xf32, #tpu.memory_space<vmem>>, %arg2: memref<3x64x64xf32, #tpu.memory_space<vmem>>, %arg3: memref<1x64xf32, #tpu.memory_space<vmem>>, %arg4: memref<1x64xf32, #tpu.memory_space<vmem>>, %arg5: memref<1x64xf32, #tpu.memory_space<vmem>>, %arg6: memref<1x55x64xf32, #tpu.memory_space<vmem>>) attributes {dimension_semantics = [#tpu.dimension_semantics<parallel>], iteration_bounds = array<i64: 2>, scalar_prefetch = 0 : i64, scratch_operands = 0 : i64, tpu.core_type = #tpu.core_type<tc>, window_params = [{transform_indices = @transform_0, window_bounds = array<i64: 1, 57, 64>}, {pipeline_mode = #tpu.pipeline_mode<synchronous>, transform_indices = @transform_1, window_bounds = array<i64: 3, 64, 64>}, {pipeline_mode = #tpu.pipeline_mode<synchronous>, transform_indices = @transform_2, window_bounds = array<i64: 1, 64>}, {pipeline_mode = #tpu.pipeline_mode<synchronous>, transform_indices = @transform_3, window_bounds = array<i64: 1, 64>}, {pipeline_mode = #tpu.pipeline_mode<synchronous>, transform_indices = @transform_4, window_bounds = array<i64: 1, 64>}, {transform_indices = @transform_5, window_bounds = array<i64: 1, 55, 64>}]} {
    %c0 = arith.constant 0 : index
    %c0_0 = arith.constant 0 : index
    %c0_1 = arith.constant 0 : index
    %0 = vector.load %arg1[%c0, %c0_0, %c0_1] : memref<1x57x64xf32, #tpu.memory_space<vmem>>, vector<1x57x64xf32>
    %1 = vector.shape_cast %0 : vector<1x57x64xf32> to vector<57x64xf32>
    %cst = arith.constant 0.000000e+00 : f32
    %2 = vector.broadcast %cst : f32 to vector<55x64xf32>
    %3 = vector.extract_strided_slice %1 {offsets = [0, 0], sizes = [55, 64], strides = [1, 1]} : vector<57x64xf32> to vector<55x64xf32>
    %c0_2 = arith.constant 0 : index
    %c0_3 = arith.constant 0 : index
    %c0_4 = arith.constant 0 : index
    %4 = vector.load %arg2[%c0_2, %c0_3, %c0_4] : memref<3x64x64xf32, #tpu.memory_space<vmem>>, vector<1x64x64xf32>
    %5 = vector.shape_cast %4 : vector<1x64x64xf32> to vector<64x64xf32>
    %cst_5 = arith.constant dense<0.000000e+00> : vector<55x64xf32>
    %6 = tpu.matmul %3, %5, %cst_5 {dimension_numbers = #tpu.dot_dimension_numbers<[1], [0], [0], [1], [0, 0, 1, 1], [], []>} : vector<55x64xf32>, vector<64x64xf32>, vector<55x64xf32> -> vector<55x64xf32>
    %7 = arith.addf %2, %6 : vector<55x64xf32>
    %8 = vector.extract_strided_slice %1 {offsets = [1, 0], sizes = [55, 64], strides = [1, 1]} : vector<57x64xf32> to vector<55x64xf32>
    %c1 = arith.constant 1 : index
    %c0_6 = arith.constant 0 : index
    %c0_7 = arith.constant 0 : index
    %9 = vector.load %arg2[%c1, %c0_6, %c0_7] : memref<3x64x64xf32, #tpu.memory_space<vmem>>, vector<1x64x64xf32>
    %10 = vector.shape_cast %9 : vector<1x64x64xf32> to vector<64x64xf32>
    %cst_8 = arith.constant dense<0.000000e+00> : vector<55x64xf32>
    %11 = tpu.matmul %8, %10, %cst_8 {dimension_numbers = #tpu.dot_dimension_numbers<[1], [0], [0], [1], [0, 0, 1, 1], [], []>} : vector<55x64xf32>, vector<64x64xf32>, vector<55x64xf32> -> vector<55x64xf32>
    %12 = arith.addf %7, %11 : vector<55x64xf32>
    %13 = vector.extract_strided_slice %1 {offsets = [2, 0], sizes = [55, 64], strides = [1, 1]} : vector<57x64xf32> to vector<55x64xf32>
    %c2 = arith.constant 2 : index
    %c0_9 = arith.constant 0 : index
    %c0_10 = arith.constant 0 : index
    %14 = vector.load %arg2[%c2, %c0_9, %c0_10] : memref<3x64x64xf32, #tpu.memory_space<vmem>>, vector<1x64x64xf32>
    %15 = vector.shape_cast %14 : vector<1x64x64xf32> to vector<64x64xf32>
    %cst_11 = arith.constant dense<0.000000e+00> : vector<55x64xf32>
    %16 = tpu.matmul %13, %15, %cst_11 {dimension_numbers = #tpu.dot_dimension_numbers<[1], [0], [0], [1], [0, 0, 1, 1], [], []>} : vector<55x64xf32>, vector<64x64xf32>, vector<55x64xf32> -> vector<55x64xf32>
    %17 = arith.addf %12, %16 : vector<55x64xf32>
    %c0_12 = arith.constant 0 : index
    %c0_13 = arith.constant 0 : index
    %18 = vector.load %arg3[%c0_12, %c0_13] : memref<1x64xf32, #tpu.memory_space<vmem>>, vector<1x64xf32>
    %19 = vector.broadcast %18 : vector<1x64xf32> to vector<55x64xf32>
    %20 = arith.addf %17, %19 : vector<55x64xf32>
    %c0_14 = arith.constant 0 : index
    %c0_15 = arith.constant 0 : index
    %21 = vector.load %arg4[%c0_14, %c0_15] : memref<1x64xf32, #tpu.memory_space<vmem>>, vector<1x64xf32>
    %22 = vector.broadcast %21 : vector<1x64xf32> to vector<55x64xf32>
    %23 = arith.mulf %20, %22 : vector<55x64xf32>
    %c0_16 = arith.constant 0 : index
    %c0_17 = arith.constant 0 : index
    %24 = vector.load %arg5[%c0_16, %c0_17] : memref<1x64xf32, #tpu.memory_space<vmem>>, vector<1x64xf32>
    %25 = vector.broadcast %24 : vector<1x64xf32> to vector<55x64xf32>
    %26 = arith.addf %23, %25 : vector<55x64xf32>
    %cst_18 = arith.constant 0.000000e+00 : f32
    %27 = vector.broadcast %cst_18 : f32 to vector<55x64xf32>
    %28 = arith.cmpf ogt, %26, %27 : vector<55x64xf32>
    %cst_19 = arith.constant 0.000000e+00 : f32
    %29 = vector.broadcast %cst_19 : f32 to vector<55x64xf32>
    %30 = arith.minimumf %26, %29 : vector<55x64xf32>
    %31 = math.exp %30 : vector<55x64xf32>
    %cst_20 = arith.constant 1.000000e+00 : f32
    %32 = vector.broadcast %cst_20 : f32 to vector<55x64xf32>
    %33 = arith.subf %31, %32 : vector<55x64xf32>
    %34 = arith.select %28, %26, %33 : vector<55x64xi1>, vector<55x64xf32>
    %c0_21 = arith.constant 0 : index
    %c0_22 = arith.constant 0 : index
    %c0_23 = arith.constant 0 : index
    %35 = vector.load %arg6[%c0_21, %c0_22, %c0_23] : memref<1x55x64xf32, #tpu.memory_space<vmem>>, vector<1x55x64xf32>
    %36 = vector.shape_cast %35 : vector<1x55x64xf32> to vector<55x64xf32>
    %37 = vector.shape_cast %34 : vector<55x64xf32> to vector<1x55x64xf32>
    tpu.vector_store %arg6[%c0_21, %c0_22, %c0_23], %37 {strides = array<i32>} : memref<1x55x64xf32, #tpu.memory_space<vmem>>, vector<1x55x64xf32>,
    return
  }
  func.func @transform_0(%arg0: i32) -> (i32, i32, i32) {
    %c0_i32 = arith.constant 0 : i32
    %c0_i32_0 = arith.constant 0 : i32
    %c0_i32_1 = arith.constant 0 : i32
    return %arg0, %c0_i32, %c0_i32_0 : i32, i32, i32
  }
  func.func @transform_1(%arg0: i32) -> (i32, i32, i32) {
    %c0_i32 = arith.constant 0 : i32
    %c0_i32_0 = arith.constant 0 : i32
    %c0_i32_1 = arith.constant 0 : i32
    %c0_i32_2 = arith.constant 0 : i32
    return %c0_i32, %c0_i32_0, %c0_i32_1 : i32, i32, i32
  }
  func.func @transform_2(%arg0: i32) -> (i32, i32) {
    %c0_i32 = arith.constant 0 : i32
    %c0_i32_0 = arith.constant 0 : i32
    %c0_i32_1 = arith.constant 0 : i32
    return %c0_i32, %c0_i32_0 : i32, i32
  }
  func.func @transform_3(%arg0: i32) -> (i32, i32) {
    %c0_i32 = arith.constant 0 : i32
    %c0_i32_0 = arith.constant 0 : i32
    %c0_i32_1 = arith.constant 0 : i32
    return %c0_i32, %c0_i32_0 : i32, i32
  }
  func.func @transform_4(%arg0: i32) -> (i32, i32) {
    %c0_i32 = arith.constant 0 : i32
    %c0_i32_0 = arith.constant 0 : i32
    %c0_i32_1 = arith.constant 0 : i32
    return %c0_i32, %c0_i32_0 : i32, i32
  }
  func.func @transform_5(%arg0: i32) -> (i32, i32, i32) {
    %c0_i32 = arith.constant 0 : i32
    %c0_i32_0 = arith.constant 0 : i32
    %c0_i32_1 = arith.constant 0 : i32
    return %arg0, %c0_i32, %c0_i32_0 : i32, i32, i32
  }
}

module attributes {stable_mosaic.version = 11 : i64} {
  func.func @kernel(%arg0: i32, %arg1: memref<1x62x64xf32, #tpu.memory_space<vmem>>, %arg2: memref<3x64x64xf32, #tpu.memory_space<vmem>>, %arg3: memref<1x64xf32, #tpu.memory_space<vmem>>, %arg4: memref<1x64xf32, #tpu.memory_space<vmem>>, %arg5: memref<1x64xf32, #tpu.memory_space<vmem>>, %arg6: memref<1x60x64xf32, #tpu.memory_space<vmem>>) attributes {dimension_semantics = [#tpu.dimension_semantics<parallel>], iteration_bounds = array<i64: 2>, scalar_prefetch = 0 : i64, scratch_operands = 0 : i64, tpu.core_type = #tpu.core_type<tc>, window_params = [{transform_indices = @transform_0, window_bounds = array<i64: 1, 62, 64>}, {pipeline_mode = #tpu.pipeline_mode<synchronous>, transform_indices = @transform_1, window_bounds = array<i64: 3, 64, 64>}, {pipeline_mode = #tpu.pipeline_mode<synchronous>, transform_indices = @transform_2, window_bounds = array<i64: 1, 64>}, {pipeline_mode = #tpu.pipeline_mode<synchronous>, transform_indices = @transform_3, window_bounds = array<i64: 1, 64>}, {pipeline_mode = #tpu.pipeline_mode<synchronous>, transform_indices = @transform_4, window_bounds = array<i64: 1, 64>}, {transform_indices = @transform_5, window_bounds = array<i64: 1, 60, 64>}]} {
    %c0 = arith.constant 0 : index
    %c0_0 = arith.constant 0 : index
    %c0_1 = arith.constant 0 : index
    %0 = vector.load %arg1[%c0, %c0_0, %c0_1] : memref<1x62x64xf32, #tpu.memory_space<vmem>>, vector<1x62x64xf32>
    %1 = vector.shape_cast %0 : vector<1x62x64xf32> to vector<62x64xf32>
    %cst = arith.constant 0.000000e+00 : f32
    %2 = vector.broadcast %cst : f32 to vector<60x64xf32>
    %3 = vector.extract_strided_slice %1 {offsets = [0, 0], sizes = [60, 64], strides = [1, 1]} : vector<62x64xf32> to vector<60x64xf32>
    %c0_2 = arith.constant 0 : index
    %c0_3 = arith.constant 0 : index
    %c0_4 = arith.constant 0 : index
    %4 = vector.load %arg2[%c0_2, %c0_3, %c0_4] : memref<3x64x64xf32, #tpu.memory_space<vmem>>, vector<1x64x64xf32>
    %5 = vector.shape_cast %4 : vector<1x64x64xf32> to vector<64x64xf32>
    %cst_5 = arith.constant dense<0.000000e+00> : vector<60x64xf32>
    %6 = tpu.matmul %3, %5, %cst_5 {dimension_numbers = #tpu.dot_dimension_numbers<[1], [0], [0], [1], [0, 0, 1, 1], [], []>} : vector<60x64xf32>, vector<64x64xf32>, vector<60x64xf32> -> vector<60x64xf32>
    %7 = arith.addf %2, %6 : vector<60x64xf32>
    %8 = vector.extract_strided_slice %1 {offsets = [1, 0], sizes = [60, 64], strides = [1, 1]} : vector<62x64xf32> to vector<60x64xf32>
    %c1 = arith.constant 1 : index
    %c0_6 = arith.constant 0 : index
    %c0_7 = arith.constant 0 : index
    %9 = vector.load %arg2[%c1, %c0_6, %c0_7] : memref<3x64x64xf32, #tpu.memory_space<vmem>>, vector<1x64x64xf32>
    %10 = vector.shape_cast %9 : vector<1x64x64xf32> to vector<64x64xf32>
    %cst_8 = arith.constant dense<0.000000e+00> : vector<60x64xf32>
    %11 = tpu.matmul %8, %10, %cst_8 {dimension_numbers = #tpu.dot_dimension_numbers<[1], [0], [0], [1], [0, 0, 1, 1], [], []>} : vector<60x64xf32>, vector<64x64xf32>, vector<60x64xf32> -> vector<60x64xf32>
    %12 = arith.addf %7, %11 : vector<60x64xf32>
    %13 = vector.extract_strided_slice %1 {offsets = [2, 0], sizes = [60, 64], strides = [1, 1]} : vector<62x64xf32> to vector<60x64xf32>
    %c2 = arith.constant 2 : index
    %c0_9 = arith.constant 0 : index
    %c0_10 = arith.constant 0 : index
    %14 = vector.load %arg2[%c2, %c0_9, %c0_10] : memref<3x64x64xf32, #tpu.memory_space<vmem>>, vector<1x64x64xf32>
    %15 = vector.shape_cast %14 : vector<1x64x64xf32> to vector<64x64xf32>
    %cst_11 = arith.constant dense<0.000000e+00> : vector<60x64xf32>
    %16 = tpu.matmul %13, %15, %cst_11 {dimension_numbers = #tpu.dot_dimension_numbers<[1], [0], [0], [1], [0, 0, 1, 1], [], []>} : vector<60x64xf32>, vector<64x64xf32>, vector<60x64xf32> -> vector<60x64xf32>
    %17 = arith.addf %12, %16 : vector<60x64xf32>
    %c0_12 = arith.constant 0 : index
    %c0_13 = arith.constant 0 : index
    %18 = vector.load %arg3[%c0_12, %c0_13] : memref<1x64xf32, #tpu.memory_space<vmem>>, vector<1x64xf32>
    %19 = vector.broadcast %18 : vector<1x64xf32> to vector<60x64xf32>
    %20 = arith.addf %17, %19 : vector<60x64xf32>
    %c0_14 = arith.constant 0 : index
    %c0_15 = arith.constant 0 : index
    %21 = vector.load %arg4[%c0_14, %c0_15] : memref<1x64xf32, #tpu.memory_space<vmem>>, vector<1x64xf32>
    %22 = vector.broadcast %21 : vector<1x64xf32> to vector<60x64xf32>
    %23 = arith.mulf %20, %22 : vector<60x64xf32>
    %c0_16 = arith.constant 0 : index
    %c0_17 = arith.constant 0 : index
    %24 = vector.load %arg5[%c0_16, %c0_17] : memref<1x64xf32, #tpu.memory_space<vmem>>, vector<1x64xf32>
    %25 = vector.broadcast %24 : vector<1x64xf32> to vector<60x64xf32>
    %26 = arith.addf %23, %25 : vector<60x64xf32>
    %cst_18 = arith.constant 0.000000e+00 : f32
    %27 = vector.broadcast %cst_18 : f32 to vector<60x64xf32>
    %28 = arith.cmpf ogt, %26, %27 : vector<60x64xf32>
    %cst_19 = arith.constant 0.000000e+00 : f32
    %29 = vector.broadcast %cst_19 : f32 to vector<60x64xf32>
    %30 = arith.minimumf %26, %29 : vector<60x64xf32>
    %31 = math.exp %30 : vector<60x64xf32>
    %cst_20 = arith.constant 1.000000e+00 : f32
    %32 = vector.broadcast %cst_20 : f32 to vector<60x64xf32>
    %33 = arith.subf %31, %32 : vector<60x64xf32>
    %34 = arith.select %28, %26, %33 : vector<60x64xi1>, vector<60x64xf32>
    %c0_21 = arith.constant 0 : index
    %c0_22 = arith.constant 0 : index
    %c0_23 = arith.constant 0 : index
    %35 = vector.load %arg6[%c0_21, %c0_22, %c0_23] : memref<1x60x64xf32, #tpu.memory_space<vmem>>, vector<1x60x64xf32>
    %36 = vector.shape_cast %35 : vector<1x60x64xf32> to vector<60x64xf32>
    %37 = vector.shape_cast %34 : vector<60x64xf32> to vector<1x60x64xf32>
    tpu.vector_store %arg6[%c0_21, %c0_22, %c0_23], %37 {strides = array<i32>} : memref<1x60x64xf32, #tpu.memory_space<vmem>>, vector<1x60x64xf32>,
    return
  }
  func.func @transform_0(%arg0: i32) -> (i32, i32, i32) {
    %c0_i32 = arith.constant 0 : i32
    %c0_i32_0 = arith.constant 0 : i32
    %c0_i32_1 = arith.constant 0 : i32
    return %arg0, %c0_i32, %c0_i32_0 : i32, i32, i32
  }
  func.func @transform_1(%arg0: i32) -> (i32, i32, i32) {
    %c0_i32 = arith.constant 0 : i32
    %c0_i32_0 = arith.constant 0 : i32
    %c0_i32_1 = arith.constant 0 : i32
    %c0_i32_2 = arith.constant 0 : i32
    return %c0_i32, %c0_i32_0, %c0_i32_1 : i32, i32, i32
  }
  func.func @transform_2(%arg0: i32) -> (i32, i32) {
    %c0_i32 = arith.constant 0 : i32
    %c0_i32_0 = arith.constant 0 : i32
    %c0_i32_1 = arith.constant 0 : i32
    return %c0_i32, %c0_i32_0 : i32, i32
  }
  func.func @transform_3(%arg0: i32) -> (i32, i32) {
    %c0_i32 = arith.constant 0 : i32
    %c0_i32_0 = arith.constant 0 : i32
    %c0_i32_1 = arith.constant 0 : i32
    return %c0_i32, %c0_i32_0 : i32, i32
  }
  func.func @transform_4(%arg0: i32) -> (i32, i32) {
    %c0_i32 = arith.constant 0 : i32
    %c0_i32_0 = arith.constant 0 : i32
    %c0_i32_1 = arith.constant 0 : i32
    return %c0_i32, %c0_i32_0 : i32, i32
  }
  func.func @transform_5(%arg0: i32) -> (i32, i32, i32) {
    %c0_i32 = arith.constant 0 : i32
    %c0_i32_0 = arith.constant 0 : i32
    %c0_i32_1 = arith.constant 0 : i32
    return %arg0, %c0_i32, %c0_i32_0 : i32, i32, i32
  }
}

module attributes {stable_mosaic.version = 11 : i64} {
  func.func @kernel(%arg0: i32, %arg1: memref<1x55x64xf32, #tpu.memory_space<vmem>>, %arg2: memref<3x64x64xf32, #tpu.memory_space<vmem>>, %arg3: memref<1x64xf32, #tpu.memory_space<vmem>>, %arg4: memref<1x64xf32, #tpu.memory_space<vmem>>, %arg5: memref<1x64xf32, #tpu.memory_space<vmem>>, %arg6: memref<1x53x64xf32, #tpu.memory_space<vmem>>) attributes {dimension_semantics = [#tpu.dimension_semantics<parallel>], iteration_bounds = array<i64: 2>, scalar_prefetch = 0 : i64, scratch_operands = 0 : i64, tpu.core_type = #tpu.core_type<tc>, window_params = [{transform_indices = @transform_0, window_bounds = array<i64: 1, 55, 64>}, {pipeline_mode = #tpu.pipeline_mode<synchronous>, transform_indices = @transform_1, window_bounds = array<i64: 3, 64, 64>}, {pipeline_mode = #tpu.pipeline_mode<synchronous>, transform_indices = @transform_2, window_bounds = array<i64: 1, 64>}, {pipeline_mode = #tpu.pipeline_mode<synchronous>, transform_indices = @transform_3, window_bounds = array<i64: 1, 64>}, {pipeline_mode = #tpu.pipeline_mode<synchronous>, transform_indices = @transform_4, window_bounds = array<i64: 1, 64>}, {transform_indices = @transform_5, window_bounds = array<i64: 1, 53, 64>}]} {
    %c0 = arith.constant 0 : index
    %c0_0 = arith.constant 0 : index
    %c0_1 = arith.constant 0 : index
    %0 = vector.load %arg1[%c0, %c0_0, %c0_1] : memref<1x55x64xf32, #tpu.memory_space<vmem>>, vector<1x55x64xf32>
    %1 = vector.shape_cast %0 : vector<1x55x64xf32> to vector<55x64xf32>
    %cst = arith.constant 0.000000e+00 : f32
    %2 = vector.broadcast %cst : f32 to vector<53x64xf32>
    %3 = vector.extract_strided_slice %1 {offsets = [0, 0], sizes = [53, 64], strides = [1, 1]} : vector<55x64xf32> to vector<53x64xf32>
    %c0_2 = arith.constant 0 : index
    %c0_3 = arith.constant 0 : index
    %c0_4 = arith.constant 0 : index
    %4 = vector.load %arg2[%c0_2, %c0_3, %c0_4] : memref<3x64x64xf32, #tpu.memory_space<vmem>>, vector<1x64x64xf32>
    %5 = vector.shape_cast %4 : vector<1x64x64xf32> to vector<64x64xf32>
    %cst_5 = arith.constant dense<0.000000e+00> : vector<53x64xf32>
    %6 = tpu.matmul %3, %5, %cst_5 {dimension_numbers = #tpu.dot_dimension_numbers<[1], [0], [0], [1], [0, 0, 1, 1], [], []>} : vector<53x64xf32>, vector<64x64xf32>, vector<53x64xf32> -> vector<53x64xf32>
    %7 = arith.addf %2, %6 : vector<53x64xf32>
    %8 = vector.extract_strided_slice %1 {offsets = [1, 0], sizes = [53, 64], strides = [1, 1]} : vector<55x64xf32> to vector<53x64xf32>
    %c1 = arith.constant 1 : index
    %c0_6 = arith.constant 0 : index
    %c0_7 = arith.constant 0 : index
    %9 = vector.load %arg2[%c1, %c0_6, %c0_7] : memref<3x64x64xf32, #tpu.memory_space<vmem>>, vector<1x64x64xf32>
    %10 = vector.shape_cast %9 : vector<1x64x64xf32> to vector<64x64xf32>
    %cst_8 = arith.constant dense<0.000000e+00> : vector<53x64xf32>
    %11 = tpu.matmul %8, %10, %cst_8 {dimension_numbers = #tpu.dot_dimension_numbers<[1], [0], [0], [1], [0, 0, 1, 1], [], []>} : vector<53x64xf32>, vector<64x64xf32>, vector<53x64xf32> -> vector<53x64xf32>
    %12 = arith.addf %7, %11 : vector<53x64xf32>
    %13 = vector.extract_strided_slice %1 {offsets = [2, 0], sizes = [53, 64], strides = [1, 1]} : vector<55x64xf32> to vector<53x64xf32>
    %c2 = arith.constant 2 : index
    %c0_9 = arith.constant 0 : index
    %c0_10 = arith.constant 0 : index
    %14 = vector.load %arg2[%c2, %c0_9, %c0_10] : memref<3x64x64xf32, #tpu.memory_space<vmem>>, vector<1x64x64xf32>
    %15 = vector.shape_cast %14 : vector<1x64x64xf32> to vector<64x64xf32>
    %cst_11 = arith.constant dense<0.000000e+00> : vector<53x64xf32>
    %16 = tpu.matmul %13, %15, %cst_11 {dimension_numbers = #tpu.dot_dimension_numbers<[1], [0], [0], [1], [0, 0, 1, 1], [], []>} : vector<53x64xf32>, vector<64x64xf32>, vector<53x64xf32> -> vector<53x64xf32>
    %17 = arith.addf %12, %16 : vector<53x64xf32>
    %c0_12 = arith.constant 0 : index
    %c0_13 = arith.constant 0 : index
    %18 = vector.load %arg3[%c0_12, %c0_13] : memref<1x64xf32, #tpu.memory_space<vmem>>, vector<1x64xf32>
    %19 = vector.broadcast %18 : vector<1x64xf32> to vector<53x64xf32>
    %20 = arith.addf %17, %19 : vector<53x64xf32>
    %c0_14 = arith.constant 0 : index
    %c0_15 = arith.constant 0 : index
    %21 = vector.load %arg4[%c0_14, %c0_15] : memref<1x64xf32, #tpu.memory_space<vmem>>, vector<1x64xf32>
    %22 = vector.broadcast %21 : vector<1x64xf32> to vector<53x64xf32>
    %23 = arith.mulf %20, %22 : vector<53x64xf32>
    %c0_16 = arith.constant 0 : index
    %c0_17 = arith.constant 0 : index
    %24 = vector.load %arg5[%c0_16, %c0_17] : memref<1x64xf32, #tpu.memory_space<vmem>>, vector<1x64xf32>
    %25 = vector.broadcast %24 : vector<1x64xf32> to vector<53x64xf32>
    %26 = arith.addf %23, %25 : vector<53x64xf32>
    %cst_18 = arith.constant 0.000000e+00 : f32
    %27 = vector.broadcast %cst_18 : f32 to vector<53x64xf32>
    %28 = arith.cmpf ogt, %26, %27 : vector<53x64xf32>
    %cst_19 = arith.constant 0.000000e+00 : f32
    %29 = vector.broadcast %cst_19 : f32 to vector<53x64xf32>
    %30 = arith.minimumf %26, %29 : vector<53x64xf32>
    %31 = math.exp %30 : vector<53x64xf32>
    %cst_20 = arith.constant 1.000000e+00 : f32
    %32 = vector.broadcast %cst_20 : f32 to vector<53x64xf32>
    %33 = arith.subf %31, %32 : vector<53x64xf32>
    %34 = arith.select %28, %26, %33 : vector<53x64xi1>, vector<53x64xf32>
    %c0_21 = arith.constant 0 : index
    %c0_22 = arith.constant 0 : index
    %c0_23 = arith.constant 0 : index
    %35 = vector.load %arg6[%c0_21, %c0_22, %c0_23] : memref<1x53x64xf32, #tpu.memory_space<vmem>>, vector<1x53x64xf32>
    %36 = vector.shape_cast %35 : vector<1x53x64xf32> to vector<53x64xf32>
    %37 = vector.shape_cast %34 : vector<53x64xf32> to vector<1x53x64xf32>
    tpu.vector_store %arg6[%c0_21, %c0_22, %c0_23], %37 {strides = array<i32>} : memref<1x53x64xf32, #tpu.memory_space<vmem>>, vector<1x53x64xf32>,
    return
  }
  func.func @transform_0(%arg0: i32) -> (i32, i32, i32) {
    %c0_i32 = arith.constant 0 : i32
    %c0_i32_0 = arith.constant 0 : i32
    %c0_i32_1 = arith.constant 0 : i32
    return %arg0, %c0_i32, %c0_i32_0 : i32, i32, i32
  }
  func.func @transform_1(%arg0: i32) -> (i32, i32, i32) {
    %c0_i32 = arith.constant 0 : i32
    %c0_i32_0 = arith.constant 0 : i32
    %c0_i32_1 = arith.constant 0 : i32
    %c0_i32_2 = arith.constant 0 : i32
    return %c0_i32, %c0_i32_0, %c0_i32_1 : i32, i32, i32
  }
  func.func @transform_2(%arg0: i32) -> (i32, i32) {
    %c0_i32 = arith.constant 0 : i32
    %c0_i32_0 = arith.constant 0 : i32
    %c0_i32_1 = arith.constant 0 : i32
    return %c0_i32, %c0_i32_0 : i32, i32
  }
  func.func @transform_3(%arg0: i32) -> (i32, i32) {
    %c0_i32 = arith.constant 0 : i32
    %c0_i32_0 = arith.constant 0 : i32
    %c0_i32_1 = arith.constant 0 : i32
    return %c0_i32, %c0_i32_0 : i32, i32
  }
  func.func @transform_4(%arg0: i32) -> (i32, i32) {
    %c0_i32 = arith.constant 0 : i32
    %c0_i32_0 = arith.constant 0 : i32
    %c0_i32_1 = arith.constant 0 : i32
    return %c0_i32, %c0_i32_0 : i32, i32
  }
  func.func @transform_5(%arg0: i32) -> (i32, i32, i32) {
    %c0_i32 = arith.constant 0 : i32
    %c0_i32_0 = arith.constant 0 : i32
    %c0_i32_1 = arith.constant 0 : i32
    return %arg0, %c0_i32, %c0_i32_0 : i32, i32, i32
  }
}

module attributes {stable_mosaic.version = 11 : i64} {
  func.func @kernel(%arg0: i32, %arg1: memref<1x50x64xf32, #tpu.memory_space<vmem>>, %arg2: memref<3x64x64xf32, #tpu.memory_space<vmem>>, %arg3: memref<1x64xf32, #tpu.memory_space<vmem>>, %arg4: memref<1x64xf32, #tpu.memory_space<vmem>>, %arg5: memref<1x64xf32, #tpu.memory_space<vmem>>, %arg6: memref<1x48x64xf32, #tpu.memory_space<vmem>>) attributes {dimension_semantics = [#tpu.dimension_semantics<parallel>], iteration_bounds = array<i64: 2>, scalar_prefetch = 0 : i64, scratch_operands = 0 : i64, tpu.core_type = #tpu.core_type<tc>, window_params = [{transform_indices = @transform_0, window_bounds = array<i64: 1, 50, 64>}, {pipeline_mode = #tpu.pipeline_mode<synchronous>, transform_indices = @transform_1, window_bounds = array<i64: 3, 64, 64>}, {pipeline_mode = #tpu.pipeline_mode<synchronous>, transform_indices = @transform_2, window_bounds = array<i64: 1, 64>}, {pipeline_mode = #tpu.pipeline_mode<synchronous>, transform_indices = @transform_3, window_bounds = array<i64: 1, 64>}, {pipeline_mode = #tpu.pipeline_mode<synchronous>, transform_indices = @transform_4, window_bounds = array<i64: 1, 64>}, {transform_indices = @transform_5, window_bounds = array<i64: 1, 48, 64>}]} {
    %c0 = arith.constant 0 : index
    %c0_0 = arith.constant 0 : index
    %c0_1 = arith.constant 0 : index
    %0 = vector.load %arg1[%c0, %c0_0, %c0_1] : memref<1x50x64xf32, #tpu.memory_space<vmem>>, vector<1x50x64xf32>
    %1 = vector.shape_cast %0 : vector<1x50x64xf32> to vector<50x64xf32>
    %cst = arith.constant 0.000000e+00 : f32
    %2 = vector.broadcast %cst : f32 to vector<48x64xf32>
    %3 = vector.extract_strided_slice %1 {offsets = [0, 0], sizes = [48, 64], strides = [1, 1]} : vector<50x64xf32> to vector<48x64xf32>
    %c0_2 = arith.constant 0 : index
    %c0_3 = arith.constant 0 : index
    %c0_4 = arith.constant 0 : index
    %4 = vector.load %arg2[%c0_2, %c0_3, %c0_4] : memref<3x64x64xf32, #tpu.memory_space<vmem>>, vector<1x64x64xf32>
    %5 = vector.shape_cast %4 : vector<1x64x64xf32> to vector<64x64xf32>
    %cst_5 = arith.constant dense<0.000000e+00> : vector<48x64xf32>
    %6 = tpu.matmul %3, %5, %cst_5 {dimension_numbers = #tpu.dot_dimension_numbers<[1], [0], [0], [1], [0, 0, 1, 1], [], []>} : vector<48x64xf32>, vector<64x64xf32>, vector<48x64xf32> -> vector<48x64xf32>
    %7 = arith.addf %2, %6 : vector<48x64xf32>
    %8 = vector.extract_strided_slice %1 {offsets = [1, 0], sizes = [48, 64], strides = [1, 1]} : vector<50x64xf32> to vector<48x64xf32>
    %c1 = arith.constant 1 : index
    %c0_6 = arith.constant 0 : index
    %c0_7 = arith.constant 0 : index
    %9 = vector.load %arg2[%c1, %c0_6, %c0_7] : memref<3x64x64xf32, #tpu.memory_space<vmem>>, vector<1x64x64xf32>
    %10 = vector.shape_cast %9 : vector<1x64x64xf32> to vector<64x64xf32>
    %cst_8 = arith.constant dense<0.000000e+00> : vector<48x64xf32>
    %11 = tpu.matmul %8, %10, %cst_8 {dimension_numbers = #tpu.dot_dimension_numbers<[1], [0], [0], [1], [0, 0, 1, 1], [], []>} : vector<48x64xf32>, vector<64x64xf32>, vector<48x64xf32> -> vector<48x64xf32>
    %12 = arith.addf %7, %11 : vector<48x64xf32>
    %13 = vector.extract_strided_slice %1 {offsets = [2, 0], sizes = [48, 64], strides = [1, 1]} : vector<50x64xf32> to vector<48x64xf32>
    %c2 = arith.constant 2 : index
    %c0_9 = arith.constant 0 : index
    %c0_10 = arith.constant 0 : index
    %14 = vector.load %arg2[%c2, %c0_9, %c0_10] : memref<3x64x64xf32, #tpu.memory_space<vmem>>, vector<1x64x64xf32>
    %15 = vector.shape_cast %14 : vector<1x64x64xf32> to vector<64x64xf32>
    %cst_11 = arith.constant dense<0.000000e+00> : vector<48x64xf32>
    %16 = tpu.matmul %13, %15, %cst_11 {dimension_numbers = #tpu.dot_dimension_numbers<[1], [0], [0], [1], [0, 0, 1, 1], [], []>} : vector<48x64xf32>, vector<64x64xf32>, vector<48x64xf32> -> vector<48x64xf32>
    %17 = arith.addf %12, %16 : vector<48x64xf32>
    %c0_12 = arith.constant 0 : index
    %c0_13 = arith.constant 0 : index
    %18 = vector.load %arg3[%c0_12, %c0_13] : memref<1x64xf32, #tpu.memory_space<vmem>>, vector<1x64xf32>
    %19 = vector.broadcast %18 : vector<1x64xf32> to vector<48x64xf32>
    %20 = arith.addf %17, %19 : vector<48x64xf32>
    %c0_14 = arith.constant 0 : index
    %c0_15 = arith.constant 0 : index
    %21 = vector.load %arg4[%c0_14, %c0_15] : memref<1x64xf32, #tpu.memory_space<vmem>>, vector<1x64xf32>
    %22 = vector.broadcast %21 : vector<1x64xf32> to vector<48x64xf32>
    %23 = arith.mulf %20, %22 : vector<48x64xf32>
    %c0_16 = arith.constant 0 : index
    %c0_17 = arith.constant 0 : index
    %24 = vector.load %arg5[%c0_16, %c0_17] : memref<1x64xf32, #tpu.memory_space<vmem>>, vector<1x64xf32>
    %25 = vector.broadcast %24 : vector<1x64xf32> to vector<48x64xf32>
    %26 = arith.addf %23, %25 : vector<48x64xf32>
    %cst_18 = arith.constant 0.000000e+00 : f32
    %27 = vector.broadcast %cst_18 : f32 to vector<48x64xf32>
    %28 = arith.cmpf ogt, %26, %27 : vector<48x64xf32>
    %cst_19 = arith.constant 0.000000e+00 : f32
    %29 = vector.broadcast %cst_19 : f32 to vector<48x64xf32>
    %30 = arith.minimumf %26, %29 : vector<48x64xf32>
    %31 = math.exp %30 : vector<48x64xf32>
    %cst_20 = arith.constant 1.000000e+00 : f32
    %32 = vector.broadcast %cst_20 : f32 to vector<48x64xf32>
    %33 = arith.subf %31, %32 : vector<48x64xf32>
    %34 = arith.select %28, %26, %33 : vector<48x64xi1>, vector<48x64xf32>
    %c0_21 = arith.constant 0 : index
    %c0_22 = arith.constant 0 : index
    %c0_23 = arith.constant 0 : index
    %35 = vector.load %arg6[%c0_21, %c0_22, %c0_23] : memref<1x48x64xf32, #tpu.memory_space<vmem>>, vector<1x48x64xf32>
    %36 = vector.shape_cast %35 : vector<1x48x64xf32> to vector<48x64xf32>
    %37 = vector.shape_cast %34 : vector<48x64xf32> to vector<1x48x64xf32>
    tpu.vector_store %arg6[%c0_21, %c0_22, %c0_23], %37 {strides = array<i32>} : memref<1x48x64xf32, #tpu.memory_space<vmem>>, vector<1x48x64xf32>,
    return
  }
  func.func @transform_0(%arg0: i32) -> (i32, i32, i32) {
    %c0_i32 = arith.constant 0 : i32
    %c0_i32_0 = arith.constant 0 : i32
    %c0_i32_1 = arith.constant 0 : i32
    return %arg0, %c0_i32, %c0_i32_0 : i32, i32, i32
  }
  func.func @transform_1(%arg0: i32) -> (i32, i32, i32) {
    %c0_i32 = arith.constant 0 : i32
    %c0_i32_0 = arith.constant 0 : i32
    %c0_i32_1 = arith.constant 0 : i32
    %c0_i32_2 = arith.constant 0 : i32
    return %c0_i32, %c0_i32_0, %c0_i32_1 : i32, i32, i32
  }
  func.func @transform_2(%arg0: i32) -> (i32, i32) {
    %c0_i32 = arith.constant 0 : i32
    %c0_i32_0 = arith.constant 0 : i32
    %c0_i32_1 = arith.constant 0 : i32
    return %c0_i32, %c0_i32_0 : i32, i32
  }
  func.func @transform_3(%arg0: i32) -> (i32, i32) {
    %c0_i32 = arith.constant 0 : i32
    %c0_i32_0 = arith.constant 0 : i32
    %c0_i32_1 = arith.constant 0 : i32
    return %c0_i32, %c0_i32_0 : i32, i32
  }
  func.func @transform_4(%arg0: i32) -> (i32, i32) {
    %c0_i32 = arith.constant 0 : i32
    %c0_i32_0 = arith.constant 0 : i32
    %c0_i32_1 = arith.constant 0 : i32
    return %c0_i32, %c0_i32_0 : i32, i32
  }
  func.func @transform_5(%arg0: i32) -> (i32, i32, i32) {
    %c0_i32 = arith.constant 0 : i32
    %c0_i32_0 = arith.constant 0 : i32
    %c0_i32_1 = arith.constant 0 : i32
    return %arg0, %c0_i32, %c0_i32_0 : i32, i32, i32
  }
}

module attributes {stable_mosaic.version = 11 : i64} {
  func.func @kernel(%arg0: i32, %arg1: memref<1x48x64xf32, #tpu.memory_space<vmem>>, %arg2: memref<3x64x64xf32, #tpu.memory_space<vmem>>, %arg3: memref<1x64xf32, #tpu.memory_space<vmem>>, %arg4: memref<1x64xf32, #tpu.memory_space<vmem>>, %arg5: memref<1x64xf32, #tpu.memory_space<vmem>>, %arg6: memref<1x46x64xf32, #tpu.memory_space<vmem>>) attributes {dimension_semantics = [#tpu.dimension_semantics<parallel>], iteration_bounds = array<i64: 2>, scalar_prefetch = 0 : i64, scratch_operands = 0 : i64, tpu.core_type = #tpu.core_type<tc>, window_params = [{transform_indices = @transform_0, window_bounds = array<i64: 1, 48, 64>}, {pipeline_mode = #tpu.pipeline_mode<synchronous>, transform_indices = @transform_1, window_bounds = array<i64: 3, 64, 64>}, {pipeline_mode = #tpu.pipeline_mode<synchronous>, transform_indices = @transform_2, window_bounds = array<i64: 1, 64>}, {pipeline_mode = #tpu.pipeline_mode<synchronous>, transform_indices = @transform_3, window_bounds = array<i64: 1, 64>}, {pipeline_mode = #tpu.pipeline_mode<synchronous>, transform_indices = @transform_4, window_bounds = array<i64: 1, 64>}, {transform_indices = @transform_5, window_bounds = array<i64: 1, 46, 64>}]} {
    %c0 = arith.constant 0 : index
    %c0_0 = arith.constant 0 : index
    %c0_1 = arith.constant 0 : index
    %0 = vector.load %arg1[%c0, %c0_0, %c0_1] : memref<1x48x64xf32, #tpu.memory_space<vmem>>, vector<1x48x64xf32>
    %1 = vector.shape_cast %0 : vector<1x48x64xf32> to vector<48x64xf32>
    %cst = arith.constant 0.000000e+00 : f32
    %2 = vector.broadcast %cst : f32 to vector<46x64xf32>
    %3 = vector.extract_strided_slice %1 {offsets = [0, 0], sizes = [46, 64], strides = [1, 1]} : vector<48x64xf32> to vector<46x64xf32>
    %c0_2 = arith.constant 0 : index
    %c0_3 = arith.constant 0 : index
    %c0_4 = arith.constant 0 : index
    %4 = vector.load %arg2[%c0_2, %c0_3, %c0_4] : memref<3x64x64xf32, #tpu.memory_space<vmem>>, vector<1x64x64xf32>
    %5 = vector.shape_cast %4 : vector<1x64x64xf32> to vector<64x64xf32>
    %cst_5 = arith.constant dense<0.000000e+00> : vector<46x64xf32>
    %6 = tpu.matmul %3, %5, %cst_5 {dimension_numbers = #tpu.dot_dimension_numbers<[1], [0], [0], [1], [0, 0, 1, 1], [], []>} : vector<46x64xf32>, vector<64x64xf32>, vector<46x64xf32> -> vector<46x64xf32>
    %7 = arith.addf %2, %6 : vector<46x64xf32>
    %8 = vector.extract_strided_slice %1 {offsets = [1, 0], sizes = [46, 64], strides = [1, 1]} : vector<48x64xf32> to vector<46x64xf32>
    %c1 = arith.constant 1 : index
    %c0_6 = arith.constant 0 : index
    %c0_7 = arith.constant 0 : index
    %9 = vector.load %arg2[%c1, %c0_6, %c0_7] : memref<3x64x64xf32, #tpu.memory_space<vmem>>, vector<1x64x64xf32>
    %10 = vector.shape_cast %9 : vector<1x64x64xf32> to vector<64x64xf32>
    %cst_8 = arith.constant dense<0.000000e+00> : vector<46x64xf32>
    %11 = tpu.matmul %8, %10, %cst_8 {dimension_numbers = #tpu.dot_dimension_numbers<[1], [0], [0], [1], [0, 0, 1, 1], [], []>} : vector<46x64xf32>, vector<64x64xf32>, vector<46x64xf32> -> vector<46x64xf32>
    %12 = arith.addf %7, %11 : vector<46x64xf32>
    %13 = vector.extract_strided_slice %1 {offsets = [2, 0], sizes = [46, 64], strides = [1, 1]} : vector<48x64xf32> to vector<46x64xf32>
    %c2 = arith.constant 2 : index
    %c0_9 = arith.constant 0 : index
    %c0_10 = arith.constant 0 : index
    %14 = vector.load %arg2[%c2, %c0_9, %c0_10] : memref<3x64x64xf32, #tpu.memory_space<vmem>>, vector<1x64x64xf32>
    %15 = vector.shape_cast %14 : vector<1x64x64xf32> to vector<64x64xf32>
    %cst_11 = arith.constant dense<0.000000e+00> : vector<46x64xf32>
    %16 = tpu.matmul %13, %15, %cst_11 {dimension_numbers = #tpu.dot_dimension_numbers<[1], [0], [0], [1], [0, 0, 1, 1], [], []>} : vector<46x64xf32>, vector<64x64xf32>, vector<46x64xf32> -> vector<46x64xf32>
    %17 = arith.addf %12, %16 : vector<46x64xf32>
    %c0_12 = arith.constant 0 : index
    %c0_13 = arith.constant 0 : index
    %18 = vector.load %arg3[%c0_12, %c0_13] : memref<1x64xf32, #tpu.memory_space<vmem>>, vector<1x64xf32>
    %19 = vector.broadcast %18 : vector<1x64xf32> to vector<46x64xf32>
    %20 = arith.addf %17, %19 : vector<46x64xf32>
    %c0_14 = arith.constant 0 : index
    %c0_15 = arith.constant 0 : index
    %21 = vector.load %arg4[%c0_14, %c0_15] : memref<1x64xf32, #tpu.memory_space<vmem>>, vector<1x64xf32>
    %22 = vector.broadcast %21 : vector<1x64xf32> to vector<46x64xf32>
    %23 = arith.mulf %20, %22 : vector<46x64xf32>
    %c0_16 = arith.constant 0 : index
    %c0_17 = arith.constant 0 : index
    %24 = vector.load %arg5[%c0_16, %c0_17] : memref<1x64xf32, #tpu.memory_space<vmem>>, vector<1x64xf32>
    %25 = vector.broadcast %24 : vector<1x64xf32> to vector<46x64xf32>
    %26 = arith.addf %23, %25 : vector<46x64xf32>
    %cst_18 = arith.constant 0.000000e+00 : f32
    %27 = vector.broadcast %cst_18 : f32 to vector<46x64xf32>
    %28 = arith.cmpf ogt, %26, %27 : vector<46x64xf32>
    %cst_19 = arith.constant 0.000000e+00 : f32
    %29 = vector.broadcast %cst_19 : f32 to vector<46x64xf32>
    %30 = arith.minimumf %26, %29 : vector<46x64xf32>
    %31 = math.exp %30 : vector<46x64xf32>
    %cst_20 = arith.constant 1.000000e+00 : f32
    %32 = vector.broadcast %cst_20 : f32 to vector<46x64xf32>
    %33 = arith.subf %31, %32 : vector<46x64xf32>
    %34 = arith.select %28, %26, %33 : vector<46x64xi1>, vector<46x64xf32>
    %c0_21 = arith.constant 0 : index
    %c0_22 = arith.constant 0 : index
    %c0_23 = arith.constant 0 : index
    %35 = vector.load %arg6[%c0_21, %c0_22, %c0_23] : memref<1x46x64xf32, #tpu.memory_space<vmem>>, vector<1x46x64xf32>
    %36 = vector.shape_cast %35 : vector<1x46x64xf32> to vector<46x64xf32>
    %37 = vector.shape_cast %34 : vector<46x64xf32> to vector<1x46x64xf32>
    tpu.vector_store %arg6[%c0_21, %c0_22, %c0_23], %37 {strides = array<i32>} : memref<1x46x64xf32, #tpu.memory_space<vmem>>, vector<1x46x64xf32>,
    return
  }
  func.func @transform_0(%arg0: i32) -> (i32, i32, i32) {
    %c0_i32 = arith.constant 0 : i32
    %c0_i32_0 = arith.constant 0 : i32
    %c0_i32_1 = arith.constant 0 : i32
    return %arg0, %c0_i32, %c0_i32_0 : i32, i32, i32
  }
  func.func @transform_1(%arg0: i32) -> (i32, i32, i32) {
    %c0_i32 = arith.constant 0 : i32
    %c0_i32_0 = arith.constant 0 : i32
    %c0_i32_1 = arith.constant 0 : i32
    %c0_i32_2 = arith.constant 0 : i32
    return %c0_i32, %c0_i32_0, %c0_i32_1 : i32, i32, i32
  }
  func.func @transform_2(%arg0: i32) -> (i32, i32) {
    %c0_i32 = arith.constant 0 : i32
    %c0_i32_0 = arith.constant 0 : i32
    %c0_i32_1 = arith.constant 0 : i32
    return %c0_i32, %c0_i32_0 : i32, i32
  }
  func.func @transform_3(%arg0: i32) -> (i32, i32) {
    %c0_i32 = arith.constant 0 : i32
    %c0_i32_0 = arith.constant 0 : i32
    %c0_i32_1 = arith.constant 0 : i32
    return %c0_i32, %c0_i32_0 : i32, i32
  }
  func.func @transform_4(%arg0: i32) -> (i32, i32) {
    %c0_i32 = arith.constant 0 : i32
    %c0_i32_0 = arith.constant 0 : i32
    %c0_i32_1 = arith.constant 0 : i32
    return %c0_i32, %c0_i32_0 : i32, i32
  }
  func.func @transform_5(%arg0: i32) -> (i32, i32, i32) {
    %c0_i32 = arith.constant 0 : i32
    %c0_i32_0 = arith.constant 0 : i32
    %c0_i32_1 = arith.constant 0 : i32
    return %arg0, %c0_i32, %c0_i32_0 : i32, i32, i32
  }
}

module attributes {stable_mosaic.version = 11 : i64} {
  func.func @kernel(%arg0: i32, %arg1: memref<1x53x64xf32, #tpu.memory_space<vmem>>, %arg2: memref<3x64x64xf32, #tpu.memory_space<vmem>>, %arg3: memref<1x64xf32, #tpu.memory_space<vmem>>, %arg4: memref<1x64xf32, #tpu.memory_space<vmem>>, %arg5: memref<1x64xf32, #tpu.memory_space<vmem>>, %arg6: memref<1x50x64xf32, #tpu.memory_space<vmem>>) attributes {dimension_semantics = [#tpu.dimension_semantics<parallel>], iteration_bounds = array<i64: 2>, scalar_prefetch = 0 : i64, scratch_operands = 0 : i64, tpu.core_type = #tpu.core_type<tc>, window_params = [{transform_indices = @transform_0, window_bounds = array<i64: 1, 53, 64>}, {pipeline_mode = #tpu.pipeline_mode<synchronous>, transform_indices = @transform_1, window_bounds = array<i64: 3, 64, 64>}, {pipeline_mode = #tpu.pipeline_mode<synchronous>, transform_indices = @transform_2, window_bounds = array<i64: 1, 64>}, {pipeline_mode = #tpu.pipeline_mode<synchronous>, transform_indices = @transform_3, window_bounds = array<i64: 1, 64>}, {pipeline_mode = #tpu.pipeline_mode<synchronous>, transform_indices = @transform_4, window_bounds = array<i64: 1, 64>}, {transform_indices = @transform_5, window_bounds = array<i64: 1, 50, 64>}]} {
    %c0 = arith.constant 0 : index
    %c0_0 = arith.constant 0 : index
    %c0_1 = arith.constant 0 : index
    %0 = vector.load %arg1[%c0, %c0_0, %c0_1] : memref<1x53x64xf32, #tpu.memory_space<vmem>>, vector<1x53x64xf32>
    %1 = vector.shape_cast %0 : vector<1x53x64xf32> to vector<53x64xf32>
    %cst = arith.constant 0.000000e+00 : f32
    %2 = vector.broadcast %cst : f32 to vector<51x64xf32>
    %3 = vector.extract_strided_slice %1 {offsets = [0, 0], sizes = [51, 64], strides = [1, 1]} : vector<53x64xf32> to vector<51x64xf32>
    %c0_2 = arith.constant 0 : index
    %c0_3 = arith.constant 0 : index
    %c0_4 = arith.constant 0 : index
    %4 = vector.load %arg2[%c0_2, %c0_3, %c0_4] : memref<3x64x64xf32, #tpu.memory_space<vmem>>, vector<1x64x64xf32>
    %5 = vector.shape_cast %4 : vector<1x64x64xf32> to vector<64x64xf32>
    %cst_5 = arith.constant dense<0.000000e+00> : vector<51x64xf32>
    %6 = tpu.matmul %3, %5, %cst_5 {dimension_numbers = #tpu.dot_dimension_numbers<[1], [0], [0], [1], [0, 0, 1, 1], [], []>} : vector<51x64xf32>, vector<64x64xf32>, vector<51x64xf32> -> vector<51x64xf32>
    %7 = arith.addf %2, %6 : vector<51x64xf32>
    %8 = vector.extract_strided_slice %1 {offsets = [1, 0], sizes = [51, 64], strides = [1, 1]} : vector<53x64xf32> to vector<51x64xf32>
    %c1 = arith.constant 1 : index
    %c0_6 = arith.constant 0 : index
    %c0_7 = arith.constant 0 : index
    %9 = vector.load %arg2[%c1, %c0_6, %c0_7] : memref<3x64x64xf32, #tpu.memory_space<vmem>>, vector<1x64x64xf32>
    %10 = vector.shape_cast %9 : vector<1x64x64xf32> to vector<64x64xf32>
    %cst_8 = arith.constant dense<0.000000e+00> : vector<51x64xf32>
    %11 = tpu.matmul %8, %10, %cst_8 {dimension_numbers = #tpu.dot_dimension_numbers<[1], [0], [0], [1], [0, 0, 1, 1], [], []>} : vector<51x64xf32>, vector<64x64xf32>, vector<51x64xf32> -> vector<51x64xf32>
    %12 = arith.addf %7, %11 : vector<51x64xf32>
    %13 = vector.extract_strided_slice %1 {offsets = [2, 0], sizes = [51, 64], strides = [1, 1]} : vector<53x64xf32> to vector<51x64xf32>
    %c2 = arith.constant 2 : index
    %c0_9 = arith.constant 0 : index
    %c0_10 = arith.constant 0 : index
    %14 = vector.load %arg2[%c2, %c0_9, %c0_10] : memref<3x64x64xf32, #tpu.memory_space<vmem>>, vector<1x64x64xf32>
    %15 = vector.shape_cast %14 : vector<1x64x64xf32> to vector<64x64xf32>
    %cst_11 = arith.constant dense<0.000000e+00> : vector<51x64xf32>
    %16 = tpu.matmul %13, %15, %cst_11 {dimension_numbers = #tpu.dot_dimension_numbers<[1], [0], [0], [1], [0, 0, 1, 1], [], []>} : vector<51x64xf32>, vector<64x64xf32>, vector<51x64xf32> -> vector<51x64xf32>
    %17 = arith.addf %12, %16 : vector<51x64xf32>
    %c0_12 = arith.constant 0 : index
    %c0_13 = arith.constant 0 : index
    %18 = vector.load %arg3[%c0_12, %c0_13] : memref<1x64xf32, #tpu.memory_space<vmem>>, vector<1x64xf32>
    %19 = vector.broadcast %18 : vector<1x64xf32> to vector<51x64xf32>
    %20 = arith.addf %17, %19 : vector<51x64xf32>
    %21 = vector.extract_strided_slice %20 {offsets = [0, 0], sizes = [50, 64], strides = [1, 1]} : vector<51x64xf32> to vector<50x64xf32>
    %22 = vector.extract_strided_slice %20 {offsets = [1, 0], sizes = [50, 64], strides = [1, 1]} : vector<51x64xf32> to vector<50x64xf32>
    %23 = arith.maximumf %21, %22 : vector<50x64xf32>
    %c0_14 = arith.constant 0 : index
    %c0_15 = arith.constant 0 : index
    %24 = vector.load %arg4[%c0_14, %c0_15] : memref<1x64xf32, #tpu.memory_space<vmem>>, vector<1x64xf32>
    %25 = vector.broadcast %24 : vector<1x64xf32> to vector<50x64xf32>
    %26 = arith.mulf %23, %25 : vector<50x64xf32>
    %c0_16 = arith.constant 0 : index
    %c0_17 = arith.constant 0 : index
    %27 = vector.load %arg5[%c0_16, %c0_17] : memref<1x64xf32, #tpu.memory_space<vmem>>, vector<1x64xf32>
    %28 = vector.broadcast %27 : vector<1x64xf32> to vector<50x64xf32>
    %29 = arith.addf %26, %28 : vector<50x64xf32>
    %cst_18 = arith.constant 0.000000e+00 : f32
    %30 = vector.broadcast %cst_18 : f32 to vector<50x64xf32>
    %31 = arith.cmpf ogt, %29, %30 : vector<50x64xf32>
    %cst_19 = arith.constant 0.000000e+00 : f32
    %32 = vector.broadcast %cst_19 : f32 to vector<50x64xf32>
    %33 = arith.minimumf %29, %32 : vector<50x64xf32>
    %34 = math.exp %33 : vector<50x64xf32>
    %cst_20 = arith.constant 1.000000e+00 : f32
    %35 = vector.broadcast %cst_20 : f32 to vector<50x64xf32>
    %36 = arith.subf %34, %35 : vector<50x64xf32>
    %37 = arith.select %31, %29, %36 : vector<50x64xi1>, vector<50x64xf32>
    %c0_21 = arith.constant 0 : index
    %c0_22 = arith.constant 0 : index
    %c0_23 = arith.constant 0 : index
    %38 = vector.load %arg6[%c0_21, %c0_22, %c0_23] : memref<1x50x64xf32, #tpu.memory_space<vmem>>, vector<1x50x64xf32>
    %39 = vector.shape_cast %38 : vector<1x50x64xf32> to vector<50x64xf32>
    %40 = vector.shape_cast %37 : vector<50x64xf32> to vector<1x50x64xf32>
    tpu.vector_store %arg6[%c0_21, %c0_22, %c0_23], %40 {strides = array<i32>} : memref<1x50x64xf32, #tpu.memory_space<vmem>>, vector<1x50x64xf32>,
    return
  }
  func.func @transform_0(%arg0: i32) -> (i32, i32, i32) {
    %c0_i32 = arith.constant 0 : i32
    %c0_i32_0 = arith.constant 0 : i32
    %c0_i32_1 = arith.constant 0 : i32
    return %arg0, %c0_i32, %c0_i32_0 : i32, i32, i32
  }
  func.func @transform_1(%arg0: i32) -> (i32, i32, i32) {
    %c0_i32 = arith.constant 0 : i32
    %c0_i32_0 = arith.constant 0 : i32
    %c0_i32_1 = arith.constant 0 : i32
    %c0_i32_2 = arith.constant 0 : i32
    return %c0_i32, %c0_i32_0, %c0_i32_1 : i32, i32, i32
  }
  func.func @transform_2(%arg0: i32) -> (i32, i32) {
    %c0_i32 = arith.constant 0 : i32
    %c0_i32_0 = arith.constant 0 : i32
    %c0_i32_1 = arith.constant 0 : i32
    return %c0_i32, %c0_i32_0 : i32, i32
  }
  func.func @transform_3(%arg0: i32) -> (i32, i32) {
    %c0_i32 = arith.constant 0 : i32
    %c0_i32_0 = arith.constant 0 : i32
    %c0_i32_1 = arith.constant 0 : i32
    return %c0_i32, %c0_i32_0 : i32, i32
  }
  func.func @transform_4(%arg0: i32) -> (i32, i32) {
    %c0_i32 = arith.constant 0 : i32
    %c0_i32_0 = arith.constant 0 : i32
    %c0_i32_1 = arith.constant 0 : i32
    return %c0_i32, %c0_i32_0 : i32, i32
  }
  func.func @transform_5(%arg0: i32) -> (i32, i32, i32) {
    %c0_i32 = arith.constant 0 : i32
    %c0_i32_0 = arith.constant 0 : i32
    %c0_i32_1 = arith.constant 0 : i32
    return %arg0, %c0_i32, %c0_i32_0 : i32, i32, i32
  }
}

module attributes {stable_mosaic.version = 11 : i64} {
  func.func @kernel(%arg0: i32, %arg1: memref<1x46x64xf32, #tpu.memory_space<vmem>>, %arg2: memref<3x64x64xf32, #tpu.memory_space<vmem>>, %arg3: memref<1x64xf32, #tpu.memory_space<vmem>>, %arg4: memref<1x64xf32, #tpu.memory_space<vmem>>, %arg5: memref<1x64xf32, #tpu.memory_space<vmem>>, %arg6: memref<1x43x64xf32, #tpu.memory_space<vmem>>) attributes {dimension_semantics = [#tpu.dimension_semantics<parallel>], iteration_bounds = array<i64: 2>, scalar_prefetch = 0 : i64, scratch_operands = 0 : i64, tpu.core_type = #tpu.core_type<tc>, window_params = [{transform_indices = @transform_0, window_bounds = array<i64: 1, 46, 64>}, {pipeline_mode = #tpu.pipeline_mode<synchronous>, transform_indices = @transform_1, window_bounds = array<i64: 3, 64, 64>}, {pipeline_mode = #tpu.pipeline_mode<synchronous>, transform_indices = @transform_2, window_bounds = array<i64: 1, 64>}, {pipeline_mode = #tpu.pipeline_mode<synchronous>, transform_indices = @transform_3, window_bounds = array<i64: 1, 64>}, {pipeline_mode = #tpu.pipeline_mode<synchronous>, transform_indices = @transform_4, window_bounds = array<i64: 1, 64>}, {transform_indices = @transform_5, window_bounds = array<i64: 1, 43, 64>}]} {
    %c0 = arith.constant 0 : index
    %c0_0 = arith.constant 0 : index
    %c0_1 = arith.constant 0 : index
    %0 = vector.load %arg1[%c0, %c0_0, %c0_1] : memref<1x46x64xf32, #tpu.memory_space<vmem>>, vector<1x46x64xf32>
    %1 = vector.shape_cast %0 : vector<1x46x64xf32> to vector<46x64xf32>
    %cst = arith.constant 0.000000e+00 : f32
    %2 = vector.broadcast %cst : f32 to vector<44x64xf32>
    %3 = vector.extract_strided_slice %1 {offsets = [0, 0], sizes = [44, 64], strides = [1, 1]} : vector<46x64xf32> to vector<44x64xf32>
    %c0_2 = arith.constant 0 : index
    %c0_3 = arith.constant 0 : index
    %c0_4 = arith.constant 0 : index
    %4 = vector.load %arg2[%c0_2, %c0_3, %c0_4] : memref<3x64x64xf32, #tpu.memory_space<vmem>>, vector<1x64x64xf32>
    %5 = vector.shape_cast %4 : vector<1x64x64xf32> to vector<64x64xf32>
    %cst_5 = arith.constant dense<0.000000e+00> : vector<44x64xf32>
    %6 = tpu.matmul %3, %5, %cst_5 {dimension_numbers = #tpu.dot_dimension_numbers<[1], [0], [0], [1], [0, 0, 1, 1], [], []>} : vector<44x64xf32>, vector<64x64xf32>, vector<44x64xf32> -> vector<44x64xf32>
    %7 = arith.addf %2, %6 : vector<44x64xf32>
    %8 = vector.extract_strided_slice %1 {offsets = [1, 0], sizes = [44, 64], strides = [1, 1]} : vector<46x64xf32> to vector<44x64xf32>
    %c1 = arith.constant 1 : index
    %c0_6 = arith.constant 0 : index
    %c0_7 = arith.constant 0 : index
    %9 = vector.load %arg2[%c1, %c0_6, %c0_7] : memref<3x64x64xf32, #tpu.memory_space<vmem>>, vector<1x64x64xf32>
    %10 = vector.shape_cast %9 : vector<1x64x64xf32> to vector<64x64xf32>
    %cst_8 = arith.constant dense<0.000000e+00> : vector<44x64xf32>
    %11 = tpu.matmul %8, %10, %cst_8 {dimension_numbers = #tpu.dot_dimension_numbers<[1], [0], [0], [1], [0, 0, 1, 1], [], []>} : vector<44x64xf32>, vector<64x64xf32>, vector<44x64xf32> -> vector<44x64xf32>
    %12 = arith.addf %7, %11 : vector<44x64xf32>
    %13 = vector.extract_strided_slice %1 {offsets = [2, 0], sizes = [44, 64], strides = [1, 1]} : vector<46x64xf32> to vector<44x64xf32>
    %c2 = arith.constant 2 : index
    %c0_9 = arith.constant 0 : index
    %c0_10 = arith.constant 0 : index
    %14 = vector.load %arg2[%c2, %c0_9, %c0_10] : memref<3x64x64xf32, #tpu.memory_space<vmem>>, vector<1x64x64xf32>
    %15 = vector.shape_cast %14 : vector<1x64x64xf32> to vector<64x64xf32>
    %cst_11 = arith.constant dense<0.000000e+00> : vector<44x64xf32>
    %16 = tpu.matmul %13, %15, %cst_11 {dimension_numbers = #tpu.dot_dimension_numbers<[1], [0], [0], [1], [0, 0, 1, 1], [], []>} : vector<44x64xf32>, vector<64x64xf32>, vector<44x64xf32> -> vector<44x64xf32>
    %17 = arith.addf %12, %16 : vector<44x64xf32>
    %c0_12 = arith.constant 0 : index
    %c0_13 = arith.constant 0 : index
    %18 = vector.load %arg3[%c0_12, %c0_13] : memref<1x64xf32, #tpu.memory_space<vmem>>, vector<1x64xf32>
    %19 = vector.broadcast %18 : vector<1x64xf32> to vector<44x64xf32>
    %20 = arith.addf %17, %19 : vector<44x64xf32>
    %21 = vector.extract_strided_slice %20 {offsets = [0, 0], sizes = [43, 64], strides = [1, 1]} : vector<44x64xf32> to vector<43x64xf32>
    %22 = vector.extract_strided_slice %20 {offsets = [1, 0], sizes = [43, 64], strides = [1, 1]} : vector<44x64xf32> to vector<43x64xf32>
    %23 = arith.maximumf %21, %22 : vector<43x64xf32>
    %c0_14 = arith.constant 0 : index
    %c0_15 = arith.constant 0 : index
    %24 = vector.load %arg4[%c0_14, %c0_15] : memref<1x64xf32, #tpu.memory_space<vmem>>, vector<1x64xf32>
    %25 = vector.broadcast %24 : vector<1x64xf32> to vector<43x64xf32>
    %26 = arith.mulf %23, %25 : vector<43x64xf32>
    %c0_16 = arith.constant 0 : index
    %c0_17 = arith.constant 0 : index
    %27 = vector.load %arg5[%c0_16, %c0_17] : memref<1x64xf32, #tpu.memory_space<vmem>>, vector<1x64xf32>
    %28 = vector.broadcast %27 : vector<1x64xf32> to vector<43x64xf32>
    %29 = arith.addf %26, %28 : vector<43x64xf32>
    %cst_18 = arith.constant 0.000000e+00 : f32
    %30 = vector.broadcast %cst_18 : f32 to vector<43x64xf32>
    %31 = arith.cmpf ogt, %29, %30 : vector<43x64xf32>
    %cst_19 = arith.constant 0.000000e+00 : f32
    %32 = vector.broadcast %cst_19 : f32 to vector<43x64xf32>
    %33 = arith.minimumf %29, %32 : vector<43x64xf32>
    %34 = math.exp %33 : vector<43x64xf32>
    %cst_20 = arith.constant 1.000000e+00 : f32
    %35 = vector.broadcast %cst_20 : f32 to vector<43x64xf32>
    %36 = arith.subf %34, %35 : vector<43x64xf32>
    %37 = arith.select %31, %29, %36 : vector<43x64xi1>, vector<43x64xf32>
    %c0_21 = arith.constant 0 : index
    %c0_22 = arith.constant 0 : index
    %c0_23 = arith.constant 0 : index
    %38 = vector.load %arg6[%c0_21, %c0_22, %c0_23] : memref<1x43x64xf32, #tpu.memory_space<vmem>>, vector<1x43x64xf32>
    %39 = vector.shape_cast %38 : vector<1x43x64xf32> to vector<43x64xf32>
    %40 = vector.shape_cast %37 : vector<43x64xf32> to vector<1x43x64xf32>
    tpu.vector_store %arg6[%c0_21, %c0_22, %c0_23], %40 {strides = array<i32>} : memref<1x43x64xf32, #tpu.memory_space<vmem>>, vector<1x43x64xf32>,
    return
  }
  func.func @transform_0(%arg0: i32) -> (i32, i32, i32) {
    %c0_i32 = arith.constant 0 : i32
    %c0_i32_0 = arith.constant 0 : i32
    %c0_i32_1 = arith.constant 0 : i32
    return %arg0, %c0_i32, %c0_i32_0 : i32, i32, i32
  }
  func.func @transform_1(%arg0: i32) -> (i32, i32, i32) {
    %c0_i32 = arith.constant 0 : i32
    %c0_i32_0 = arith.constant 0 : i32
    %c0_i32_1 = arith.constant 0 : i32
    %c0_i32_2 = arith.constant 0 : i32
    return %c0_i32, %c0_i32_0, %c0_i32_1 : i32, i32, i32
  }
  func.func @transform_2(%arg0: i32) -> (i32, i32) {
    %c0_i32 = arith.constant 0 : i32
    %c0_i32_0 = arith.constant 0 : i32
    %c0_i32_1 = arith.constant 0 : i32
    return %c0_i32, %c0_i32_0 : i32, i32
  }
  func.func @transform_3(%arg0: i32) -> (i32, i32) {
    %c0_i32 = arith.constant 0 : i32
    %c0_i32_0 = arith.constant 0 : i32
    %c0_i32_1 = arith.constant 0 : i32
    return %c0_i32, %c0_i32_0 : i32, i32
  }
  func.func @transform_4(%arg0: i32) -> (i32, i32) {
    %c0_i32 = arith.constant 0 : i32
    %c0_i32_0 = arith.constant 0 : i32
    %c0_i32_1 = arith.constant 0 : i32
    return %c0_i32, %c0_i32_0 : i32, i32
  }
  func.func @transform_5(%arg0: i32) -> (i32, i32, i32) {
    %c0_i32 = arith.constant 0 : i32
    %c0_i32_0 = arith.constant 0 : i32
    %c0_i32_1 = arith.constant 0 : i32
    return %arg0, %c0_i32, %c0_i32_0 : i32, i32, i32
  }
}

module attributes {stable_mosaic.version = 11 : i64} {
  func.func @kernel(%arg0: i32, %arg1: memref<1x43x64xf32, #tpu.memory_space<vmem>>, %arg2: memref<3x64x64xf32, #tpu.memory_space<vmem>>, %arg3: memref<1x64xf32, #tpu.memory_space<vmem>>, %arg4: memref<1x64xf32, #tpu.memory_space<vmem>>, %arg5: memref<1x64xf32, #tpu.memory_space<vmem>>, %arg6: memref<1x41x64xf32, #tpu.memory_space<vmem>>) attributes {dimension_semantics = [#tpu.dimension_semantics<parallel>], iteration_bounds = array<i64: 2>, scalar_prefetch = 0 : i64, scratch_operands = 0 : i64, tpu.core_type = #tpu.core_type<tc>, window_params = [{transform_indices = @transform_0, window_bounds = array<i64: 1, 43, 64>}, {pipeline_mode = #tpu.pipeline_mode<synchronous>, transform_indices = @transform_1, window_bounds = array<i64: 3, 64, 64>}, {pipeline_mode = #tpu.pipeline_mode<synchronous>, transform_indices = @transform_2, window_bounds = array<i64: 1, 64>}, {pipeline_mode = #tpu.pipeline_mode<synchronous>, transform_indices = @transform_3, window_bounds = array<i64: 1, 64>}, {pipeline_mode = #tpu.pipeline_mode<synchronous>, transform_indices = @transform_4, window_bounds = array<i64: 1, 64>}, {transform_indices = @transform_5, window_bounds = array<i64: 1, 41, 64>}]} {
    %c0 = arith.constant 0 : index
    %c0_0 = arith.constant 0 : index
    %c0_1 = arith.constant 0 : index
    %0 = vector.load %arg1[%c0, %c0_0, %c0_1] : memref<1x43x64xf32, #tpu.memory_space<vmem>>, vector<1x43x64xf32>
    %1 = vector.shape_cast %0 : vector<1x43x64xf32> to vector<43x64xf32>
    %cst = arith.constant 0.000000e+00 : f32
    %2 = vector.broadcast %cst : f32 to vector<41x64xf32>
    %3 = vector.extract_strided_slice %1 {offsets = [0, 0], sizes = [41, 64], strides = [1, 1]} : vector<43x64xf32> to vector<41x64xf32>
    %c0_2 = arith.constant 0 : index
    %c0_3 = arith.constant 0 : index
    %c0_4 = arith.constant 0 : index
    %4 = vector.load %arg2[%c0_2, %c0_3, %c0_4] : memref<3x64x64xf32, #tpu.memory_space<vmem>>, vector<1x64x64xf32>
    %5 = vector.shape_cast %4 : vector<1x64x64xf32> to vector<64x64xf32>
    %cst_5 = arith.constant dense<0.000000e+00> : vector<41x64xf32>
    %6 = tpu.matmul %3, %5, %cst_5 {dimension_numbers = #tpu.dot_dimension_numbers<[1], [0], [0], [1], [0, 0, 1, 1], [], []>} : vector<41x64xf32>, vector<64x64xf32>, vector<41x64xf32> -> vector<41x64xf32>
    %7 = arith.addf %2, %6 : vector<41x64xf32>
    %8 = vector.extract_strided_slice %1 {offsets = [1, 0], sizes = [41, 64], strides = [1, 1]} : vector<43x64xf32> to vector<41x64xf32>
    %c1 = arith.constant 1 : index
    %c0_6 = arith.constant 0 : index
    %c0_7 = arith.constant 0 : index
    %9 = vector.load %arg2[%c1, %c0_6, %c0_7] : memref<3x64x64xf32, #tpu.memory_space<vmem>>, vector<1x64x64xf32>
    %10 = vector.shape_cast %9 : vector<1x64x64xf32> to vector<64x64xf32>
    %cst_8 = arith.constant dense<0.000000e+00> : vector<41x64xf32>
    %11 = tpu.matmul %8, %10, %cst_8 {dimension_numbers = #tpu.dot_dimension_numbers<[1], [0], [0], [1], [0, 0, 1, 1], [], []>} : vector<41x64xf32>, vector<64x64xf32>, vector<41x64xf32> -> vector<41x64xf32>
    %12 = arith.addf %7, %11 : vector<41x64xf32>
    %13 = vector.extract_strided_slice %1 {offsets = [2, 0], sizes = [41, 64], strides = [1, 1]} : vector<43x64xf32> to vector<41x64xf32>
    %c2 = arith.constant 2 : index
    %c0_9 = arith.constant 0 : index
    %c0_10 = arith.constant 0 : index
    %14 = vector.load %arg2[%c2, %c0_9, %c0_10] : memref<3x64x64xf32, #tpu.memory_space<vmem>>, vector<1x64x64xf32>
    %15 = vector.shape_cast %14 : vector<1x64x64xf32> to vector<64x64xf32>
    %cst_11 = arith.constant dense<0.000000e+00> : vector<41x64xf32>
    %16 = tpu.matmul %13, %15, %cst_11 {dimension_numbers = #tpu.dot_dimension_numbers<[1], [0], [0], [1], [0, 0, 1, 1], [], []>} : vector<41x64xf32>, vector<64x64xf32>, vector<41x64xf32> -> vector<41x64xf32>
    %17 = arith.addf %12, %16 : vector<41x64xf32>
    %c0_12 = arith.constant 0 : index
    %c0_13 = arith.constant 0 : index
    %18 = vector.load %arg3[%c0_12, %c0_13] : memref<1x64xf32, #tpu.memory_space<vmem>>, vector<1x64xf32>
    %19 = vector.broadcast %18 : vector<1x64xf32> to vector<41x64xf32>
    %20 = arith.addf %17, %19 : vector<41x64xf32>
    %c0_14 = arith.constant 0 : index
    %c0_15 = arith.constant 0 : index
    %21 = vector.load %arg4[%c0_14, %c0_15] : memref<1x64xf32, #tpu.memory_space<vmem>>, vector<1x64xf32>
    %22 = vector.broadcast %21 : vector<1x64xf32> to vector<41x64xf32>
    %23 = arith.mulf %20, %22 : vector<41x64xf32>
    %c0_16 = arith.constant 0 : index
    %c0_17 = arith.constant 0 : index
    %24 = vector.load %arg5[%c0_16, %c0_17] : memref<1x64xf32, #tpu.memory_space<vmem>>, vector<1x64xf32>
    %25 = vector.broadcast %24 : vector<1x64xf32> to vector<41x64xf32>
    %26 = arith.addf %23, %25 : vector<41x64xf32>
    %cst_18 = arith.constant 0.000000e+00 : f32
    %27 = vector.broadcast %cst_18 : f32 to vector<41x64xf32>
    %28 = arith.cmpf ogt, %26, %27 : vector<41x64xf32>
    %cst_19 = arith.constant 0.000000e+00 : f32
    %29 = vector.broadcast %cst_19 : f32 to vector<41x64xf32>
    %30 = arith.minimumf %26, %29 : vector<41x64xf32>
    %31 = math.exp %30 : vector<41x64xf32>
    %cst_20 = arith.constant 1.000000e+00 : f32
    %32 = vector.broadcast %cst_20 : f32 to vector<41x64xf32>
    %33 = arith.subf %31, %32 : vector<41x64xf32>
    %34 = arith.select %28, %26, %33 : vector<41x64xi1>, vector<41x64xf32>
    %c0_21 = arith.constant 0 : index
    %c0_22 = arith.constant 0 : index
    %c0_23 = arith.constant 0 : index
    %35 = vector.load %arg6[%c0_21, %c0_22, %c0_23] : memref<1x41x64xf32, #tpu.memory_space<vmem>>, vector<1x41x64xf32>
    %36 = vector.shape_cast %35 : vector<1x41x64xf32> to vector<41x64xf32>
    %37 = vector.shape_cast %34 : vector<41x64xf32> to vector<1x41x64xf32>
    tpu.vector_store %arg6[%c0_21, %c0_22, %c0_23], %37 {strides = array<i32>} : memref<1x41x64xf32, #tpu.memory_space<vmem>>, vector<1x41x64xf32>,
    return
  }
  func.func @transform_0(%arg0: i32) -> (i32, i32, i32) {
    %c0_i32 = arith.constant 0 : i32
    %c0_i32_0 = arith.constant 0 : i32
    %c0_i32_1 = arith.constant 0 : i32
    return %arg0, %c0_i32, %c0_i32_0 : i32, i32, i32
  }
  func.func @transform_1(%arg0: i32) -> (i32, i32, i32) {
    %c0_i32 = arith.constant 0 : i32
    %c0_i32_0 = arith.constant 0 : i32
    %c0_i32_1 = arith.constant 0 : i32
    %c0_i32_2 = arith.constant 0 : i32
    return %c0_i32, %c0_i32_0, %c0_i32_1 : i32, i32, i32
  }
  func.func @transform_2(%arg0: i32) -> (i32, i32) {
    %c0_i32 = arith.constant 0 : i32
    %c0_i32_0 = arith.constant 0 : i32
    %c0_i32_1 = arith.constant 0 : i32
    return %c0_i32, %c0_i32_0 : i32, i32
  }
  func.func @transform_3(%arg0: i32) -> (i32, i32) {
    %c0_i32 = arith.constant 0 : i32
    %c0_i32_0 = arith.constant 0 : i32
    %c0_i32_1 = arith.constant 0 : i32
    return %c0_i32, %c0_i32_0 : i32, i32
  }
  func.func @transform_4(%arg0: i32) -> (i32, i32) {
    %c0_i32 = arith.constant 0 : i32
    %c0_i32_0 = arith.constant 0 : i32
    %c0_i32_1 = arith.constant 0 : i32
    return %c0_i32, %c0_i32_0 : i32, i32
  }
  func.func @transform_5(%arg0: i32) -> (i32, i32, i32) {
    %c0_i32 = arith.constant 0 : i32
    %c0_i32_0 = arith.constant 0 : i32
    %c0_i32_1 = arith.constant 0 : i32
    return %arg0, %c0_i32, %c0_i32_0 : i32, i32, i32
  }
}

module attributes {stable_mosaic.version = 11 : i64} {
  func.func @kernel(%arg0: i32, %arg1: memref<1x41x64xf32, #tpu.memory_space<vmem>>, %arg2: memref<3x64x64xf32, #tpu.memory_space<vmem>>, %arg3: memref<1x64xf32, #tpu.memory_space<vmem>>, %arg4: memref<1x64xf32, #tpu.memory_space<vmem>>, %arg5: memref<1x64xf32, #tpu.memory_space<vmem>>, %arg6: memref<1x39x64xf32, #tpu.memory_space<vmem>>) attributes {dimension_semantics = [#tpu.dimension_semantics<parallel>], iteration_bounds = array<i64: 2>, scalar_prefetch = 0 : i64, scratch_operands = 0 : i64, tpu.core_type = #tpu.core_type<tc>, window_params = [{transform_indices = @transform_0, window_bounds = array<i64: 1, 41, 64>}, {pipeline_mode = #tpu.pipeline_mode<synchronous>, transform_indices = @transform_1, window_bounds = array<i64: 3, 64, 64>}, {pipeline_mode = #tpu.pipeline_mode<synchronous>, transform_indices = @transform_2, window_bounds = array<i64: 1, 64>}, {pipeline_mode = #tpu.pipeline_mode<synchronous>, transform_indices = @transform_3, window_bounds = array<i64: 1, 64>}, {pipeline_mode = #tpu.pipeline_mode<synchronous>, transform_indices = @transform_4, window_bounds = array<i64: 1, 64>}, {transform_indices = @transform_5, window_bounds = array<i64: 1, 39, 64>}]} {
    %c0 = arith.constant 0 : index
    %c0_0 = arith.constant 0 : index
    %c0_1 = arith.constant 0 : index
    %0 = vector.load %arg1[%c0, %c0_0, %c0_1] : memref<1x41x64xf32, #tpu.memory_space<vmem>>, vector<1x41x64xf32>
    %1 = vector.shape_cast %0 : vector<1x41x64xf32> to vector<41x64xf32>
    %cst = arith.constant 0.000000e+00 : f32
    %2 = vector.broadcast %cst : f32 to vector<39x64xf32>
    %3 = vector.extract_strided_slice %1 {offsets = [0, 0], sizes = [39, 64], strides = [1, 1]} : vector<41x64xf32> to vector<39x64xf32>
    %c0_2 = arith.constant 0 : index
    %c0_3 = arith.constant 0 : index
    %c0_4 = arith.constant 0 : index
    %4 = vector.load %arg2[%c0_2, %c0_3, %c0_4] : memref<3x64x64xf32, #tpu.memory_space<vmem>>, vector<1x64x64xf32>
    %5 = vector.shape_cast %4 : vector<1x64x64xf32> to vector<64x64xf32>
    %cst_5 = arith.constant dense<0.000000e+00> : vector<39x64xf32>
    %6 = tpu.matmul %3, %5, %cst_5 {dimension_numbers = #tpu.dot_dimension_numbers<[1], [0], [0], [1], [0, 0, 1, 1], [], []>} : vector<39x64xf32>, vector<64x64xf32>, vector<39x64xf32> -> vector<39x64xf32>
    %7 = arith.addf %2, %6 : vector<39x64xf32>
    %8 = vector.extract_strided_slice %1 {offsets = [1, 0], sizes = [39, 64], strides = [1, 1]} : vector<41x64xf32> to vector<39x64xf32>
    %c1 = arith.constant 1 : index
    %c0_6 = arith.constant 0 : index
    %c0_7 = arith.constant 0 : index
    %9 = vector.load %arg2[%c1, %c0_6, %c0_7] : memref<3x64x64xf32, #tpu.memory_space<vmem>>, vector<1x64x64xf32>
    %10 = vector.shape_cast %9 : vector<1x64x64xf32> to vector<64x64xf32>
    %cst_8 = arith.constant dense<0.000000e+00> : vector<39x64xf32>
    %11 = tpu.matmul %8, %10, %cst_8 {dimension_numbers = #tpu.dot_dimension_numbers<[1], [0], [0], [1], [0, 0, 1, 1], [], []>} : vector<39x64xf32>, vector<64x64xf32>, vector<39x64xf32> -> vector<39x64xf32>
    %12 = arith.addf %7, %11 : vector<39x64xf32>
    %13 = vector.extract_strided_slice %1 {offsets = [2, 0], sizes = [39, 64], strides = [1, 1]} : vector<41x64xf32> to vector<39x64xf32>
    %c2 = arith.constant 2 : index
    %c0_9 = arith.constant 0 : index
    %c0_10 = arith.constant 0 : index
    %14 = vector.load %arg2[%c2, %c0_9, %c0_10] : memref<3x64x64xf32, #tpu.memory_space<vmem>>, vector<1x64x64xf32>
    %15 = vector.shape_cast %14 : vector<1x64x64xf32> to vector<64x64xf32>
    %cst_11 = arith.constant dense<0.000000e+00> : vector<39x64xf32>
    %16 = tpu.matmul %13, %15, %cst_11 {dimension_numbers = #tpu.dot_dimension_numbers<[1], [0], [0], [1], [0, 0, 1, 1], [], []>} : vector<39x64xf32>, vector<64x64xf32>, vector<39x64xf32> -> vector<39x64xf32>
    %17 = arith.addf %12, %16 : vector<39x64xf32>
    %c0_12 = arith.constant 0 : index
    %c0_13 = arith.constant 0 : index
    %18 = vector.load %arg3[%c0_12, %c0_13] : memref<1x64xf32, #tpu.memory_space<vmem>>, vector<1x64xf32>
    %19 = vector.broadcast %18 : vector<1x64xf32> to vector<39x64xf32>
    %20 = arith.addf %17, %19 : vector<39x64xf32>
    %c0_14 = arith.constant 0 : index
    %c0_15 = arith.constant 0 : index
    %21 = vector.load %arg4[%c0_14, %c0_15] : memref<1x64xf32, #tpu.memory_space<vmem>>, vector<1x64xf32>
    %22 = vector.broadcast %21 : vector<1x64xf32> to vector<39x64xf32>
    %23 = arith.mulf %20, %22 : vector<39x64xf32>
    %c0_16 = arith.constant 0 : index
    %c0_17 = arith.constant 0 : index
    %24 = vector.load %arg5[%c0_16, %c0_17] : memref<1x64xf32, #tpu.memory_space<vmem>>, vector<1x64xf32>
    %25 = vector.broadcast %24 : vector<1x64xf32> to vector<39x64xf32>
    %26 = arith.addf %23, %25 : vector<39x64xf32>
    %cst_18 = arith.constant 0.000000e+00 : f32
    %27 = vector.broadcast %cst_18 : f32 to vector<39x64xf32>
    %28 = arith.cmpf ogt, %26, %27 : vector<39x64xf32>
    %cst_19 = arith.constant 0.000000e+00 : f32
    %29 = vector.broadcast %cst_19 : f32 to vector<39x64xf32>
    %30 = arith.minimumf %26, %29 : vector<39x64xf32>
    %31 = math.exp %30 : vector<39x64xf32>
    %cst_20 = arith.constant 1.000000e+00 : f32
    %32 = vector.broadcast %cst_20 : f32 to vector<39x64xf32>
    %33 = arith.subf %31, %32 : vector<39x64xf32>
    %34 = arith.select %28, %26, %33 : vector<39x64xi1>, vector<39x64xf32>
    %c0_21 = arith.constant 0 : index
    %c0_22 = arith.constant 0 : index
    %c0_23 = arith.constant 0 : index
    %35 = vector.load %arg6[%c0_21, %c0_22, %c0_23] : memref<1x39x64xf32, #tpu.memory_space<vmem>>, vector<1x39x64xf32>
    %36 = vector.shape_cast %35 : vector<1x39x64xf32> to vector<39x64xf32>
    %37 = vector.shape_cast %34 : vector<39x64xf32> to vector<1x39x64xf32>
    tpu.vector_store %arg6[%c0_21, %c0_22, %c0_23], %37 {strides = array<i32>} : memref<1x39x64xf32, #tpu.memory_space<vmem>>, vector<1x39x64xf32>,
    return
  }
  func.func @transform_0(%arg0: i32) -> (i32, i32, i32) {
    %c0_i32 = arith.constant 0 : i32
    %c0_i32_0 = arith.constant 0 : i32
    %c0_i32_1 = arith.constant 0 : i32
    return %arg0, %c0_i32, %c0_i32_0 : i32, i32, i32
  }
  func.func @transform_1(%arg0: i32) -> (i32, i32, i32) {
    %c0_i32 = arith.constant 0 : i32
    %c0_i32_0 = arith.constant 0 : i32
    %c0_i32_1 = arith.constant 0 : i32
    %c0_i32_2 = arith.constant 0 : i32
    return %c0_i32, %c0_i32_0, %c0_i32_1 : i32, i32, i32
  }
  func.func @transform_2(%arg0: i32) -> (i32, i32) {
    %c0_i32 = arith.constant 0 : i32
    %c0_i32_0 = arith.constant 0 : i32
    %c0_i32_1 = arith.constant 0 : i32
    return %c0_i32, %c0_i32_0 : i32, i32
  }
  func.func @transform_3(%arg0: i32) -> (i32, i32) {
    %c0_i32 = arith.constant 0 : i32
    %c0_i32_0 = arith.constant 0 : i32
    %c0_i32_1 = arith.constant 0 : i32
    return %c0_i32, %c0_i32_0 : i32, i32
  }
  func.func @transform_4(%arg0: i32) -> (i32, i32) {
    %c0_i32 = arith.constant 0 : i32
    %c0_i32_0 = arith.constant 0 : i32
    %c0_i32_1 = arith.constant 0 : i32
    return %c0_i32, %c0_i32_0 : i32, i32
  }
  func.func @transform_5(%arg0: i32) -> (i32, i32, i32) {
    %c0_i32 = arith.constant 0 : i32
    %c0_i32_0 = arith.constant 0 : i32
    %c0_i32_1 = arith.constant 0 : i32
    return %arg0, %c0_i32, %c0_i32_0 : i32, i32, i32
  }
}

module attributes {stable_mosaic.version = 11 : i64} {
  func.func @kernel(%arg0: i32, %arg1: memref<1x39x64xf32, #tpu.memory_space<vmem>>, %arg2: memref<3x64x64xf32, #tpu.memory_space<vmem>>, %arg3: memref<1x64xf32, #tpu.memory_space<vmem>>, %arg4: memref<1x64xf32, #tpu.memory_space<vmem>>, %arg5: memref<1x64xf32, #tpu.memory_space<vmem>>, %arg6: memref<1x36x64xf32, #tpu.memory_space<vmem>>) attributes {dimension_semantics = [#tpu.dimension_semantics<parallel>], iteration_bounds = array<i64: 2>, scalar_prefetch = 0 : i64, scratch_operands = 0 : i64, tpu.core_type = #tpu.core_type<tc>, window_params = [{transform_indices = @transform_0, window_bounds = array<i64: 1, 39, 64>}, {pipeline_mode = #tpu.pipeline_mode<synchronous>, transform_indices = @transform_1, window_bounds = array<i64: 3, 64, 64>}, {pipeline_mode = #tpu.pipeline_mode<synchronous>, transform_indices = @transform_2, window_bounds = array<i64: 1, 64>}, {pipeline_mode = #tpu.pipeline_mode<synchronous>, transform_indices = @transform_3, window_bounds = array<i64: 1, 64>}, {pipeline_mode = #tpu.pipeline_mode<synchronous>, transform_indices = @transform_4, window_bounds = array<i64: 1, 64>}, {transform_indices = @transform_5, window_bounds = array<i64: 1, 36, 64>}]} {
    %c0 = arith.constant 0 : index
    %c0_0 = arith.constant 0 : index
    %c0_1 = arith.constant 0 : index
    %0 = vector.load %arg1[%c0, %c0_0, %c0_1] : memref<1x39x64xf32, #tpu.memory_space<vmem>>, vector<1x39x64xf32>
    %1 = vector.shape_cast %0 : vector<1x39x64xf32> to vector<39x64xf32>
    %cst = arith.constant 0.000000e+00 : f32
    %2 = vector.broadcast %cst : f32 to vector<37x64xf32>
    %3 = vector.extract_strided_slice %1 {offsets = [0, 0], sizes = [37, 64], strides = [1, 1]} : vector<39x64xf32> to vector<37x64xf32>
    %c0_2 = arith.constant 0 : index
    %c0_3 = arith.constant 0 : index
    %c0_4 = arith.constant 0 : index
    %4 = vector.load %arg2[%c0_2, %c0_3, %c0_4] : memref<3x64x64xf32, #tpu.memory_space<vmem>>, vector<1x64x64xf32>
    %5 = vector.shape_cast %4 : vector<1x64x64xf32> to vector<64x64xf32>
    %cst_5 = arith.constant dense<0.000000e+00> : vector<37x64xf32>
    %6 = tpu.matmul %3, %5, %cst_5 {dimension_numbers = #tpu.dot_dimension_numbers<[1], [0], [0], [1], [0, 0, 1, 1], [], []>} : vector<37x64xf32>, vector<64x64xf32>, vector<37x64xf32> -> vector<37x64xf32>
    %7 = arith.addf %2, %6 : vector<37x64xf32>
    %8 = vector.extract_strided_slice %1 {offsets = [1, 0], sizes = [37, 64], strides = [1, 1]} : vector<39x64xf32> to vector<37x64xf32>
    %c1 = arith.constant 1 : index
    %c0_6 = arith.constant 0 : index
    %c0_7 = arith.constant 0 : index
    %9 = vector.load %arg2[%c1, %c0_6, %c0_7] : memref<3x64x64xf32, #tpu.memory_space<vmem>>, vector<1x64x64xf32>
    %10 = vector.shape_cast %9 : vector<1x64x64xf32> to vector<64x64xf32>
    %cst_8 = arith.constant dense<0.000000e+00> : vector<37x64xf32>
    %11 = tpu.matmul %8, %10, %cst_8 {dimension_numbers = #tpu.dot_dimension_numbers<[1], [0], [0], [1], [0, 0, 1, 1], [], []>} : vector<37x64xf32>, vector<64x64xf32>, vector<37x64xf32> -> vector<37x64xf32>
    %12 = arith.addf %7, %11 : vector<37x64xf32>
    %13 = vector.extract_strided_slice %1 {offsets = [2, 0], sizes = [37, 64], strides = [1, 1]} : vector<39x64xf32> to vector<37x64xf32>
    %c2 = arith.constant 2 : index
    %c0_9 = arith.constant 0 : index
    %c0_10 = arith.constant 0 : index
    %14 = vector.load %arg2[%c2, %c0_9, %c0_10] : memref<3x64x64xf32, #tpu.memory_space<vmem>>, vector<1x64x64xf32>
    %15 = vector.shape_cast %14 : vector<1x64x64xf32> to vector<64x64xf32>
    %cst_11 = arith.constant dense<0.000000e+00> : vector<37x64xf32>
    %16 = tpu.matmul %13, %15, %cst_11 {dimension_numbers = #tpu.dot_dimension_numbers<[1], [0], [0], [1], [0, 0, 1, 1], [], []>} : vector<37x64xf32>, vector<64x64xf32>, vector<37x64xf32> -> vector<37x64xf32>
    %17 = arith.addf %12, %16 : vector<37x64xf32>
    %c0_12 = arith.constant 0 : index
    %c0_13 = arith.constant 0 : index
    %18 = vector.load %arg3[%c0_12, %c0_13] : memref<1x64xf32, #tpu.memory_space<vmem>>, vector<1x64xf32>
    %19 = vector.broadcast %18 : vector<1x64xf32> to vector<37x64xf32>
    %20 = arith.addf %17, %19 : vector<37x64xf32>
    %21 = vector.extract_strided_slice %20 {offsets = [0, 0], sizes = [36, 64], strides = [1, 1]} : vector<37x64xf32> to vector<36x64xf32>
    %22 = vector.extract_strided_slice %20 {offsets = [1, 0], sizes = [36, 64], strides = [1, 1]} : vector<37x64xf32> to vector<36x64xf32>
    %23 = arith.maximumf %21, %22 : vector<36x64xf32>
    %c0_14 = arith.constant 0 : index
    %c0_15 = arith.constant 0 : index
    %24 = vector.load %arg4[%c0_14, %c0_15] : memref<1x64xf32, #tpu.memory_space<vmem>>, vector<1x64xf32>
    %25 = vector.broadcast %24 : vector<1x64xf32> to vector<36x64xf32>
    %26 = arith.mulf %23, %25 : vector<36x64xf32>
    %c0_16 = arith.constant 0 : index
    %c0_17 = arith.constant 0 : index
    %27 = vector.load %arg5[%c0_16, %c0_17] : memref<1x64xf32, #tpu.memory_space<vmem>>, vector<1x64xf32>
    %28 = vector.broadcast %27 : vector<1x64xf32> to vector<36x64xf32>
    %29 = arith.addf %26, %28 : vector<36x64xf32>
    %cst_18 = arith.constant 0.000000e+00 : f32
    %30 = vector.broadcast %cst_18 : f32 to vector<36x64xf32>
    %31 = arith.cmpf ogt, %29, %30 : vector<36x64xf32>
    %cst_19 = arith.constant 0.000000e+00 : f32
    %32 = vector.broadcast %cst_19 : f32 to vector<36x64xf32>
    %33 = arith.minimumf %29, %32 : vector<36x64xf32>
    %34 = math.exp %33 : vector<36x64xf32>
    %cst_20 = arith.constant 1.000000e+00 : f32
    %35 = vector.broadcast %cst_20 : f32 to vector<36x64xf32>
    %36 = arith.subf %34, %35 : vector<36x64xf32>
    %37 = arith.select %31, %29, %36 : vector<36x64xi1>, vector<36x64xf32>
    %c0_21 = arith.constant 0 : index
    %c0_22 = arith.constant 0 : index
    %c0_23 = arith.constant 0 : index
    %38 = vector.load %arg6[%c0_21, %c0_22, %c0_23] : memref<1x36x64xf32, #tpu.memory_space<vmem>>, vector<1x36x64xf32>
    %39 = vector.shape_cast %38 : vector<1x36x64xf32> to vector<36x64xf32>
    %40 = vector.shape_cast %37 : vector<36x64xf32> to vector<1x36x64xf32>
    tpu.vector_store %arg6[%c0_21, %c0_22, %c0_23], %40 {strides = array<i32>} : memref<1x36x64xf32, #tpu.memory_space<vmem>>, vector<1x36x64xf32>,
    return
  }
  func.func @transform_0(%arg0: i32) -> (i32, i32, i32) {
    %c0_i32 = arith.constant 0 : i32
    %c0_i32_0 = arith.constant 0 : i32
    %c0_i32_1 = arith.constant 0 : i32
    return %arg0, %c0_i32, %c0_i32_0 : i32, i32, i32
  }
  func.func @transform_1(%arg0: i32) -> (i32, i32, i32) {
    %c0_i32 = arith.constant 0 : i32
    %c0_i32_0 = arith.constant 0 : i32
    %c0_i32_1 = arith.constant 0 : i32
    %c0_i32_2 = arith.constant 0 : i32
    return %c0_i32, %c0_i32_0, %c0_i32_1 : i32, i32, i32
  }
  func.func @transform_2(%arg0: i32) -> (i32, i32) {
    %c0_i32 = arith.constant 0 : i32
    %c0_i32_0 = arith.constant 0 : i32
    %c0_i32_1 = arith.constant 0 : i32
    return %c0_i32, %c0_i32_0 : i32, i32
  }
  func.func @transform_3(%arg0: i32) -> (i32, i32) {
    %c0_i32 = arith.constant 0 : i32
    %c0_i32_0 = arith.constant 0 : i32
    %c0_i32_1 = arith.constant 0 : i32
    return %c0_i32, %c0_i32_0 : i32, i32
  }
  func.func @transform_4(%arg0: i32) -> (i32, i32) {
    %c0_i32 = arith.constant 0 : i32
    %c0_i32_0 = arith.constant 0 : i32
    %c0_i32_1 = arith.constant 0 : i32
    return %c0_i32, %c0_i32_0 : i32, i32
  }
  func.func @transform_5(%arg0: i32) -> (i32, i32, i32) {
    %c0_i32 = arith.constant 0 : i32
    %c0_i32_0 = arith.constant 0 : i32
    %c0_i32_1 = arith.constant 0 : i32
    return %arg0, %c0_i32, %c0_i32_0 : i32, i32, i32
  }
}

</mosaic_0001>

<bundles_post_ra>
// kernel: snr_forward.12
= control target key start
LH: loop header
LB: loop body
LE: loop exit
PB: predicated region body
PF: predicated region fallthrough
CT: control target
= control target key end

     0   :  { %s661_s18 = smov 0   ;;  %s824_s0 = inlined_call_operand.vmem [shape: f32[2,64,1], index: 0, kind: input, shape index: {}]   ;;  %s825_s1 = inlined_call_operand.vmem [shape: f32[3,1,64], index: 1, kind: input, shape index: {}]   ;;  %s826_s2 = inlined_call_operand.vmem [shape: f32[1,64], index: 2, kind: input, shape index: {}]   ;;  %s827_s3 = inlined_call_operand.vmem [shape: f32[1,64], index: 3, kind: input, shape index: {}]   ;;  %s828_s4 = inlined_call_operand.vmem [shape: f32[1,64], index: 4, kind: input, shape index: {}]   ;;  %s829_s5 = inlined_call_operand.vmem [shape: f32[2,62,64], index: 5, kind: output, shape index: {}]  }
   0x1 LB: > { %s566_s19 = sadd.s32 4294967295, %s628_s18   ;;  %p570_p0 = scmp.ge.s32.totalorder %s628_s18, 1  ;;  %s628_s18 = sphi %s661_s18, %s15_s18  }
   0x2   : > { %p187_p1 = scmp.lt.s32.totalorder %s628_s18, 3 }
   0x4   : > { %p188_p2 = pnand %p570_p0, %p187_p1 }
   0x5   : > { %p215_p3 = scmp.lt.s32.totalorder (!%p188_p2), %s566_s19, 1  ;;  %v630_v0 = vmov (!%p188_p2), 0   ;;  %v680_v9 = vld [vmem:[%s825_s1 + $0x1] ss:$0 sm:$0xff] (!%p188_p2)  ;;  %v685_v10 = vld [vmem:[%s825_s1 + $0x2] ss:$0 sm:$0xff] (!%p188_p2) }
   0x6   : > { %191 = sbr.rel (%p188_p2) target bundleno = 200 (0xc8), region = 40  ;;  %605 = vset.pattern.permute.xlu1 (!%p188_p2), %v630_v0  ;;  %604 = vset.pattern.permute.xlu0 (!%p188_p2), %v630_v0  ;;  %v690_v13 = vld [vmem:[%s825_s1] ss:$0 sm:$0xff] (!%p188_p2)  ;;  %vm320_vm0 = vcmask (!%p188_p2), 1046528   ;;  %vm376_vm1 = vcmask (!%p188_p2), 1045504   ;;  %vm501_vm2 = vcmask (!%p188_p2), 523264  }
   0x7   : > { %v718_v45 = vld [vmem:[%s826_s2] ss:$0 sm:$0xff] (!%p188_p2)  ;;  %vm509_vm8 = vcmask (!%p188_p2), 521216  }
   0x8   : > { %v731_v55 = vld [vmem:[%s827_s3] ss:$0 sm:$0xff] (!%p188_p2) }
   0x9   : > { %v741_v0 = vld [vmem:[%s828_s4] ss:$0 sm:$0xff] (!%p188_p2) }
   0xd   : > { %s831_s19 = smov (!%p215_p3, %s566_s19), 1 }
   0xe   : > { %s593_s20 = sshll.u32 %s831_s19, 6 }
   0xf   : > { %s219_s23 = scalar_lea.vmem %s824_s0, %s593_s20  ;;  %s794_s13 = scalar_lea.vmem %s829_s5, %s593_s20 }
  0x10   : > { %v227_v1 = vld [vmem:[%s219_s23 + $0x10] sm:$0xff]  ;;  %v225_v2 = vld [vmem:[%s219_s23] sm:$0xff]  ;;  %v228_v3 = vld [vmem:[%s219_s23 + $0x18] sm:$0xff] }
  0x11   : > { %246 = vperm.xlu1 %605, %v227_v1   ;;  %236 = vperm.xlu0 %604, %v225_v2   ;;  %v226_v4 = vld [vmem:[%s219_s23 + $0x8] sm:$0xff]  ;;  %v229_v6 = vld [vmem:[%s219_s23 + $0x20] sm:$0xff]  ;;  %v232_v7 = vld [vmem:[%s219_s23 + $0x38] sm:$0xff] }
  0x12   : > { %v230_v5 = vld [vmem:[%s219_s23 + $0x28] sm:$0xff]  ;;  %v231_v8 = vld [vmem:[%s219_s23 + $0x30] sm:$0xff] }
  0x15   : > { %251 = vperm.xlu1 %605, %v228_v3   ;;  %241 = vperm.xlu0 %604, %v226_v4  }
  0x19   : > { %261 = vperm.xlu1 %605, %v230_v5   ;;  %256 = vperm.xlu0 %604, %v229_v6  }
  0x1d   : > { %271 = vperm.xlu1 %605, %v232_v7   ;;  %266 = vperm.xlu0 %604, %v231_v8  }
  0x90   : > { %v247_v11 = vpop.permute.xlu1 %246  ;;  %v237_v12 = vpop.permute.xlu0 %236 }
  0x91   : > { %v306_v14 = vmul.f32 %v680_v9, %v247_v11  ;;  %v362_v15 = vmul.f32 %v685_v10, %v247_v11  ;;  %v304_v16 = vmul.f32 %v680_v9, %v237_v12  ;;  %v360_v17 = vmul.f32 %v685_v10, %v237_v12 }
  0x92   : > { %v282_v20 = vmul.f32 %v690_v13, %v247_v11  ;;  %v280_v24 = vmul.f32 %v690_v13, %v237_v12 }
  0x93   : > { %v324_v23 = vrot.slane %v306_v14, 1  ;;  %v380_v27 = vrot.slane %v362_v15, 2  ;;  %v321_v28 = vrot.slane %v304_v16, 1  ;;  %v377_v31 = vrot.slane %v360_v17, 2 }
  0x94   : > { %v252_v18 = vpop.permute.xlu1 %251  ;;  %v242_v19 = vpop.permute.xlu0 %241 }
  0x95   : > { %v307_v21 = vmul.f32 %v680_v9, %v252_v18  ;;  %v363_v22 = vmul.f32 %v685_v10, %v252_v18  ;;  %v305_v25 = vmul.f32 %v680_v9, %v242_v19  ;;  %v361_v26 = vmul.f32 %v685_v10, %v242_v19 }
  0x96   : > { %v283_v32 = vmul.f32 %v690_v13, %v252_v18  ;;  %v281_v38 = vmul.f32 %v690_v13, %v242_v19 }
  0x97   : > { %v326_v29 = vrot.slane %v307_v21, 1  ;;  %v382_v30 = vrot.slane %v363_v22, 2  ;;  %v322_v33 = vrot.slane %v305_v25, 1  ;;  %v378_v34 = vrot.slane %v361_v26, 2 }
  0x98   : > { %v703_v35 = vpop.permute.xlu1 %261  ;;  %v257_v40 = vpop.permute.xlu0 %256 }
  0x99   : > { %v327_v36 = vsel %vm320_vm0, %v324_v23, %v326_v29  ;;  %v383_v37 = vsel %vm376_vm1, %v380_v27, %v382_v30  ;;  %v710_v39 = vmul.f32 %v680_v9, %v703_v35  ;;  %v323_v42 = vsel %vm320_vm0, %v321_v28, %v322_v33 }
  0x9a   : > { %v346_v41 = vadd.f32 %v327_v36, %v282_v20  ;;  %v325_v43 = vsel %vm320_vm0, %v322_v33, %v324_v23  ;;  %v379_v44 = vsel %vm376_vm1, %v377_v31, %v378_v34  ;;  %v344_v46 = vadd.f32 %v323_v42, %v280_v24 }
  0x9b   : > { %v345_v47 = vadd.f32 %v325_v43, %v281_v38  ;;  %v381_v48 = vsel %vm376_vm1, %v378_v34, %v380_v27  ;;  %v330_v49 = vrot.slane %v710_v39, 1  ;;  %v724_v51 = vmul.f32 %v685_v10, %v703_v35 }
  0x9c   : > { %v402_v50 = vadd.f32 %v383_v37, %v346_v41  ;;  %v284_v52 = vmul.f32 %v690_v13, %v257_v40  ;;  %v308_v53 = vmul.f32 %v680_v9, %v257_v40  ;;  %v272_v54 = vpop.permute.xlu1 %271  ;;  %v400_v56 = vadd.f32 %v379_v44, %v344_v46  ;;  %v267_v26 = vpop.permute.xlu0 %266 }
  0x9d   : > { %v401_v57 = vadd.f32 %v381_v48, %v345_v47  ;;  %v364_v58 = vmul.f32 %v685_v10, %v257_v40  ;;  %v287_v59 = vmul.f32 %v690_v13, %v272_v54  ;;  %v386_v61 = vrot.slane %v724_v51, 2 }
  0x9e   : > { %v417_v60 = vadd.f32 %v718_v45, %v402_v50  ;;  %v328_v62 = vrot.slane %v308_v53, 1  ;;  %v311_v63 = vmul.f32 %v680_v9, %v272_v54  ;;  %v415_v1 = vadd.f32 %v718_v45, %v400_v56 }
  0x9f   : > { %v416_v2 = vadd.f32 %v718_v45, %v401_v57  ;;  %v384_v3 = vrot.slane %v364_v58, 2  ;;  %v367_v4 = vmul.f32 %v685_v10, %v272_v54  ;;  %v310_v36 = vmul.f32 %v680_v9, %v267_v26 }
  0xa0   : > { %v432_v5 = vmul.f32 %v731_v55, %v417_v60  ;;  %v329_v6 = vsel %vm320_vm0, %v326_v29, %v328_v62  ;;  %v331_v7 = vsel %vm320_vm0, %v328_v62, %v330_v49  ;;  %v334_v8 = vrot.slane %v311_v63, 1 }
  0xa1   : > { %v430_v11 = vmul.f32 %v731_v55, %v415_v1  ;;  %v431_v12 = vmul.f32 %v731_v55, %v416_v2  ;;  %v347_v14 = vadd.f32 %v329_v6, %v283_v32  ;;  %v348_v15 = vadd.f32 %v331_v7, %v284_v52 }
  0xa2   : > { %v754_v16 = vadd.f32 %v741_v0, %v432_v5  ;;  %v385_v17 = vsel %vm376_vm1, %v382_v30, %v384_v3  ;;  %v387_v18 = vsel %vm376_vm1, %v384_v3, %v386_v61  ;;  %v351_v19 = vadd.f32 %v334_v8, %v287_v59 }
  0xa3   : > { %v759_v20 = vadd.f32 %v741_v0, %v430_v11  ;;  %v762_v21 = vadd.f32 %v741_v0, %v431_v12  ;;  %v403_v22 = vadd.f32 %v385_v17, %v347_v14  ;;  %v404_v23 = vadd.f32 %v387_v18, %v348_v15 }
  0xa4   : > { %v463_v24 = vmin.f32 %v754_v16, 0.0  ;;  %v390_v25 = vrot.slane %v367_v4, 2  ;;  %v366_v37 = vmul.f32 %v685_v10, %v267_v26  ;;  %v332_v42 = vrot.slane %v310_v36, 1 }
  0xa5   : > { %v461_v27 = vmin.f32 %v759_v20, 0.0  ;;  %v462_v28 = vmin.f32 %v762_v21, 0.0  ;;  %v418_v30 = vadd.f32 %v718_v45, %v403_v22  ;;  %v419_v31 = vadd.f32 %v718_v45, %v404_v23 }
  0xa6   : > { %v473_v29 = vmul.f32 1.442695, %v463_v24  ;;  %v407_v32 = vadd.f32 %v390_v25, %v351_v19  ;;  %v388_v43 = vrot.slane %v366_v37, 2  ;;  %v285_v9 = vmul.f32 %v690_v13, %v703_v35 }
  0xa7   : > { %v469_v33 = vmul.f32 1.442695, %v461_v27  ;;  %v471_v34 = vmul.f32 1.442695, %v462_v28  ;;  %v433_v38 = vmul.f32 %v731_v55, %v418_v30  ;;  %v434_v40 = vmul.f32 %v731_v55, %v419_v31 }
  0xa8   : > { %606 = vpow2.f32 %v473_v29  ;;  %v422_v41 = vadd.f32 %v718_v45, %v407_v32  ;;  %v286_v10 = vmul.f32 %v690_v13, %v267_v26  ;;  %v333_v48 = vsel %vm320_vm0, %v330_v49, %v332_v42 }
  0xa9   : > { %608 = vpow2.f32 %v469_v33  ;;  %v448_v44 = vadd.f32 %v741_v0, %v433_v38  ;;  %v449_v46 = vadd.f32 %v741_v0, %v434_v40  ;;  %v335_v50 = vsel %vm320_vm0, %v332_v42, %v334_v8 }
  0xaa   : > { %610 = vpow2.f32 %v471_v34  ;;  %v437_v47 = vmul.f32 %v731_v55, %v422_v41  ;;  %v349_v54 = vadd.f32 %v333_v48, %v285_v9  ;;  %v350_v56 = vadd.f32 %v335_v50, %v286_v10 }
  0xab   : > { %v464_v51 = vmin.f32 %v448_v44, 0.0  ;;  %v465_v52 = vmin.f32 %v449_v46, 0.0  ;;  %v389_v59 = vsel %vm376_vm1, %v386_v61, %v388_v43  ;;  %v391_v35 = vsel %vm376_vm1, %v388_v43, %v390_v25 }
  0xac   : > { %v452_v53 = vadd.f32 %v741_v0, %v437_v47  ;;  %v405_v60 = vadd.f32 %v389_v59, %v349_v54  ;;  %v406_v39 = vadd.f32 %v391_v35, %v350_v56  ;;  %vm455_vm3 = vcmp.gt.f32.partialorder %v754_v16, 0.0 }
  0xad   : > { %v475_v57 = vmul.f32 1.442695, %v464_v51  ;;  %v477_v58 = vmul.f32 1.442695, %v465_v52  ;;  %vm453_vm4 = vcmp.gt.f32.partialorder %v759_v20, 0.0  ;;  %vm454_vm5 = vcmp.gt.f32.partialorder %v762_v21, 0.0 }
  0xae   : > { %v468_v13 = vmin.f32 %v452_v53, 0.0  ;;  %v420_v62 = vadd.f32 %v718_v45, %v405_v60  ;;  %v421_v63 = vadd.f32 %v718_v45, %v406_v39  ;;  %vm456_vm6 = vcmp.gt.f32.partialorder %v448_v44, 0.0 }
  0xaf   : > { %612 = vpow2.f32 %v475_v57  ;;  %vm457_vm7 = vcmp.gt.f32.partialorder %v449_v46, 0.0  ;;  %vm460_vm9 = vcmp.gt.f32.partialorder %v452_v53, 0.0 }
  0xb0   : > { %614 = vpow2.f32 %v477_v58  ;;  %v483_v49 = vmul.f32 1.442695, %v468_v13  ;;  %v435_v3 = vmul.f32 %v731_v55, %v420_v62  ;;  %v436_v4 = vmul.f32 %v731_v55, %v421_v63 }
  0xb2   : > { %v607_v1 = vpop.eup %606  ;;  %616 = vpow2.f32 %v483_v49  ;;  %v450_v8 = vadd.f32 %v741_v0, %v435_v3  ;;  %v451_v11 = vadd.f32 %v741_v0, %v436_v4 }
  0xb3   : > { %v609_v2 = vpop.eup %608  ;;  %v585_v61 = vadd.f32 -1.0, %v607_v1 }
  0xb4   : > { %v611_v5 = vpop.eup %610  ;;  %v583_v45 = vadd.f32 -1.0, %v609_v2  ;;  %v466_v14 = vmin.f32 %v450_v8, 0.0  ;;  %v467_v15 = vmin.f32 %v451_v11, 0.0  ;;  %vm458_vm10 = vcmp.gt.f32.partialorder %v450_v8, 0.0 }
  0xb5   : > { %v495_v6 = vsel %vm455_vm3, %v754_v16, %v585_v61  ;;  %v584_v7 = vadd.f32 -1.0, %v611_v5  ;;  %vm459_vm11 = vcmp.gt.f32.partialorder %v451_v11, 0.0 }
  0xb6   : > { %504 = vst.msk [vmem:[%s794_s13 + $0x10] sm:$0xff] %vm501_vm2, %v495_v6  ;;  %v493_v12 = vsel %vm453_vm4, %v759_v20, %v583_v45  ;;  %v479_v16 = vmul.f32 1.442695, %v466_v14  ;;  %v481_v18 = vmul.f32 1.442695, %v467_v15 }
  0xb7   : > { %v494_v55 = vsel %vm454_vm5, %v762_v21, %v584_v7  ;;  %502 = vst.msk [vmem:[%s794_s13] sm:$0xff] %vm501_vm2, %v493_v12 }
  0xb8   : > { %503 = vst.msk [vmem:[%s794_s13 + $0x8] sm:$0xff] %vm501_vm2, %v494_v55  ;;  %618 = vpow2.f32 %v479_v16 }
  0xb9   : > { %v613_v17 = vpop.eup %612  ;;  %620 = vpow2.f32 %v481_v18 }
  0xba   : > { %v615_v0 = vpop.eup %614  ;;  %v586_v19 = vadd.f32 -1.0, %v613_v17 }
  0xbb   : > { %v587_v22 = vadd.f32 -1.0, %v615_v0 }
  0xbc   : > { %v617_v20 = vpop.eup %616  ;;  %v496_v21 = vsel %vm456_vm6, %v448_v44, %v586_v19 }
  0xbd   : > { %v497_v23 = vsel %vm457_vm7, %v449_v46, %v587_v22  ;;  %505 = vst.msk [vmem:[%s794_s13 + $0x18] sm:$0xff] %vm501_vm2, %v496_v21  ;;  %v590_v24 = vadd.f32 -1.0, %v617_v20 }
  0xbe   : > { %506 = vst.msk [vmem:[%s794_s13 + $0x20] sm:$0xff] %vm501_vm2, %v497_v23 }
  0xbf   : > { %v500_v25 = vsel %vm460_vm9, %v452_v53, %v590_v24 }
  0xc0   : > { %510 = vst.msk [vmem:[%s794_s13 + $0x38] sm:$0x3f] %vm509_vm8, %v500_v25 }
  0xc2   : > { %v619_v26 = vpop.eup %618 }
  0xc3   : > { %v621_v27 = vpop.eup %620  ;;  %v588_v28 = vadd.f32 -1.0, %v619_v26 }
  0xc4   : > { %v589_v29 = vadd.f32 -1.0, %v621_v27 }
  0xc5   : > { %v498_v30 = vsel %vm458_vm10, %v450_v8, %v588_v28 }
  0xc6   : > { %v499_v31 = vsel %vm459_vm11, %v451_v11, %v589_v29  ;;  %507 = vst.msk [vmem:[%s794_s13 + $0x28] sm:$0xff] %vm501_vm2, %v498_v30 }
  0xc7   : > { %508 = vst.msk [vmem:[%s794_s13 + $0x30] sm:$0xff] %vm501_vm2, %v499_v31 }
  0xc8 PF: > { %s15_s18 = sadd.s32 1, %s628_s18  }
  0xc9   : > { %p12_p4 = scmp.ge.s32.totalorder %s15_s18, 4  }
  0xcb   :  { %14 = sbr.rel (!%p12_p4) target bundleno = 1 (0x1), region = 72 }

// kernel: snr_forward.14
= control target key start
LH: loop header
LB: loop body
LE: loop exit
PB: predicated region body
PF: predicated region fallthrough
CT: control target
= control target key end

     0   :  { %s1197_s18 = smov 0   ;;  %s1408_s0 = inlined_call_operand.vmem [shape: f32[2,60,64], index: 0, kind: input, shape index: {}]   ;;  %s1409_s1 = inlined_call_operand.vmem [shape: f32[3,64,64], index: 1, kind: input, shape index: {}]   ;;  %s1410_s2 = inlined_call_operand.vmem [shape: f32[1,64], index: 2, kind: input, shape index: {}]   ;;  %s1411_s3 = inlined_call_operand.vmem [shape: f32[1,64], index: 3, kind: input, shape index: {}]   ;;  %s1412_s4 = inlined_call_operand.vmem [shape: f32[1,64], index: 4, kind: input, shape index: {}]   ;;  %s1413_s5 = inlined_call_operand.vmem [shape: f32[2,57,64], index: 5, kind: output, shape index: {}]  }
   0x1 LB: > { %s867_s19 = sadd.s32 4294967295, %s1165_s18   ;;  %p871_p0 = scmp.ge.s32.totalorder %s1165_s18, 1  ;;  %s1165_s18 = sphi %s1197_s18, %s15_s18  }
   0x2   : > { %p187_p1 = scmp.lt.s32.totalorder %s1165_s18, 3 }
   0x4   : > { %p188_p2 = pnand %p871_p0, %p187_p1 }
   0x5   : > { %v876_v0 = vld [vmem:[%s1409_s1 + $0x40] sm:$0xff] (!%p188_p2)  ;;  %v877_v1 = vld [vmem:[%s1409_s1 + $0x48] sm:$0xff] (!%p188_p2)  ;;  %p215_p3 = scmp.lt.s32.totalorder (!%p188_p2), %s867_s19, 1  ;;  %v878_v5 = vld [vmem:[%s1409_s1 + $0x50] sm:$0xff] (!%p188_p2)  ;;  %vm274_vm0 = vcmask (!%p188_p2), 523264   ;;  %vm258_vm1 = vcmask (!%p188_p2), 1046528  }
   0x6   : > { %191 = sbr.rel (%p188_p2) target bundleno = 293 (0x125), region = 40  ;;  %v233_v2 = vld [vmem:[%s1409_s1] sm:$0xff] (!%p188_p2)  ;;  %v1063_v3 = vpack.c.bf16 (!%p188_p2), %v877_v1, %v876_v0  ;;  %v234_v4 = vld [vmem:[%s1409_s1 + $0x8] sm:$0xff] (!%p188_p2)  ;;  %v879_v6 = vld [vmem:[%s1409_s1 + $0x58] sm:$0xff] (!%p188_p2)  ;;  %vm526_vm2 = vcmask (!%p188_p2), 1045504   ;;  %vm810_vm5 = vcmask (!%p188_p2), 516096  }
   0x7   : > { %v1079_v7 = vpack.c.bf16 (!%p188_p2), %v234_v4, %v233_v2  ;;  %v1067_v8 = vpack.c.bf16 (!%p188_p2), %v879_v6, %v878_v5  ;;  %v235_v9 = vld [vmem:[%s1409_s1 + $0x10] sm:$0xff] (!%p188_p2)  ;;  %v236_v10 = vld [vmem:[%s1409_s1 + $0x18] sm:$0xff] (!%p188_p2)  ;;  %v880_v11 = vld [vmem:[%s1409_s1 + $0x60] sm:$0xff] (!%p188_p2) }
   0x8   : > { %1064 = vmatprep.subr.bf16.mxu1 (!%p188_p2), %v1063_v3  ;;  %v1083_v12 = vpack.c.bf16 (!%p188_p2), %v236_v10, %v235_v9  ;;  %v881_v13 = vld [vmem:[%s1409_s1 + $0x68] sm:$0xff] (!%p188_p2)  ;;  %v237_v14 = vld [vmem:[%s1409_s1 + $0x20] sm:$0xff] (!%p188_p2)  ;;  %v882_v17 = vld [vmem:[%s1409_s1 + $0x70] sm:$0xff] (!%p188_p2) }
   0x9   : > { %v238_v15 = vld [vmem:[%s1409_s1 + $0x28] sm:$0xff] (!%p188_p2)  ;;  %1080 = vmatprep.subr.bf16.mxu0 (!%p188_p2), %v1079_v7  ;;  %1066 = vmatpush3.bf16.msra.mxu1 (!%p188_p2), %v1063_v3  ;;  %v1071_v16 = vpack.c.bf16 (!%p188_p2), %v881_v13, %v880_v11  ;;  %v883_v19 = vld [vmem:[%s1409_s1 + $0x78] sm:$0xff] (!%p188_p2)  ;;  %v239_v22 = vld [vmem:[%s1409_s1 + $0x30] sm:$0xff] (!%p188_p2) }
   0xa   : > { %1082 = vmatpush3.bf16.msra.mxu0 (!%p188_p2), %v1079_v7  ;;  %1068 = vmatprep.subr.bf16.mxu1 (!%p188_p2), %v1067_v8  ;;  %v1087_v18 = vpack.c.bf16 (!%p188_p2), %v238_v15, %v237_v14  ;;  %v240_v23 = vld [vmem:[%s1409_s1 + $0x38] sm:$0xff] (!%p188_p2)  ;;  %v1075_v26 = vpack.c.bf16 (!%p188_p2), %v883_v19, %v882_v17  ;;  %v900_v30 = vld [vmem:[%s1409_s1 + $0x80] sm:$0xff] (!%p188_p2)  ;;  %v901_v31 = vld [vmem:[%s1409_s1 + $0x88] sm:$0xff] (!%p188_p2) }
   0xb   : > { %1084 = vmatprep.subr.bf16.mxu0 (!%p188_p2), %v1083_v12  ;;  %v1091_v29 = vpack.c.bf16 (!%p188_p2), %v240_v23, %v239_v22  ;;  %v1095_v34 = vpack.c.bf16 (!%p188_p2), %v901_v31, %v900_v30  ;;  %v902_v37 = vld [vmem:[%s1409_s1 + $0x90] sm:$0xff] (!%p188_p2)  ;;  %v903_v38 = vld [vmem:[%s1409_s1 + $0x98] sm:$0xff] (!%p188_p2)  ;;  %v904_v46 = vld [vmem:[%s1409_s1 + $0xa0] sm:$0xff] (!%p188_p2) }
   0xc   : > { %v1099_v44 = vpack.c.bf16 (!%p188_p2), %v903_v38, %v902_v37  ;;  %v905_v47 = vld [vmem:[%s1409_s1 + $0xa8] sm:$0xff] (!%p188_p2)  ;;  %v906_v54 = vld [vmem:[%s1409_s1 + $0xb0] sm:$0xff] (!%p188_p2)  ;;  %v907_v55 = vld [vmem:[%s1409_s1 + $0xb8] sm:$0xff] (!%p188_p2) }
   0xd   : > { %s1415_s19 = smov (!%p215_p3, %s867_s19), 1  ;;  %1070 = vmatpush3.bf16.msra.mxu1 %v1067_v8  ;;  %v1103_v52 = vpack.c.bf16 %v905_v47, %v904_v46  ;;  %v1107_v58 = vpack.c.bf16 %v907_v55, %v906_v54 }
   0xe   : > { %s929_s21 = sshll.u32 %s1415_s19, 6  ;;  %1086 = vmatpush3.bf16.msra.mxu0 %v1083_v12  ;;  %1072 = vmatprep.subr.bf16.mxu1 %v1071_v16 }
   0xf   : > { %s1252_s26 = scalar_lea.vmem %s1408_s0, %s929_s21  ;;  %1088 = vmatprep.subr.bf16.mxu0 %v1087_v18  ;;  %s1388_s10 = scalar_lea.vmem %s1413_s5, %s929_s21 }
  0x10   : > { %v1258_v20 = vld [vmem:[%s1252_s26] sm:$0xff]  ;;  %v1261_v21 = vld [vmem:[%s1252_s26 + $0x8] sm:$0xff]  ;;  %v1275_v28 = vld [vmem:[%s1252_s26 + $0x10] sm:$0xff] }
  0x11   : > { %v259_v24 = vrot.slane %v1258_v20, 1  ;;  %v260_v25 = vrot.slane %v1261_v21, 1  ;;  %1023 = vmatprep.mubr.msk.f32.mxu0 %vm274_vm0, %v1258_v20  ;;  %v1285_v32 = vld [vmem:[%s1252_s26 + $0x18] sm:$0xff]  ;;  %1074 = vmatpush3.bf16.msra.mxu1 %v1071_v16  ;;  %v262_v33 = vrot.slane %v1275_v28, 1  ;;  %v1289_v35 = vld [vmem:[%s1252_s26 + $0x20] sm:$0xff]  ;;  %v1299_v39 = vld [vmem:[%s1252_s26 + $0x28] sm:$0xff] }
  0x12   : > { %1090 = vmatpush3.bf16.msra.mxu0 %v1087_v18  ;;  %1076 = vmatprep.subr.bf16.mxu1 %v1075_v26  ;;  %v264_v36 = vrot.slane %v1285_v32, 1  ;;  %v266_v41 = vrot.slane %v1289_v35, 1  ;;  %v231_v42 = vld [vmem:[%s1252_s26 + $0x30] sm:$0xff]  ;;  %v268_v45 = vrot.slane %v1299_v39, 1  ;;  %v232_v48 = vld [vmem:[%s1252_s26 + $0x38] sm:$0xf] }
  0x13   : > { %v261_v27 = vsel %vm258_vm1, %v259_v24, %v260_v25  ;;  %1092 = vmatprep.subr.bf16.mxu0 %v1091_v29  ;;  %v263_v40 = vsel %vm258_vm1, %v260_v25, %v262_v33  ;;  %v270_v50 = vrot.slane %v231_v42, 1  ;;  %v272_v53 = vrot.slane %v232_v48, 1 }
  0x14   : > { %995 = vmatprep.mubr.msk.f32.mxu1 %vm274_vm0, %v261_v27  ;;  %v265_v43 = vsel %vm258_vm1, %v262_v33, %v264_v36  ;;  %v267_v49 = vsel %vm258_vm1, %v264_v36, %v266_v41  ;;  %v269_v51 = vsel %vm258_vm1, %v266_v41, %v268_v45  ;;  %v527_v59 = vrot.slane %v1258_v20, 2 }
  0x15   : > { %1078 = vmatpush3.bf16.msra.mxu1 %v1075_v26  ;;  %v271_v56 = vsel %vm258_vm1, %v268_v45, %v270_v50  ;;  %v273_v57 = vsel %vm258_vm1, %v270_v50, %v272_v53  ;;  %v528_v60 = vrot.slane %v1261_v21, 2  ;;  %v534_v61 = vrot.slane %v1289_v35, 2  ;;  %v916_v26 = vld [vmem:[%s1410_s2] ss:$0 sm:$0xff] }
  0x16   : > { %1094 = vmatpush3.bf16.msra.mxu0 %v1091_v29  ;;  %1111 = vmatprep.subr.bf16.mxu1 %v1095_v34  ;;  %v536_v62 = vrot.slane %v1299_v39, 2  ;;  %v538_v63 = vrot.slane %v231_v42, 2  ;;  %v530_v0 = vrot.slane %v1275_v28, 2  ;;  %v540_v1 = vrot.slane %v232_v48, 2 }
  0x17   : > { %1096 = vmatprep.subr.bf16.mxu0 %v1095_v34  ;;  %v529_v2 = vsel %vm526_vm2, %v527_v59, %v528_v60  ;;  %v532_v3 = vrot.slane %v1285_v32, 2 }
  0x18   : > { %996 = vmatmul.mubr.msk.f32.vlgmr.msra.gmra.mrb[0].mxu1 %vm274_vm0, %v263_v40  ;;  %v537_v4 = vsel %vm526_vm2, %v534_v61, %v536_v62  ;;  %v539_v5 = vsel %vm526_vm2, %v536_v62, %v538_v63  ;;  %v531_v6 = vsel %vm526_vm2, %v528_v60, %v530_v0  ;;  %v541_v7 = vsel %vm526_vm2, %v538_v63, %v540_v1 }
  0x19   : > { %1024 = vmatmul.mubr.msk.f32.vlgmr.msra.gmra.mrb[0].mxu0 %vm274_vm0, %v1261_v21  ;;  %1115 = vmatpush3.bf16.msra.mxu1 %v1095_v34  ;;  %v533_v8 = vsel %vm526_vm2, %v530_v0, %v532_v3  ;;  %v535_v9 = vsel %vm526_vm2, %v532_v3, %v534_v61  ;;  %v918_v61 = vld [vmem:[%s1412_s4] ss:$0 sm:$0xff] }
  0x1a   : > { %1098 = vmatpush3.bf16.msra.mxu0 %v1095_v34  ;;  %998 = vmatprep.mubr.msk.f32.mxu1 %vm274_vm0, %v265_v43 }
  0x1b   : > { %1026 = vmatprep.mubr.msk.f32.mxu0 %vm274_vm0, %v1275_v28  ;;  %1100 = vmatprep.subr.bf16.mxu0 %v1099_v44 }
  0x1c   : > { %999 = vmatmul.mubr.msk.f32.gmra.mrb[2].mxu1 %vm274_vm0, %v267_v49  ;;  %1112 = vmatprep.subr.bf16.mxu1 %v1099_v44 }
  0x1d   : > { %1027 = vmatmul.mubr.msk.f32.gmra.mrb[2].mxu0 %vm274_vm0, %v1285_v32  ;;  %1116 = vmatpush3.bf16.msra.mxu1 %v1099_v44 }
  0x1e   : > { %1102 = vmatpush3.bf16.msra.mxu0 %v1099_v44  ;;  %1001 = vmatprep.mubr.msk.f32.mxu1 %vm274_vm0, %v269_v51 }
  0x1f   : > { %1029 = vmatprep.mubr.msk.f32.mxu0 %vm274_vm0, %v1289_v35  ;;  %1104 = vmatprep.subr.bf16.mxu0 %v1103_v52 }
  0x20   : > { %1002 = vmatmul.mubr.msk.f32.gmra.mrb[4].mxu1 %vm274_vm0, %v271_v56  ;;  %1113 = vmatprep.subr.bf16.mxu1 %v1103_v52 }
  0x21   : > { %1030 = vmatmul.mubr.msk.f32.gmra.mrb[4].mxu0 %vm274_vm0, %v1299_v39  ;;  %1117 = vmatpush3.bf16.msra.mxu1 %v1103_v52 }
  0x22   : > { %1106 = vmatpush3.bf16.msra.mxu0 %v1103_v52  ;;  %1004 = vmatprep.mubr.msk.f32.mxu1 %vm274_vm0, %v273_v57  ;;  %v917_v52 = vld [vmem:[%s1411_s3] ss:$0 sm:$0xff] }
  0x23   : > { %1032 = vmatprep.mubr.msk.f32.mxu0 %vm274_vm0, %v231_v42  ;;  %1108 = vmatprep.subr.bf16.mxu0 %v1107_v58 }
  0x24   : > { %1005 = vmatmul.mubr.msk.f32.gmra.mrb[6].mxu1 %vm274_vm0, %v272_v53  ;;  %1114 = vmatprep.subr.bf16.mxu1 %v1107_v58 }
  0x25   : > { %1033 = vmatmul.mubr.msk.f32.gmra.mrb[6].mxu0 %vm274_vm0, %v232_v48  ;;  %1118 = vmatpush3.bf16.msra.mxu1 %v1107_v58 }
  0x26   : > { %1110 = vmatpush3.bf16.msra.mxu0 %v1107_v58  ;;  %1051 = vmatprep.mubr.msk.f32.mxu0 %vm274_vm0, %v529_v2 }
  0x27   : > { %1057 = vmatprep.mubr.msk.f32.mxu1 %vm274_vm0, %v537_v4 }
  0x28   : > { %1058 = vmatmul.mubr.msk.f32.vlgmr.msra.gmra.mrb[8].mxu1 %vm274_vm0, %v539_v5 }
  0x29   : > { %1052 = vmatmul.mubr.msk.f32.vlgmr.msra.gmra.mrb[0].mxu0 %vm274_vm0, %v531_v6  ;;  %1060 = vmatprep.mubr.msk.f32.mxu1 %vm274_vm0, %v541_v7 }
  0x2a   : > { %1054 = vmatprep.mubr.msk.f32.mxu0 %vm274_vm0, %v533_v8 }
  0x2c   : > { %1061 = vmatmul.mubr.msk.f32.gmra.mrb[10].mxu1 %vm274_vm0, %v540_v1 }
  0x2d   : > { %1055 = vmatmul.mubr.msk.f32.gmra.mrb[2].mxu0 %vm274_vm0, %v535_v9 }
  0xeb   : > { %v997_v10 = vpop.f32.mrb[0].mxu1 }
  0xec   : > { %v357_v11 = vpop.f32.mrb[1].mxu1 }
  0xef   : > { %v1000_v12 = vpop.f32.mrb[2].mxu1 }
  0xf0   : > { %v367_v13 = vpop.f32.mrb[3].mxu1 }
  0xf3   : > { %v1003_v14 = vpop.f32.mrb[4].mxu1 }
  0xf4   : > { %v1031_v15 = vpop.f32.mrb[4].mxu0  ;;  %v377_v16 = vpop.f32.mrb[5].mxu1 }
  0xf5   : > { %v504_v17 = vadd.f32 %v1031_v15, %v1003_v14  ;;  %v498_v18 = vpop.f32.mrb[5].mxu0 }
  0xf6   : > { %v499_v19 = vadd.f32 %v498_v18, %v377_v16 }
  0xf7   : > { %v1006_v20 = vpop.f32.mrb[6].mxu1 }
  0xf8   : > { %v1034_v21 = vpop.f32.mrb[6].mxu0  ;;  %v387_v22 = vpop.f32.mrb[7].mxu1 }
  0xf9   : > { %v514_v23 = vadd.f32 %v1034_v21, %v1006_v20  ;;  %v508_v24 = vpop.f32.mrb[7].mxu0 }
  0xfa   : > { %v509_v25 = vadd.f32 %v508_v24, %v387_v22 }
  0xfb   : > { %v1059_v27 = vpop.f32.mrb[8].mxu1 }
  0xfc   : > { %v1053_v28 = vpop.f32.mrb[0].mxu0  ;;  %v668_v29 = vadd.f32 %v1059_v27, %v504_v17  ;;  %v644_v30 = vpop.f32.mrb[9].mxu1 }
  0xfd   : > { %v1119_v31 = vadd.f32 %v1053_v28, %v997_v10  ;;  %v624_v32 = vpop.f32.mrb[1].mxu0  ;;  %v667_v33 = vadd.f32 %v644_v30, %v499_v19 }
  0xfe   : > { %v1366_v34 = vadd.f32 %v916_v26, %v668_v29  ;;  %v1120_v35 = vadd.f32 %v624_v32, %v357_v11 }
  0xff   : > { %v679_v36 = vadd.f32 %v1119_v31, %v916_v26  ;;  %v682_v37 = vadd.f32 %v916_v26, %v667_v33  ;;  %v1062_v38 = vpop.f32.mrb[10].mxu1 }
 0x100   : > { %v703_v39 = vrot.slane %v1366_v34, 1  ;;  %v678_v40 = vadd.f32 %v1120_v35, %v916_v26  ;;  %v1056_v41 = vpop.f32.mrb[2].mxu0  ;;  %v670_v42 = vadd.f32 %v1062_v38, %v514_v23  ;;  %v654_v43 = vpop.f32.mrb[11].mxu1 }
 0x101   : > { %v695_v44 = vrot.slane %v679_v36, 1  ;;  %v701_v45 = vrot.slane %v682_v37, 1  ;;  %v1121_v46 = vadd.f32 %v1056_v41, %v1000_v12  ;;  %v634_v47 = vpop.f32.mrb[3].mxu0  ;;  %v669_v48 = vadd.f32 %v654_v43, %v509_v25 }
 0x102   : > { %v694_v49 = vrot.slane %v678_v40, 1  ;;  %v685_v50 = vadd.f32 %v916_v26, %v670_v42  ;;  %v1122_v51 = vadd.f32 %v634_v47, %v367_v13 }
 0x103   : > { %v704_v53 = vsel %vm258_vm1, %v701_v45, %v703_v39  ;;  %v681_v54 = vadd.f32 %v1121_v46, %v916_v26  ;;  %v684_v55 = vadd.f32 %v916_v26, %v669_v48 }
 0x104   : > { %v696_v56 = vsel %vm258_vm1, %v694_v49, %v695_v44  ;;  %v721_v57 = vmax.f32 %v682_v37, %v704_v53  ;;  %v707_v58 = vrot.slane %v685_v50, 1  ;;  %v680_v59 = vadd.f32 %v1122_v51, %v916_v26 }
 0x105   : > { %v717_v60 = vmax.f32 %v678_v40, %v696_v56  ;;  %v699_v62 = vrot.slane %v681_v54, 1  ;;  %v705_v63 = vrot.slane %v684_v55, 1 }
 0x106   : > { %v736_v0 = vmul.f32 %v917_v52, %v721_v57  ;;  %v724_v1 = vmax.f32 %v685_v50, %v707_v58  ;;  %v697_v2 = vrot.slane %v680_v59, 1 }
 0x107   : > { %v732_v3 = vmul.f32 %v917_v52, %v717_v60  ;;  %v702_v4 = vsel %vm258_vm1, %v699_v62, %v701_v45  ;;  %v706_v5 = vsel %vm258_vm1, %v703_v39, %v705_v63  ;;  %v708_v6 = vsel %vm258_vm1, %v705_v63, %v707_v58 }
 0x108   : > { %v751_v7 = vadd.f32 %v918_v61, %v736_v0  ;;  %v720_v8 = vmax.f32 %v681_v54, %v702_v4  ;;  %v739_v9 = vmul.f32 %v917_v52, %v724_v1  ;;  %v698_v10 = vsel %vm258_vm1, %v695_v44, %v697_v2 }
 0x109   : > { %v747_v11 = vadd.f32 %v918_v61, %v732_v3  ;;  %v700_v12 = vsel %vm258_vm1, %v697_v2, %v699_v62  ;;  %v718_v13 = vmax.f32 %v679_v36, %v698_v10  ;;  %v722_v14 = vmax.f32 %v1366_v34, %v706_v5 }
 0x10a   : > { %v767_v15 = vmin.f32 %v751_v7, 0.0  ;;  %v735_v16 = vmul.f32 %v917_v52, %v720_v8  ;;  %v754_v17 = vadd.f32 %v918_v61, %v739_v9  ;;  %v719_v19 = vmax.f32 %v680_v59, %v700_v12 }
 0x10b   : > { %v763_v18 = vmin.f32 %v747_v11, 0.0  ;;  %v733_v20 = vmul.f32 %v917_v52, %v718_v13  ;;  %v723_v27 = vmax.f32 %v684_v55, %v708_v6  ;;  %v737_v33 = vmul.f32 %v917_v52, %v722_v14 }
 0x10c   : > { %v779_v21 = vmul.f32 1.442695, %v767_v15  ;;  %v750_v22 = vadd.f32 %v918_v61, %v735_v16  ;;  %v770_v23 = vmin.f32 %v754_v17, 0.0  ;;  %v734_v25 = vmul.f32 %v917_v52, %v719_v19 }
 0x10d   : > { %v771_v24 = vmul.f32 1.442695, %v763_v18  ;;  %v748_v26 = vadd.f32 %v918_v61, %v733_v20  ;;  %v738_v34 = vmul.f32 %v917_v52, %v723_v27  ;;  %v752_v37 = vadd.f32 %v918_v61, %v737_v33 }
 0x10e   : > { %1143 = vpow2.f32 %v779_v21  ;;  %v766_v28 = vmin.f32 %v750_v22, 0.0  ;;  %v785_v29 = vmul.f32 1.442695, %v770_v23  ;;  %v749_v30 = vadd.f32 %v918_v61, %v734_v25 }
 0x10f   : > { %1145 = vpow2.f32 %v771_v24  ;;  %v764_v31 = vmin.f32 %v748_v26, 0.0  ;;  %v753_v38 = vadd.f32 %v918_v61, %v738_v34  ;;  %v768_v40 = vmin.f32 %v752_v37, 0.0 }
 0x110   : > { %v777_v32 = vmul.f32 1.442695, %v766_v28  ;;  %1147 = vpow2.f32 %v785_v29  ;;  %v765_v35 = vmin.f32 %v749_v30, 0.0  ;;  %vm759_vm3 = vcmp.gt.f32.partialorder %v751_v7, 0.0 }
 0x111   : > { %v773_v36 = vmul.f32 1.442695, %v764_v31  ;;  %v769_v41 = vmin.f32 %v753_v38, 0.0  ;;  %v781_v42 = vmul.f32 1.442695, %v768_v40  ;;  %vm755_vm4 = vcmp.gt.f32.partialorder %v747_v11, 0.0 }
 0x112   : > { %1149 = vpow2.f32 %v777_v32  ;;  %v775_v39 = vmul.f32 1.442695, %v765_v35  ;;  %vm762_vm6 = vcmp.gt.f32.partialorder %v754_v17, 0.0  ;;  %vm758_vm7 = vcmp.gt.f32.partialorder %v750_v22, 0.0 }
 0x113   : > { %1151 = vpow2.f32 %v773_v36  ;;  %v783_v43 = vmul.f32 1.442695, %v769_v41  ;;  %vm756_vm8 = vcmp.gt.f32.partialorder %v748_v26, 0.0  ;;  %vm757_vm9 = vcmp.gt.f32.partialorder %v749_v30, 0.0 }
 0x114   : > { %1153 = vpow2.f32 %v775_v39  ;;  %vm760_vm10 = vcmp.gt.f32.partialorder %v752_v37, 0.0  ;;  %vm761_vm11 = vcmp.gt.f32.partialorder %v753_v38, 0.0 }
 0x115   : > { %1155 = vpow2.f32 %v781_v42 }
 0x116   : > { %1157 = vpow2.f32 %v783_v43 }
 0x118   : > { %v1144_v44 = vpop.eup %1143 }
 0x119   : > { %v1146_v45 = vpop.eup %1145  ;;  %v923_v46 = vadd.f32 -1.0, %v1144_v44 }
 0x11a   : > { %v1148_v47 = vpop.eup %1147  ;;  %v919_v48 = vadd.f32 -1.0, %v1146_v45 }
 0x11b   : > { %v799_v49 = vsel %vm759_vm3, %v751_v7, %v923_v46  ;;  %v926_v50 = vadd.f32 -1.0, %v1148_v47 }
 0x11c   : > { %v1150_v51 = vpop.eup %1149  ;;  %v795_v52 = vsel %vm755_vm4, %v747_v11, %v919_v48  ;;  %807 = vst.msk [vmem:[%s1388_s10 + $0x20] sm:$0xff] %vm274_vm0, %v799_v49 }
 0x11d   : > { %v1152_v53 = vpop.eup %1151  ;;  %803 = vst.msk [vmem:[%s1388_s10] sm:$0xff] %vm274_vm0, %v795_v52  ;;  %v922_v54 = vadd.f32 -1.0, %v1150_v51  ;;  %v802_v55 = vsel %vm762_vm6, %v754_v17, %v926_v50 }
 0x11e   : > { %811 = vst.msk [vmem:[%s1388_s10 + $0x38] sm:$0x1] %vm810_vm5, %v802_v55  ;;  %v920_v56 = vadd.f32 -1.0, %v1152_v53  ;;  %v1154_v57 = vpop.eup %1153 }
 0x11f   : > { %v798_v58 = vsel %vm758_vm7, %v750_v22, %v922_v54  ;;  %v921_v59 = vadd.f32 -1.0, %v1154_v57  ;;  %v1156_v61 = vpop.eup %1155 }
 0x120   : > { %806 = vst.msk [vmem:[%s1388_s10 + $0x18] sm:$0xff] %vm274_vm0, %v798_v58  ;;  %v796_v60 = vsel %vm756_vm8, %v748_v26, %v920_v56  ;;  %v1158_v63 = vpop.eup %1157  ;;  %v924_v0 = vadd.f32 -1.0, %v1156_v61 }
 0x121   : > { %804 = vst.msk [vmem:[%s1388_s10 + $0x8] sm:$0xff] %vm274_vm0, %v796_v60  ;;  %v797_v62 = vsel %vm757_vm9, %v749_v30, %v921_v59  ;;  %v925_v1 = vadd.f32 -1.0, %v1158_v63 }
 0x122   : > { %805 = vst.msk [vmem:[%s1388_s10 + $0x10] sm:$0xff] %vm274_vm0, %v797_v62  ;;  %v800_v2 = vsel %vm760_vm10, %v752_v37, %v924_v0 }
 0x123   : > { %v801_v3 = vsel %vm761_vm11, %v753_v38, %v925_v1  ;;  %808 = vst.msk [vmem:[%s1388_s10 + $0x28] sm:$0xff] %vm274_vm0, %v800_v2 }
 0x124   : > { %809 = vst.msk [vmem:[%s1388_s10 + $0x30] sm:$0xff] %vm274_vm0, %v801_v3 }
 0x125 PF: > { %s15_s18 = sadd.s32 1, %s1165_s18  }
 0x126   : > { %p12_p4 = scmp.ge.s32.totalorder %s15_s18, 4  }
 0x128   :  { %14 = sbr.rel (!%p12_p4) target bundleno = 1 (0x1), region = 72 }

// kernel: snr_forward.15
= control target key start
LH: loop header
LB: loop body
LE: loop exit
PB: predicated region body
PF: predicated region fallthrough
CT: control target
= control target key end

     0   :  { %s1119_s18 = smov 0   ;;  %s1410_s0 = inlined_call_operand.vmem [shape: f32[2,57,64], index: 0, kind: input, shape index: {}]   ;;  %s1411_s1 = inlined_call_operand.vmem [shape: f32[3,64,64], index: 1, kind: input, shape index: {}]   ;;  %s1412_s2 = inlined_call_operand.vmem [shape: f32[1,64], index: 2, kind: input, shape index: {}]   ;;  %s1413_s3 = inlined_call_operand.vmem [shape: f32[1,64], index: 3, kind: input, shape index: {}]   ;;  %s1414_s4 = inlined_call_operand.vmem [shape: f32[1,64], index: 4, kind: input, shape index: {}]   ;;  %s1415_s5 = inlined_call_operand.vmem [shape: f32[2,55,64], index: 5, kind: output, shape index: {}]  }
   0x1 LB: > { %s794_s19 = sadd.s32 4294967295, %s1084_s18   ;;  %p798_p0 = scmp.ge.s32.totalorder %s1084_s18, 1  ;;  %s1084_s18 = sphi %s1119_s18, %s15_s18  }
   0x2   : > { %p187_p1 = scmp.lt.s32.totalorder %s1084_s18, 3 }
   0x4   : > { %p188_p2 = pnand %p798_p0, %p187_p1 }
   0x5   : > { %v802_v0 = vld [vmem:[%s1411_s1 + $0x40] sm:$0xff] (!%p188_p2)  ;;  %v803_v1 = vld [vmem:[%s1411_s1 + $0x48] sm:$0xff] (!%p188_p2)  ;;  %v804_v2 = vld [vmem:[%s1411_s1 + $0x50] sm:$0xff] (!%p188_p2)  ;;  %v1086_v3 = vmov (!%p188_p2), 0.0|0.0   ;;  %p215_p3 = scmp.lt.s32.totalorder (!%p188_p2), %s794_s19, 1  ;;  %vm1087_vm0 = vmmov (!%p188_p2), 0  }
   0x6   : > { %191 = sbr.rel (%p188_p2) target bundleno = 304 (0x130), region = 40  ;;  %1044 = vmatprep.subr.bf16.mxu1 (!%p188_p2), %v1086_v3  ;;  %1008 = vmatprep.subr.bf16.mxu0 (!%p188_p2), %v1086_v3  ;;  %v1009_v4 = vpack.c.bf16 (!%p188_p2), %v803_v1, %v802_v0  ;;  %v805_v5 = vld [vmem:[%s1411_s1 + $0x58] sm:$0xff] (!%p188_p2)  ;;  %v1088_v6 = vmov (!%p188_p2), 0.0   ;;  %v806_v8 = vld [vmem:[%s1411_s1 + $0x60] sm:$0xff] (!%p188_p2)  ;;  %v807_v9 = vld [vmem:[%s1411_s1 + $0x68] sm:$0xff] (!%p188_p2)  ;;  %vm257_vm1 = vcmask (!%p188_p2), 1046528  }
   0x7   : > { %925 = vmatprep.mubr.msk.f32.mxu1 (!%p188_p2), %vm1087_vm0, %v1088_v6  ;;  %913 = vmatprep.mubr.msk.f32.mxu0 (!%p188_p2), %vm1087_vm0, %v1088_v6  ;;  %v1012_v7 = vpack.c.bf16 (!%p188_p2), %v805_v5, %v804_v2  ;;  %v1015_v10 = vpack.c.bf16 (!%p188_p2), %v807_v9, %v806_v8  ;;  %v808_v11 = vld [vmem:[%s1411_s1 + $0x70] sm:$0xff] (!%p188_p2)  ;;  %v809_v12 = vld [vmem:[%s1411_s1 + $0x78] sm:$0xff] (!%p188_p2)  ;;  %v233_v18 = vld [vmem:[%s1411_s1] sm:$0xff] (!%p188_p2)  ;;  %vm271_vm2 = vcmask (!%p188_p2), 523264   ;;  %vm510_vm3 = vcmask (!%p188_p2), 1045504  }
   0x8   : > { %1048 = vmatpush3.bf16.msra.mxu1 (!%p188_p2), %v1009_v4  ;;  %1010 = vmatpush3.bf16.msra.mxu0 (!%p188_p2), %v1009_v4  ;;  %v1018_v17 = vpack.c.bf16 (!%p188_p2), %v809_v12, %v808_v11  ;;  %v234_v19 = vld [vmem:[%s1411_s1 + $0x8] sm:$0xff] (!%p188_p2)  ;;  %v824_v24 = vld [vmem:[%s1411_s1 + $0x80] sm:$0xff] (!%p188_p2)  ;;  %v235_v33 = vld [vmem:[%s1411_s1 + $0x10] sm:$0xff] (!%p188_p2)  ;;  %vm737_vm10 = vcmask (!%p188_p2), 522240  }
   0x9   : > { %1045 = vmatprep.subr.bf16.mxu1 (!%p188_p2), %v1086_v3  ;;  %1011 = vmatprep.subr.bf16.mxu0 (!%p188_p2), %v1086_v3  ;;  %v825_v25 = vld [vmem:[%s1411_s1 + $0x88] sm:$0xff] (!%p188_p2)  ;;  %v1021_v28 = vpack.c.bf16 (!%p188_p2), %v234_v19, %v233_v18  ;;  %v236_v34 = vld [vmem:[%s1411_s1 + $0x18] sm:$0xff] (!%p188_p2)  ;;  %v826_v36 = vld [vmem:[%s1411_s1 + $0x90] sm:$0xff] (!%p188_p2) }
   0xa   : > { %v1033_v29 = vpack.c.bf16 (!%p188_p2), %v825_v25, %v824_v24  ;;  %v827_v37 = vld [vmem:[%s1411_s1 + $0x98] sm:$0xff] (!%p188_p2)  ;;  %v1024_v39 = vpack.c.bf16 (!%p188_p2), %v236_v34, %v235_v33  ;;  %v237_v44 = vld [vmem:[%s1411_s1 + $0x20] sm:$0xff] (!%p188_p2)  ;;  %v238_v45 = vld [vmem:[%s1411_s1 + $0x28] sm:$0xff] (!%p188_p2) }
   0xb   : > { %v1036_v41 = vpack.c.bf16 (!%p188_p2), %v827_v37, %v826_v36  ;;  %v828_v46 = vld [vmem:[%s1411_s1 + $0xa0] sm:$0xff] (!%p188_p2)  ;;  %v829_v47 = vld [vmem:[%s1411_s1 + $0xa8] sm:$0xff] (!%p188_p2)  ;;  %v1027_v49 = vpack.c.bf16 (!%p188_p2), %v238_v45, %v237_v44  ;;  %v239_v51 = vld [vmem:[%s1411_s1 + $0x30] sm:$0xff] (!%p188_p2) }
   0xc   : > { %1049 = vmatpush3.bf16.msra.mxu1 (!%p188_p2), %v1012_v7  ;;  %1013 = vmatpush3.bf16.msra.mxu0 (!%p188_p2), %v1012_v7  ;;  %v1039_v50 = vpack.c.bf16 (!%p188_p2), %v829_v47, %v828_v46  ;;  %v240_v52 = vld [vmem:[%s1411_s1 + $0x38] sm:$0xff] (!%p188_p2)  ;;  %v830_v53 = vld [vmem:[%s1411_s1 + $0xb0] sm:$0xff] (!%p188_p2) }
   0xd   : > { %s1417_s19 = smov (!%p215_p3, %s794_s19), 1  ;;  %1046 = vmatprep.subr.bf16.mxu1 %v1086_v3  ;;  %1014 = vmatprep.subr.bf16.mxu0 %v1086_v3  ;;  %v831_v54 = vld [vmem:[%s1411_s1 + $0xb8] sm:$0xff]  ;;  %v1030_v58 = vpack.c.bf16 %v240_v52, %v239_v51 }
   0xe   : > { %s851_s7 = sshll.u32 %s1417_s19, 6  ;;  %v1042_v59 = vpack.c.bf16 %v831_v54, %v830_v53 }
   0xf   : > { %s1159_s10 = scalar_lea.vmem %s1410_s0, %s851_s7  ;;  %s1052_s7 = smul.u32 56, %s1417_s19 }
  0x10   : > { %v1168_v13 = vld [vmem:[%s1159_s10 + $0x20] sm:$0xff]  ;;  %v1173_v14 = vld [vmem:[%s1159_s10 + $0x28] sm:$0xff]  ;;  %1050 = vmatpush3.bf16.msra.mxu1 %v1015_v10  ;;  %1016 = vmatpush3.bf16.msra.mxu0 %v1015_v10  ;;  %v1200_v26 = vld [vmem:[%s1159_s10 + $0x10] sm:$0xff] }
  0x11   : > { %v1176_v15 = vld [vmem:[%s1159_s10] sm:$0xff]  ;;  %v1179_v16 = vld [vmem:[%s1159_s10 + $0x8] sm:$0xff]  ;;  %v265_v20 = vrot.slane %v1168_v13, 1  ;;  %v267_v21 = vrot.slane %v1173_v14, 1  ;;  %1047 = vmatprep.subr.bf16.mxu1 %v1086_v3  ;;  %1017 = vmatprep.subr.bf16.mxu0 %v1086_v3  ;;  %v1203_v27 = vld [vmem:[%s1159_s10 + $0x30] sm:$0xff]  ;;  %v261_v32 = vrot.slane %v1200_v26, 1  ;;  %s1387_s9 = scalar_lea.vmem %s1415_s5, %s1052_s7 }
  0x12   : > { %v258_v22 = vrot.slane %v1176_v15, 1  ;;  %v259_v23 = vrot.slane %v1179_v16, 1  ;;  %v269_v35 = vrot.slane %v1203_v27, 1  ;;  %v1226_v38 = vld [vmem:[%s1159_s10 + $0x18] sm:$0xff]  ;;  %v511_v55 = vrot.slane %v1176_v15, 2 }
  0x13   : > { %v268_v30 = vsel %vm257_vm1, %v265_v20, %v267_v21  ;;  %v263_v43 = vrot.slane %v1226_v38, 1  ;;  %v512_v56 = vrot.slane %v1179_v16, 2  ;;  %v514_v61 = vrot.slane %v1200_v26, 2  ;;  %v232_v7 = vld [vmem:[%s1159_s10 + $0x38] sm:$0x1] }
  0x14   : > { %1051 = vmatpush3.bf16.msra.mxu1 %v1018_v17  ;;  %1019 = vmatpush3.bf16.msra.mxu0 %v1018_v17  ;;  %v260_v31 = vsel %vm257_vm1, %v258_v22, %v259_v23  ;;  %v262_v40 = vsel %vm257_vm1, %v259_v23, %v261_v32  ;;  %v270_v42 = vsel %vm257_vm1, %v267_v21, %v269_v35  ;;  %v516_v63 = vrot.slane %v1226_v38, 2 }
  0x15   : > { %1020 = vmatprep.subr.bf16.mxu1 %v1086_v3  ;;  %1032 = vmatprep.subr.bf16.mxu0 %v1086_v3  ;;  %v264_v48 = vsel %vm257_vm1, %v261_v32, %v263_v43  ;;  %v266_v57 = vsel %vm257_vm1, %v263_v43, %v265_v20  ;;  %v513_v60 = vsel %vm510_vm3, %v511_v55, %v512_v56  ;;  %v518_v1 = vrot.slane %v1168_v13, 2 }
  0x16   : > { %v515_v62 = vsel %vm510_vm3, %v512_v56, %v514_v61  ;;  %v517_v0 = vsel %vm510_vm3, %v514_v61, %v516_v63  ;;  %v522_v5 = vrot.slane %v1203_v27, 2  ;;  %v524_v9 = vrot.slane %v232_v7, 2 }
  0x17   : > { %926 = vmatmul.mubr.msk.f32.vlgmr.msra.gmra.mrb[0].mxu1 %vm271_vm2, %v268_v30  ;;  %914 = vmatmul.mubr.msk.f32.vlgmr.msra.gmra.mrb[0].mxu0 %vm271_vm2, %v260_v31  ;;  %v519_v2 = vsel %vm510_vm3, %v516_v63, %v518_v1  ;;  %v1358_v31 = vld [vmem:[%s1413_s3] ss:$0 sm:$0xff] }
  0x18   : > { %1022 = vmatpush3.bf16.msra.mxu1 %v1021_v28  ;;  %1034 = vmatpush3.bf16.msra.mxu0 %v1033_v29  ;;  %v525_v10 = vsel %vm510_vm3, %v522_v5, %v524_v9  ;;  %v1353_v29 = vld [vmem:[%s1412_s2] ss:$0 sm:$0xff] }
  0x19   : > { %916 = vmatprep.mubr.msk.f32.mxu0 %vm1087_vm0, %v1088_v6  ;;  %1023 = vmatprep.subr.bf16.mxu1 %v1086_v3 }
  0x1a   : > { %1035 = vmatprep.subr.bf16.mxu0 %v1086_v3  ;;  %928 = vmatprep.mubr.msk.f32.mxu1 %vm1087_vm0, %v1088_v6 }
  0x1b   : > { %917 = vmatmul.mubr.msk.f32.gmra.mrb[2].mxu0 %vm271_vm2, %v262_v40  ;;  %929 = vmatmul.mubr.msk.f32.gmra.mrb[2].mxu1 %vm271_vm2, %v270_v42 }
  0x1c   : > { %1025 = vmatpush3.bf16.msra.mxu1 %v1024_v39  ;;  %1037 = vmatpush3.bf16.msra.mxu0 %v1036_v41 }
  0x1d   : > { %919 = vmatprep.mubr.msk.f32.mxu0 %vm1087_vm0, %v1088_v6  ;;  %1026 = vmatprep.subr.bf16.mxu1 %v1086_v3 }
  0x1e   : > { %1038 = vmatprep.subr.bf16.mxu0 %v1086_v3  ;;  %931 = vmatprep.mubr.msk.f32.mxu1 %vm1087_vm0, %v1088_v6 }
  0x1f   : > { %920 = vmatmul.mubr.msk.f32.gmra.mrb[4].mxu0 %vm271_vm2, %v264_v48  ;;  %932 = vmatmul.mubr.msk.f32.gmra.mrb[4].mxu1 %vm271_vm2, %v269_v35 }
  0x20   : > { %1028 = vmatpush3.bf16.msra.mxu1 %v1027_v49  ;;  %1040 = vmatpush3.bf16.msra.mxu0 %v1039_v50 }
  0x21   : > { %922 = vmatprep.mubr.msk.f32.mxu0 %vm1087_vm0, %v1088_v6  ;;  %1029 = vmatprep.subr.bf16.mxu1 %v1086_v3 }
  0x22   : > { %1041 = vmatprep.subr.bf16.mxu0 %v1086_v3  ;;  %950 = vmatprep.mubr.msk.f32.mxu1 %vm1087_vm0, %v1088_v6  ;;  %v520_v3 = vrot.slane %v1173_v14, 2 }
  0x23   : > { %923 = vmatmul.mubr.msk.f32.gmra.mrb[6].mxu0 %vm271_vm2, %v266_v57 }
  0x24   : > { %1031 = vmatpush3.bf16.msra.mxu1 %v1030_v58  ;;  %1043 = vmatpush3.bf16.msra.mxu0 %v1042_v59  ;;  %v521_v4 = vsel %vm510_vm3, %v518_v1, %v520_v3  ;;  %v523_v8 = vsel %vm510_vm3, %v520_v3, %v522_v5 }
  0x25   : > { %987 = vmatprep.mubr.msk.f32.mxu0 %vm1087_vm0, %v1088_v6 }
  0x27   : > { %951 = vmatmul.mubr.msk.f32.vlgmr.msra.gmra.mrb[6].mxu1 %vm271_vm2, %v1176_v15  ;;  %988 = vmatmul.mubr.msk.f32.vlgmr.msra.gmra.mrb[8].mxu0 %vm271_vm2, %v513_v60 }
  0x28   : > { %953 = vmatprep.mubr.msk.f32.mxu1 %vm1087_vm0, %v1088_v6  ;;  %990 = vmatprep.mubr.msk.f32.mxu0 %vm1087_vm0, %v1088_v6 }
  0x2b   : > { %954 = vmatmul.mubr.msk.f32.gmra.mrb[8].mxu1 %vm271_vm2, %v1179_v16  ;;  %991 = vmatmul.mubr.msk.f32.gmra.mrb[10].mxu0 %vm271_vm2, %v515_v62 }
  0x2c   : > { %956 = vmatprep.mubr.msk.f32.mxu1 %vm1087_vm0, %v1088_v6  ;;  %993 = vmatprep.mubr.msk.f32.mxu0 %vm1087_vm0, %v1088_v6 }
  0x2f   : > { %957 = vmatmul.mubr.msk.f32.gmra.mrb[10].mxu1 %vm271_vm2, %v1200_v26  ;;  %994 = vmatmul.mubr.msk.f32.gmra.mrb[12].mxu0 %vm271_vm2, %v517_v0 }
  0x30   : > { %959 = vmatprep.mubr.msk.f32.mxu1 %vm1087_vm0, %v1088_v6  ;;  %996 = vmatprep.mubr.msk.f32.mxu0 %vm1087_vm0, %v1088_v6 }
  0x33   : > { %960 = vmatmul.mubr.msk.f32.gmra.mrb[12].mxu1 %vm271_vm2, %v1226_v38  ;;  %997 = vmatmul.mubr.msk.f32.gmra.mrb[14].mxu0 %vm271_vm2, %v519_v2  ;;  %v1364_v38 = vld [vmem:[%s1414_s4] ss:$0 sm:$0xff] }
  0x34   : > { %962 = vmatprep.mubr.msk.f32.mxu1 %vm1087_vm0, %v1088_v6  ;;  %999 = vmatprep.mubr.msk.f32.mxu0 %vm1087_vm0, %v1088_v6 }
  0x37   : > { %963 = vmatmul.mubr.msk.f32.gmra.mrb[14].mxu1 %vm271_vm2, %v1168_v13  ;;  %1000 = vmatmul.mubr.msk.f32.gmra.mrb[16].mxu0 %vm271_vm2, %v521_v4 }
  0x38   : > { %965 = vmatprep.mubr.msk.f32.mxu1 %vm1087_vm0, %v1088_v6  ;;  %1002 = vmatprep.mubr.msk.f32.mxu0 %vm1087_vm0, %v1088_v6 }
  0x3b   : > { %966 = vmatmul.mubr.msk.f32.gmra.mrb[16].mxu1 %vm271_vm2, %v1173_v14  ;;  %1003 = vmatmul.mubr.msk.f32.gmra.mrb[18].mxu0 %vm271_vm2, %v523_v8 }
  0x3c   : > { %968 = vmatprep.mubr.msk.f32.mxu1 %vm1087_vm0, %v1088_v6  ;;  %1005 = vmatprep.mubr.msk.f32.mxu0 %vm1087_vm0, %v1088_v6 }
  0x3f   : > { %969 = vmatmul.mubr.msk.f32.gmra.mrb[18].mxu1 %vm271_vm2, %v1203_v27  ;;  %1006 = vmatmul.mubr.msk.f32.gmra.mrb[20].mxu0 %vm271_vm2, %v525_v10 }
  0xea   : > { %v372_v11 = vpop.f32.mrb[0].mxu1  ;;  %v352_v12 = vpop.f32.mrb[0].mxu0 }
  0xeb   : > { %v927_v13 = vpop.f32.mrb[1].mxu1  ;;  %v915_v15 = vpop.f32.mrb[1].mxu0 }
  0xee   : > { %v357_v14 = vpop.f32.mrb[2].mxu0  ;;  %v1346_v16 = vpop.f32.mrb[2].mxu1 }
  0xef   : > { %v918_v17 = vpop.f32.mrb[3].mxu0  ;;  %v930_v18 = vpop.f32.mrb[3].mxu1 }
  0xf2   : > { %v362_v19 = vpop.f32.mrb[4].mxu0  ;;  %v1348_v20 = vpop.f32.mrb[4].mxu1 }
  0xf3   : > { %v921_v6 = vpop.f32.mrb[5].mxu0  ;;  %v933_v21 = vpop.f32.mrb[5].mxu1 }
  0xf6   : > { %v367_v22 = vpop.f32.mrb[6].mxu0 }
  0xf7   : > { %v924_v23 = vpop.f32.mrb[7].mxu0 }
  0xfa   : > { %v466_v24 = vpop.f32.mrb[6].mxu1  ;;  %v606_v25 = vpop.f32.mrb[8].mxu0 }
  0xfb   : > { %v467_v26 = vadd.f32 %v466_v24, %v352_v12  ;;  %v952_v27 = vpop.f32.mrb[7].mxu1  ;;  %v989_v28 = vpop.f32.mrb[9].mxu0 }
  0xfd   : > { %v640_v30 = vadd.f32 %v606_v25, %v467_v26 }
  0xfe   : > { %v471_v32 = vpop.f32.mrb[8].mxu1  ;;  %v611_v33 = vpop.f32.mrb[10].mxu0 }
  0xff   : > { %v654_v34 = vadd.f32 %v1353_v29, %v640_v30  ;;  %v472_v35 = vadd.f32 %v471_v32, %v357_v14  ;;  %v955_v36 = vpop.f32.mrb[9].mxu1  ;;  %v992_v37 = vpop.f32.mrb[11].mxu0 }
 0x101   : > { %v668_v39 = vmul.f32 %v1358_v31, %v654_v34  ;;  %v641_v40 = vadd.f32 %v611_v33, %v472_v35 }
 0x102   : > { %v476_v41 = vpop.f32.mrb[10].mxu1  ;;  %v616_v42 = vpop.f32.mrb[12].mxu0 }
 0x103   : > { %v682_v43 = vadd.f32 %v1364_v38, %v668_v39  ;;  %v655_v44 = vadd.f32 %v1353_v29, %v641_v40  ;;  %v477_v45 = vadd.f32 %v476_v41, %v362_v19  ;;  %v958_v46 = vpop.f32.mrb[11].mxu1  ;;  %v995_v47 = vpop.f32.mrb[13].mxu0 }
 0x105   : > { %v696_v48 = vmin.f32 %v682_v43, 0.0  ;;  %v669_v49 = vmul.f32 %v1358_v31, %v655_v44  ;;  %v642_v50 = vadd.f32 %v616_v42, %v477_v45  ;;  %vm689_vm4 = vcmp.gt.f32.partialorder %v682_v43, 0.0 }
 0x106   : > { %v481_v51 = vpop.f32.mrb[12].mxu1  ;;  %v621_v52 = vpop.f32.mrb[14].mxu0 }
 0x107   : > { %v703_v53 = vmul.f32 1.442695, %v696_v48  ;;  %v683_v54 = vadd.f32 %v1364_v38, %v669_v49  ;;  %v656_v55 = vadd.f32 %v1353_v29, %v642_v50  ;;  %v482_v56 = vadd.f32 %v481_v51, %v367_v22  ;;  %v961_v57 = vpop.f32.mrb[13].mxu1  ;;  %v998_v58 = vpop.f32.mrb[15].mxu0 }
 0x109   : > { %1064 = vpow2.f32 %v703_v53  ;;  %v697_v59 = vmin.f32 %v683_v54, 0.0  ;;  %v670_v60 = vmul.f32 %v1358_v31, %v656_v55  ;;  %v643_v61 = vadd.f32 %v621_v52, %v482_v56 }
 0x10a   : > { %v486_v62 = vpop.f32.mrb[14].mxu1  ;;  %v626_v63 = vpop.f32.mrb[16].mxu0  ;;  %vm690_vm5 = vcmp.gt.f32.partialorder %v683_v54, 0.0 }
 0x10b   : > { %v705_v0 = vmul.f32 1.442695, %v697_v59  ;;  %v684_v1 = vadd.f32 %v1364_v38, %v670_v60  ;;  %v487_v2 = vadd.f32 %v486_v62, %v372_v11  ;;  %v964_v3 = vpop.f32.mrb[15].mxu1  ;;  %v1001_v4 = vpop.f32.mrb[17].mxu0  ;;  %v657_v5 = vadd.f32 %v1353_v29, %v643_v61 }
 0x10d   : > { %1066 = vpow2.f32 %v705_v0  ;;  %v698_v7 = vmin.f32 %v684_v1, 0.0  ;;  %v644_v8 = vadd.f32 %v626_v63, %v487_v2  ;;  %v671_v9 = vmul.f32 %v1358_v31, %v657_v5 }
 0x10e   : > { %v491_v10 = vpop.f32.mrb[16].mxu1  ;;  %v631_v12 = vpop.f32.mrb[18].mxu0  ;;  %vm691_vm6 = vcmp.gt.f32.partialorder %v684_v1, 0.0 }
 0x10f   : > { %v707_v13 = vmul.f32 1.442695, %v698_v7  ;;  %v658_v15 = vadd.f32 %v1353_v29, %v644_v8  ;;  %v492_v14 = vadd.f32 %v491_v10, %v1346_v16  ;;  %v967_v17 = vpop.f32.mrb[17].mxu1  ;;  %v1004_v18 = vpop.f32.mrb[19].mxu0  ;;  %v685_v11 = vadd.f32 %v1364_v38, %v671_v9 }
 0x111   : > { %1068 = vpow2.f32 %v707_v13  ;;  %v672_v19 = vmul.f32 %v1358_v31, %v658_v15  ;;  %v645_v6 = vadd.f32 %v631_v12, %v492_v14  ;;  %v699_v21 = vmin.f32 %v685_v11, 0.0 }
 0x112   : > { %v496_v22 = vpop.f32.mrb[18].mxu1  ;;  %v636_v23 = vpop.f32.mrb[20].mxu0  ;;  %vm692_vm7 = vcmp.gt.f32.partialorder %v685_v11, 0.0 }
 0x113   : > { %v1065_v24 = vpop.eup %1064  ;;  %v686_v25 = vadd.f32 %v1364_v38, %v672_v19  ;;  %v659_v26 = vadd.f32 %v1353_v29, %v645_v6  ;;  %v497_v27 = vadd.f32 %v496_v22, %v1348_v20  ;;  %v970_v16 = vpop.f32.mrb[19].mxu1  ;;  %v709_v32 = vmul.f32 1.442695, %v699_v21 }
 0x114   : > { %v1007_v28 = vpop.f32.mrb[21].mxu0  ;;  %v842_v30 = vadd.f32 -1.0, %v1065_v24 }
 0x115   : > { %v700_v33 = vmin.f32 %v686_v25, 0.0  ;;  %v673_v34 = vmul.f32 %v1358_v31, %v659_v26  ;;  %v646_v35 = vadd.f32 %v636_v23, %v497_v27  ;;  %1070 = vpow2.f32 %v709_v32 }
 0x116   : > { %v724_v36 = vsel %vm689_vm4, %v682_v43, %v842_v30  ;;  %vm693_vm8 = vcmp.gt.f32.partialorder %v686_v25, 0.0 }
 0x117   : > { %v1067_v37 = vpop.eup %1066  ;;  %731 = vst.msk [vmem:[%s1387_s9] sm:$0xff] %vm271_vm2, %v724_v36  ;;  %v711_v20 = vmul.f32 1.442695, %v700_v33  ;;  %v687_v39 = vadd.f32 %v1364_v38, %v673_v34  ;;  %v660_v40 = vadd.f32 %v1353_v29, %v646_v35 }
 0x118   : > { %v843_v41 = vadd.f32 -1.0, %v1067_v37 }
 0x119   : > { %1072 = vpow2.f32 %v711_v20  ;;  %v701_v42 = vmin.f32 %v687_v39, 0.0  ;;  %v674_v44 = vmul.f32 %v1358_v31, %v660_v40  ;;  %vm694_vm9 = vcmp.gt.f32.partialorder %v687_v39, 0.0 }
 0x11a   : > { %v725_v45 = vsel %vm690_vm5, %v683_v54, %v843_v41 }
 0x11b   : > { %v1069_v46 = vpop.eup %1068  ;;  %732 = vst.msk [vmem:[%s1387_s9 + $0x8] sm:$0xff] %vm271_vm2, %v725_v45  ;;  %v713_v43 = vmul.f32 1.442695, %v701_v42  ;;  %v688_v47 = vadd.f32 %v1364_v38, %v674_v44 }
 0x11c   : > { %v844_v48 = vadd.f32 -1.0, %v1069_v46 }
 0x11d   : > { %1074 = vpow2.f32 %v713_v43  ;;  %v702_v29 = vmin.f32 %v688_v47, 0.0  ;;  %vm695_vm11 = vcmp.gt.f32.partialorder %v688_v47, 0.0 }
 0x11e   : > { %v726_v49 = vsel %vm691_vm6, %v684_v1, %v844_v48 }
 0x11f   : > { %733 = vst.msk [vmem:[%s1387_s9 + $0x10] sm:$0xff] %vm271_vm2, %v726_v49  ;;  %v715_v50 = vmul.f32 1.442695, %v702_v29  ;;  %v1071_v51 = vpop.eup %1070 }
 0x120   : > { %v845_v31 = vadd.f32 -1.0, %v1071_v51 }
 0x121   : > { %1076 = vpow2.f32 %v715_v50 }
 0x122   : > { %v727_v53 = vsel %vm692_vm7, %v685_v11, %v845_v31 }
 0x123   : > { %v1073_v52 = vpop.eup %1072  ;;  %734 = vst.msk [vmem:[%s1387_s9 + $0x18] sm:$0xff] %vm271_vm2, %v727_v53 }
 0x124   : > { %v846_v38 = vadd.f32 -1.0, %v1073_v52 }
 0x126   : > { %v728_v54 = vsel %vm693_vm8, %v686_v25, %v846_v38 }
 0x127   : > { %v1075_v55 = vpop.eup %1074  ;;  %735 = vst.msk [vmem:[%s1387_s9 + $0x20] sm:$0xff] %vm271_vm2, %v728_v54 }
 0x128   : > { %v847_v56 = vadd.f32 -1.0, %v1075_v55 }
 0x12a   : > { %v729_v57 = vsel %vm694_vm9, %v687_v39, %v847_v56 }
 0x12b   : > { %v1077_v58 = vpop.eup %1076  ;;  %736 = vst.msk [vmem:[%s1387_s9 + $0x28] sm:$0xff] %vm271_vm2, %v729_v57 }
 0x12c   : > { %v848_v59 = vadd.f32 -1.0, %v1077_v58 }
 0x12e   : > { %v730_v60 = vsel %vm695_vm11, %v688_v47, %v848_v59 }
 0x12f   : > { %738 = vst.msk [vmem:[%s1387_s9 + $0x30] sm:$0x7f] %vm737_vm10, %v730_v60 }
 0x130 PF: > { %s15_s18 = sadd.s32 1, %s1084_s18  }
 0x131   : > { %p12_p4 = scmp.ge.s32.totalorder %s15_s18, 4  }
 0x133   :  { %14 = sbr.rel (!%p12_p4) target bundleno = 1 (0x1), region = 72 }

// kernel: snr_forward.13
= control target key start
LH: loop header
LB: loop body
LE: loop exit
PB: predicated region body
PF: predicated region fallthrough
CT: control target
= control target key end

     0   :  { %s1158_s18 = smov 0   ;;  %s1358_s0 = inlined_call_operand.vmem [shape: f32[2,62,64], index: 0, kind: input, shape index: {}]   ;;  %s1359_s1 = inlined_call_operand.vmem [shape: f32[3,64,64], index: 1, kind: input, shape index: {}]   ;;  %s1360_s2 = inlined_call_operand.vmem [shape: f32[1,64], index: 2, kind: input, shape index: {}]   ;;  %s1361_s3 = inlined_call_operand.vmem [shape: f32[1,64], index: 3, kind: input, shape index: {}]   ;;  %s1362_s4 = inlined_call_operand.vmem [shape: f32[1,64], index: 4, kind: input, shape index: {}]   ;;  %s1363_s5 = inlined_call_operand.vmem [shape: f32[2,60,64], index: 5, kind: output, shape index: {}]  }
   0x1 LB: > { %s828_s19 = sadd.s32 4294967295, %s1126_s18   ;;  %p832_p0 = scmp.ge.s32.totalorder %s1126_s18, 1  ;;  %s1126_s18 = sphi %s1158_s18, %s15_s18  }
   0x2   : > { %p187_p1 = scmp.lt.s32.totalorder %s1126_s18, 3 }
   0x4   : > { %p188_p2 = pnand %p832_p0, %p187_p1 }
   0x5   : > { %v837_v0 = vld [vmem:[%s1359_s1 + $0x40] sm:$0xff] (!%p188_p2)  ;;  %v838_v1 = vld [vmem:[%s1359_s1 + $0x48] sm:$0xff] (!%p188_p2)  ;;  %p215_p3 = scmp.lt.s32.totalorder (!%p188_p2), %s828_s19, 1  ;;  %v839_v5 = vld [vmem:[%s1359_s1 + $0x50] sm:$0xff] (!%p188_p2)  ;;  %vm274_vm0 = vcmask (!%p188_p2), 523264   ;;  %vm258_vm1 = vcmask (!%p188_p2), 1046528  }
   0x6   : > { %191 = sbr.rel (%p188_p2) target bundleno = 286 (0x11e), region = 40  ;;  %v233_v2 = vld [vmem:[%s1359_s1] sm:$0xff] (!%p188_p2)  ;;  %v1024_v3 = vpack.c.bf16 (!%p188_p2), %v838_v1, %v837_v0  ;;  %v234_v4 = vld [vmem:[%s1359_s1 + $0x8] sm:$0xff] (!%p188_p2)  ;;  %v840_v6 = vld [vmem:[%s1359_s1 + $0x58] sm:$0xff] (!%p188_p2)  ;;  %vm526_vm2 = vcmask (!%p188_p2), 1045504   ;;  %vm771_vm7 = vcmask (!%p188_p2), 519168  }
   0x7   : > { %v1040_v7 = vpack.c.bf16 (!%p188_p2), %v234_v4, %v233_v2  ;;  %v1028_v8 = vpack.c.bf16 (!%p188_p2), %v840_v6, %v839_v5  ;;  %v235_v9 = vld [vmem:[%s1359_s1 + $0x10] sm:$0xff] (!%p188_p2)  ;;  %v236_v10 = vld [vmem:[%s1359_s1 + $0x18] sm:$0xff] (!%p188_p2)  ;;  %v841_v11 = vld [vmem:[%s1359_s1 + $0x60] sm:$0xff] (!%p188_p2) }
   0x8   : > { %1025 = vmatprep.subr.bf16.mxu1 (!%p188_p2), %v1024_v3  ;;  %v1044_v12 = vpack.c.bf16 (!%p188_p2), %v236_v10, %v235_v9  ;;  %v842_v13 = vld [vmem:[%s1359_s1 + $0x68] sm:$0xff] (!%p188_p2)  ;;  %v237_v14 = vld [vmem:[%s1359_s1 + $0x20] sm:$0xff] (!%p188_p2)  ;;  %v843_v17 = vld [vmem:[%s1359_s1 + $0x70] sm:$0xff] (!%p188_p2) }
   0x9   : > { %v238_v15 = vld [vmem:[%s1359_s1 + $0x28] sm:$0xff] (!%p188_p2)  ;;  %1041 = vmatprep.subr.bf16.mxu0 (!%p188_p2), %v1040_v7  ;;  %1027 = vmatpush3.bf16.msra.mxu1 (!%p188_p2), %v1024_v3  ;;  %v1032_v16 = vpack.c.bf16 (!%p188_p2), %v842_v13, %v841_v11  ;;  %v844_v19 = vld [vmem:[%s1359_s1 + $0x78] sm:$0xff] (!%p188_p2)  ;;  %v239_v22 = vld [vmem:[%s1359_s1 + $0x30] sm:$0xff] (!%p188_p2) }
   0xa   : > { %1043 = vmatpush3.bf16.msra.mxu0 (!%p188_p2), %v1040_v7  ;;  %1029 = vmatprep.subr.bf16.mxu1 (!%p188_p2), %v1028_v8  ;;  %v1048_v18 = vpack.c.bf16 (!%p188_p2), %v238_v15, %v237_v14  ;;  %v240_v23 = vld [vmem:[%s1359_s1 + $0x38] sm:$0xff] (!%p188_p2)  ;;  %v1036_v26 = vpack.c.bf16 (!%p188_p2), %v844_v19, %v843_v17  ;;  %v861_v30 = vld [vmem:[%s1359_s1 + $0x80] sm:$0xff] (!%p188_p2)  ;;  %v862_v31 = vld [vmem:[%s1359_s1 + $0x88] sm:$0xff] (!%p188_p2) }
   0xb   : > { %1045 = vmatprep.subr.bf16.mxu0 (!%p188_p2), %v1044_v12  ;;  %v1052_v29 = vpack.c.bf16 (!%p188_p2), %v240_v23, %v239_v22  ;;  %v1056_v34 = vpack.c.bf16 (!%p188_p2), %v862_v31, %v861_v30  ;;  %v863_v37 = vld [vmem:[%s1359_s1 + $0x90] sm:$0xff] (!%p188_p2)  ;;  %v864_v38 = vld [vmem:[%s1359_s1 + $0x98] sm:$0xff] (!%p188_p2)  ;;  %v865_v46 = vld [vmem:[%s1359_s1 + $0xa0] sm:$0xff] (!%p188_p2) }
   0xc   : > { %v1060_v44 = vpack.c.bf16 (!%p188_p2), %v864_v38, %v863_v37  ;;  %v866_v47 = vld [vmem:[%s1359_s1 + $0xa8] sm:$0xff] (!%p188_p2)  ;;  %v867_v54 = vld [vmem:[%s1359_s1 + $0xb0] sm:$0xff] (!%p188_p2)  ;;  %v868_v55 = vld [vmem:[%s1359_s1 + $0xb8] sm:$0xff] (!%p188_p2) }
   0xd   : > { %s1365_s19 = smov (!%p215_p3, %s828_s19), 1  ;;  %1031 = vmatpush3.bf16.msra.mxu1 %v1028_v8  ;;  %v1064_v52 = vpack.c.bf16 %v866_v47, %v865_v46  ;;  %v1068_v58 = vpack.c.bf16 %v868_v55, %v867_v54  ;;  %v879_v38 = vld [vmem:[%s1362_s4] ss:$0 sm:$0xff] }
   0xe   : > { %s890_s21 = sshll.u32 %s1365_s19, 6  ;;  %1047 = vmatpush3.bf16.msra.mxu0 %v1044_v12  ;;  %1033 = vmatprep.subr.bf16.mxu1 %v1032_v16 }
   0xf   : > { %s1213_s26 = scalar_lea.vmem %s1358_s0, %s890_s21  ;;  %1049 = vmatprep.subr.bf16.mxu0 %v1048_v18  ;;  %s1338_s10 = scalar_lea.vmem %s1363_s5, %s890_s21 }
  0x10   : > { %v1219_v20 = vld [vmem:[%s1213_s26] sm:$0xff]  ;;  %v1222_v21 = vld [vmem:[%s1213_s26 + $0x8] sm:$0xff]  ;;  %v1236_v28 = vld [vmem:[%s1213_s26 + $0x10] sm:$0xff] }
  0x11   : > { %v259_v24 = vrot.slane %v1219_v20, 1  ;;  %v260_v25 = vrot.slane %v1222_v21, 1  ;;  %984 = vmatprep.mubr.msk.f32.mxu0 %vm274_vm0, %v1219_v20  ;;  %v1246_v32 = vld [vmem:[%s1213_s26 + $0x18] sm:$0xff]  ;;  %1035 = vmatpush3.bf16.msra.mxu1 %v1032_v16  ;;  %v262_v33 = vrot.slane %v1236_v28, 1  ;;  %v1250_v35 = vld [vmem:[%s1213_s26 + $0x20] sm:$0xff]  ;;  %v1260_v39 = vld [vmem:[%s1213_s26 + $0x28] sm:$0xff] }
  0x12   : > { %1051 = vmatpush3.bf16.msra.mxu0 %v1048_v18  ;;  %1037 = vmatprep.subr.bf16.mxu1 %v1036_v26  ;;  %v264_v36 = vrot.slane %v1246_v32, 1  ;;  %v266_v41 = vrot.slane %v1250_v35, 1  ;;  %v231_v42 = vld [vmem:[%s1213_s26 + $0x30] sm:$0xff]  ;;  %v268_v45 = vrot.slane %v1260_v39, 1  ;;  %v232_v48 = vld [vmem:[%s1213_s26 + $0x38] sm:$0x3f] }
  0x13   : > { %v261_v27 = vsel %vm258_vm1, %v259_v24, %v260_v25  ;;  %1053 = vmatprep.subr.bf16.mxu0 %v1052_v29  ;;  %v263_v40 = vsel %vm258_vm1, %v260_v25, %v262_v33  ;;  %v270_v50 = vrot.slane %v231_v42, 1  ;;  %v272_v53 = vrot.slane %v232_v48, 1 }
  0x14   : > { %956 = vmatprep.mubr.msk.f32.mxu1 %vm274_vm0, %v261_v27  ;;  %v265_v43 = vsel %vm258_vm1, %v262_v33, %v264_v36  ;;  %v267_v49 = vsel %vm258_vm1, %v264_v36, %v266_v41  ;;  %v269_v51 = vsel %vm258_vm1, %v266_v41, %v268_v45  ;;  %v527_v59 = vrot.slane %v1219_v20, 2 }
  0x15   : > { %1039 = vmatpush3.bf16.msra.mxu1 %v1036_v26  ;;  %v271_v56 = vsel %vm258_vm1, %v268_v45, %v270_v50  ;;  %v273_v57 = vsel %vm258_vm1, %v270_v50, %v272_v53  ;;  %v528_v60 = vrot.slane %v1222_v21, 2  ;;  %v534_v61 = vrot.slane %v1250_v35, 2  ;;  %v877_v26 = vld [vmem:[%s1360_s2] ss:$0 sm:$0xff] }
  0x16   : > { %1055 = vmatpush3.bf16.msra.mxu0 %v1052_v29  ;;  %1072 = vmatprep.subr.bf16.mxu1 %v1056_v34  ;;  %v536_v62 = vrot.slane %v1260_v39, 2  ;;  %v538_v63 = vrot.slane %v231_v42, 2  ;;  %v530_v0 = vrot.slane %v1236_v28, 2  ;;  %v540_v1 = vrot.slane %v232_v48, 2 }
  0x17   : > { %1057 = vmatprep.subr.bf16.mxu0 %v1056_v34  ;;  %v529_v2 = vsel %vm526_vm2, %v527_v59, %v528_v60  ;;  %v532_v3 = vrot.slane %v1246_v32, 2 }
  0x18   : > { %957 = vmatmul.mubr.msk.f32.vlgmr.msra.gmra.mrb[0].mxu1 %vm274_vm0, %v263_v40  ;;  %v537_v4 = vsel %vm526_vm2, %v534_v61, %v536_v62  ;;  %v539_v5 = vsel %vm526_vm2, %v536_v62, %v538_v63  ;;  %v531_v6 = vsel %vm526_vm2, %v528_v60, %v530_v0  ;;  %v541_v7 = vsel %vm526_vm2, %v538_v63, %v540_v1 }
  0x19   : > { %985 = vmatmul.mubr.msk.f32.vlgmr.msra.gmra.mrb[0].mxu0 %vm274_vm0, %v1222_v21  ;;  %1076 = vmatpush3.bf16.msra.mxu1 %v1056_v34  ;;  %v533_v8 = vsel %vm526_vm2, %v530_v0, %v532_v3  ;;  %v535_v9 = vsel %vm526_vm2, %v532_v3, %v534_v61 }
  0x1a   : > { %1059 = vmatpush3.bf16.msra.mxu0 %v1056_v34  ;;  %959 = vmatprep.mubr.msk.f32.mxu1 %vm274_vm0, %v265_v43 }
  0x1b   : > { %987 = vmatprep.mubr.msk.f32.mxu0 %vm274_vm0, %v1236_v28  ;;  %1061 = vmatprep.subr.bf16.mxu0 %v1060_v44 }
  0x1c   : > { %960 = vmatmul.mubr.msk.f32.gmra.mrb[2].mxu1 %vm274_vm0, %v267_v49  ;;  %1073 = vmatprep.subr.bf16.mxu1 %v1060_v44 }
  0x1d   : > { %988 = vmatmul.mubr.msk.f32.gmra.mrb[2].mxu0 %vm274_vm0, %v1246_v32  ;;  %1077 = vmatpush3.bf16.msra.mxu1 %v1060_v44  ;;  %v878_v32 = vld [vmem:[%s1361_s3] ss:$0 sm:$0xff] }
  0x1e   : > { %1063 = vmatpush3.bf16.msra.mxu0 %v1060_v44  ;;  %962 = vmatprep.mubr.msk.f32.mxu1 %vm274_vm0, %v269_v51 }
  0x1f   : > { %990 = vmatprep.mubr.msk.f32.mxu0 %vm274_vm0, %v1250_v35  ;;  %1065 = vmatprep.subr.bf16.mxu0 %v1064_v52 }
  0x20   : > { %963 = vmatmul.mubr.msk.f32.gmra.mrb[4].mxu1 %vm274_vm0, %v271_v56  ;;  %1074 = vmatprep.subr.bf16.mxu1 %v1064_v52 }
  0x21   : > { %991 = vmatmul.mubr.msk.f32.gmra.mrb[4].mxu0 %vm274_vm0, %v1260_v39  ;;  %1078 = vmatpush3.bf16.msra.mxu1 %v1064_v52 }
  0x22   : > { %1067 = vmatpush3.bf16.msra.mxu0 %v1064_v52  ;;  %965 = vmatprep.mubr.msk.f32.mxu1 %vm274_vm0, %v273_v57 }
  0x23   : > { %993 = vmatprep.mubr.msk.f32.mxu0 %vm274_vm0, %v231_v42  ;;  %1069 = vmatprep.subr.bf16.mxu0 %v1068_v58 }
  0x24   : > { %966 = vmatmul.mubr.msk.f32.gmra.mrb[6].mxu1 %vm274_vm0, %v272_v53  ;;  %1075 = vmatprep.subr.bf16.mxu1 %v1068_v58 }
  0x25   : > { %994 = vmatmul.mubr.msk.f32.gmra.mrb[6].mxu0 %vm274_vm0, %v232_v48  ;;  %1079 = vmatpush3.bf16.msra.mxu1 %v1068_v58 }
  0x26   : > { %1071 = vmatpush3.bf16.msra.mxu0 %v1068_v58  ;;  %1012 = vmatprep.mubr.msk.f32.mxu0 %vm274_vm0, %v529_v2 }
  0x27   : > { %1018 = vmatprep.mubr.msk.f32.mxu1 %vm274_vm0, %v537_v4 }
  0x28   : > { %1019 = vmatmul.mubr.msk.f32.vlgmr.msra.gmra.mrb[8].mxu1 %vm274_vm0, %v539_v5 }
  0x29   : > { %1013 = vmatmul.mubr.msk.f32.vlgmr.msra.gmra.mrb[0].mxu0 %vm274_vm0, %v531_v6  ;;  %1021 = vmatprep.mubr.msk.f32.mxu1 %vm274_vm0, %v541_v7 }
  0x2a   : > { %1015 = vmatprep.mubr.msk.f32.mxu0 %vm274_vm0, %v533_v8 }
  0x2c   : > { %1022 = vmatmul.mubr.msk.f32.gmra.mrb[10].mxu1 %vm274_vm0, %v540_v1 }
  0x2d   : > { %1016 = vmatmul.mubr.msk.f32.gmra.mrb[2].mxu0 %vm274_vm0, %v535_v9 }
  0xeb   : > { %v958_v10 = vpop.f32.mrb[0].mxu1 }
  0xec   : > { %v357_v11 = vpop.f32.mrb[1].mxu1 }
  0xef   : > { %v961_v12 = vpop.f32.mrb[2].mxu1 }
  0xf0   : > { %v367_v13 = vpop.f32.mrb[3].mxu1 }
  0xf3   : > { %v964_v14 = vpop.f32.mrb[4].mxu1 }
  0xf4   : > { %v992_v15 = vpop.f32.mrb[4].mxu0  ;;  %v377_v16 = vpop.f32.mrb[5].mxu1 }
  0xf5   : > { %v504_v17 = vadd.f32 %v992_v15, %v964_v14  ;;  %v498_v18 = vpop.f32.mrb[5].mxu0 }
  0xf6   : > { %v499_v19 = vadd.f32 %v498_v18, %v377_v16 }
  0xf7   : > { %v967_v20 = vpop.f32.mrb[6].mxu1 }
  0xf8   : > { %v995_v21 = vpop.f32.mrb[6].mxu0  ;;  %v387_v22 = vpop.f32.mrb[7].mxu1 }
  0xf9   : > { %v514_v23 = vadd.f32 %v995_v21, %v967_v20  ;;  %v508_v24 = vpop.f32.mrb[7].mxu0 }
  0xfa   : > { %v509_v25 = vadd.f32 %v508_v24, %v387_v22 }
  0xfb   : > { %v1020_v27 = vpop.f32.mrb[8].mxu1 }
  0xfc   : > { %v1014_v28 = vpop.f32.mrb[0].mxu0  ;;  %v668_v29 = vadd.f32 %v1020_v27, %v504_v17  ;;  %v644_v30 = vpop.f32.mrb[9].mxu1 }
  0xfd   : > { %v1080_v31 = vadd.f32 %v1014_v28, %v958_v10  ;;  %v624_v33 = vpop.f32.mrb[1].mxu0  ;;  %v667_v34 = vadd.f32 %v644_v30, %v499_v19 }
  0xfe   : > { %v683_v35 = vadd.f32 %v877_v26, %v668_v29  ;;  %v1081_v36 = vadd.f32 %v624_v33, %v357_v11 }
  0xff   : > { %v679_v37 = vadd.f32 %v1080_v31, %v877_v26  ;;  %v682_v39 = vadd.f32 %v877_v26, %v667_v34  ;;  %v1023_v40 = vpop.f32.mrb[10].mxu1 }
 0x100   : > { %v698_v41 = vmul.f32 %v878_v32, %v683_v35  ;;  %v678_v42 = vadd.f32 %v1081_v36, %v877_v26  ;;  %v1017_v43 = vpop.f32.mrb[2].mxu0  ;;  %v670_v44 = vadd.f32 %v1023_v40, %v514_v23  ;;  %v654_v45 = vpop.f32.mrb[11].mxu1 }
 0x101   : > { %v694_v46 = vmul.f32 %v878_v32, %v679_v37  ;;  %v697_v47 = vmul.f32 %v878_v32, %v682_v39  ;;  %v1082_v48 = vadd.f32 %v1017_v43, %v961_v12  ;;  %v634_v49 = vpop.f32.mrb[3].mxu0  ;;  %v669_v50 = vadd.f32 %v654_v45, %v509_v25 }
 0x102   : > { %v713_v51 = vadd.f32 %v879_v38, %v698_v41  ;;  %v693_v52 = vmul.f32 %v878_v32, %v678_v42  ;;  %v685_v53 = vadd.f32 %v877_v26, %v670_v44  ;;  %v1083_v54 = vadd.f32 %v634_v49, %v367_v13 }
 0x103   : > { %v709_v55 = vadd.f32 %v879_v38, %v694_v46  ;;  %v712_v56 = vadd.f32 %v879_v38, %v697_v47  ;;  %v681_v57 = vadd.f32 %v1082_v48, %v877_v26  ;;  %v684_v61 = vadd.f32 %v877_v26, %v669_v50 }
 0x104   : > { %v729_v58 = vmin.f32 %v713_v51, 0.0  ;;  %v708_v59 = vadd.f32 %v879_v38, %v693_v52  ;;  %v700_v60 = vmul.f32 %v878_v32, %v685_v53  ;;  %v680_v6 = vadd.f32 %v1083_v54, %v877_v26 }
 0x105   : > { %v725_v62 = vmin.f32 %v709_v55, 0.0  ;;  %v728_v63 = vmin.f32 %v712_v56, 0.0  ;;  %v696_v2 = vmul.f32 %v878_v32, %v681_v57  ;;  %v699_v9 = vmul.f32 %v878_v32, %v684_v61 }
 0x106   : > { %v742_v0 = vmul.f32 1.442695, %v729_v58  ;;  %v724_v1 = vmin.f32 %v708_v59, 0.0  ;;  %v715_v5 = vadd.f32 %v879_v38, %v700_v60  ;;  %v695_v11 = vmul.f32 %v878_v32, %v680_v6 }
 0x107   : > { %v734_v3 = vmul.f32 1.442695, %v725_v62  ;;  %v740_v4 = vmul.f32 1.442695, %v728_v63  ;;  %v711_v8 = vadd.f32 %v879_v38, %v696_v2  ;;  %v714_v13 = vadd.f32 %v879_v38, %v699_v9 }
 0x108   : > { %1104 = vpow2.f32 %v742_v0  ;;  %v732_v7 = vmul.f32 1.442695, %v724_v1  ;;  %v731_v10 = vmin.f32 %v715_v5, 0.0  ;;  %v710_v15 = vadd.f32 %v879_v38, %v695_v11 }
 0x109   : > { %1106 = vpow2.f32 %v734_v3  ;;  %v727_v12 = vmin.f32 %v711_v8, 0.0  ;;  %v730_v17 = vmin.f32 %v714_v13, 0.0  ;;  %vm721_vm3 = vcmp.gt.f32.partialorder %v713_v51, 0.0 }
 0x10a   : > { %1108 = vpow2.f32 %v732_v7  ;;  %v746_v14 = vmul.f32 1.442695, %v731_v10  ;;  %v726_v18 = vmin.f32 %v710_v15, 0.0  ;;  %vm717_vm4 = vcmp.gt.f32.partialorder %v709_v55, 0.0 }
 0x10b   : > { %1110 = vpow2.f32 %v740_v4  ;;  %v738_v16 = vmul.f32 1.442695, %v727_v12  ;;  %v744_v19 = vmul.f32 1.442695, %v730_v17  ;;  %vm716_vm5 = vcmp.gt.f32.partialorder %v708_v59, 0.0 }
 0x10c   : > { %1112 = vpow2.f32 %v746_v14  ;;  %v736_v20 = vmul.f32 1.442695, %v726_v18  ;;  %vm720_vm6 = vcmp.gt.f32.partialorder %v712_v56, 0.0  ;;  %vm723_vm8 = vcmp.gt.f32.partialorder %v715_v5, 0.0 }
 0x10d   : > { %1114 = vpow2.f32 %v738_v16  ;;  %vm719_vm9 = vcmp.gt.f32.partialorder %v711_v8, 0.0  ;;  %vm722_vm10 = vcmp.gt.f32.partialorder %v714_v13, 0.0  ;;  %vm718_vm11 = vcmp.gt.f32.partialorder %v710_v15, 0.0 }
 0x10e   : > { %1116 = vpow2.f32 %v744_v19 }
 0x10f   : > { %1118 = vpow2.f32 %v736_v20 }
 0x112   : > { %v1105_v21 = vpop.eup %1104 }
 0x113   : > { %v1107_v22 = vpop.eup %1106  ;;  %v885_v23 = vadd.f32 -1.0, %v1105_v21 }
 0x114   : > { %v1109_v24 = vpop.eup %1108  ;;  %v881_v25 = vadd.f32 -1.0, %v1107_v22 }
 0x115   : > { %v1111_v26 = vpop.eup %1110  ;;  %v761_v27 = vsel %vm721_vm3, %v713_v51, %v885_v23  ;;  %v880_v28 = vadd.f32 -1.0, %v1109_v24 }
 0x116   : > { %v757_v29 = vsel %vm717_vm4, %v709_v55, %v881_v25  ;;  %769 = vst.msk [vmem:[%s1338_s10 + $0x28] sm:$0xff] %vm274_vm0, %v761_v27  ;;  %v884_v30 = vadd.f32 -1.0, %v1111_v26  ;;  %v1113_v31 = vpop.eup %1112 }
 0x117   : > { %765 = vst.msk [vmem:[%s1338_s10 + $0x8] sm:$0xff] %vm274_vm0, %v757_v29  ;;  %v756_v32 = vsel %vm716_vm5, %v708_v59, %v880_v28  ;;  %v1115_v33 = vpop.eup %1114  ;;  %v887_v35 = vadd.f32 -1.0, %v1113_v31 }
 0x118   : > { %764 = vst.msk [vmem:[%s1338_s10] sm:$0xff] %vm274_vm0, %v756_v32  ;;  %v760_v34 = vsel %vm720_vm6, %v712_v56, %v884_v30  ;;  %v883_v36 = vadd.f32 -1.0, %v1115_v33  ;;  %v1117_v37 = vpop.eup %1116 }
 0x119   : > { %768 = vst.msk [vmem:[%s1338_s10 + $0x20] sm:$0xff] %vm274_vm0, %v760_v34  ;;  %v763_v38 = vsel %vm723_vm8, %v715_v5, %v887_v35  ;;  %v1119_v39 = vpop.eup %1118  ;;  %v886_v41 = vadd.f32 -1.0, %v1117_v37 }
 0x11a   : > { %v759_v40 = vsel %vm719_vm9, %v711_v8, %v883_v36  ;;  %772 = vst.msk [vmem:[%s1338_s10 + $0x38] sm:$0xf] %vm771_vm7, %v763_v38  ;;  %v882_v42 = vadd.f32 -1.0, %v1119_v39 }
 0x11b   : > { %767 = vst.msk [vmem:[%s1338_s10 + $0x18] sm:$0xff] %vm274_vm0, %v759_v40  ;;  %v762_v43 = vsel %vm722_vm10, %v714_v13, %v886_v41 }
 0x11c   : > { %v758_v44 = vsel %vm718_vm11, %v710_v15, %v882_v42  ;;  %770 = vst.msk [vmem:[%s1338_s10 + $0x30] sm:$0xff] %vm274_vm0, %v762_v43 }
 0x11d   : > { %766 = vst.msk [vmem:[%s1338_s10 + $0x10] sm:$0xff] %vm274_vm0, %v758_v44 }
 0x11e PF: > { %s15_s18 = sadd.s32 1, %s1126_s18  }
 0x11f   : > { %p12_p4 = scmp.ge.s32.totalorder %s15_s18, 4  }
 0x121   :  { %14 = sbr.rel (!%p12_p4) target bundleno = 1 (0x1), region = 72 }

// kernel: snr_forward.16
= control target key start
LH: loop header
LB: loop body
LE: loop exit
PB: predicated region body
PF: predicated region fallthrough
CT: control target
= control target key end

     0   :  { %s1113_s18 = smov 0   ;;  %s1405_s0 = inlined_call_operand.vmem [shape: f32[2,55,64], index: 0, kind: input, shape index: {}]   ;;  %s1406_s1 = inlined_call_operand.vmem [shape: f32[3,64,64], index: 1, kind: input, shape index: {}]   ;;  %s1407_s2 = inlined_call_operand.vmem [shape: f32[1,64], index: 2, kind: input, shape index: {}]   ;;  %s1408_s3 = inlined_call_operand.vmem [shape: f32[1,64], index: 3, kind: input, shape index: {}]   ;;  %s1409_s4 = inlined_call_operand.vmem [shape: f32[1,64], index: 4, kind: input, shape index: {}]   ;;  %s1410_s5 = inlined_call_operand.vmem [shape: f32[2,53,64], index: 5, kind: output, shape index: {}]  }
   0x1 LB: > { %s790_s19 = sadd.s32 4294967295, %s1078_s18   ;;  %p794_p0 = scmp.ge.s32.totalorder %s1078_s18, 1  ;;  %s1078_s18 = sphi %s1113_s18, %s15_s18  }
   0x2   : > { %p187_p1 = scmp.lt.s32.totalorder %s1078_s18, 3 }
   0x4   : > { %p188_p2 = pnand %p794_p0, %p187_p1 }
   0x5   : > { %v797_v0 = vld [vmem:[%s1406_s1 + $0x40] sm:$0xff] (!%p188_p2)  ;;  %v798_v1 = vld [vmem:[%s1406_s1 + $0x48] sm:$0xff] (!%p188_p2)  ;;  %v799_v2 = vld [vmem:[%s1406_s1 + $0x50] sm:$0xff] (!%p188_p2)  ;;  %v1080_v3 = vmov (!%p188_p2), 0.0|0.0   ;;  %p215_p3 = scmp.lt.s32.totalorder (!%p188_p2), %s790_s19, 1  ;;  %vm1081_vm0 = vmmov (!%p188_p2), 0  }
   0x6   : > { %191 = sbr.rel (%p188_p2) target bundleno = 304 (0x130), region = 40  ;;  %1038 = vmatprep.subr.bf16.mxu1 (!%p188_p2), %v1080_v3  ;;  %1002 = vmatprep.subr.bf16.mxu0 (!%p188_p2), %v1080_v3  ;;  %v1003_v4 = vpack.c.bf16 (!%p188_p2), %v798_v1, %v797_v0  ;;  %v800_v5 = vld [vmem:[%s1406_s1 + $0x58] sm:$0xff] (!%p188_p2)  ;;  %v1082_v6 = vmov (!%p188_p2), 0.0   ;;  %v801_v8 = vld [vmem:[%s1406_s1 + $0x60] sm:$0xff] (!%p188_p2)  ;;  %v802_v9 = vld [vmem:[%s1406_s1 + $0x68] sm:$0xff] (!%p188_p2)  ;;  %vm256_vm1 = vcmask (!%p188_p2), 1046528  }
   0x7   : > { %919 = vmatprep.mubr.msk.f32.mxu1 (!%p188_p2), %vm1081_vm0, %v1082_v6  ;;  %907 = vmatprep.mubr.msk.f32.mxu0 (!%p188_p2), %vm1081_vm0, %v1082_v6  ;;  %v1006_v7 = vpack.c.bf16 (!%p188_p2), %v800_v5, %v799_v2  ;;  %v1009_v10 = vpack.c.bf16 (!%p188_p2), %v802_v9, %v801_v8  ;;  %v803_v11 = vld [vmem:[%s1406_s1 + $0x70] sm:$0xff] (!%p188_p2)  ;;  %v804_v12 = vld [vmem:[%s1406_s1 + $0x78] sm:$0xff] (!%p188_p2)  ;;  %v232_v18 = vld [vmem:[%s1406_s1] sm:$0xff] (!%p188_p2)  ;;  %vm270_vm2 = vcmask (!%p188_p2), 523264   ;;  %vm508_vm3 = vcmask (!%p188_p2), 1045504  }
   0x8   : > { %1042 = vmatpush3.bf16.msra.mxu1 (!%p188_p2), %v1003_v4  ;;  %1004 = vmatpush3.bf16.msra.mxu0 (!%p188_p2), %v1003_v4  ;;  %v1012_v17 = vpack.c.bf16 (!%p188_p2), %v804_v12, %v803_v11  ;;  %v233_v19 = vld [vmem:[%s1406_s1 + $0x8] sm:$0xff] (!%p188_p2)  ;;  %v819_v24 = vld [vmem:[%s1406_s1 + $0x80] sm:$0xff] (!%p188_p2)  ;;  %v234_v33 = vld [vmem:[%s1406_s1 + $0x10] sm:$0xff] (!%p188_p2)  ;;  %vm733_vm10 = vcmask (!%p188_p2), 520192  }
   0x9   : > { %1039 = vmatprep.subr.bf16.mxu1 (!%p188_p2), %v1080_v3  ;;  %1005 = vmatprep.subr.bf16.mxu0 (!%p188_p2), %v1080_v3  ;;  %v820_v25 = vld [vmem:[%s1406_s1 + $0x88] sm:$0xff] (!%p188_p2)  ;;  %v1015_v28 = vpack.c.bf16 (!%p188_p2), %v233_v19, %v232_v18  ;;  %v235_v34 = vld [vmem:[%s1406_s1 + $0x18] sm:$0xff] (!%p188_p2)  ;;  %v821_v36 = vld [vmem:[%s1406_s1 + $0x90] sm:$0xff] (!%p188_p2) }
   0xa   : > { %v1027_v29 = vpack.c.bf16 (!%p188_p2), %v820_v25, %v819_v24  ;;  %v822_v37 = vld [vmem:[%s1406_s1 + $0x98] sm:$0xff] (!%p188_p2)  ;;  %v1018_v39 = vpack.c.bf16 (!%p188_p2), %v235_v34, %v234_v33  ;;  %v236_v44 = vld [vmem:[%s1406_s1 + $0x20] sm:$0xff] (!%p188_p2)  ;;  %v237_v45 = vld [vmem:[%s1406_s1 + $0x28] sm:$0xff] (!%p188_p2) }
   0xb   : > { %v1030_v41 = vpack.c.bf16 (!%p188_p2), %v822_v37, %v821_v36  ;;  %v823_v46 = vld [vmem:[%s1406_s1 + $0xa0] sm:$0xff] (!%p188_p2)  ;;  %v824_v47 = vld [vmem:[%s1406_s1 + $0xa8] sm:$0xff] (!%p188_p2)  ;;  %v1021_v49 = vpack.c.bf16 (!%p188_p2), %v237_v45, %v236_v44  ;;  %v238_v51 = vld [vmem:[%s1406_s1 + $0x30] sm:$0xff] (!%p188_p2) }
   0xc   : > { %1043 = vmatpush3.bf16.msra.mxu1 (!%p188_p2), %v1006_v7  ;;  %1007 = vmatpush3.bf16.msra.mxu0 (!%p188_p2), %v1006_v7  ;;  %v1033_v50 = vpack.c.bf16 (!%p188_p2), %v824_v47, %v823_v46  ;;  %v239_v52 = vld [vmem:[%s1406_s1 + $0x38] sm:$0xff] (!%p188_p2)  ;;  %v825_v53 = vld [vmem:[%s1406_s1 + $0xb0] sm:$0xff] (!%p188_p2) }
   0xd   : > { %s1412_s19 = smov (!%p215_p3, %s790_s19), 1  ;;  %1040 = vmatprep.subr.bf16.mxu1 %v1080_v3  ;;  %1008 = vmatprep.subr.bf16.mxu0 %v1080_v3  ;;  %v826_v54 = vld [vmem:[%s1406_s1 + $0xb8] sm:$0xff]  ;;  %v1024_v55 = vpack.c.bf16 %v239_v52, %v238_v51 }
   0xe   : > { %s1046_s7 = smul.u32 56, %s1412_s19  ;;  %v1036_v59 = vpack.c.bf16 %v826_v54, %v825_v53 }
  0x10   : > { %s1161_s14 = scalar_lea.vmem %s1405_s0, %s1046_s7  ;;  %1044 = vmatpush3.bf16.msra.mxu1 %v1009_v10  ;;  %1010 = vmatpush3.bf16.msra.mxu0 %v1009_v10  ;;  %s1382_s11 = scalar_lea.vmem %s1410_s5, %s1046_s7 }
  0x11   : > { %v1166_v13 = vld [vmem:[%s1161_s14 + $0x20] sm:$0xff]  ;;  %v1169_v14 = vld [vmem:[%s1161_s14 + $0x28] sm:$0xff]  ;;  %1041 = vmatprep.subr.bf16.mxu1 %v1080_v3  ;;  %1011 = vmatprep.subr.bf16.mxu0 %v1080_v3  ;;  %v1196_v26 = vld [vmem:[%s1161_s14 + $0x10] sm:$0xff] }
  0x12   : > { %v1172_v15 = vld [vmem:[%s1161_s14] sm:$0xff]  ;;  %v1175_v16 = vld [vmem:[%s1161_s14 + $0x8] sm:$0xff]  ;;  %v264_v20 = vrot.slane %v1166_v13, 1  ;;  %v266_v21 = vrot.slane %v1169_v14, 1  ;;  %v1199_v27 = vld [vmem:[%s1161_s14 + $0x30] sm:$0x7f] }
  0x13   : > { %v257_v22 = vrot.slane %v1172_v15, 1  ;;  %v258_v23 = vrot.slane %v1175_v16, 1  ;;  %v260_v32 = vrot.slane %v1196_v26, 1  ;;  %v268_v35 = vrot.slane %v1199_v27, 1  ;;  %v1222_v38 = vld [vmem:[%s1161_s14 + $0x18] sm:$0xff] }
  0x14   : > { %1045 = vmatpush3.bf16.msra.mxu1 %v1012_v17  ;;  %1013 = vmatpush3.bf16.msra.mxu0 %v1012_v17  ;;  %v267_v30 = vsel %vm256_vm1, %v264_v20, %v266_v21  ;;  %v262_v43 = vrot.slane %v1222_v38, 1  ;;  %v509_v56 = vrot.slane %v1172_v15, 2  ;;  %v510_v57 = vrot.slane %v1175_v16, 2 }
  0x15   : > { %v259_v31 = vsel %vm256_vm1, %v257_v22, %v258_v23  ;;  %1014 = vmatprep.subr.bf16.mxu1 %v1080_v3  ;;  %1026 = vmatprep.subr.bf16.mxu0 %v1080_v3  ;;  %v261_v40 = vsel %vm256_vm1, %v258_v23, %v260_v32  ;;  %v269_v42 = vsel %vm256_vm1, %v266_v21, %v268_v35  ;;  %v512_v61 = vrot.slane %v1196_v26, 2 }
  0x16   : > { %v263_v48 = vsel %vm256_vm1, %v260_v32, %v262_v43  ;;  %v265_v58 = vsel %vm256_vm1, %v262_v43, %v264_v20  ;;  %v511_v60 = vsel %vm508_vm3, %v509_v56, %v510_v57  ;;  %v514_v63 = vrot.slane %v1222_v38, 2 }
  0x17   : > { %920 = vmatmul.mubr.msk.f32.vlgmr.msra.gmra.mrb[0].mxu1 %vm270_vm2, %v267_v30  ;;  %908 = vmatmul.mubr.msk.f32.vlgmr.msra.gmra.mrb[0].mxu0 %vm270_vm2, %v259_v31  ;;  %v513_v62 = vsel %vm508_vm3, %v510_v57, %v512_v61  ;;  %v516_v1 = vrot.slane %v1166_v13, 2  ;;  %v520_v5 = vrot.slane %v1199_v27, 2 }
  0x18   : > { %1016 = vmatpush3.bf16.msra.mxu1 %v1015_v28  ;;  %1028 = vmatpush3.bf16.msra.mxu0 %v1027_v29  ;;  %v515_v0 = vsel %vm508_vm3, %v512_v61, %v514_v63  ;;  %v1352_v28 = vld [vmem:[%s1408_s3] ss:$0 sm:$0xff] }
  0x19   : > { %910 = vmatprep.mubr.msk.f32.mxu0 %vm1081_vm0, %v1082_v6  ;;  %1017 = vmatprep.subr.bf16.mxu1 %v1080_v3  ;;  %v517_v2 = vsel %vm508_vm3, %v514_v63, %v516_v1 }
  0x1a   : > { %1029 = vmatprep.subr.bf16.mxu0 %v1080_v3  ;;  %922 = vmatprep.mubr.msk.f32.mxu1 %vm1081_vm0, %v1082_v6 }
  0x1b   : > { %911 = vmatmul.mubr.msk.f32.gmra.mrb[2].mxu0 %vm270_vm2, %v261_v40  ;;  %923 = vmatmul.mubr.msk.f32.gmra.mrb[2].mxu1 %vm270_vm2, %v269_v42 }
  0x1c   : > { %1019 = vmatpush3.bf16.msra.mxu1 %v1018_v39  ;;  %1031 = vmatpush3.bf16.msra.mxu0 %v1030_v41 }
  0x1d   : > { %913 = vmatprep.mubr.msk.f32.mxu0 %vm1081_vm0, %v1082_v6  ;;  %1020 = vmatprep.subr.bf16.mxu1 %v1080_v3 }
  0x1e   : > { %1032 = vmatprep.subr.bf16.mxu0 %v1080_v3  ;;  %925 = vmatprep.mubr.msk.f32.mxu1 %vm1081_vm0, %v1082_v6 }
  0x1f   : > { %914 = vmatmul.mubr.msk.f32.gmra.mrb[4].mxu0 %vm270_vm2, %v263_v48  ;;  %926 = vmatmul.mubr.msk.f32.gmra.mrb[4].mxu1 %vm270_vm2, %v268_v35  ;;  %v1358_v35 = vld [vmem:[%s1409_s4] ss:$0 sm:$0xff] }
  0x20   : > { %1022 = vmatpush3.bf16.msra.mxu1 %v1021_v49  ;;  %1034 = vmatpush3.bf16.msra.mxu0 %v1033_v50 }
  0x21   : > { %916 = vmatprep.mubr.msk.f32.mxu0 %vm1081_vm0, %v1082_v6  ;;  %1023 = vmatprep.subr.bf16.mxu1 %v1080_v3 }
  0x22   : > { %1035 = vmatprep.subr.bf16.mxu0 %v1080_v3  ;;  %944 = vmatprep.mubr.msk.f32.mxu1 %vm1081_vm0, %v1082_v6  ;;  %v518_v3 = vrot.slane %v1169_v14, 2 }
  0x23   : > { %917 = vmatmul.mubr.msk.f32.gmra.mrb[6].mxu0 %vm270_vm2, %v265_v58 }
  0x24   : > { %1025 = vmatpush3.bf16.msra.mxu1 %v1024_v55  ;;  %1037 = vmatpush3.bf16.msra.mxu0 %v1036_v59  ;;  %v519_v4 = vsel %vm508_vm3, %v516_v1, %v518_v3  ;;  %v521_v7 = vsel %vm508_vm3, %v518_v3, %v520_v5 }
  0x25   : > { %981 = vmatprep.mubr.msk.f32.mxu0 %vm1081_vm0, %v1082_v6 }
  0x27   : > { %945 = vmatmul.mubr.msk.f32.vlgmr.msra.gmra.mrb[6].mxu1 %vm270_vm2, %v1172_v15  ;;  %982 = vmatmul.mubr.msk.f32.vlgmr.msra.gmra.mrb[8].mxu0 %vm270_vm2, %v511_v60 }
  0x28   : > { %947 = vmatprep.mubr.msk.f32.mxu1 %vm1081_vm0, %v1082_v6  ;;  %984 = vmatprep.mubr.msk.f32.mxu0 %vm1081_vm0, %v1082_v6 }
  0x2b   : > { %948 = vmatmul.mubr.msk.f32.gmra.mrb[8].mxu1 %vm270_vm2, %v1175_v16  ;;  %985 = vmatmul.mubr.msk.f32.gmra.mrb[10].mxu0 %vm270_vm2, %v513_v62 }
  0x2c   : > { %950 = vmatprep.mubr.msk.f32.mxu1 %vm1081_vm0, %v1082_v6  ;;  %987 = vmatprep.mubr.msk.f32.mxu0 %vm1081_vm0, %v1082_v6 }
  0x2f   : > { %951 = vmatmul.mubr.msk.f32.gmra.mrb[10].mxu1 %vm270_vm2, %v1196_v26  ;;  %988 = vmatmul.mubr.msk.f32.gmra.mrb[12].mxu0 %vm270_vm2, %v515_v0  ;;  %v1347_v26 = vld [vmem:[%s1407_s2] ss:$0 sm:$0xff] }
  0x30   : > { %953 = vmatprep.mubr.msk.f32.mxu1 %vm1081_vm0, %v1082_v6  ;;  %990 = vmatprep.mubr.msk.f32.mxu0 %vm1081_vm0, %v1082_v6 }
  0x33   : > { %954 = vmatmul.mubr.msk.f32.gmra.mrb[12].mxu1 %vm270_vm2, %v1222_v38  ;;  %991 = vmatmul.mubr.msk.f32.gmra.mrb[14].mxu0 %vm270_vm2, %v517_v2 }
  0x34   : > { %956 = vmatprep.mubr.msk.f32.mxu1 %vm1081_vm0, %v1082_v6  ;;  %993 = vmatprep.mubr.msk.f32.mxu0 %vm1081_vm0, %v1082_v6 }
  0x37   : > { %957 = vmatmul.mubr.msk.f32.gmra.mrb[14].mxu1 %vm270_vm2, %v1166_v13  ;;  %994 = vmatmul.mubr.msk.f32.gmra.mrb[16].mxu0 %vm270_vm2, %v519_v4 }
  0x38   : > { %959 = vmatprep.mubr.msk.f32.mxu1 %vm1081_vm0, %v1082_v6  ;;  %996 = vmatprep.mubr.msk.f32.mxu0 %vm1081_vm0, %v1082_v6 }
  0x3b   : > { %960 = vmatmul.mubr.msk.f32.gmra.mrb[16].mxu1 %vm270_vm2, %v1169_v14  ;;  %997 = vmatmul.mubr.msk.f32.gmra.mrb[18].mxu0 %vm270_vm2, %v521_v7 }
  0x3c   : > { %962 = vmatprep.mubr.msk.f32.mxu1 %vm1081_vm0, %v1082_v6  ;;  %999 = vmatprep.mubr.msk.f32.mxu0 %vm1081_vm0, %v1082_v6 }
  0x3f   : > { %963 = vmatmul.mubr.msk.f32.gmra.mrb[18].mxu1 %vm270_vm2, %v1199_v27  ;;  %1000 = vmatmul.mubr.msk.f32.gmra.mrb[20].mxu0 %vm270_vm2, %v520_v5 }
  0xea   : > { %v371_v8 = vpop.f32.mrb[0].mxu1  ;;  %v351_v9 = vpop.f32.mrb[0].mxu0 }
  0xeb   : > { %v921_v10 = vpop.f32.mrb[1].mxu1  ;;  %v909_v11 = vpop.f32.mrb[1].mxu0 }
  0xee   : > { %v356_v12 = vpop.f32.mrb[2].mxu0  ;;  %v1340_v13 = vpop.f32.mrb[2].mxu1 }
  0xef   : > { %v912_v14 = vpop.f32.mrb[3].mxu0  ;;  %v924_v15 = vpop.f32.mrb[3].mxu1 }
  0xf2   : > { %v361_v16 = vpop.f32.mrb[4].mxu0  ;;  %v1342_v17 = vpop.f32.mrb[4].mxu1 }
  0xf3   : > { %v915_v18 = vpop.f32.mrb[5].mxu0  ;;  %v927_v19 = vpop.f32.mrb[5].mxu1 }
  0xf6   : > { %v366_v6 = vpop.f32.mrb[6].mxu0 }
  0xf7   : > { %v918_v20 = vpop.f32.mrb[7].mxu0 }
  0xfa   : > { %v465_v21 = vpop.f32.mrb[6].mxu1  ;;  %v602_v22 = vpop.f32.mrb[8].mxu0 }
  0xfb   : > { %v466_v23 = vadd.f32 %v465_v21, %v351_v9  ;;  %v946_v24 = vpop.f32.mrb[7].mxu1  ;;  %v983_v25 = vpop.f32.mrb[9].mxu0 }
  0xfd   : > { %v636_v27 = vadd.f32 %v602_v22, %v466_v23 }
  0xfe   : > { %v470_v29 = vpop.f32.mrb[8].mxu1  ;;  %v607_v30 = vpop.f32.mrb[10].mxu0 }
  0xff   : > { %v650_v31 = vadd.f32 %v1347_v26, %v636_v27  ;;  %v471_v32 = vadd.f32 %v470_v29, %v356_v12  ;;  %v949_v33 = vpop.f32.mrb[9].mxu1  ;;  %v986_v34 = vpop.f32.mrb[11].mxu0 }
 0x101   : > { %v664_v36 = vmul.f32 %v1352_v28, %v650_v31  ;;  %v637_v37 = vadd.f32 %v607_v30, %v471_v32 }
 0x102   : > { %v475_v38 = vpop.f32.mrb[10].mxu1  ;;  %v612_v39 = vpop.f32.mrb[12].mxu0 }
 0x103   : > { %v678_v40 = vadd.f32 %v1358_v35, %v664_v36  ;;  %v651_v41 = vadd.f32 %v1347_v26, %v637_v37  ;;  %v476_v42 = vadd.f32 %v475_v38, %v361_v16  ;;  %v952_v43 = vpop.f32.mrb[11].mxu1  ;;  %v989_v44 = vpop.f32.mrb[13].mxu0 }
 0x105   : > { %v692_v45 = vmin.f32 %v678_v40, 0.0  ;;  %v665_v46 = vmul.f32 %v1352_v28, %v651_v41  ;;  %v638_v47 = vadd.f32 %v612_v39, %v476_v42  ;;  %vm685_vm4 = vcmp.gt.f32.partialorder %v678_v40, 0.0 }
 0x106   : > { %v480_v48 = vpop.f32.mrb[12].mxu1  ;;  %v617_v49 = vpop.f32.mrb[14].mxu0 }
 0x107   : > { %v699_v50 = vmul.f32 1.442695, %v692_v45  ;;  %v679_v51 = vadd.f32 %v1358_v35, %v665_v46  ;;  %v652_v52 = vadd.f32 %v1347_v26, %v638_v47  ;;  %v481_v53 = vadd.f32 %v480_v48, %v366_v6  ;;  %v955_v54 = vpop.f32.mrb[13].mxu1  ;;  %v992_v55 = vpop.f32.mrb[15].mxu0 }
 0x109   : > { %1058 = vpow2.f32 %v699_v50  ;;  %v693_v56 = vmin.f32 %v679_v51, 0.0  ;;  %v666_v57 = vmul.f32 %v1352_v28, %v652_v52  ;;  %v639_v58 = vadd.f32 %v617_v49, %v481_v53 }
 0x10a   : > { %v485_v59 = vpop.f32.mrb[14].mxu1  ;;  %v622_v60 = vpop.f32.mrb[16].mxu0  ;;  %vm686_vm5 = vcmp.gt.f32.partialorder %v679_v51, 0.0 }
 0x10b   : > { %v701_v61 = vmul.f32 1.442695, %v693_v56  ;;  %v680_v62 = vadd.f32 %v1358_v35, %v666_v57  ;;  %v486_v63 = vadd.f32 %v485_v59, %v371_v8  ;;  %v958_v0 = vpop.f32.mrb[15].mxu1  ;;  %v995_v1 = vpop.f32.mrb[17].mxu0  ;;  %v653_v2 = vadd.f32 %v1347_v26, %v639_v58 }
 0x10d   : > { %1060 = vpow2.f32 %v701_v61  ;;  %v694_v3 = vmin.f32 %v680_v62, 0.0  ;;  %v640_v4 = vadd.f32 %v622_v60, %v486_v63  ;;  %v667_v5 = vmul.f32 %v1352_v28, %v653_v2 }
 0x10e   : > { %v490_v7 = vpop.f32.mrb[16].mxu1  ;;  %v627_v9 = vpop.f32.mrb[18].mxu0  ;;  %vm687_vm6 = vcmp.gt.f32.partialorder %v680_v62, 0.0 }
 0x10f   : > { %v703_v10 = vmul.f32 1.442695, %v694_v3  ;;  %v654_v11 = vadd.f32 %v1347_v26, %v640_v4  ;;  %v491_v12 = vadd.f32 %v490_v7, %v1340_v13  ;;  %v961_v14 = vpop.f32.mrb[17].mxu1  ;;  %v998_v15 = vpop.f32.mrb[19].mxu0  ;;  %v681_v8 = vadd.f32 %v1358_v35, %v667_v5 }
 0x111   : > { %1062 = vpow2.f32 %v703_v10  ;;  %v668_v16 = vmul.f32 %v1352_v28, %v654_v11  ;;  %v641_v18 = vadd.f32 %v627_v9, %v491_v12  ;;  %v695_v19 = vmin.f32 %v681_v8, 0.0 }
 0x112   : > { %v495_v6 = vpop.f32.mrb[18].mxu1  ;;  %v632_v20 = vpop.f32.mrb[20].mxu0  ;;  %vm688_vm7 = vcmp.gt.f32.partialorder %v681_v8, 0.0 }
 0x113   : > { %v1059_v21 = vpop.eup %1058  ;;  %v682_v22 = vadd.f32 %v1358_v35, %v668_v16  ;;  %v655_v23 = vadd.f32 %v1347_v26, %v641_v18  ;;  %v496_v24 = vadd.f32 %v495_v6, %v1342_v17  ;;  %v964_v13 = vpop.f32.mrb[19].mxu1  ;;  %v705_v29 = vmul.f32 1.442695, %v695_v19 }
 0x114   : > { %v1001_v25 = vpop.f32.mrb[21].mxu0  ;;  %v837_v27 = vadd.f32 -1.0, %v1059_v21 }
 0x115   : > { %v696_v30 = vmin.f32 %v682_v22, 0.0  ;;  %v669_v31 = vmul.f32 %v1352_v28, %v655_v23  ;;  %v642_v32 = vadd.f32 %v632_v20, %v496_v24  ;;  %1064 = vpow2.f32 %v705_v29 }
 0x116   : > { %v720_v33 = vsel %vm685_vm4, %v678_v40, %v837_v27  ;;  %vm689_vm8 = vcmp.gt.f32.partialorder %v682_v22, 0.0 }
 0x117   : > { %v1061_v17 = vpop.eup %1060  ;;  %727 = vst.msk [vmem:[%s1382_s11] sm:$0xff] %vm270_vm2, %v720_v33  ;;  %v707_v34 = vmul.f32 1.442695, %v696_v30  ;;  %v683_v36 = vadd.f32 %v1358_v35, %v669_v31  ;;  %v656_v37 = vadd.f32 %v1347_v26, %v642_v32 }
 0x118   : > { %v838_v38 = vadd.f32 -1.0, %v1061_v17 }
 0x119   : > { %1066 = vpow2.f32 %v707_v34  ;;  %v697_v39 = vmin.f32 %v683_v36, 0.0  ;;  %v670_v41 = vmul.f32 %v1352_v28, %v656_v37  ;;  %vm690_vm9 = vcmp.gt.f32.partialorder %v683_v36, 0.0 }
 0x11a   : > { %v721_v42 = vsel %vm686_vm5, %v679_v51, %v838_v38 }
 0x11b   : > { %v1063_v43 = vpop.eup %1062  ;;  %728 = vst.msk [vmem:[%s1382_s11 + $0x8] sm:$0xff] %vm270_vm2, %v721_v42  ;;  %v709_v40 = vmul.f32 1.442695, %v697_v39  ;;  %v684_v44 = vadd.f32 %v1358_v35, %v670_v41 }
 0x11c   : > { %v839_v45 = vadd.f32 -1.0, %v1063_v43 }
 0x11d   : > { %1068 = vpow2.f32 %v709_v40  ;;  %v698_v26 = vmin.f32 %v684_v44, 0.0  ;;  %vm691_vm11 = vcmp.gt.f32.partialorder %v684_v44, 0.0 }
 0x11e   : > { %v722_v46 = vsel %vm687_vm6, %v680_v62, %v839_v45 }
 0x11f   : > { %729 = vst.msk [vmem:[%s1382_s11 + $0x10] sm:$0xff] %vm270_vm2, %v722_v46  ;;  %v711_v47 = vmul.f32 1.442695, %v698_v26  ;;  %v1065_v48 = vpop.eup %1064 }
 0x120   : > { %v840_v28 = vadd.f32 -1.0, %v1065_v48 }
 0x121   : > { %1070 = vpow2.f32 %v711_v47 }
 0x122   : > { %v723_v50 = vsel %vm688_vm7, %v681_v8, %v840_v28 }
 0x123   : > { %v1067_v49 = vpop.eup %1066  ;;  %730 = vst.msk [vmem:[%s1382_s11 + $0x18] sm:$0xff] %vm270_vm2, %v723_v50 }
 0x124   : > { %v841_v35 = vadd.f32 -1.0, %v1067_v49 }
 0x126   : > { %v724_v51 = vsel %vm689_vm8, %v682_v22, %v841_v35 }
 0x127   : > { %v1069_v52 = vpop.eup %1068  ;;  %731 = vst.msk [vmem:[%s1382_s11 + $0x20] sm:$0xff] %vm270_vm2, %v724_v51 }
 0x128   : > { %v842_v53 = vadd.f32 -1.0, %v1069_v52 }
 0x12a   : > { %v725_v54 = vsel %vm690_vm9, %v683_v36, %v842_v53 }
 0x12b   : > { %v1071_v55 = vpop.eup %1070  ;;  %732 = vst.msk [vmem:[%s1382_s11 + $0x28] sm:$0xff] %vm270_vm2, %v725_v54 }
 0x12c   : > { %v843_v56 = vadd.f32 -1.0, %v1071_v55 }
 0x12e   : > { %v726_v57 = vsel %vm691_vm11, %v684_v44, %v843_v56 }
 0x12f   : > { %734 = vst.msk [vmem:[%s1382_s11 + $0x30] sm:$0x1f] %vm733_vm10, %v726_v57 }
 0x130 PF: > { %s15_s18 = sadd.s32 1, %s1078_s18  }
 0x131   : > { %p12_p4 = scmp.ge.s32.totalorder %s15_s18, 4  }
 0x133   :  { %14 = sbr.rel (!%p12_p4) target bundleno = 1 (0x1), region = 72 }

// kernel: snr_forward.18
= control target key start
LH: loop header
LB: loop body
LE: loop exit
PB: predicated region body
PF: predicated region fallthrough
CT: control target
= control target key end

     0   :  { %s1054_s18 = smov 0   ;;  %s1226_s0 = inlined_call_operand.vmem [shape: f32[2,50,64], index: 0, kind: input, shape index: {}]   ;;  %s1227_s1 = inlined_call_operand.vmem [shape: f32[3,64,64], index: 1, kind: input, shape index: {}]   ;;  %s1228_s2 = inlined_call_operand.vmem [shape: f32[1,64], index: 2, kind: input, shape index: {}]   ;;  %s1229_s3 = inlined_call_operand.vmem [shape: f32[1,64], index: 3, kind: input, shape index: {}]   ;;  %s1230_s4 = inlined_call_operand.vmem [shape: f32[1,64], index: 4, kind: input, shape index: {}]   ;;  %s1231_s5 = inlined_call_operand.vmem [shape: f32[2,48,64], index: 5, kind: output, shape index: {}]  }
   0x1 LB: > { %s757_s19 = sadd.s32 4294967295, %s1022_s18   ;;  %p761_p0 = scmp.ge.s32.totalorder %s1022_s18, 1  ;;  %s1022_s18 = sphi %s1054_s18, %s15_s18  }
   0x2   : > { %p187_p1 = scmp.lt.s32.totalorder %s1022_s18, 3 }
   0x4   : > { %p188_p2 = pnand %p761_p0, %p187_p1 }
   0x5   : > { %v764_v0 = vld [vmem:[%s1227_s1 + $0x40] sm:$0xff] (!%p188_p2)  ;;  %v765_v1 = vld [vmem:[%s1227_s1 + $0x48] sm:$0xff] (!%p188_p2)  ;;  %p215_p3 = scmp.lt.s32.totalorder (!%p188_p2), %s757_s19, 1  ;;  %v766_v5 = vld [vmem:[%s1227_s1 + $0x50] sm:$0xff] (!%p188_p2)  ;;  %vm270_vm0 = vcmask (!%p188_p2), 523264   ;;  %vm256_vm1 = vcmask (!%p188_p2), 1046528  }
   0x6   : > { %191 = sbr.rel (%p188_p2) target bundleno = 284 (0x11c), region = 40  ;;  %v232_v2 = vld [vmem:[%s1227_s1] sm:$0xff] (!%p188_p2)  ;;  %v926_v3 = vpack.c.bf16 (!%p188_p2), %v765_v1, %v764_v0  ;;  %v233_v4 = vld [vmem:[%s1227_s1 + $0x8] sm:$0xff] (!%p188_p2)  ;;  %v767_v6 = vld [vmem:[%s1227_s1 + $0x58] sm:$0xff] (!%p188_p2)  ;;  %vm494_vm2 = vcmask (!%p188_p2), 1045504  }
   0x7   : > { %v942_v7 = vpack.c.bf16 (!%p188_p2), %v233_v4, %v232_v2  ;;  %v930_v8 = vpack.c.bf16 (!%p188_p2), %v767_v6, %v766_v5  ;;  %v234_v9 = vld [vmem:[%s1227_s1 + $0x10] sm:$0xff] (!%p188_p2)  ;;  %v235_v10 = vld [vmem:[%s1227_s1 + $0x18] sm:$0xff] (!%p188_p2)  ;;  %v768_v11 = vld [vmem:[%s1227_s1 + $0x60] sm:$0xff] (!%p188_p2) }
   0x8   : > { %927 = vmatprep.subr.bf16.mxu1 (!%p188_p2), %v926_v3  ;;  %v946_v12 = vpack.c.bf16 (!%p188_p2), %v235_v10, %v234_v9  ;;  %v769_v13 = vld [vmem:[%s1227_s1 + $0x68] sm:$0xff] (!%p188_p2)  ;;  %v236_v14 = vld [vmem:[%s1227_s1 + $0x20] sm:$0xff] (!%p188_p2)  ;;  %v770_v18 = vld [vmem:[%s1227_s1 + $0x70] sm:$0xff] (!%p188_p2) }
   0x9   : > { %v237_v15 = vld [vmem:[%s1227_s1 + $0x28] sm:$0xff] (!%p188_p2)  ;;  %943 = vmatprep.subr.bf16.mxu0 (!%p188_p2), %v942_v7  ;;  %929 = vmatpush3.bf16.msra.mxu1 (!%p188_p2), %v926_v3  ;;  %v934_v16 = vpack.c.bf16 (!%p188_p2), %v769_v13, %v768_v11  ;;  %v771_v19 = vld [vmem:[%s1227_s1 + $0x78] sm:$0xff] (!%p188_p2)  ;;  %v238_v20 = vld [vmem:[%s1227_s1 + $0x30] sm:$0xff] (!%p188_p2) }
   0xa   : > { %945 = vmatpush3.bf16.msra.mxu0 (!%p188_p2), %v942_v7  ;;  %931 = vmatprep.subr.bf16.mxu1 (!%p188_p2), %v930_v8  ;;  %v950_v17 = vpack.c.bf16 (!%p188_p2), %v237_v15, %v236_v14  ;;  %v239_v21 = vld [vmem:[%s1227_s1 + $0x38] sm:$0xff] (!%p188_p2)  ;;  %v938_v26 = vpack.c.bf16 (!%p188_p2), %v771_v19, %v770_v18  ;;  %v784_v30 = vld [vmem:[%s1227_s1 + $0x80] sm:$0xff] (!%p188_p2)  ;;  %v785_v31 = vld [vmem:[%s1227_s1 + $0x88] sm:$0xff] (!%p188_p2) }
   0xb   : > { %947 = vmatprep.subr.bf16.mxu0 (!%p188_p2), %v946_v12  ;;  %v954_v28 = vpack.c.bf16 (!%p188_p2), %v239_v21, %v238_v20  ;;  %v958_v34 = vpack.c.bf16 (!%p188_p2), %v785_v31, %v784_v30  ;;  %v786_v36 = vld [vmem:[%s1227_s1 + $0x90] sm:$0xff] (!%p188_p2)  ;;  %v787_v37 = vld [vmem:[%s1227_s1 + $0x98] sm:$0xff] (!%p188_p2)  ;;  %v788_v44 = vld [vmem:[%s1227_s1 + $0xa0] sm:$0xff] (!%p188_p2) }
   0xc   : > { %v962_v42 = vpack.c.bf16 (!%p188_p2), %v787_v37, %v786_v36  ;;  %v789_v45 = vld [vmem:[%s1227_s1 + $0xa8] sm:$0xff] (!%p188_p2)  ;;  %v790_v51 = vld [vmem:[%s1227_s1 + $0xb0] sm:$0xff] (!%p188_p2)  ;;  %v791_v52 = vld [vmem:[%s1227_s1 + $0xb8] sm:$0xff] (!%p188_p2) }
   0xd   : > { %s1233_s19 = smov (!%p215_p3, %s757_s19), 1  ;;  %933 = vmatpush3.bf16.msra.mxu1 %v930_v8  ;;  %v966_v50 = vpack.c.bf16 %v789_v45, %v788_v44  ;;  %v970_v59 = vpack.c.bf16 %v791_v52, %v790_v51  ;;  %v798_v19 = vld [vmem:[%s1228_s2] ss:$0 sm:$0xff] }
   0xe   : > { %s994_s21 = smul.u32 56, %s1233_s19  ;;  %949 = vmatpush3.bf16.msra.mxu0 %v946_v12  ;;  %935 = vmatprep.subr.bf16.mxu1 %v934_v16  ;;  %v800_v31 = vld [vmem:[%s1230_s4] ss:$0 sm:$0xff] }
   0xf   : > { %951 = vmatprep.subr.bf16.mxu0 %v950_v17  ;;  %s995_s7 = smul.u32 48, %s1233_s19 }
  0x10   : > { %s1113_s30 = scalar_lea.vmem %s1226_s0, %s994_s21 }
  0x11   : > { %v1119_v22 = vld [vmem:[%s1113_s30] sm:$0xff]  ;;  %v1122_v23 = vld [vmem:[%s1113_s30 + $0x8] sm:$0xff]  ;;  %v1129_v27 = vld [vmem:[%s1113_s30 + $0x10] sm:$0xff]  ;;  %937 = vmatpush3.bf16.msra.mxu1 %v934_v16  ;;  %s224_s10 = scalar_lea.vmem %s1231_s5, %s995_s7 }
  0x12   : > { %v257_v24 = vrot.slane %v1119_v22, 1  ;;  %v258_v25 = vrot.slane %v1122_v23, 1  ;;  %892 = vmatprep.mubr.msk.f32.mxu0 %vm270_vm0, %v1119_v22  ;;  %v260_v32 = vrot.slane %v1129_v27, 1  ;;  %v1141_v33 = vld [vmem:[%s1113_s30 + $0x18] sm:$0xff]  ;;  %953 = vmatpush3.bf16.msra.mxu0 %v950_v17  ;;  %v1144_v35 = vld [vmem:[%s1113_s30 + $0x20] sm:$0xff]  ;;  %v230_v41 = vld [vmem:[%s1113_s30 + $0x28] sm:$0xff] }
  0x13   : > { %939 = vmatprep.subr.bf16.mxu1 %v938_v26  ;;  %955 = vmatprep.subr.bf16.mxu0 %v954_v28  ;;  %v262_v38 = vrot.slane %v1141_v33, 1  ;;  %v264_v40 = vrot.slane %v1144_v35, 1  ;;  %v231_v43 = vld [vmem:[%s1113_s30 + $0x30] sm:$0x3]  ;;  %v266_v47 = vrot.slane %v230_v41, 1  ;;  %v495_v54 = vrot.slane %v1119_v22, 2 }
  0x14   : > { %v259_v29 = vsel %vm256_vm1, %v257_v24, %v258_v25  ;;  %v261_v39 = vsel %vm256_vm1, %v258_v25, %v260_v32  ;;  %v268_v49 = vrot.slane %v231_v43, 1  ;;  %v496_v55 = vrot.slane %v1122_v23, 2  ;;  %v799_v25 = vld [vmem:[%s1229_s3] ss:$0 sm:$0xff] }
  0x15   : > { %867 = vmatprep.mubr.msk.f32.mxu1 %vm270_vm0, %v259_v29  ;;  %941 = vmatpush3.bf16.msra.mxu1 %v938_v26  ;;  %v263_v46 = vsel %vm256_vm1, %v260_v32, %v262_v38  ;;  %v265_v48 = vsel %vm256_vm1, %v262_v38, %v264_v40  ;;  %v267_v53 = vsel %vm256_vm1, %v264_v40, %v266_v47  ;;  %v498_v57 = vrot.slane %v1129_v27, 2 }
  0x16   : > { %957 = vmatpush3.bf16.msra.mxu0 %v954_v28  ;;  %974 = vmatprep.subr.bf16.mxu1 %v958_v34  ;;  %v269_v56 = vsel %vm256_vm1, %v266_v47, %v268_v49  ;;  %v500_v58 = vrot.slane %v1141_v33, 2  ;;  %v497_v60 = vsel %vm494_vm2, %v495_v54, %v496_v55  ;;  %v502_v61 = vrot.slane %v1144_v35, 2 }
  0x17   : > { %959 = vmatprep.subr.bf16.mxu0 %v958_v34  ;;  %v504_v63 = vrot.slane %v230_v41, 2  ;;  %v506_v1 = vrot.slane %v231_v43, 2  ;;  %v499_v2 = vsel %vm494_vm2, %v496_v55, %v498_v57 }
  0x18   : > { %868 = vmatmul.mubr.msk.f32.vlgmr.msra.gmra.mrb[0].mxu1 %vm270_vm0, %v261_v39  ;;  %v501_v62 = vsel %vm494_vm2, %v498_v57, %v500_v58  ;;  %v503_v0 = vsel %vm494_vm2, %v500_v58, %v502_v61 }
  0x19   : > { %893 = vmatmul.mubr.msk.f32.vlgmr.msra.gmra.mrb[0].mxu0 %vm270_vm0, %v1122_v23  ;;  %978 = vmatpush3.bf16.msra.mxu1 %v958_v34  ;;  %v505_v3 = vsel %vm494_vm2, %v502_v61, %v504_v63  ;;  %v507_v4 = vsel %vm494_vm2, %v504_v63, %v506_v1 }
  0x1a   : > { %961 = vmatpush3.bf16.msra.mxu0 %v958_v34  ;;  %975 = vmatprep.subr.bf16.mxu1 %v962_v42 }
  0x1b   : > { %963 = vmatprep.subr.bf16.mxu0 %v962_v42  ;;  %870 = vmatprep.mubr.msk.f32.mxu1 %vm270_vm0, %v263_v46 }
  0x1c   : > { %895 = vmatprep.mubr.msk.f32.mxu0 %vm270_vm0, %v1129_v27  ;;  %871 = vmatmul.mubr.msk.f32.gmra.mrb[2].mxu1 %vm270_vm0, %v265_v48 }
  0x1d   : > { %979 = vmatpush3.bf16.msra.mxu1 %v962_v42  ;;  %896 = vmatmul.mubr.msk.f32.gmra.mrb[2].mxu0 %vm270_vm0, %v1141_v33 }
  0x1e   : > { %965 = vmatpush3.bf16.msra.mxu0 %v962_v42  ;;  %976 = vmatprep.subr.bf16.mxu1 %v966_v50 }
  0x1f   : > { %967 = vmatprep.subr.bf16.mxu0 %v966_v50  ;;  %873 = vmatprep.mubr.msk.f32.mxu1 %vm270_vm0, %v267_v53 }
  0x20   : > { %898 = vmatprep.mubr.msk.f32.mxu0 %vm270_vm0, %v1144_v35  ;;  %874 = vmatmul.mubr.msk.f32.gmra.mrb[4].mxu1 %vm270_vm0, %v269_v56 }
  0x21   : > { %980 = vmatpush3.bf16.msra.mxu1 %v966_v50  ;;  %899 = vmatmul.mubr.msk.f32.gmra.mrb[4].mxu0 %vm270_vm0, %v230_v41 }
  0x22   : > { %969 = vmatpush3.bf16.msra.mxu0 %v966_v50  ;;  %977 = vmatprep.subr.bf16.mxu1 %v970_v59 }
  0x23   : > { %971 = vmatprep.subr.bf16.mxu0 %v970_v59  ;;  %917 = vmatprep.mubr.msk.f32.mxu0 %vm270_vm0, %v497_v60 }
  0x24   : > { %920 = vmatprep.mubr.msk.f32.mxu1 %vm270_vm0, %v501_v62 }
  0x25   : > { %981 = vmatpush3.bf16.msra.mxu1 %v970_v59 }
  0x26   : > { %973 = vmatpush3.bf16.msra.mxu0 %v970_v59 }
  0x28   : > { %921 = vmatmul.mubr.msk.f32.vlgmr.msra.gmra.mrb[6].mxu1 %vm270_vm0, %v503_v0 }
  0x29   : > { %918 = vmatmul.mubr.msk.f32.vlgmr.msra.gmra.mrb[0].mxu0 %vm270_vm0, %v499_v2  ;;  %923 = vmatprep.mubr.msk.f32.mxu1 %vm270_vm0, %v505_v3 }
  0x2c   : > { %924 = vmatmul.mubr.msk.f32.gmra.mrb[8].mxu1 %vm270_vm0, %v507_v4 }
  0xeb   : > { %v869_v5 = vpop.f32.mrb[0].mxu1 }
  0xec   : > { %v349_v6 = vpop.f32.mrb[1].mxu1 }
  0xef   : > { %v872_v7 = vpop.f32.mrb[2].mxu1 }
  0xf0   : > { %v897_v8 = vpop.f32.mrb[2].mxu0  ;;  %v359_v9 = vpop.f32.mrb[3].mxu1 }
  0xf1   : > { %v472_v10 = vadd.f32 %v897_v8, %v872_v7  ;;  %v466_v11 = vpop.f32.mrb[3].mxu0 }
  0xf2   : > { %v467_v12 = vadd.f32 %v466_v11, %v359_v9 }
  0xf3   : > { %v875_v13 = vpop.f32.mrb[4].mxu1 }
  0xf4   : > { %v900_v14 = vpop.f32.mrb[4].mxu0  ;;  %v369_v15 = vpop.f32.mrb[5].mxu1 }
  0xf5   : > { %v482_v16 = vadd.f32 %v900_v14, %v875_v13  ;;  %v476_v17 = vpop.f32.mrb[5].mxu0 }
  0xf6   : > { %v477_v18 = vadd.f32 %v476_v17, %v369_v15 }
  0xfb   : > { %v922_v20 = vpop.f32.mrb[6].mxu1 }
  0xfc   : > { %v919_v21 = vpop.f32.mrb[0].mxu0  ;;  %v618_v22 = vadd.f32 %v922_v20, %v472_v10  ;;  %v596_v23 = vpop.f32.mrb[7].mxu1 }
  0xfd   : > { %v982_v24 = vadd.f32 %v919_v21, %v869_v5  ;;  %v586_v26 = vpop.f32.mrb[1].mxu0  ;;  %v617_v27 = vadd.f32 %v596_v23, %v467_v12 }
  0xfe   : > { %v631_v28 = vadd.f32 %v798_v19, %v618_v22  ;;  %v983_v29 = vadd.f32 %v586_v26, %v349_v6 }
  0xff   : > { %v629_v30 = vadd.f32 %v982_v24, %v798_v19  ;;  %v630_v32 = vadd.f32 %v798_v19, %v617_v27  ;;  %v925_v33 = vpop.f32.mrb[8].mxu1 }
 0x100   : > { %v644_v34 = vmul.f32 %v799_v25, %v631_v28  ;;  %v628_v35 = vadd.f32 %v983_v29, %v798_v19  ;;  %v620_v36 = vadd.f32 %v925_v33, %v482_v16  ;;  %v606_v37 = vpop.f32.mrb[9].mxu1 }
 0x101   : > { %v642_v38 = vmul.f32 %v799_v25, %v629_v30  ;;  %v643_v39 = vmul.f32 %v799_v25, %v630_v32  ;;  %v619_v40 = vadd.f32 %v606_v37, %v477_v18 }
 0x102   : > { %v657_v41 = vadd.f32 %v800_v31, %v644_v34  ;;  %v641_v42 = vmul.f32 %v799_v25, %v628_v35  ;;  %v633_v43 = vadd.f32 %v798_v19, %v620_v36 }
 0x103   : > { %v655_v44 = vadd.f32 %v800_v31, %v642_v38  ;;  %v656_v45 = vadd.f32 %v800_v31, %v643_v39  ;;  %v632_v46 = vadd.f32 %v798_v19, %v619_v40 }
 0x104   : > { %v669_v47 = vmin.f32 %v657_v41, 0.0  ;;  %v654_v48 = vadd.f32 %v800_v31, %v641_v42  ;;  %v646_v49 = vmul.f32 %v799_v25, %v633_v43  ;;  %vm663_vm3 = vcmp.gt.f32.partialorder %v657_v41, 0.0 }
 0x105   : > { %v667_v50 = vmin.f32 %v655_v44, 0.0  ;;  %v668_v51 = vmin.f32 %v656_v45, 0.0  ;;  %v645_v57 = vmul.f32 %v799_v25, %v632_v46  ;;  %vm661_vm4 = vcmp.gt.f32.partialorder %v655_v44, 0.0 }
 0x106   : > { %v678_v52 = vmul.f32 1.442695, %v669_v47  ;;  %v666_v53 = vmin.f32 %v654_v48, 0.0  ;;  %v659_v54 = vadd.f32 %v800_v31, %v646_v49  ;;  %vm660_vm5 = vcmp.gt.f32.partialorder %v654_v48, 0.0 }
 0x107   : > { %v674_v55 = vmul.f32 1.442695, %v667_v50  ;;  %v676_v56 = vmul.f32 1.442695, %v668_v51  ;;  %v658_v60 = vadd.f32 %v800_v31, %v645_v57  ;;  %vm662_vm6 = vcmp.gt.f32.partialorder %v656_v45, 0.0 }
 0x108   : > { %1004 = vpow2.f32 %v678_v52  ;;  %v672_v58 = vmul.f32 1.442695, %v666_v53  ;;  %v671_v59 = vmin.f32 %v659_v54, 0.0  ;;  %vm665_vm7 = vcmp.gt.f32.partialorder %v659_v54, 0.0 }
 0x109   : > { %1006 = vpow2.f32 %v674_v55  ;;  %v670_v62 = vmin.f32 %v658_v60, 0.0  ;;  %vm664_vm8 = vcmp.gt.f32.partialorder %v658_v60, 0.0 }
 0x10a   : > { %1008 = vpow2.f32 %v672_v58  ;;  %v682_v61 = vmul.f32 1.442695, %v671_v59 }
 0x10b   : > { %1010 = vpow2.f32 %v676_v56  ;;  %v680_v63 = vmul.f32 1.442695, %v670_v62 }
 0x10c   : > { %1012 = vpow2.f32 %v682_v61 }
 0x10d   : > { %1014 = vpow2.f32 %v680_v63 }
 0x112   : > { %v1005_v0 = vpop.eup %1004 }
 0x113   : > { %v1007_v1 = vpop.eup %1006  ;;  %v804_v2 = vadd.f32 -1.0, %v1005_v0 }
 0x114   : > { %v1009_v3 = vpop.eup %1008  ;;  %v802_v4 = vadd.f32 -1.0, %v1007_v1 }
 0x115   : > { %v1011_v5 = vpop.eup %1010  ;;  %v693_v6 = vsel %vm663_vm3, %v657_v41, %v804_v2  ;;  %v801_v7 = vadd.f32 -1.0, %v1009_v3 }
 0x116   : > { %v1013_v8 = vpop.eup %1012  ;;  %v691_v9 = vsel %vm661_vm4, %v655_v44, %v802_v4  ;;  %699 = vst.msk [vmem:[%s224_s10 + $0x18] sm:$0xff] %vm270_vm0, %v693_v6  ;;  %v803_v10 = vadd.f32 -1.0, %v1011_v5 }
 0x117   : > { %697 = vst.msk [vmem:[%s224_s10 + $0x8] sm:$0xff] %vm270_vm0, %v691_v9  ;;  %v690_v11 = vsel %vm660_vm5, %v654_v48, %v801_v7  ;;  %v806_v12 = vadd.f32 -1.0, %v1013_v8  ;;  %v1015_v14 = vpop.eup %1014 }
 0x118   : > { %696 = vst.msk [vmem:[%s224_s10] sm:$0xff] %vm270_vm0, %v690_v11  ;;  %v692_v13 = vsel %vm662_vm6, %v656_v45, %v803_v10  ;;  %v805_v16 = vadd.f32 -1.0, %v1015_v14 }
 0x119   : > { %698 = vst.msk [vmem:[%s224_s10 + $0x10] sm:$0xff] %vm270_vm0, %v692_v13  ;;  %v695_v15 = vsel %vm665_vm7, %v659_v54, %v806_v12 }
 0x11a   : > { %701 = vst.msk [vmem:[%s224_s10 + $0x28] sm:$0xff] %vm270_vm0, %v695_v15  ;;  %v694_v17 = vsel %vm664_vm8, %v658_v60, %v805_v16 }
 0x11b   : > { %700 = vst.msk [vmem:[%s224_s10 + $0x20] sm:$0xff] %vm270_vm0, %v694_v17 }
 0x11c PF: > { %s15_s18 = sadd.s32 1, %s1022_s18  }
 0x11d   : > { %p12_p4 = scmp.ge.s32.totalorder %s15_s18, 4  }
 0x11f   :  { %14 = sbr.rel (!%p12_p4) target bundleno = 1 (0x1), region = 72 }

// kernel: snr_forward.19
= control target key start
LH: loop header
LB: loop body
LE: loop exit
PB: predicated region body
PF: predicated region fallthrough
CT: control target
= control target key end

     0   :  { %s1048_s18 = smov 0   ;;  %s1214_s0 = inlined_call_operand.vmem [shape: f32[2,48,64], index: 0, kind: input, shape index: {}]   ;;  %s1215_s1 = inlined_call_operand.vmem [shape: f32[3,64,64], index: 1, kind: input, shape index: {}]   ;;  %s1216_s2 = inlined_call_operand.vmem [shape: f32[1,64], index: 2, kind: input, shape index: {}]   ;;  %s1217_s3 = inlined_call_operand.vmem [shape: f32[1,64], index: 3, kind: input, shape index: {}]   ;;  %s1218_s4 = inlined_call_operand.vmem [shape: f32[1,64], index: 4, kind: input, shape index: {}]   ;;  %s1219_s5 = inlined_call_operand.vmem [shape: f32[2,46,64], index: 5, kind: output, shape index: {}]  }
   0x1 LB: > { %s752_s19 = sadd.s32 4294967295, %s1016_s18   ;;  %p756_p0 = scmp.ge.s32.totalorder %s1016_s18, 1  ;;  %s1016_s18 = sphi %s1048_s18, %s15_s18  }
   0x2   : > { %p187_p1 = scmp.lt.s32.totalorder %s1016_s18, 3 }
   0x4   : > { %p188_p2 = pnand %p756_p0, %p187_p1 }
   0x5   : > { %v759_v0 = vld [vmem:[%s1215_s1 + $0x40] sm:$0xff] (!%p188_p2)  ;;  %v760_v1 = vld [vmem:[%s1215_s1 + $0x48] sm:$0xff] (!%p188_p2)  ;;  %p215_p3 = scmp.lt.s32.totalorder (!%p188_p2), %s752_s19, 1  ;;  %v761_v5 = vld [vmem:[%s1215_s1 + $0x50] sm:$0xff] (!%p188_p2)  ;;  %vm266_vm0 = vcmask (!%p188_p2), 523264   ;;  %vm254_vm1 = vcmask (!%p188_p2), 1046528  }
   0x6   : > { %191 = sbr.rel (%p188_p2) target bundleno = 284 (0x11c), region = 40  ;;  %v231_v2 = vld [vmem:[%s1215_s1] sm:$0xff] (!%p188_p2)  ;;  %v921_v3 = vpack.c.bf16 (!%p188_p2), %v760_v1, %v759_v0  ;;  %v232_v4 = vld [vmem:[%s1215_s1 + $0x8] sm:$0xff] (!%p188_p2)  ;;  %v762_v6 = vld [vmem:[%s1215_s1 + $0x58] sm:$0xff] (!%p188_p2)  ;;  %vm490_vm2 = vcmask (!%p188_p2), 1045504   ;;  %vm695_vm7 = vcmask (!%p188_p2), 521216  }
   0x7   : > { %v937_v7 = vpack.c.bf16 (!%p188_p2), %v232_v4, %v231_v2  ;;  %v925_v8 = vpack.c.bf16 (!%p188_p2), %v762_v6, %v761_v5  ;;  %v233_v9 = vld [vmem:[%s1215_s1 + $0x10] sm:$0xff] (!%p188_p2)  ;;  %v234_v10 = vld [vmem:[%s1215_s1 + $0x18] sm:$0xff] (!%p188_p2)  ;;  %v763_v11 = vld [vmem:[%s1215_s1 + $0x60] sm:$0xff] (!%p188_p2) }
   0x8   : > { %922 = vmatprep.subr.bf16.mxu1 (!%p188_p2), %v921_v3  ;;  %v941_v12 = vpack.c.bf16 (!%p188_p2), %v234_v10, %v233_v9  ;;  %v764_v13 = vld [vmem:[%s1215_s1 + $0x68] sm:$0xff] (!%p188_p2)  ;;  %v235_v14 = vld [vmem:[%s1215_s1 + $0x20] sm:$0xff] (!%p188_p2)  ;;  %v765_v18 = vld [vmem:[%s1215_s1 + $0x70] sm:$0xff] (!%p188_p2) }
   0x9   : > { %v236_v15 = vld [vmem:[%s1215_s1 + $0x28] sm:$0xff] (!%p188_p2)  ;;  %938 = vmatprep.subr.bf16.mxu0 (!%p188_p2), %v937_v7  ;;  %924 = vmatpush3.bf16.msra.mxu1 (!%p188_p2), %v921_v3  ;;  %v929_v16 = vpack.c.bf16 (!%p188_p2), %v764_v13, %v763_v11  ;;  %v766_v19 = vld [vmem:[%s1215_s1 + $0x78] sm:$0xff] (!%p188_p2)  ;;  %v237_v20 = vld [vmem:[%s1215_s1 + $0x30] sm:$0xff] (!%p188_p2) }
   0xa   : > { %940 = vmatpush3.bf16.msra.mxu0 (!%p188_p2), %v937_v7  ;;  %926 = vmatprep.subr.bf16.mxu1 (!%p188_p2), %v925_v8  ;;  %v945_v17 = vpack.c.bf16 (!%p188_p2), %v236_v15, %v235_v14  ;;  %v238_v21 = vld [vmem:[%s1215_s1 + $0x38] sm:$0xff] (!%p188_p2)  ;;  %v933_v26 = vpack.c.bf16 (!%p188_p2), %v766_v19, %v765_v18  ;;  %v779_v30 = vld [vmem:[%s1215_s1 + $0x80] sm:$0xff] (!%p188_p2)  ;;  %v780_v31 = vld [vmem:[%s1215_s1 + $0x88] sm:$0xff] (!%p188_p2) }
   0xb   : > { %942 = vmatprep.subr.bf16.mxu0 (!%p188_p2), %v941_v12  ;;  %v949_v28 = vpack.c.bf16 (!%p188_p2), %v238_v21, %v237_v20  ;;  %v953_v34 = vpack.c.bf16 (!%p188_p2), %v780_v31, %v779_v30  ;;  %v781_v36 = vld [vmem:[%s1215_s1 + $0x90] sm:$0xff] (!%p188_p2)  ;;  %v782_v37 = vld [vmem:[%s1215_s1 + $0x98] sm:$0xff] (!%p188_p2)  ;;  %v783_v43 = vld [vmem:[%s1215_s1 + $0xa0] sm:$0xff] (!%p188_p2) }
   0xc   : > { %v957_v42 = vpack.c.bf16 (!%p188_p2), %v782_v37, %v781_v36  ;;  %v784_v44 = vld [vmem:[%s1215_s1 + $0xa8] sm:$0xff] (!%p188_p2)  ;;  %v785_v49 = vld [vmem:[%s1215_s1 + $0xb0] sm:$0xff] (!%p188_p2)  ;;  %v786_v50 = vld [vmem:[%s1215_s1 + $0xb8] sm:$0xff] (!%p188_p2) }
   0xd   : > { %s1221_s19 = smov (!%p215_p3, %s752_s19), 1  ;;  %928 = vmatpush3.bf16.msra.mxu1 %v925_v8  ;;  %v961_v48 = vpack.c.bf16 %v784_v44, %v783_v43  ;;  %v965_v56 = vpack.c.bf16 %v786_v50, %v785_v49  ;;  %v793_v14 = vld [vmem:[%s1216_s2] ss:$0 sm:$0xff] }
   0xe   : > { %s989_s21 = smul.u32 48, %s1221_s19  ;;  %944 = vmatpush3.bf16.msra.mxu0 %v941_v12  ;;  %930 = vmatprep.subr.bf16.mxu1 %v929_v16  ;;  %v794_v20 = vld [vmem:[%s1217_s3] ss:$0 sm:$0xff] }
   0xf   : > { %946 = vmatprep.subr.bf16.mxu0 %v945_v17 }
  0x10   : > { %s1109_s30 = scalar_lea.vmem %s1214_s0, %s989_s21  ;;  %s224_s10 = scalar_lea.vmem %s1219_s5, %s989_s21 }
  0x11   : > { %v1115_v22 = vld [vmem:[%s1109_s30] sm:$0xff]  ;;  %v1118_v23 = vld [vmem:[%s1109_s30 + $0x8] sm:$0xff]  ;;  %v1125_v27 = vld [vmem:[%s1109_s30 + $0x10] sm:$0xff]  ;;  %932 = vmatpush3.bf16.msra.mxu1 %v929_v16 }
  0x12   : > { %v255_v24 = vrot.slane %v1115_v22, 1  ;;  %v256_v25 = vrot.slane %v1118_v23, 1  ;;  %887 = vmatprep.mubr.msk.f32.mxu0 %vm266_vm0, %v1115_v22  ;;  %v258_v32 = vrot.slane %v1125_v27, 1  ;;  %v1137_v33 = vld [vmem:[%s1109_s30 + $0x18] sm:$0xff]  ;;  %948 = vmatpush3.bf16.msra.mxu0 %v945_v17  ;;  %v229_v35 = vld [vmem:[%s1109_s30 + $0x20] sm:$0xff]  ;;  %v230_v41 = vld [vmem:[%s1109_s30 + $0x28] sm:$0xff] }
  0x13   : > { %934 = vmatprep.subr.bf16.mxu1 %v933_v26  ;;  %950 = vmatprep.subr.bf16.mxu0 %v949_v28  ;;  %v260_v38 = vrot.slane %v1137_v33, 1  ;;  %v262_v40 = vrot.slane %v229_v35, 1  ;;  %v264_v46 = vrot.slane %v230_v41, 1  ;;  %v491_v52 = vrot.slane %v1115_v22, 2 }
  0x14   : > { %v257_v29 = vsel %vm254_vm1, %v255_v24, %v256_v25  ;;  %v259_v39 = vsel %vm254_vm1, %v256_v25, %v258_v32  ;;  %v492_v53 = vrot.slane %v1118_v23, 2  ;;  %v494_v54 = vrot.slane %v1125_v27, 2 }
  0x15   : > { %862 = vmatprep.mubr.msk.f32.mxu1 %vm266_vm0, %v257_v29  ;;  %936 = vmatpush3.bf16.msra.mxu1 %v933_v26  ;;  %v261_v45 = vsel %vm254_vm1, %v258_v32, %v260_v38  ;;  %v263_v47 = vsel %vm254_vm1, %v260_v38, %v262_v40  ;;  %v265_v51 = vsel %vm254_vm1, %v262_v40, %v264_v46  ;;  %v496_v55 = vrot.slane %v1137_v33, 2  ;;  %v795_v26 = vld [vmem:[%s1218_s4] ss:$0 sm:$0xff] }
  0x16   : > { %952 = vmatpush3.bf16.msra.mxu0 %v949_v28  ;;  %969 = vmatprep.subr.bf16.mxu1 %v953_v34  ;;  %v493_v57 = vsel %vm490_vm2, %v491_v52, %v492_v53  ;;  %v498_v58 = vrot.slane %v229_v35, 2  ;;  %v500_v60 = vrot.slane %v230_v41, 2  ;;  %v495_v62 = vsel %vm490_vm2, %v492_v53, %v494_v54 }
  0x17   : > { %954 = vmatprep.subr.bf16.mxu0 %v953_v34  ;;  %v497_v59 = vsel %vm490_vm2, %v494_v54, %v496_v55 }
  0x18   : > { %863 = vmatmul.mubr.msk.f32.vlgmr.msra.gmra.mrb[0].mxu1 %vm266_vm0, %v259_v39  ;;  %v499_v61 = vsel %vm490_vm2, %v496_v55, %v498_v58  ;;  %v501_v63 = vsel %vm490_vm2, %v498_v58, %v500_v60 }
  0x19   : > { %888 = vmatmul.mubr.msk.f32.vlgmr.msra.gmra.mrb[0].mxu0 %vm266_vm0, %v1118_v23  ;;  %973 = vmatpush3.bf16.msra.mxu1 %v953_v34 }
  0x1a   : > { %956 = vmatpush3.bf16.msra.mxu0 %v953_v34  ;;  %970 = vmatprep.subr.bf16.mxu1 %v957_v42 }
  0x1b   : > { %958 = vmatprep.subr.bf16.mxu0 %v957_v42  ;;  %865 = vmatprep.mubr.msk.f32.mxu1 %vm266_vm0, %v261_v45 }
  0x1c   : > { %890 = vmatprep.mubr.msk.f32.mxu0 %vm266_vm0, %v1125_v27  ;;  %866 = vmatmul.mubr.msk.f32.gmra.mrb[2].mxu1 %vm266_vm0, %v263_v47 }
  0x1d   : > { %974 = vmatpush3.bf16.msra.mxu1 %v957_v42  ;;  %891 = vmatmul.mubr.msk.f32.gmra.mrb[2].mxu0 %vm266_vm0, %v1137_v33 }
  0x1e   : > { %960 = vmatpush3.bf16.msra.mxu0 %v957_v42  ;;  %971 = vmatprep.subr.bf16.mxu1 %v961_v48 }
  0x1f   : > { %962 = vmatprep.subr.bf16.mxu0 %v961_v48  ;;  %868 = vmatprep.mubr.msk.f32.mxu1 %vm266_vm0, %v265_v51 }
  0x20   : > { %893 = vmatprep.mubr.msk.f32.mxu0 %vm266_vm0, %v229_v35  ;;  %869 = vmatmul.mubr.msk.f32.gmra.mrb[4].mxu1 %vm266_vm0, %v264_v46 }
  0x21   : > { %975 = vmatpush3.bf16.msra.mxu1 %v961_v48  ;;  %894 = vmatmul.mubr.msk.f32.gmra.mrb[4].mxu0 %vm266_vm0, %v230_v41 }
  0x22   : > { %964 = vmatpush3.bf16.msra.mxu0 %v961_v48  ;;  %972 = vmatprep.subr.bf16.mxu1 %v965_v56 }
  0x23   : > { %966 = vmatprep.subr.bf16.mxu0 %v965_v56  ;;  %912 = vmatprep.mubr.msk.f32.mxu0 %vm266_vm0, %v493_v57 }
  0x24   : > { %915 = vmatprep.mubr.msk.f32.mxu1 %vm266_vm0, %v497_v59 }
  0x25   : > { %976 = vmatpush3.bf16.msra.mxu1 %v965_v56 }
  0x26   : > { %968 = vmatpush3.bf16.msra.mxu0 %v965_v56 }
  0x28   : > { %916 = vmatmul.mubr.msk.f32.vlgmr.msra.gmra.mrb[6].mxu1 %vm266_vm0, %v499_v61 }
  0x29   : > { %913 = vmatmul.mubr.msk.f32.vlgmr.msra.gmra.mrb[0].mxu0 %vm266_vm0, %v495_v62  ;;  %918 = vmatprep.mubr.msk.f32.mxu1 %vm266_vm0, %v501_v63 }
  0x2c   : > { %919 = vmatmul.mubr.msk.f32.gmra.mrb[8].mxu1 %vm266_vm0, %v500_v60 }
  0xeb   : > { %v864_v0 = vpop.f32.mrb[0].mxu1 }
  0xec   : > { %v345_v1 = vpop.f32.mrb[1].mxu1 }
  0xef   : > { %v867_v2 = vpop.f32.mrb[2].mxu1 }
  0xf0   : > { %v892_v3 = vpop.f32.mrb[2].mxu0  ;;  %v355_v4 = vpop.f32.mrb[3].mxu1 }
  0xf1   : > { %v468_v5 = vadd.f32 %v892_v3, %v867_v2  ;;  %v462_v6 = vpop.f32.mrb[3].mxu0 }
  0xf2   : > { %v463_v7 = vadd.f32 %v462_v6, %v355_v4 }
  0xf3   : > { %v870_v8 = vpop.f32.mrb[4].mxu1 }
  0xf4   : > { %v895_v9 = vpop.f32.mrb[4].mxu0  ;;  %v365_v10 = vpop.f32.mrb[5].mxu1 }
  0xf5   : > { %v478_v11 = vadd.f32 %v895_v9, %v870_v8  ;;  %v472_v12 = vpop.f32.mrb[5].mxu0 }
  0xf6   : > { %v473_v13 = vadd.f32 %v472_v12, %v365_v10 }
  0xfb   : > { %v917_v15 = vpop.f32.mrb[6].mxu1 }
  0xfc   : > { %v914_v16 = vpop.f32.mrb[0].mxu0  ;;  %v612_v17 = vadd.f32 %v917_v15, %v468_v5  ;;  %v590_v18 = vpop.f32.mrb[7].mxu1 }
  0xfd   : > { %v977_v19 = vadd.f32 %v914_v16, %v864_v0  ;;  %v580_v21 = vpop.f32.mrb[1].mxu0  ;;  %v611_v22 = vadd.f32 %v590_v18, %v463_v7 }
  0xfe   : > { %v625_v23 = vadd.f32 %v793_v14, %v612_v17  ;;  %v978_v24 = vadd.f32 %v580_v21, %v345_v1 }
  0xff   : > { %v623_v25 = vadd.f32 %v977_v19, %v793_v14  ;;  %v624_v27 = vadd.f32 %v793_v14, %v611_v22  ;;  %v920_v28 = vpop.f32.mrb[8].mxu1 }
 0x100   : > { %v638_v29 = vmul.f32 %v794_v20, %v625_v23  ;;  %v622_v30 = vadd.f32 %v978_v24, %v793_v14  ;;  %v614_v31 = vadd.f32 %v920_v28, %v478_v11  ;;  %v600_v32 = vpop.f32.mrb[9].mxu1 }
 0x101   : > { %v636_v33 = vmul.f32 %v794_v20, %v623_v25  ;;  %v637_v34 = vmul.f32 %v794_v20, %v624_v27  ;;  %v613_v35 = vadd.f32 %v600_v32, %v473_v13 }
 0x102   : > { %v651_v36 = vadd.f32 %v795_v26, %v638_v29  ;;  %v635_v37 = vmul.f32 %v794_v20, %v622_v30  ;;  %v627_v38 = vadd.f32 %v793_v14, %v614_v31 }
 0x103   : > { %v649_v39 = vadd.f32 %v795_v26, %v636_v33  ;;  %v650_v40 = vadd.f32 %v795_v26, %v637_v34  ;;  %v626_v41 = vadd.f32 %v793_v14, %v613_v35 }
 0x104   : > { %v663_v42 = vmin.f32 %v651_v36, 0.0  ;;  %v648_v43 = vadd.f32 %v795_v26, %v635_v37  ;;  %v640_v44 = vmul.f32 %v794_v20, %v627_v38  ;;  %vm657_vm3 = vcmp.gt.f32.partialorder %v651_v36, 0.0 }
 0x105   : > { %v661_v45 = vmin.f32 %v649_v39, 0.0  ;;  %v662_v46 = vmin.f32 %v650_v40, 0.0  ;;  %v639_v52 = vmul.f32 %v794_v20, %v626_v41  ;;  %vm655_vm4 = vcmp.gt.f32.partialorder %v649_v39, 0.0 }
 0x106   : > { %v672_v47 = vmul.f32 1.442695, %v663_v42  ;;  %v660_v48 = vmin.f32 %v648_v43, 0.0  ;;  %v653_v49 = vadd.f32 %v795_v26, %v640_v44  ;;  %vm654_vm5 = vcmp.gt.f32.partialorder %v648_v43, 0.0 }
 0x107   : > { %v668_v50 = vmul.f32 1.442695, %v661_v45  ;;  %v670_v51 = vmul.f32 1.442695, %v662_v46  ;;  %v652_v55 = vadd.f32 %v795_v26, %v639_v52  ;;  %vm656_vm6 = vcmp.gt.f32.partialorder %v650_v40, 0.0 }
 0x108   : > { %998 = vpow2.f32 %v672_v47  ;;  %v666_v53 = vmul.f32 1.442695, %v660_v48  ;;  %v665_v54 = vmin.f32 %v653_v49, 0.0  ;;  %vm659_vm8 = vcmp.gt.f32.partialorder %v653_v49, 0.0 }
 0x109   : > { %1000 = vpow2.f32 %v668_v50  ;;  %v664_v57 = vmin.f32 %v652_v55, 0.0  ;;  %vm658_vm9 = vcmp.gt.f32.partialorder %v652_v55, 0.0 }
 0x10a   : > { %1002 = vpow2.f32 %v666_v53  ;;  %v676_v56 = vmul.f32 1.442695, %v665_v54 }
 0x10b   : > { %1004 = vpow2.f32 %v670_v51  ;;  %v674_v58 = vmul.f32 1.442695, %v664_v57 }
 0x10c   : > { %1006 = vpow2.f32 %v676_v56 }
 0x10d   : > { %1008 = vpow2.f32 %v674_v58 }
 0x112   : > { %v999_v59 = vpop.eup %998 }
 0x113   : > { %v1001_v60 = vpop.eup %1000  ;;  %v799_v61 = vadd.f32 -1.0, %v999_v59 }
 0x114   : > { %v1003_v62 = vpop.eup %1002  ;;  %v797_v63 = vadd.f32 -1.0, %v1001_v60 }
 0x115   : > { %v1005_v0 = vpop.eup %1004  ;;  %v687_v1 = vsel %vm657_vm3, %v651_v36, %v799_v61  ;;  %v796_v2 = vadd.f32 -1.0, %v1003_v62 }
 0x116   : > { %v1007_v3 = vpop.eup %1006  ;;  %v685_v4 = vsel %vm655_vm4, %v649_v39, %v797_v63  ;;  %693 = vst.msk [vmem:[%s224_s10 + $0x18] sm:$0xff] %vm266_vm0, %v687_v1  ;;  %v798_v5 = vadd.f32 -1.0, %v1005_v0 }
 0x117   : > { %691 = vst.msk [vmem:[%s224_s10 + $0x8] sm:$0xff] %vm266_vm0, %v685_v4  ;;  %v684_v6 = vsel %vm654_vm5, %v648_v43, %v796_v2  ;;  %v801_v7 = vadd.f32 -1.0, %v1007_v3  ;;  %v1009_v9 = vpop.eup %1008 }
 0x118   : > { %690 = vst.msk [vmem:[%s224_s10] sm:$0xff] %vm266_vm0, %v684_v6  ;;  %v686_v8 = vsel %vm656_vm6, %v650_v40, %v798_v5  ;;  %v800_v11 = vadd.f32 -1.0, %v1009_v9 }
 0x119   : > { %692 = vst.msk [vmem:[%s224_s10 + $0x10] sm:$0xff] %vm266_vm0, %v686_v8  ;;  %v689_v10 = vsel %vm659_vm8, %v653_v49, %v801_v7 }
 0x11a   : > { %696 = vst.msk [vmem:[%s224_s10 + $0x28] sm:$0x3f] %vm695_vm7, %v689_v10  ;;  %v688_v12 = vsel %vm658_vm9, %v652_v55, %v800_v11 }
 0x11b   : > { %694 = vst.msk [vmem:[%s224_s10 + $0x20] sm:$0xff] %vm266_vm0, %v688_v12 }
 0x11c PF: > { %s15_s18 = sadd.s32 1, %s1016_s18  }
 0x11d   : > { %p12_p4 = scmp.ge.s32.totalorder %s15_s18, 4  }
 0x11f   :  { %14 = sbr.rel (!%p12_p4) target bundleno = 1 (0x1), region = 72 }

// kernel: snr_forward.17
= control target key start
LH: loop header
LB: loop body
LE: loop exit
PB: predicated region body
PF: predicated region fallthrough
CT: control target
= control target key end

     0   :  { %s1147_s18 = smov 0   ;;  %s1442_s0 = inlined_call_operand.vmem [shape: f32[2,53,64], index: 0, kind: input, shape index: {}]   ;;  %s1443_s1 = inlined_call_operand.vmem [shape: f32[3,64,64], index: 1, kind: input, shape index: {}]   ;;  %s1444_s2 = inlined_call_operand.vmem [shape: f32[1,64], index: 2, kind: input, shape index: {}]   ;;  %s1445_s3 = inlined_call_operand.vmem [shape: f32[1,64], index: 3, kind: input, shape index: {}]   ;;  %s1446_s4 = inlined_call_operand.vmem [shape: f32[1,64], index: 4, kind: input, shape index: {}]   ;;  %s1447_s5 = inlined_call_operand.vmem [shape: f32[2,50,64], index: 5, kind: output, shape index: {}]  }
   0x1 LB: > { %s824_s19 = sadd.s32 4294967295, %s1112_s18   ;;  %p828_p0 = scmp.ge.s32.totalorder %s1112_s18, 1  ;;  %s1112_s18 = sphi %s1147_s18, %s15_s18  }
   0x2   : > { %p187_p1 = scmp.lt.s32.totalorder %s1112_s18, 3 }
   0x4   : > { %p188_p2 = pnand %p828_p0, %p187_p1 }
   0x5   : > { %v831_v0 = vld [vmem:[%s1443_s1 + $0x40] sm:$0xff] (!%p188_p2)  ;;  %v832_v1 = vld [vmem:[%s1443_s1 + $0x48] sm:$0xff] (!%p188_p2)  ;;  %v833_v2 = vld [vmem:[%s1443_s1 + $0x50] sm:$0xff] (!%p188_p2)  ;;  %v1114_v3 = vmov (!%p188_p2), 0.0|0.0   ;;  %p215_p3 = scmp.lt.s32.totalorder (!%p188_p2), %s824_s19, 1  ;;  %vm1115_vm0 = vmmov (!%p188_p2), 0  }
   0x6   : > { %191 = sbr.rel (%p188_p2) target bundleno = 309 (0x135), region = 40  ;;  %1072 = vmatprep.subr.bf16.mxu1 (!%p188_p2), %v1114_v3  ;;  %1036 = vmatprep.subr.bf16.mxu0 (!%p188_p2), %v1114_v3  ;;  %v1037_v4 = vpack.c.bf16 (!%p188_p2), %v832_v1, %v831_v0  ;;  %v834_v5 = vld [vmem:[%s1443_s1 + $0x58] sm:$0xff] (!%p188_p2)  ;;  %v1116_v6 = vmov (!%p188_p2), 0.0   ;;  %v835_v8 = vld [vmem:[%s1443_s1 + $0x60] sm:$0xff] (!%p188_p2)  ;;  %v836_v9 = vld [vmem:[%s1443_s1 + $0x68] sm:$0xff] (!%p188_p2)  ;;  %vm256_vm1 = vcmask (!%p188_p2), 1046528  }
   0x7   : > { %953 = vmatprep.mubr.msk.f32.mxu1 (!%p188_p2), %vm1115_vm0, %v1116_v6  ;;  %941 = vmatprep.mubr.msk.f32.mxu0 (!%p188_p2), %vm1115_vm0, %v1116_v6  ;;  %v1040_v7 = vpack.c.bf16 (!%p188_p2), %v834_v5, %v833_v2  ;;  %v1043_v10 = vpack.c.bf16 (!%p188_p2), %v836_v9, %v835_v8  ;;  %v837_v11 = vld [vmem:[%s1443_s1 + $0x70] sm:$0xff] (!%p188_p2)  ;;  %v838_v12 = vld [vmem:[%s1443_s1 + $0x78] sm:$0xff] (!%p188_p2)  ;;  %v232_v18 = vld [vmem:[%s1443_s1] sm:$0xff] (!%p188_p2)  ;;  %vm270_vm2 = vcmask (!%p188_p2), 523264   ;;  %vm508_vm3 = vcmask (!%p188_p2), 1045504  }
   0x8   : > { %1076 = vmatpush3.bf16.msra.mxu1 (!%p188_p2), %v1037_v4  ;;  %1038 = vmatpush3.bf16.msra.mxu0 (!%p188_p2), %v1037_v4  ;;  %v1046_v17 = vpack.c.bf16 (!%p188_p2), %v838_v12, %v837_v11  ;;  %v233_v19 = vld [vmem:[%s1443_s1 + $0x8] sm:$0xff] (!%p188_p2)  ;;  %v853_v24 = vld [vmem:[%s1443_s1 + $0x80] sm:$0xff] (!%p188_p2)  ;;  %v234_v33 = vld [vmem:[%s1443_s1 + $0x10] sm:$0xff] (!%p188_p2)  ;;  %vm767_vm9 = vcmask (!%p188_p2), 517120  }
   0x9   : > { %1073 = vmatprep.subr.bf16.mxu1 (!%p188_p2), %v1114_v3  ;;  %1039 = vmatprep.subr.bf16.mxu0 (!%p188_p2), %v1114_v3  ;;  %v854_v25 = vld [vmem:[%s1443_s1 + $0x88] sm:$0xff] (!%p188_p2)  ;;  %v1049_v28 = vpack.c.bf16 (!%p188_p2), %v233_v19, %v232_v18  ;;  %v235_v34 = vld [vmem:[%s1443_s1 + $0x18] sm:$0xff] (!%p188_p2)  ;;  %v855_v36 = vld [vmem:[%s1443_s1 + $0x90] sm:$0xff] (!%p188_p2) }
   0xa   : > { %v1061_v29 = vpack.c.bf16 (!%p188_p2), %v854_v25, %v853_v24  ;;  %v856_v37 = vld [vmem:[%s1443_s1 + $0x98] sm:$0xff] (!%p188_p2)  ;;  %v1052_v39 = vpack.c.bf16 (!%p188_p2), %v235_v34, %v234_v33  ;;  %v236_v44 = vld [vmem:[%s1443_s1 + $0x20] sm:$0xff] (!%p188_p2)  ;;  %v237_v45 = vld [vmem:[%s1443_s1 + $0x28] sm:$0xff] (!%p188_p2) }
   0xb   : > { %v1064_v41 = vpack.c.bf16 (!%p188_p2), %v856_v37, %v855_v36  ;;  %v857_v46 = vld [vmem:[%s1443_s1 + $0xa0] sm:$0xff] (!%p188_p2)  ;;  %v858_v47 = vld [vmem:[%s1443_s1 + $0xa8] sm:$0xff] (!%p188_p2)  ;;  %v1055_v49 = vpack.c.bf16 (!%p188_p2), %v237_v45, %v236_v44  ;;  %v238_v51 = vld [vmem:[%s1443_s1 + $0x30] sm:$0xff] (!%p188_p2) }
   0xc   : > { %1077 = vmatpush3.bf16.msra.mxu1 (!%p188_p2), %v1040_v7  ;;  %1041 = vmatpush3.bf16.msra.mxu0 (!%p188_p2), %v1040_v7  ;;  %v1067_v50 = vpack.c.bf16 (!%p188_p2), %v858_v47, %v857_v46  ;;  %v239_v52 = vld [vmem:[%s1443_s1 + $0x38] sm:$0xff] (!%p188_p2)  ;;  %v859_v53 = vld [vmem:[%s1443_s1 + $0xb0] sm:$0xff] (!%p188_p2)  ;;  %v1387_v47 = vld [vmem:[%s1445_s3] ss:$0 sm:$0xff] (!%p188_p2) }
   0xd   : > { %s1449_s19 = smov (!%p215_p3, %s824_s19), 1  ;;  %1074 = vmatprep.subr.bf16.mxu1 %v1114_v3  ;;  %1042 = vmatprep.subr.bf16.mxu0 %v1114_v3  ;;  %v860_v54 = vld [vmem:[%s1443_s1 + $0xb8] sm:$0xff]  ;;  %v1058_v55 = vpack.c.bf16 %v239_v52, %v238_v51 }
   0xe   : > { %s1080_s7 = smul.u32 56, %s1449_s19  ;;  %v1070_v59 = vpack.c.bf16 %v860_v54, %v859_v53  ;;  %v1393_v53 = vld [vmem:[%s1446_s4] ss:$0 sm:$0xff] }
  0x10   : > { %s1195_s14 = scalar_lea.vmem %s1442_s0, %s1080_s7  ;;  %1078 = vmatpush3.bf16.msra.mxu1 %v1043_v10  ;;  %1044 = vmatpush3.bf16.msra.mxu0 %v1043_v10  ;;  %s1420_s11 = scalar_lea.vmem %s1447_s5, %s1080_s7 }
  0x11   : > { %v1200_v13 = vld [vmem:[%s1195_s14 + $0x20] sm:$0xff]  ;;  %v1203_v14 = vld [vmem:[%s1195_s14 + $0x28] sm:$0xff]  ;;  %1075 = vmatprep.subr.bf16.mxu1 %v1114_v3  ;;  %1045 = vmatprep.subr.bf16.mxu0 %v1114_v3  ;;  %v1230_v26 = vld [vmem:[%s1195_s14 + $0x10] sm:$0xff] }
  0x12   : > { %v1206_v15 = vld [vmem:[%s1195_s14] sm:$0xff]  ;;  %v1209_v16 = vld [vmem:[%s1195_s14 + $0x8] sm:$0xff]  ;;  %v264_v20 = vrot.slane %v1200_v13, 1  ;;  %v266_v21 = vrot.slane %v1203_v14, 1  ;;  %v1233_v27 = vld [vmem:[%s1195_s14 + $0x30] sm:$0x1f] }
  0x13   : > { %v257_v22 = vrot.slane %v1206_v15, 1  ;;  %v258_v23 = vrot.slane %v1209_v16, 1  ;;  %v260_v32 = vrot.slane %v1230_v26, 1  ;;  %v268_v35 = vrot.slane %v1233_v27, 1  ;;  %v1256_v38 = vld [vmem:[%s1195_s14 + $0x18] sm:$0xff] }
  0x14   : > { %1079 = vmatpush3.bf16.msra.mxu1 %v1046_v17  ;;  %1047 = vmatpush3.bf16.msra.mxu0 %v1046_v17  ;;  %v267_v30 = vsel %vm256_vm1, %v264_v20, %v266_v21  ;;  %v262_v43 = vrot.slane %v1256_v38, 1  ;;  %v509_v56 = vrot.slane %v1206_v15, 2  ;;  %v510_v57 = vrot.slane %v1209_v16, 2 }
  0x15   : > { %v259_v31 = vsel %vm256_vm1, %v257_v22, %v258_v23  ;;  %1048 = vmatprep.subr.bf16.mxu1 %v1114_v3  ;;  %1060 = vmatprep.subr.bf16.mxu0 %v1114_v3  ;;  %v261_v40 = vsel %vm256_vm1, %v258_v23, %v260_v32  ;;  %v269_v42 = vsel %vm256_vm1, %v266_v21, %v268_v35  ;;  %v512_v61 = vrot.slane %v1230_v26, 2 }
  0x16   : > { %v263_v48 = vsel %vm256_vm1, %v260_v32, %v262_v43  ;;  %v265_v58 = vsel %vm256_vm1, %v262_v43, %v264_v20  ;;  %v511_v60 = vsel %vm508_vm3, %v509_v56, %v510_v57  ;;  %v514_v63 = vrot.slane %v1256_v38, 2 }
  0x17   : > { %954 = vmatmul.mubr.msk.f32.vlgmr.msra.gmra.mrb[0].mxu1 %vm270_vm2, %v267_v30  ;;  %942 = vmatmul.mubr.msk.f32.vlgmr.msra.gmra.mrb[0].mxu0 %vm270_vm2, %v259_v31  ;;  %v513_v62 = vsel %vm508_vm3, %v510_v57, %v512_v61  ;;  %v516_v1 = vrot.slane %v1200_v13, 2  ;;  %v520_v5 = vrot.slane %v1233_v27, 2 }
  0x18   : > { %1050 = vmatpush3.bf16.msra.mxu1 %v1049_v28  ;;  %1062 = vmatpush3.bf16.msra.mxu0 %v1061_v29  ;;  %v515_v0 = vsel %vm508_vm3, %v512_v61, %v514_v63 }
  0x19   : > { %944 = vmatprep.mubr.msk.f32.mxu0 %vm1115_vm0, %v1116_v6  ;;  %1051 = vmatprep.subr.bf16.mxu1 %v1114_v3  ;;  %v517_v2 = vsel %vm508_vm3, %v514_v63, %v516_v1 }
  0x1a   : > { %1063 = vmatprep.subr.bf16.mxu0 %v1114_v3  ;;  %956 = vmatprep.mubr.msk.f32.mxu1 %vm1115_vm0, %v1116_v6 }
  0x1b   : > { %945 = vmatmul.mubr.msk.f32.gmra.mrb[2].mxu0 %vm270_vm2, %v261_v40  ;;  %957 = vmatmul.mubr.msk.f32.gmra.mrb[2].mxu1 %vm270_vm2, %v269_v42 }
  0x1c   : > { %1053 = vmatpush3.bf16.msra.mxu1 %v1052_v39  ;;  %1065 = vmatpush3.bf16.msra.mxu0 %v1064_v41 }
  0x1d   : > { %947 = vmatprep.mubr.msk.f32.mxu0 %vm1115_vm0, %v1116_v6  ;;  %1054 = vmatprep.subr.bf16.mxu1 %v1114_v3 }
  0x1e   : > { %1066 = vmatprep.subr.bf16.mxu0 %v1114_v3  ;;  %959 = vmatprep.mubr.msk.f32.mxu1 %vm1115_vm0, %v1116_v6 }
  0x1f   : > { %948 = vmatmul.mubr.msk.f32.gmra.mrb[4].mxu0 %vm270_vm2, %v263_v48  ;;  %960 = vmatmul.mubr.msk.f32.gmra.mrb[4].mxu1 %vm270_vm2, %v268_v35 }
  0x20   : > { %1056 = vmatpush3.bf16.msra.mxu1 %v1055_v49  ;;  %1068 = vmatpush3.bf16.msra.mxu0 %v1067_v50 }
  0x21   : > { %950 = vmatprep.mubr.msk.f32.mxu0 %vm1115_vm0, %v1116_v6  ;;  %1057 = vmatprep.subr.bf16.mxu1 %v1114_v3 }
  0x22   : > { %1069 = vmatprep.subr.bf16.mxu0 %v1114_v3  ;;  %978 = vmatprep.mubr.msk.f32.mxu1 %vm1115_vm0, %v1116_v6  ;;  %v518_v3 = vrot.slane %v1203_v14, 2 }
  0x23   : > { %951 = vmatmul.mubr.msk.f32.gmra.mrb[6].mxu0 %vm270_vm2, %v265_v58 }
  0x24   : > { %1059 = vmatpush3.bf16.msra.mxu1 %v1058_v55  ;;  %1071 = vmatpush3.bf16.msra.mxu0 %v1070_v59  ;;  %v519_v4 = vsel %vm508_vm3, %v516_v1, %v518_v3  ;;  %v521_v7 = vsel %vm508_vm3, %v518_v3, %v520_v5 }
  0x25   : > { %1015 = vmatprep.mubr.msk.f32.mxu0 %vm1115_vm0, %v1116_v6 }
  0x27   : > { %979 = vmatmul.mubr.msk.f32.vlgmr.msra.gmra.mrb[6].mxu1 %vm270_vm2, %v1206_v15  ;;  %1016 = vmatmul.mubr.msk.f32.vlgmr.msra.gmra.mrb[8].mxu0 %vm270_vm2, %v511_v60 }
  0x28   : > { %981 = vmatprep.mubr.msk.f32.mxu1 %vm1115_vm0, %v1116_v6  ;;  %1018 = vmatprep.mubr.msk.f32.mxu0 %vm1115_vm0, %v1116_v6 }
  0x2b   : > { %982 = vmatmul.mubr.msk.f32.gmra.mrb[8].mxu1 %vm270_vm2, %v1209_v16  ;;  %1019 = vmatmul.mubr.msk.f32.gmra.mrb[10].mxu0 %vm270_vm2, %v513_v62 }
  0x2c   : > { %984 = vmatprep.mubr.msk.f32.mxu1 %vm1115_vm0, %v1116_v6  ;;  %1021 = vmatprep.mubr.msk.f32.mxu0 %vm1115_vm0, %v1116_v6 }
  0x2f   : > { %985 = vmatmul.mubr.msk.f32.gmra.mrb[10].mxu1 %vm270_vm2, %v1230_v26  ;;  %1022 = vmatmul.mubr.msk.f32.gmra.mrb[12].mxu0 %vm270_vm2, %v515_v0 }
  0x30   : > { %987 = vmatprep.mubr.msk.f32.mxu1 %vm1115_vm0, %v1116_v6  ;;  %1024 = vmatprep.mubr.msk.f32.mxu0 %vm1115_vm0, %v1116_v6 }
  0x33   : > { %988 = vmatmul.mubr.msk.f32.gmra.mrb[12].mxu1 %vm270_vm2, %v1256_v38  ;;  %1025 = vmatmul.mubr.msk.f32.gmra.mrb[14].mxu0 %vm270_vm2, %v517_v2 }
  0x34   : > { %990 = vmatprep.mubr.msk.f32.mxu1 %vm1115_vm0, %v1116_v6  ;;  %1027 = vmatprep.mubr.msk.f32.mxu0 %vm1115_vm0, %v1116_v6 }
  0x37   : > { %991 = vmatmul.mubr.msk.f32.gmra.mrb[14].mxu1 %vm270_vm2, %v1200_v13  ;;  %1028 = vmatmul.mubr.msk.f32.gmra.mrb[16].mxu0 %vm270_vm2, %v519_v4 }
  0x38   : > { %993 = vmatprep.mubr.msk.f32.mxu1 %vm1115_vm0, %v1116_v6  ;;  %1030 = vmatprep.mubr.msk.f32.mxu0 %vm1115_vm0, %v1116_v6 }
  0x3b   : > { %994 = vmatmul.mubr.msk.f32.gmra.mrb[16].mxu1 %vm270_vm2, %v1203_v14  ;;  %1031 = vmatmul.mubr.msk.f32.gmra.mrb[18].mxu0 %vm270_vm2, %v521_v7 }
  0x3c   : > { %996 = vmatprep.mubr.msk.f32.mxu1 %vm1115_vm0, %v1116_v6  ;;  %1033 = vmatprep.mubr.msk.f32.mxu0 %vm1115_vm0, %v1116_v6 }
  0x3f   : > { %997 = vmatmul.mubr.msk.f32.gmra.mrb[18].mxu1 %vm270_vm2, %v1233_v27  ;;  %1034 = vmatmul.mubr.msk.f32.gmra.mrb[20].mxu0 %vm270_vm2, %v520_v5  ;;  %v1379_v27 = vld [vmem:[%s1444_s2] ss:$0 sm:$0xff] }
  0xea   : > { %v371_v8 = vpop.f32.mrb[0].mxu1  ;;  %v351_v9 = vpop.f32.mrb[0].mxu0 }
  0xeb   : > { %v955_v10 = vpop.f32.mrb[1].mxu1  ;;  %v943_v11 = vpop.f32.mrb[1].mxu0 }
  0xee   : > { %v356_v12 = vpop.f32.mrb[2].mxu0  ;;  %v376_v13 = vpop.f32.mrb[2].mxu1 }
  0xef   : > { %v946_v14 = vpop.f32.mrb[3].mxu0  ;;  %v958_v15 = vpop.f32.mrb[3].mxu1 }
  0xf2   : > { %v361_v16 = vpop.f32.mrb[4].mxu0  ;;  %v1374_v17 = vpop.f32.mrb[4].mxu1 }
  0xf3   : > { %v949_v18 = vpop.f32.mrb[5].mxu0  ;;  %v961_v19 = vpop.f32.mrb[5].mxu1 }
  0xf6   : > { %v366_v20 = vpop.f32.mrb[6].mxu0 }
  0xf7   : > { %v952_v6 = vpop.f32.mrb[7].mxu0 }
  0xfa   : > { %v465_v21 = vpop.f32.mrb[6].mxu1  ;;  %v602_v22 = vpop.f32.mrb[8].mxu0 }
  0xfb   : > { %v466_v23 = vadd.f32 %v465_v21, %v351_v9  ;;  %v980_v24 = vpop.f32.mrb[7].mxu1  ;;  %v1017_v25 = vpop.f32.mrb[9].mxu0 }
  0xfd   : > { %v636_v26 = vadd.f32 %v602_v22, %v466_v23 }
  0xfe   : > { %v470_v28 = vpop.f32.mrb[8].mxu1  ;;  %v607_v29 = vpop.f32.mrb[10].mxu0 }
  0xff   : > { %v471_v30 = vadd.f32 %v470_v28, %v356_v12  ;;  %v983_v31 = vpop.f32.mrb[9].mxu1  ;;  %v1020_v32 = vpop.f32.mrb[11].mxu0  ;;  %v650_v33 = vadd.f32 %v1379_v27, %v636_v26 }
 0x101   : > { %v637_v34 = vadd.f32 %v607_v29, %v471_v30  ;;  %v664_v41 = vrot.slane %v650_v33, 1 }
 0x102   : > { %v475_v35 = vpop.f32.mrb[10].mxu1  ;;  %v612_v36 = vpop.f32.mrb[12].mxu0 }
 0x103   : > { %v651_v37 = vadd.f32 %v1379_v27, %v637_v34  ;;  %v476_v38 = vadd.f32 %v475_v35, %v361_v16  ;;  %v986_v39 = vpop.f32.mrb[11].mxu1  ;;  %v1023_v40 = vpop.f32.mrb[13].mxu0 }
 0x105   : > { %v665_v42 = vrot.slane %v651_v37, 1  ;;  %v638_v43 = vadd.f32 %v612_v36, %v476_v38 }
 0x106   : > { %v480_v44 = vpop.f32.mrb[12].mxu1  ;;  %v617_v45 = vpop.f32.mrb[14].mxu0 }
 0x107   : > { %v666_v46 = vsel %vm256_vm1, %v664_v41, %v665_v42  ;;  %v652_v48 = vadd.f32 %v1379_v27, %v638_v43  ;;  %v481_v49 = vadd.f32 %v480_v44, %v366_v20  ;;  %v989_v50 = vpop.f32.mrb[13].mxu1  ;;  %v1026_v51 = vpop.f32.mrb[15].mxu0 }
 0x108   : > { %v684_v52 = vmax.f32 %v650_v33, %v666_v46 }
 0x109   : > { %v667_v54 = vrot.slane %v652_v48, 1  ;;  %v639_v55 = vadd.f32 %v617_v45, %v481_v49 }
 0x10a   : > { %v698_v56 = vmul.f32 %v1387_v47, %v684_v52  ;;  %v485_v57 = vpop.f32.mrb[14].mxu1  ;;  %v622_v58 = vpop.f32.mrb[16].mxu0 }
 0x10b   : > { %v668_v59 = vsel %vm256_vm1, %v665_v42, %v667_v54  ;;  %v653_v60 = vadd.f32 %v1379_v27, %v639_v55  ;;  %v486_v61 = vadd.f32 %v485_v57, %v371_v8  ;;  %v992_v62 = vpop.f32.mrb[15].mxu1  ;;  %v1029_v63 = vpop.f32.mrb[17].mxu0 }
 0x10c   : > { %v712_v0 = vadd.f32 %v1393_v53, %v698_v56  ;;  %v685_v1 = vmax.f32 %v651_v37, %v668_v59 }
 0x10d   : > { %v669_v2 = vrot.slane %v653_v60, 1  ;;  %v640_v3 = vadd.f32 %v622_v58, %v486_v61 }
 0x10e   : > { %v726_v4 = vmin.f32 %v712_v0, 0.0  ;;  %v699_v5 = vmul.f32 %v1387_v47, %v685_v1  ;;  %v490_v7 = vpop.f32.mrb[16].mxu1  ;;  %v627_v9 = vpop.f32.mrb[18].mxu0  ;;  %vm719_vm4 = vcmp.gt.f32.partialorder %v712_v0, 0.0 }
 0x10f   : > { %v670_v10 = vsel %vm256_vm1, %v667_v54, %v669_v2  ;;  %v654_v11 = vadd.f32 %v1379_v27, %v640_v3  ;;  %v491_v12 = vadd.f32 %v490_v7, %v376_v13  ;;  %v995_v14 = vpop.f32.mrb[17].mxu1  ;;  %v1032_v15 = vpop.f32.mrb[19].mxu0 }
 0x110   : > { %v733_v8 = vmul.f32 1.442695, %v726_v4  ;;  %v713_v16 = vadd.f32 %v1393_v53, %v699_v5  ;;  %v686_v18 = vmax.f32 %v652_v48, %v670_v10 }
 0x111   : > { %v671_v19 = vrot.slane %v654_v11, 1  ;;  %v641_v20 = vadd.f32 %v627_v9, %v491_v12 }
 0x112   : > { %1092 = vpow2.f32 %v733_v8  ;;  %v727_v6 = vmin.f32 %v713_v16, 0.0  ;;  %v700_v21 = vmul.f32 %v1387_v47, %v686_v18  ;;  %v495_v22 = vpop.f32.mrb[18].mxu1  ;;  %v632_v23 = vpop.f32.mrb[20].mxu0  ;;  %vm720_vm5 = vcmp.gt.f32.partialorder %v713_v16, 0.0 }
 0x113   : > { %v672_v24 = vsel %vm256_vm1, %v669_v2, %v671_v19  ;;  %v655_v25 = vadd.f32 %v1379_v27, %v641_v20  ;;  %v496_v13 = vadd.f32 %v495_v22, %v1374_v17  ;;  %v998_v26 = vpop.f32.mrb[19].mxu1  ;;  %v1035_v28 = vpop.f32.mrb[21].mxu0 }
 0x114   : > { %v735_v29 = vmul.f32 1.442695, %v727_v6  ;;  %v714_v30 = vadd.f32 %v1393_v53, %v700_v21  ;;  %v687_v31 = vmax.f32 %v653_v60, %v672_v24 }
 0x115   : > { %v673_v32 = vrot.slane %v655_v25, 1  ;;  %v642_v33 = vadd.f32 %v632_v23, %v496_v13 }
 0x116   : > { %1094 = vpow2.f32 %v735_v29  ;;  %v728_v34 = vmin.f32 %v714_v30, 0.0  ;;  %v701_v35 = vmul.f32 %v1387_v47, %v687_v31  ;;  %vm721_vm6 = vcmp.gt.f32.partialorder %v714_v30, 0.0 }
 0x117   : > { %v674_v36 = vsel %vm256_vm1, %v671_v19, %v673_v32  ;;  %v656_v37 = vadd.f32 %v1379_v27, %v642_v33 }
 0x118   : > { %v737_v38 = vmul.f32 1.442695, %v728_v34  ;;  %v715_v17 = vadd.f32 %v1393_v53, %v701_v35  ;;  %v688_v39 = vmax.f32 %v654_v11, %v674_v36 }
 0x119   : > { %v675_v40 = vrot.slane %v656_v37, 1 }
 0x11a   : > { %1096 = vpow2.f32 %v737_v38  ;;  %v729_v41 = vmin.f32 %v715_v17, 0.0  ;;  %v702_v42 = vmul.f32 %v1387_v47, %v688_v39  ;;  %vm722_vm7 = vcmp.gt.f32.partialorder %v715_v17, 0.0 }
 0x11b   : > { %v676_v43 = vsel %vm256_vm1, %v673_v32, %v675_v40  ;;  %v690_v44 = vmax.f32 %v656_v37, %v675_v40 }
 0x11c   : > { %v1093_v45 = vpop.eup %1092  ;;  %v739_v46 = vmul.f32 1.442695, %v729_v41  ;;  %v716_v48 = vadd.f32 %v1393_v53, %v702_v42  ;;  %v689_v49 = vmax.f32 %v655_v25, %v676_v43 }
 0x11d   : > { %v871_v27 = vadd.f32 -1.0, %v1093_v45  ;;  %v704_v50 = vmul.f32 %v1387_v47, %v690_v44 }
 0x11e   : > { %1098 = vpow2.f32 %v739_v46  ;;  %v730_v51 = vmin.f32 %v716_v48, 0.0  ;;  %v703_v52 = vmul.f32 %v1387_v47, %v689_v49  ;;  %vm723_vm8 = vcmp.gt.f32.partialorder %v716_v48, 0.0 }
 0x11f   : > { %v754_v54 = vsel %vm719_vm4, %v712_v0, %v871_v27  ;;  %v718_v55 = vadd.f32 %v1393_v53, %v704_v50 }
 0x120   : > { %v1095_v56 = vpop.eup %1094  ;;  %761 = vst.msk [vmem:[%s1420_s11] sm:$0xff] %vm270_vm2, %v754_v54  ;;  %v741_v57 = vmul.f32 1.442695, %v730_v51  ;;  %v717_v58 = vadd.f32 %v1393_v53, %v703_v52 }
 0x121   : > { %v872_v59 = vadd.f32 -1.0, %v1095_v56  ;;  %v732_v60 = vmin.f32 %v718_v55, 0.0  ;;  %vm725_vm10 = vcmp.gt.f32.partialorder %v718_v55, 0.0 }
 0x122   : > { %1100 = vpow2.f32 %v741_v57  ;;  %v731_v61 = vmin.f32 %v717_v58, 0.0  ;;  %vm724_vm11 = vcmp.gt.f32.partialorder %v717_v58, 0.0 }
 0x123   : > { %v755_v62 = vsel %vm720_vm5, %v713_v16, %v872_v59  ;;  %v745_v63 = vmul.f32 1.442695, %v732_v60 }
 0x124   : > { %v1097_v1 = vpop.eup %1096  ;;  %762 = vst.msk [vmem:[%s1420_s11 + $0x8] sm:$0xff] %vm270_vm2, %v755_v62  ;;  %v743_v47 = vmul.f32 1.442695, %v731_v61 }
 0x125   : > { %v873_v0 = vadd.f32 -1.0, %v1097_v1  ;;  %1102 = vpow2.f32 %v745_v63 }
 0x126   : > { %1104 = vpow2.f32 %v743_v47 }
 0x127   : > { %v756_v2 = vsel %vm721_vm6, %v714_v30, %v873_v0 }
 0x128   : > { %v1099_v53 = vpop.eup %1098  ;;  %763 = vst.msk [vmem:[%s1420_s11 + $0x10] sm:$0xff] %vm270_vm2, %v756_v2 }
 0x129   : > { %v874_v3 = vadd.f32 -1.0, %v1099_v53 }
 0x12b   : > { %v757_v4 = vsel %vm722_vm7, %v715_v17, %v874_v3 }
 0x12c   : > { %v1101_v5 = vpop.eup %1100  ;;  %764 = vst.msk [vmem:[%s1420_s11 + $0x18] sm:$0xff] %vm270_vm2, %v757_v4 }
 0x12d   : > { %v875_v7 = vadd.f32 -1.0, %v1101_v5 }
 0x12f   : > { %v1103_v9 = vpop.eup %1102  ;;  %v758_v10 = vsel %vm723_vm8, %v716_v48, %v875_v7 }
 0x130   : > { %v1105_v11 = vpop.eup %1104  ;;  %765 = vst.msk [vmem:[%s1420_s11 + $0x20] sm:$0xff] %vm270_vm2, %v758_v10  ;;  %v877_v12 = vadd.f32 -1.0, %v1103_v9 }
 0x131   : > { %v876_v14 = vadd.f32 -1.0, %v1105_v11 }
 0x132   : > { %v760_v15 = vsel %vm725_vm10, %v718_v55, %v877_v12 }
 0x133   : > { %v759_v8 = vsel %vm724_vm11, %v717_v58, %v876_v14  ;;  %768 = vst.msk [vmem:[%s1420_s11 + $0x30] sm:$0x3] %vm767_vm9, %v760_v15 }
 0x134   : > { %766 = vst.msk [vmem:[%s1420_s11 + $0x28] sm:$0xff] %vm270_vm2, %v759_v8 }
 0x135 PF: > { %s15_s18 = sadd.s32 1, %s1112_s18  }
 0x136   : > { %p12_p4 = scmp.ge.s32.totalorder %s15_s18, 4  }
 0x138   :  { %14 = sbr.rel (!%p12_p4) target bundleno = 1 (0x1), region = 72 }

// kernel: snr_forward.22
= control target key start
LH: loop header
LB: loop body
LE: loop exit
PB: predicated region body
PF: predicated region fallthrough
CT: control target
= control target key end

     0   :  { %s1006_s18 = smov 0   ;;  %s1210_s0 = inlined_call_operand.vmem [shape: f32[2,41,64], index: 0, kind: input, shape index: {}]   ;;  %s1211_s1 = inlined_call_operand.vmem [shape: f32[3,64,64], index: 1, kind: input, shape index: {}]   ;;  %s1212_s2 = inlined_call_operand.vmem [shape: f32[1,64], index: 2, kind: input, shape index: {}]   ;;  %s1213_s3 = inlined_call_operand.vmem [shape: f32[1,64], index: 3, kind: input, shape index: {}]   ;;  %s1214_s4 = inlined_call_operand.vmem [shape: f32[1,64], index: 4, kind: input, shape index: {}]   ;;  %s1215_s5 = inlined_call_operand.vmem [shape: f32[2,39,64], index: 5, kind: output, shape index: {}]  }
   0x1 LB: > { %s718_s19 = sadd.s32 4294967295, %s971_s18   ;;  %p722_p0 = scmp.ge.s32.totalorder %s971_s18, 1  ;;  %s971_s18 = sphi %s1006_s18, %s15_s18  }
   0x2   : > { %p187_p1 = scmp.lt.s32.totalorder %s971_s18, 3 }
   0x4   : > { %p188_p2 = pnand %p722_p0, %p187_p1 }
   0x5   : > { %v725_v0 = vld [vmem:[%s1211_s1 + $0x40] sm:$0xff] (!%p188_p2)  ;;  %v726_v1 = vld [vmem:[%s1211_s1 + $0x48] sm:$0xff] (!%p188_p2)  ;;  %v973_v3 = vmov (!%p188_p2), 0.0|0.0   ;;  %v727_v6 = vld [vmem:[%s1211_s1 + $0x50] sm:$0xff] (!%p188_p2)  ;;  %p215_p3 = scmp.lt.s32.totalorder (!%p188_p2), %s718_s19, 1  ;;  %vm974_vm0 = vmmov (!%p188_p2), 0  }
   0x6   : > { %191 = sbr.rel (%p188_p2) target bundleno = 290 (0x122), region = 40  ;;  %v231_v2 = vld [vmem:[%s1211_s1] sm:$0xff] (!%p188_p2)  ;;  %898 = vmatprep.subr.bf16.mxu0 (!%p188_p2), %v973_v3  ;;  %910 = vmatprep.subr.bf16.mxu1 (!%p188_p2), %v973_v3  ;;  %v899_v4 = vpack.c.bf16 (!%p188_p2), %v726_v1, %v725_v0  ;;  %v232_v5 = vld [vmem:[%s1211_s1 + $0x8] sm:$0xff] (!%p188_p2)  ;;  %v728_v7 = vld [vmem:[%s1211_s1 + $0x58] sm:$0xff] (!%p188_p2)  ;;  %v975_v11 = vmov (!%p188_p2), 0.0   ;;  %vm253_vm1 = vcmask (!%p188_p2), 1046528  }
   0x7   : > { %v911_v8 = vpack.c.bf16 (!%p188_p2), %v232_v5, %v231_v2  ;;  %v233_v9 = vld [vmem:[%s1211_s1 + $0x10] sm:$0xff] (!%p188_p2)  ;;  %v234_v10 = vld [vmem:[%s1211_s1 + $0x18] sm:$0xff] (!%p188_p2)  ;;  %821 = vmatprep.mubr.msk.f32.mxu0 (!%p188_p2), %vm974_vm0, %v975_v11  ;;  %852 = vmatprep.mubr.msk.f32.mxu1 (!%p188_p2), %vm974_vm0, %v975_v11  ;;  %v902_v12 = vpack.c.bf16 (!%p188_p2), %v728_v7, %v727_v6  ;;  %v729_v14 = vld [vmem:[%s1211_s1 + $0x60] sm:$0xff] (!%p188_p2)  ;;  %vm263_vm2 = vcmask (!%p188_p2), 523264   ;;  %vm474_vm3 = vcmask (!%p188_p2), 1045504  }
   0x8   : > { %900 = vmatpush3.bf16.msra.mxu0 (!%p188_p2), %v899_v4  ;;  %v914_v13 = vpack.c.bf16 (!%p188_p2), %v234_v10, %v233_v9  ;;  %v730_v15 = vld [vmem:[%s1211_s1 + $0x68] sm:$0xff] (!%p188_p2)  ;;  %v235_v16 = vld [vmem:[%s1211_s1 + $0x20] sm:$0xff] (!%p188_p2)  ;;  %v731_v19 = vld [vmem:[%s1211_s1 + $0x70] sm:$0xff] (!%p188_p2)  ;;  %vm661_vm7 = vcmask (!%p188_p2), 522240  }
   0x9   : > { %912 = vmatpush3.bf16.msra.mxu1 (!%p188_p2), %v911_v8  ;;  %901 = vmatprep.subr.bf16.mxu0 (!%p188_p2), %v973_v3  ;;  %v236_v17 = vld [vmem:[%s1211_s1 + $0x28] sm:$0xff] (!%p188_p2)  ;;  %v905_v18 = vpack.c.bf16 (!%p188_p2), %v730_v15, %v729_v14  ;;  %v732_v21 = vld [vmem:[%s1211_s1 + $0x78] sm:$0xff] (!%p188_p2)  ;;  %v237_v24 = vld [vmem:[%s1211_s1 + $0x30] sm:$0xff] (!%p188_p2) }
   0xa   : > { %913 = vmatprep.subr.bf16.mxu1 (!%p188_p2), %v973_v3  ;;  %v917_v20 = vpack.c.bf16 (!%p188_p2), %v236_v17, %v235_v16  ;;  %v238_v25 = vld [vmem:[%s1211_s1 + $0x38] sm:$0xff] (!%p188_p2)  ;;  %v908_v26 = vpack.c.bf16 (!%p188_p2), %v732_v21, %v731_v19  ;;  %v743_v30 = vld [vmem:[%s1211_s1 + $0x80] sm:$0xff] (!%p188_p2)  ;;  %v744_v31 = vld [vmem:[%s1211_s1 + $0x88] sm:$0xff] (!%p188_p2) }
   0xb   : > { %v920_v29 = vpack.c.bf16 (!%p188_p2), %v238_v25, %v237_v24  ;;  %v923_v34 = vpack.c.bf16 (!%p188_p2), %v744_v31, %v743_v30  ;;  %v745_v36 = vld [vmem:[%s1211_s1 + $0x90] sm:$0xff] (!%p188_p2)  ;;  %v746_v37 = vld [vmem:[%s1211_s1 + $0x98] sm:$0xff] (!%p188_p2)  ;;  %v747_v43 = vld [vmem:[%s1211_s1 + $0xa0] sm:$0xff] (!%p188_p2) }
   0xc   : > { %903 = vmatpush3.bf16.msra.mxu0 (!%p188_p2), %v902_v12  ;;  %v926_v40 = vpack.c.bf16 (!%p188_p2), %v746_v37, %v745_v36  ;;  %v748_v44 = vld [vmem:[%s1211_s1 + $0xa8] sm:$0xff] (!%p188_p2)  ;;  %v749_v48 = vld [vmem:[%s1211_s1 + $0xb0] sm:$0xff] (!%p188_p2)  ;;  %v750_v49 = vld [vmem:[%s1211_s1 + $0xb8] sm:$0xff] (!%p188_p2) }
   0xd   : > { %s1217_s19 = smov (!%p215_p3, %s718_s19), 1  ;;  %915 = vmatpush3.bf16.msra.mxu1 %v914_v13  ;;  %904 = vmatprep.subr.bf16.mxu0 %v973_v3  ;;  %v929_v47 = vpack.c.bf16 %v748_v44, %v747_v43  ;;  %v932_v51 = vpack.c.bf16 %v750_v49, %v749_v48  ;;  %v757_v30 = vld [vmem:[%s1213_s3] ss:$0 sm:$0xff] }
   0xe   : > { %s942_s21 = smul.u32 48, %s1217_s19  ;;  %916 = vmatprep.subr.bf16.mxu1 %v973_v3 }
   0xf   : > { %s943_s7 = smul.u32 40, %s1217_s19 }
  0x10   : > { %s1067_s26 = scalar_lea.vmem %s1210_s0, %s942_s21  ;;  %906 = vmatpush3.bf16.msra.mxu0 %v905_v18 }
  0x11   : > { %v1074_v22 = vld [vmem:[%s1067_s26] sm:$0xff]  ;;  %v1077_v23 = vld [vmem:[%s1067_s26 + $0x8] sm:$0xff]  ;;  %918 = vmatpush3.bf16.msra.mxu1 %v917_v20  ;;  %907 = vmatprep.subr.bf16.mxu0 %v973_v3  ;;  %v1096_v32 = vld [vmem:[%s1067_s26 + $0x10] sm:$0xff]  ;;  %s224_s10 = scalar_lea.vmem %s1215_s5, %s943_s7 }
  0x12   : > { %v254_v27 = vrot.slane %v1074_v22, 1  ;;  %v255_v28 = vrot.slane %v1077_v23, 1  ;;  %919 = vmatprep.subr.bf16.mxu1 %v973_v3  ;;  %v257_v35 = vrot.slane %v1096_v32, 1  ;;  %v1109_v38 = vld [vmem:[%s1067_s26 + $0x18] sm:$0xff]  ;;  %v229_v42 = vld [vmem:[%s1067_s26 + $0x20] sm:$0xff]  ;;  %v475_v52 = vrot.slane %v1074_v22, 2 }
  0x13   : > { %v259_v41 = vrot.slane %v1109_v38, 1  ;;  %v261_v46 = vrot.slane %v229_v42, 1  ;;  %v476_v53 = vrot.slane %v1077_v23, 2  ;;  %v480_v54 = vrot.slane %v1109_v38, 2  ;;  %v230_v56 = vld [vmem:[%s1067_s26 + $0x28] sm:$0x1] }
  0x14   : > { %909 = vmatpush3.bf16.msra.mxu0 %v908_v26  ;;  %v256_v33 = vsel %vm253_vm1, %v254_v27, %v255_v28  ;;  %v258_v39 = vsel %vm253_vm1, %v255_v28, %v257_v35  ;;  %v482_v55 = vrot.slane %v229_v42, 2  ;;  %v478_v58 = vrot.slane %v1096_v32, 2  ;;  %v756_v26 = vld [vmem:[%s1212_s2] ss:$0 sm:$0xff] }
  0x15   : > { %921 = vmatpush3.bf16.msra.mxu1 %v920_v29  ;;  %922 = vmatprep.subr.bf16.mxu0 %v973_v3  ;;  %v260_v45 = vsel %vm253_vm1, %v257_v35, %v259_v41  ;;  %v262_v50 = vsel %vm253_vm1, %v259_v41, %v261_v46  ;;  %v477_v57 = vsel %vm474_vm3, %v475_v52, %v476_v53  ;;  %v484_v60 = vrot.slane %v230_v56, 2 }
  0x16   : > { %934 = vmatprep.subr.bf16.mxu1 %v973_v3  ;;  %v483_v59 = vsel %vm474_vm3, %v480_v54, %v482_v55  ;;  %v479_v61 = vsel %vm474_vm3, %v476_v53, %v478_v58  ;;  %v481_v63 = vsel %vm474_vm3, %v478_v58, %v480_v54 }
  0x17   : > { %822 = vmatmul.mubr.msk.f32.vlgmr.msra.gmra.mrb[0].mxu0 %vm263_vm2, %v256_v33  ;;  %v485_v62 = vsel %vm474_vm3, %v482_v55, %v484_v60 }
  0x18   : > { %853 = vmatmul.mubr.msk.f32.vlgmr.msra.gmra.mrb[0].mxu1 %vm263_vm2, %v1074_v22  ;;  %924 = vmatpush3.bf16.msra.mxu0 %v923_v34 }
  0x19   : > { %824 = vmatprep.mubr.msk.f32.mxu0 %vm974_vm0, %v975_v11  ;;  %855 = vmatprep.mubr.msk.f32.mxu1 %vm974_vm0, %v975_v11 }
  0x1a   : > { %938 = vmatpush3.bf16.msra.mxu1 %v923_v34  ;;  %925 = vmatprep.subr.bf16.mxu0 %v973_v3  ;;  %v758_v34 = vld [vmem:[%s1214_s4] ss:$0 sm:$0xff] }
  0x1b   : > { %825 = vmatmul.mubr.msk.f32.gmra.mrb[2].mxu0 %vm263_vm2, %v258_v39  ;;  %935 = vmatprep.subr.bf16.mxu1 %v973_v3 }
  0x1c   : > { %856 = vmatmul.mubr.msk.f32.gmra.mrb[2].mxu1 %vm263_vm2, %v1077_v23  ;;  %927 = vmatpush3.bf16.msra.mxu0 %v926_v40 }
  0x1d   : > { %827 = vmatprep.mubr.msk.f32.mxu0 %vm974_vm0, %v975_v11  ;;  %858 = vmatprep.mubr.msk.f32.mxu1 %vm974_vm0, %v975_v11 }
  0x1e   : > { %939 = vmatpush3.bf16.msra.mxu1 %v926_v40  ;;  %928 = vmatprep.subr.bf16.mxu0 %v973_v3 }
  0x1f   : > { %828 = vmatmul.mubr.msk.f32.gmra.mrb[4].mxu0 %vm263_vm2, %v260_v45  ;;  %936 = vmatprep.subr.bf16.mxu1 %v973_v3 }
  0x20   : > { %859 = vmatmul.mubr.msk.f32.gmra.mrb[4].mxu1 %vm263_vm2, %v1096_v32  ;;  %830 = vmatprep.mubr.msk.f32.mxu0 %vm974_vm0, %v975_v11 }
  0x21   : > { %861 = vmatprep.mubr.msk.f32.mxu1 %vm974_vm0, %v975_v11  ;;  %930 = vmatpush3.bf16.msra.mxu0 %v929_v47 }
  0x22   : > { %940 = vmatpush3.bf16.msra.mxu1 %v929_v47  ;;  %931 = vmatprep.subr.bf16.mxu0 %v973_v3 }
  0x23   : > { %831 = vmatmul.mubr.msk.f32.gmra.mrb[6].mxu0 %vm263_vm2, %v262_v50  ;;  %937 = vmatprep.subr.bf16.mxu1 %v973_v3 }
  0x24   : > { %862 = vmatmul.mubr.msk.f32.gmra.mrb[6].mxu1 %vm263_vm2, %v1109_v38  ;;  %833 = vmatprep.mubr.msk.f32.mxu0 %vm974_vm0, %v975_v11 }
  0x25   : > { %864 = vmatprep.mubr.msk.f32.mxu1 %vm974_vm0, %v975_v11  ;;  %933 = vmatpush3.bf16.msra.mxu0 %v932_v51 }
  0x26   : > { %941 = vmatpush3.bf16.msra.mxu1 %v932_v51 }
  0x27   : > { %834 = vmatmul.mubr.msk.f32.gmra.mrb[8].mxu0 %vm263_vm2, %v261_v46 }
  0x28   : > { %865 = vmatmul.mubr.msk.f32.gmra.mrb[8].mxu1 %vm263_vm2, %v229_v42  ;;  %883 = vmatprep.mubr.msk.f32.mxu0 %vm974_vm0, %v975_v11 }
  0x29   : > { %892 = vmatprep.mubr.msk.f32.mxu1 %vm974_vm0, %v975_v11 }
  0x2b   : > { %884 = vmatmul.mubr.msk.f32.vlgmr.msra.gmra.mrb[10].mxu0 %vm263_vm2, %v477_v57 }
  0x2c   : > { %893 = vmatmul.mubr.msk.f32.vlgmr.msra.gmra.mrb[10].mxu1 %vm263_vm2, %v483_v59  ;;  %886 = vmatprep.mubr.msk.f32.mxu0 %vm974_vm0, %v975_v11 }
  0x2d   : > { %895 = vmatprep.mubr.msk.f32.mxu1 %vm974_vm0, %v975_v11 }
  0x2f   : > { %887 = vmatmul.mubr.msk.f32.gmra.mrb[12].mxu0 %vm263_vm2, %v479_v61 }
  0x30   : > { %896 = vmatmul.mubr.msk.f32.gmra.mrb[12].mxu1 %vm263_vm2, %v485_v62  ;;  %889 = vmatprep.mubr.msk.f32.mxu0 %vm974_vm0, %v975_v11 }
  0x33   : > { %890 = vmatmul.mubr.msk.f32.gmra.mrb[14].mxu0 %vm263_vm2, %v481_v63 }
  0xea   : > { %v340_v0 = vpop.f32.mrb[0].mxu0 }
  0xeb   : > { %v823_v1 = vpop.f32.mrb[1].mxu0  ;;  %v440_v2 = vpop.f32.mrb[0].mxu1 }
  0xec   : > { %v441_v3 = vadd.f32 %v440_v2, %v340_v0  ;;  %v854_v4 = vpop.f32.mrb[1].mxu1 }
  0xee   : > { %v345_v5 = vpop.f32.mrb[2].mxu0 }
  0xef   : > { %v826_v6 = vpop.f32.mrb[3].mxu0  ;;  %v445_v7 = vpop.f32.mrb[2].mxu1 }
  0xf0   : > { %v446_v8 = vadd.f32 %v445_v7, %v345_v5  ;;  %v857_v9 = vpop.f32.mrb[3].mxu1 }
  0xf2   : > { %v350_v10 = vpop.f32.mrb[4].mxu0 }
  0xf3   : > { %v829_v12 = vpop.f32.mrb[5].mxu0  ;;  %v450_v13 = vpop.f32.mrb[4].mxu1 }
  0xf4   : > { %v451_v14 = vadd.f32 %v450_v13, %v350_v10  ;;  %v860_v15 = vpop.f32.mrb[5].mxu1 }
  0xf6   : > { %v355_v11 = vpop.f32.mrb[6].mxu0 }
  0xf7   : > { %v832_v16 = vpop.f32.mrb[7].mxu0  ;;  %v455_v17 = vpop.f32.mrb[6].mxu1 }
  0xf8   : > { %v456_v18 = vadd.f32 %v455_v17, %v355_v11  ;;  %v863_v19 = vpop.f32.mrb[7].mxu1 }
  0xfa   : > { %v360_v20 = vpop.f32.mrb[8].mxu0 }
  0xfb   : > { %v835_v21 = vpop.f32.mrb[9].mxu0  ;;  %v460_v22 = vpop.f32.mrb[8].mxu1 }
  0xfc   : > { %v461_v23 = vadd.f32 %v460_v22, %v360_v20  ;;  %v866_v24 = vpop.f32.mrb[9].mxu1 }
  0xfe   : > { %v562_v25 = vpop.f32.mrb[10].mxu0 }
  0xff   : > { %v586_v27 = vadd.f32 %v562_v25, %v441_v3  ;;  %v577_v28 = vpop.f32.mrb[10].mxu1  ;;  %v885_v29 = vpop.f32.mrb[11].mxu0 }
 0x100   : > { %v589_v31 = vadd.f32 %v577_v28, %v456_v18  ;;  %v894_v32 = vpop.f32.mrb[11].mxu1 }
 0x101   : > { %v598_v33 = vadd.f32 %v756_v26, %v586_v27 }
 0x102   : > { %v601_v35 = vadd.f32 %v756_v26, %v589_v31  ;;  %v567_v36 = vpop.f32.mrb[12].mxu0 }
 0x103   : > { %v610_v37 = vmul.f32 %v757_v30, %v598_v33  ;;  %v587_v38 = vadd.f32 %v567_v36, %v446_v8  ;;  %v582_v39 = vpop.f32.mrb[12].mxu1  ;;  %v888_v40 = vpop.f32.mrb[13].mxu0 }
 0x104   : > { %v613_v41 = vmul.f32 %v757_v30, %v601_v35  ;;  %v590_v42 = vadd.f32 %v582_v39, %v461_v23  ;;  %v897_v43 = vpop.f32.mrb[13].mxu1 }
 0x105   : > { %v622_v44 = vadd.f32 %v758_v34, %v610_v37  ;;  %v599_v45 = vadd.f32 %v756_v26, %v587_v38 }
 0x106   : > { %v625_v46 = vadd.f32 %v758_v34, %v613_v41  ;;  %v602_v47 = vadd.f32 %v756_v26, %v590_v42  ;;  %v572_v48 = vpop.f32.mrb[14].mxu0 }
 0x107   : > { %v632_v49 = vmin.f32 %v622_v44, 0.0  ;;  %v611_v50 = vmul.f32 %v757_v30, %v599_v45  ;;  %v588_v51 = vadd.f32 %v572_v48, %v451_v14  ;;  %v891_v52 = vpop.f32.mrb[15].mxu0  ;;  %vm627_vm4 = vcmp.gt.f32.partialorder %v622_v44, 0.0 }
 0x108   : > { %v635_v53 = vmin.f32 %v625_v46, 0.0  ;;  %v614_v54 = vmul.f32 %v757_v30, %v602_v47  ;;  %vm630_vm5 = vcmp.gt.f32.partialorder %v625_v46, 0.0 }
 0x109   : > { %v637_v55 = vmul.f32 1.442695, %v632_v49  ;;  %v623_v56 = vadd.f32 %v758_v34, %v611_v50  ;;  %v600_v57 = vadd.f32 %v756_v26, %v588_v51 }
 0x10a   : > { %v643_v58 = vmul.f32 1.442695, %v635_v53  ;;  %v626_v59 = vadd.f32 %v758_v34, %v614_v54 }
 0x10b   : > { %955 = vpow2.f32 %v637_v55  ;;  %v633_v60 = vmin.f32 %v623_v56, 0.0  ;;  %v612_v61 = vmul.f32 %v757_v30, %v600_v57  ;;  %vm628_vm6 = vcmp.gt.f32.partialorder %v623_v56, 0.0 }
 0x10c   : > { %957 = vpow2.f32 %v643_v58  ;;  %v636_v62 = vmin.f32 %v626_v59, 0.0  ;;  %vm631_vm8 = vcmp.gt.f32.partialorder %v626_v59, 0.0 }
 0x10d   : > { %v639_v63 = vmul.f32 1.442695, %v633_v60  ;;  %v624_v0 = vadd.f32 %v758_v34, %v612_v61 }
 0x10e   : > { %v645_v1 = vmul.f32 1.442695, %v636_v62 }
 0x10f   : > { %959 = vpow2.f32 %v639_v63  ;;  %v634_v2 = vmin.f32 %v624_v0, 0.0  ;;  %vm629_vm9 = vcmp.gt.f32.partialorder %v624_v0, 0.0 }
 0x110   : > { %961 = vpow2.f32 %v645_v1 }
 0x111   : > { %v641_v3 = vmul.f32 1.442695, %v634_v2 }
 0x113   : > { %963 = vpow2.f32 %v641_v3 }
 0x115   : > { %v956_v4 = vpop.eup %955 }
 0x116   : > { %v958_v5 = vpop.eup %957  ;;  %v759_v6 = vadd.f32 -1.0, %v956_v4 }
 0x117   : > { %v762_v7 = vadd.f32 -1.0, %v958_v5 }
 0x118   : > { %v652_v8 = vsel %vm627_vm4, %v622_v44, %v759_v6 }
 0x119   : > { %v960_v9 = vpop.eup %959  ;;  %657 = vst.msk [vmem:[%s224_s10] sm:$0xff] %vm263_vm2, %v652_v8  ;;  %v655_v10 = vsel %vm630_vm5, %v625_v46, %v762_v7 }
 0x11a   : > { %v962_v12 = vpop.eup %961  ;;  %660 = vst.msk [vmem:[%s224_s10 + $0x18] sm:$0xff] %vm263_vm2, %v655_v10  ;;  %v760_v13 = vadd.f32 -1.0, %v960_v9 }
 0x11b   : > { %v763_v14 = vadd.f32 -1.0, %v962_v12 }
 0x11c   : > { %v653_v15 = vsel %vm628_vm6, %v623_v56, %v760_v13 }
 0x11d   : > { %v964_v11 = vpop.eup %963  ;;  %658 = vst.msk [vmem:[%s224_s10 + $0x8] sm:$0xff] %vm263_vm2, %v653_v15  ;;  %v656_v16 = vsel %vm631_vm8, %v626_v59, %v763_v14 }
 0x11e   : > { %662 = vst.msk [vmem:[%s224_s10 + $0x20] sm:$0x7f] %vm661_vm7, %v656_v16  ;;  %v761_v17 = vadd.f32 -1.0, %v964_v11 }
 0x120   : > { %v654_v18 = vsel %vm629_vm9, %v624_v0, %v761_v17 }
 0x121   : > { %659 = vst.msk [vmem:[%s224_s10 + $0x10] sm:$0xff] %vm263_vm2, %v654_v18 }
 0x122 PF: > { %s15_s18 = sadd.s32 1, %s971_s18  }
 0x123   : > { %p12_p4 = scmp.ge.s32.totalorder %s15_s18, 4  }
 0x125   :  { %14 = sbr.rel (!%p12_p4) target bundleno = 1 (0x1), region = 72 }

// kernel: snr_forward.21
= control target key start
LH: loop header
LB: loop body
LE: loop exit
PB: predicated region body
PF: predicated region fallthrough
CT: control target
= control target key end

     0   :  { %s1048_s18 = smov 0   ;;  %s1214_s0 = inlined_call_operand.vmem [shape: f32[2,43,64], index: 0, kind: input, shape index: {}]   ;;  %s1215_s1 = inlined_call_operand.vmem [shape: f32[3,64,64], index: 1, kind: input, shape index: {}]   ;;  %s1216_s2 = inlined_call_operand.vmem [shape: f32[1,64], index: 2, kind: input, shape index: {}]   ;;  %s1217_s3 = inlined_call_operand.vmem [shape: f32[1,64], index: 3, kind: input, shape index: {}]   ;;  %s1218_s4 = inlined_call_operand.vmem [shape: f32[1,64], index: 4, kind: input, shape index: {}]   ;;  %s1219_s5 = inlined_call_operand.vmem [shape: f32[2,41,64], index: 5, kind: output, shape index: {}]  }
   0x1 LB: > { %s752_s19 = sadd.s32 4294967295, %s1016_s18   ;;  %p756_p0 = scmp.ge.s32.totalorder %s1016_s18, 1  ;;  %s1016_s18 = sphi %s1048_s18, %s15_s18  }
   0x2   : > { %p187_p1 = scmp.lt.s32.totalorder %s1016_s18, 3 }
   0x4   : > { %p188_p2 = pnand %p756_p0, %p187_p1 }
   0x5   : > { %v759_v0 = vld [vmem:[%s1215_s1 + $0x40] sm:$0xff] (!%p188_p2)  ;;  %v760_v1 = vld [vmem:[%s1215_s1 + $0x48] sm:$0xff] (!%p188_p2)  ;;  %p215_p3 = scmp.lt.s32.totalorder (!%p188_p2), %s752_s19, 1  ;;  %v761_v5 = vld [vmem:[%s1215_s1 + $0x50] sm:$0xff] (!%p188_p2)  ;;  %vm266_vm0 = vcmask (!%p188_p2), 523264   ;;  %vm254_vm1 = vcmask (!%p188_p2), 1046528  }
   0x6   : > { %191 = sbr.rel (%p188_p2) target bundleno = 284 (0x11c), region = 40  ;;  %v231_v2 = vld [vmem:[%s1215_s1] sm:$0xff] (!%p188_p2)  ;;  %v921_v3 = vpack.c.bf16 (!%p188_p2), %v760_v1, %v759_v0  ;;  %v232_v4 = vld [vmem:[%s1215_s1 + $0x8] sm:$0xff] (!%p188_p2)  ;;  %v762_v6 = vld [vmem:[%s1215_s1 + $0x58] sm:$0xff] (!%p188_p2)  ;;  %vm490_vm2 = vcmask (!%p188_p2), 1045504   ;;  %vm695_vm7 = vcmask (!%p188_p2), 516096  }
   0x7   : > { %v937_v7 = vpack.c.bf16 (!%p188_p2), %v232_v4, %v231_v2  ;;  %v925_v8 = vpack.c.bf16 (!%p188_p2), %v762_v6, %v761_v5  ;;  %v233_v9 = vld [vmem:[%s1215_s1 + $0x10] sm:$0xff] (!%p188_p2)  ;;  %v234_v10 = vld [vmem:[%s1215_s1 + $0x18] sm:$0xff] (!%p188_p2)  ;;  %v763_v11 = vld [vmem:[%s1215_s1 + $0x60] sm:$0xff] (!%p188_p2) }
   0x8   : > { %922 = vmatprep.subr.bf16.mxu1 (!%p188_p2), %v921_v3  ;;  %v941_v12 = vpack.c.bf16 (!%p188_p2), %v234_v10, %v233_v9  ;;  %v764_v13 = vld [vmem:[%s1215_s1 + $0x68] sm:$0xff] (!%p188_p2)  ;;  %v235_v14 = vld [vmem:[%s1215_s1 + $0x20] sm:$0xff] (!%p188_p2)  ;;  %v765_v18 = vld [vmem:[%s1215_s1 + $0x70] sm:$0xff] (!%p188_p2) }
   0x9   : > { %v236_v15 = vld [vmem:[%s1215_s1 + $0x28] sm:$0xff] (!%p188_p2)  ;;  %938 = vmatprep.subr.bf16.mxu0 (!%p188_p2), %v937_v7  ;;  %924 = vmatpush3.bf16.msra.mxu1 (!%p188_p2), %v921_v3  ;;  %v929_v16 = vpack.c.bf16 (!%p188_p2), %v764_v13, %v763_v11  ;;  %v766_v19 = vld [vmem:[%s1215_s1 + $0x78] sm:$0xff] (!%p188_p2)  ;;  %v237_v20 = vld [vmem:[%s1215_s1 + $0x30] sm:$0xff] (!%p188_p2) }
   0xa   : > { %940 = vmatpush3.bf16.msra.mxu0 (!%p188_p2), %v937_v7  ;;  %926 = vmatprep.subr.bf16.mxu1 (!%p188_p2), %v925_v8  ;;  %v945_v17 = vpack.c.bf16 (!%p188_p2), %v236_v15, %v235_v14  ;;  %v238_v21 = vld [vmem:[%s1215_s1 + $0x38] sm:$0xff] (!%p188_p2)  ;;  %v933_v26 = vpack.c.bf16 (!%p188_p2), %v766_v19, %v765_v18  ;;  %v779_v30 = vld [vmem:[%s1215_s1 + $0x80] sm:$0xff] (!%p188_p2)  ;;  %v780_v31 = vld [vmem:[%s1215_s1 + $0x88] sm:$0xff] (!%p188_p2) }
   0xb   : > { %942 = vmatprep.subr.bf16.mxu0 (!%p188_p2), %v941_v12  ;;  %v949_v28 = vpack.c.bf16 (!%p188_p2), %v238_v21, %v237_v20  ;;  %v953_v34 = vpack.c.bf16 (!%p188_p2), %v780_v31, %v779_v30  ;;  %v781_v36 = vld [vmem:[%s1215_s1 + $0x90] sm:$0xff] (!%p188_p2)  ;;  %v782_v37 = vld [vmem:[%s1215_s1 + $0x98] sm:$0xff] (!%p188_p2)  ;;  %v783_v43 = vld [vmem:[%s1215_s1 + $0xa0] sm:$0xff] (!%p188_p2) }
   0xc   : > { %v957_v42 = vpack.c.bf16 (!%p188_p2), %v782_v37, %v781_v36  ;;  %v784_v44 = vld [vmem:[%s1215_s1 + $0xa8] sm:$0xff] (!%p188_p2)  ;;  %v785_v49 = vld [vmem:[%s1215_s1 + $0xb0] sm:$0xff] (!%p188_p2)  ;;  %v786_v50 = vld [vmem:[%s1215_s1 + $0xb8] sm:$0xff] (!%p188_p2) }
   0xd   : > { %s1221_s19 = smov (!%p215_p3, %s752_s19), 1  ;;  %928 = vmatpush3.bf16.msra.mxu1 %v925_v8  ;;  %v961_v48 = vpack.c.bf16 %v784_v44, %v783_v43  ;;  %v965_v56 = vpack.c.bf16 %v786_v50, %v785_v49  ;;  %v793_v14 = vld [vmem:[%s1216_s2] ss:$0 sm:$0xff] }
   0xe   : > { %s989_s21 = smul.u32 48, %s1221_s19  ;;  %944 = vmatpush3.bf16.msra.mxu0 %v941_v12  ;;  %930 = vmatprep.subr.bf16.mxu1 %v929_v16  ;;  %v794_v20 = vld [vmem:[%s1217_s3] ss:$0 sm:$0xff] }
   0xf   : > { %946 = vmatprep.subr.bf16.mxu0 %v945_v17 }
  0x10   : > { %s1109_s30 = scalar_lea.vmem %s1214_s0, %s989_s21  ;;  %s224_s10 = scalar_lea.vmem %s1219_s5, %s989_s21 }
  0x11   : > { %v1115_v22 = vld [vmem:[%s1109_s30] sm:$0xff]  ;;  %v1118_v23 = vld [vmem:[%s1109_s30 + $0x8] sm:$0xff]  ;;  %v1125_v27 = vld [vmem:[%s1109_s30 + $0x10] sm:$0xff]  ;;  %932 = vmatpush3.bf16.msra.mxu1 %v929_v16 }
  0x12   : > { %v255_v24 = vrot.slane %v1115_v22, 1  ;;  %v256_v25 = vrot.slane %v1118_v23, 1  ;;  %887 = vmatprep.mubr.msk.f32.mxu0 %vm266_vm0, %v1115_v22  ;;  %v258_v32 = vrot.slane %v1125_v27, 1  ;;  %v1137_v33 = vld [vmem:[%s1109_s30 + $0x18] sm:$0xff]  ;;  %948 = vmatpush3.bf16.msra.mxu0 %v945_v17  ;;  %v229_v35 = vld [vmem:[%s1109_s30 + $0x20] sm:$0xff]  ;;  %v491_v52 = vrot.slane %v1115_v22, 2 }
  0x13   : > { %934 = vmatprep.subr.bf16.mxu1 %v933_v26  ;;  %950 = vmatprep.subr.bf16.mxu0 %v949_v28  ;;  %v260_v38 = vrot.slane %v1137_v33, 1  ;;  %v262_v40 = vrot.slane %v229_v35, 1  ;;  %v230_v41 = vld [vmem:[%s1109_s30 + $0x28] sm:$0x7]  ;;  %v492_v53 = vrot.slane %v1118_v23, 2  ;;  %v494_v54 = vrot.slane %v1125_v27, 2 }
  0x14   : > { %v257_v29 = vsel %vm254_vm1, %v255_v24, %v256_v25  ;;  %v259_v39 = vsel %vm254_vm1, %v256_v25, %v258_v32  ;;  %v264_v46 = vrot.slane %v230_v41, 1  ;;  %v496_v55 = vrot.slane %v1137_v33, 2 }
  0x15   : > { %862 = vmatprep.mubr.msk.f32.mxu1 %vm266_vm0, %v257_v29  ;;  %936 = vmatpush3.bf16.msra.mxu1 %v933_v26  ;;  %v261_v45 = vsel %vm254_vm1, %v258_v32, %v260_v38  ;;  %v263_v47 = vsel %vm254_vm1, %v260_v38, %v262_v40  ;;  %v493_v57 = vsel %vm490_vm2, %v491_v52, %v492_v53  ;;  %v498_v58 = vrot.slane %v229_v35, 2  ;;  %v795_v26 = vld [vmem:[%s1218_s4] ss:$0 sm:$0xff] }
  0x16   : > { %952 = vmatpush3.bf16.msra.mxu0 %v949_v28  ;;  %969 = vmatprep.subr.bf16.mxu1 %v953_v34  ;;  %v265_v51 = vsel %vm254_vm1, %v262_v40, %v264_v46  ;;  %v497_v59 = vsel %vm490_vm2, %v494_v54, %v496_v55  ;;  %v500_v60 = vrot.slane %v230_v41, 2  ;;  %v495_v62 = vsel %vm490_vm2, %v492_v53, %v494_v54 }
  0x17   : > { %954 = vmatprep.subr.bf16.mxu0 %v953_v34  ;;  %v499_v61 = vsel %vm490_vm2, %v496_v55, %v498_v58 }
  0x18   : > { %863 = vmatmul.mubr.msk.f32.vlgmr.msra.gmra.mrb[0].mxu1 %vm266_vm0, %v259_v39  ;;  %v501_v63 = vsel %vm490_vm2, %v498_v58, %v500_v60 }
  0x19   : > { %888 = vmatmul.mubr.msk.f32.vlgmr.msra.gmra.mrb[0].mxu0 %vm266_vm0, %v1118_v23  ;;  %973 = vmatpush3.bf16.msra.mxu1 %v953_v34 }
  0x1a   : > { %956 = vmatpush3.bf16.msra.mxu0 %v953_v34  ;;  %970 = vmatprep.subr.bf16.mxu1 %v957_v42 }
  0x1b   : > { %958 = vmatprep.subr.bf16.mxu0 %v957_v42  ;;  %865 = vmatprep.mubr.msk.f32.mxu1 %vm266_vm0, %v261_v45 }
  0x1c   : > { %890 = vmatprep.mubr.msk.f32.mxu0 %vm266_vm0, %v1125_v27  ;;  %866 = vmatmul.mubr.msk.f32.gmra.mrb[2].mxu1 %vm266_vm0, %v263_v47 }
  0x1d   : > { %974 = vmatpush3.bf16.msra.mxu1 %v957_v42  ;;  %891 = vmatmul.mubr.msk.f32.gmra.mrb[2].mxu0 %vm266_vm0, %v1137_v33 }
  0x1e   : > { %960 = vmatpush3.bf16.msra.mxu0 %v957_v42  ;;  %971 = vmatprep.subr.bf16.mxu1 %v961_v48 }
  0x1f   : > { %962 = vmatprep.subr.bf16.mxu0 %v961_v48  ;;  %868 = vmatprep.mubr.msk.f32.mxu1 %vm266_vm0, %v265_v51 }
  0x20   : > { %893 = vmatprep.mubr.msk.f32.mxu0 %vm266_vm0, %v229_v35  ;;  %869 = vmatmul.mubr.msk.f32.gmra.mrb[4].mxu1 %vm266_vm0, %v264_v46 }
  0x21   : > { %975 = vmatpush3.bf16.msra.mxu1 %v961_v48  ;;  %894 = vmatmul.mubr.msk.f32.gmra.mrb[4].mxu0 %vm266_vm0, %v230_v41 }
  0x22   : > { %964 = vmatpush3.bf16.msra.mxu0 %v961_v48  ;;  %972 = vmatprep.subr.bf16.mxu1 %v965_v56 }
  0x23   : > { %966 = vmatprep.subr.bf16.mxu0 %v965_v56  ;;  %912 = vmatprep.mubr.msk.f32.mxu0 %vm266_vm0, %v493_v57 }
  0x24   : > { %915 = vmatprep.mubr.msk.f32.mxu1 %vm266_vm0, %v497_v59 }
  0x25   : > { %976 = vmatpush3.bf16.msra.mxu1 %v965_v56 }
  0x26   : > { %968 = vmatpush3.bf16.msra.mxu0 %v965_v56 }
  0x28   : > { %916 = vmatmul.mubr.msk.f32.vlgmr.msra.gmra.mrb[6].mxu1 %vm266_vm0, %v499_v61 }
  0x29   : > { %913 = vmatmul.mubr.msk.f32.vlgmr.msra.gmra.mrb[0].mxu0 %vm266_vm0, %v495_v62  ;;  %918 = vmatprep.mubr.msk.f32.mxu1 %vm266_vm0, %v501_v63 }
  0x2c   : > { %919 = vmatmul.mubr.msk.f32.gmra.mrb[8].mxu1 %vm266_vm0, %v500_v60 }
  0xeb   : > { %v864_v0 = vpop.f32.mrb[0].mxu1 }
  0xec   : > { %v345_v1 = vpop.f32.mrb[1].mxu1 }
  0xef   : > { %v867_v2 = vpop.f32.mrb[2].mxu1 }
  0xf0   : > { %v892_v3 = vpop.f32.mrb[2].mxu0  ;;  %v355_v4 = vpop.f32.mrb[3].mxu1 }
  0xf1   : > { %v468_v5 = vadd.f32 %v892_v3, %v867_v2  ;;  %v462_v6 = vpop.f32.mrb[3].mxu0 }
  0xf2   : > { %v463_v7 = vadd.f32 %v462_v6, %v355_v4 }
  0xf3   : > { %v870_v8 = vpop.f32.mrb[4].mxu1 }
  0xf4   : > { %v895_v9 = vpop.f32.mrb[4].mxu0  ;;  %v365_v10 = vpop.f32.mrb[5].mxu1 }
  0xf5   : > { %v478_v11 = vadd.f32 %v895_v9, %v870_v8  ;;  %v472_v12 = vpop.f32.mrb[5].mxu0 }
  0xf6   : > { %v473_v13 = vadd.f32 %v472_v12, %v365_v10 }
  0xfb   : > { %v917_v15 = vpop.f32.mrb[6].mxu1 }
  0xfc   : > { %v914_v16 = vpop.f32.mrb[0].mxu0  ;;  %v612_v17 = vadd.f32 %v917_v15, %v468_v5  ;;  %v590_v18 = vpop.f32.mrb[7].mxu1 }
  0xfd   : > { %v977_v19 = vadd.f32 %v914_v16, %v864_v0  ;;  %v580_v21 = vpop.f32.mrb[1].mxu0  ;;  %v611_v22 = vadd.f32 %v590_v18, %v463_v7 }
  0xfe   : > { %v625_v23 = vadd.f32 %v793_v14, %v612_v17  ;;  %v978_v24 = vadd.f32 %v580_v21, %v345_v1 }
  0xff   : > { %v623_v25 = vadd.f32 %v977_v19, %v793_v14  ;;  %v624_v27 = vadd.f32 %v793_v14, %v611_v22  ;;  %v920_v28 = vpop.f32.mrb[8].mxu1 }
 0x100   : > { %v638_v29 = vmul.f32 %v794_v20, %v625_v23  ;;  %v622_v30 = vadd.f32 %v978_v24, %v793_v14  ;;  %v614_v31 = vadd.f32 %v920_v28, %v478_v11  ;;  %v600_v32 = vpop.f32.mrb[9].mxu1 }
 0x101   : > { %v636_v33 = vmul.f32 %v794_v20, %v623_v25  ;;  %v637_v34 = vmul.f32 %v794_v20, %v624_v27  ;;  %v613_v35 = vadd.f32 %v600_v32, %v473_v13 }
 0x102   : > { %v651_v36 = vadd.f32 %v795_v26, %v638_v29  ;;  %v635_v37 = vmul.f32 %v794_v20, %v622_v30  ;;  %v627_v38 = vadd.f32 %v793_v14, %v614_v31 }
 0x103   : > { %v649_v39 = vadd.f32 %v795_v26, %v636_v33  ;;  %v650_v40 = vadd.f32 %v795_v26, %v637_v34  ;;  %v626_v41 = vadd.f32 %v793_v14, %v613_v35 }
 0x104   : > { %v663_v42 = vmin.f32 %v651_v36, 0.0  ;;  %v648_v43 = vadd.f32 %v795_v26, %v635_v37  ;;  %v640_v44 = vmul.f32 %v794_v20, %v627_v38  ;;  %vm657_vm3 = vcmp.gt.f32.partialorder %v651_v36, 0.0 }
 0x105   : > { %v661_v45 = vmin.f32 %v649_v39, 0.0  ;;  %v662_v46 = vmin.f32 %v650_v40, 0.0  ;;  %v639_v52 = vmul.f32 %v794_v20, %v626_v41  ;;  %vm655_vm4 = vcmp.gt.f32.partialorder %v649_v39, 0.0 }
 0x106   : > { %v672_v47 = vmul.f32 1.442695, %v663_v42  ;;  %v660_v48 = vmin.f32 %v648_v43, 0.0  ;;  %v653_v49 = vadd.f32 %v795_v26, %v640_v44  ;;  %vm654_vm5 = vcmp.gt.f32.partialorder %v648_v43, 0.0 }
 0x107   : > { %v668_v50 = vmul.f32 1.442695, %v661_v45  ;;  %v670_v51 = vmul.f32 1.442695, %v662_v46  ;;  %v652_v55 = vadd.f32 %v795_v26, %v639_v52  ;;  %vm656_vm6 = vcmp.gt.f32.partialorder %v650_v40, 0.0 }
 0x108   : > { %998 = vpow2.f32 %v672_v47  ;;  %v666_v53 = vmul.f32 1.442695, %v660_v48  ;;  %v665_v54 = vmin.f32 %v653_v49, 0.0  ;;  %vm659_vm8 = vcmp.gt.f32.partialorder %v653_v49, 0.0 }
 0x109   : > { %1000 = vpow2.f32 %v668_v50  ;;  %v664_v57 = vmin.f32 %v652_v55, 0.0  ;;  %vm658_vm9 = vcmp.gt.f32.partialorder %v652_v55, 0.0 }
 0x10a   : > { %1002 = vpow2.f32 %v666_v53  ;;  %v676_v56 = vmul.f32 1.442695, %v665_v54 }
 0x10b   : > { %1004 = vpow2.f32 %v670_v51  ;;  %v674_v58 = vmul.f32 1.442695, %v664_v57 }
 0x10c   : > { %1006 = vpow2.f32 %v676_v56 }
 0x10d   : > { %1008 = vpow2.f32 %v674_v58 }
 0x112   : > { %v999_v59 = vpop.eup %998 }
 0x113   : > { %v1001_v60 = vpop.eup %1000  ;;  %v799_v61 = vadd.f32 -1.0, %v999_v59 }
 0x114   : > { %v1003_v62 = vpop.eup %1002  ;;  %v797_v63 = vadd.f32 -1.0, %v1001_v60 }
 0x115   : > { %v1005_v0 = vpop.eup %1004  ;;  %v687_v1 = vsel %vm657_vm3, %v651_v36, %v799_v61  ;;  %v796_v2 = vadd.f32 -1.0, %v1003_v62 }
 0x116   : > { %v1007_v3 = vpop.eup %1006  ;;  %v685_v4 = vsel %vm655_vm4, %v649_v39, %v797_v63  ;;  %693 = vst.msk [vmem:[%s224_s10 + $0x18] sm:$0xff] %vm266_vm0, %v687_v1  ;;  %v798_v5 = vadd.f32 -1.0, %v1005_v0 }
 0x117   : > { %691 = vst.msk [vmem:[%s224_s10 + $0x8] sm:$0xff] %vm266_vm0, %v685_v4  ;;  %v684_v6 = vsel %vm654_vm5, %v648_v43, %v796_v2  ;;  %v801_v7 = vadd.f32 -1.0, %v1007_v3  ;;  %v1009_v9 = vpop.eup %1008 }
 0x118   : > { %690 = vst.msk [vmem:[%s224_s10] sm:$0xff] %vm266_vm0, %v684_v6  ;;  %v686_v8 = vsel %vm656_vm6, %v650_v40, %v798_v5  ;;  %v800_v11 = vadd.f32 -1.0, %v1009_v9 }
 0x119   : > { %692 = vst.msk [vmem:[%s224_s10 + $0x10] sm:$0xff] %vm266_vm0, %v686_v8  ;;  %v689_v10 = vsel %vm659_vm8, %v653_v49, %v801_v7 }
 0x11a   : > { %696 = vst.msk [vmem:[%s224_s10 + $0x28] sm:$0x1] %vm695_vm7, %v689_v10  ;;  %v688_v12 = vsel %vm658_vm9, %v652_v55, %v800_v11 }
 0x11b   : > { %694 = vst.msk [vmem:[%s224_s10 + $0x20] sm:$0xff] %vm266_vm0, %v688_v12 }
 0x11c PF: > { %s15_s18 = sadd.s32 1, %s1016_s18  }
 0x11d   : > { %p12_p4 = scmp.ge.s32.totalorder %s15_s18, 4  }
 0x11f   :  { %14 = sbr.rel (!%p12_p4) target bundleno = 1 (0x1), region = 72 }

// kernel: snr_forward.20
= control target key start
LH: loop header
LB: loop body
LE: loop exit
PB: predicated region body
PF: predicated region fallthrough
CT: control target
= control target key end

     0   :  { %s1077_s18 = smov 0   ;;  %s1248_s0 = inlined_call_operand.vmem [shape: f32[2,46,64], index: 0, kind: input, shape index: {}]   ;;  %s1249_s1 = inlined_call_operand.vmem [shape: f32[3,64,64], index: 1, kind: input, shape index: {}]   ;;  %s1250_s2 = inlined_call_operand.vmem [shape: f32[1,64], index: 2, kind: input, shape index: {}]   ;;  %s1251_s3 = inlined_call_operand.vmem [shape: f32[1,64], index: 3, kind: input, shape index: {}]   ;;  %s1252_s4 = inlined_call_operand.vmem [shape: f32[1,64], index: 4, kind: input, shape index: {}]   ;;  %s1253_s5 = inlined_call_operand.vmem [shape: f32[2,43,64], index: 5, kind: output, shape index: {}]  }
   0x1 LB: > { %s781_s19 = sadd.s32 4294967295, %s1045_s18   ;;  %p785_p0 = scmp.ge.s32.totalorder %s1045_s18, 1  ;;  %s1045_s18 = sphi %s1077_s18, %s15_s18  }
   0x2   : > { %p187_p1 = scmp.lt.s32.totalorder %s1045_s18, 3 }
   0x4   : > { %p188_p2 = pnand %p785_p0, %p187_p1 }
   0x5   : > { %v788_v0 = vld [vmem:[%s1249_s1 + $0x40] sm:$0xff] (!%p188_p2)  ;;  %v789_v1 = vld [vmem:[%s1249_s1 + $0x48] sm:$0xff] (!%p188_p2)  ;;  %p215_p3 = scmp.lt.s32.totalorder (!%p188_p2), %s781_s19, 1  ;;  %v790_v5 = vld [vmem:[%s1249_s1 + $0x50] sm:$0xff] (!%p188_p2)  ;;  %vm266_vm0 = vcmask (!%p188_p2), 523264   ;;  %vm254_vm1 = vcmask (!%p188_p2), 1046528  }
   0x6   : > { %191 = sbr.rel (%p188_p2) target bundleno = 290 (0x122), region = 40  ;;  %v231_v2 = vld [vmem:[%s1249_s1] sm:$0xff] (!%p188_p2)  ;;  %v950_v3 = vpack.c.bf16 (!%p188_p2), %v789_v1, %v788_v0  ;;  %v232_v4 = vld [vmem:[%s1249_s1 + $0x8] sm:$0xff] (!%p188_p2)  ;;  %v791_v6 = vld [vmem:[%s1249_s1 + $0x58] sm:$0xff] (!%p188_p2)  ;;  %vm490_vm2 = vcmask (!%p188_p2), 1045504   ;;  %vm724_vm6 = vcmask (!%p188_p2), 518144  }
   0x7   : > { %v966_v7 = vpack.c.bf16 (!%p188_p2), %v232_v4, %v231_v2  ;;  %v954_v8 = vpack.c.bf16 (!%p188_p2), %v791_v6, %v790_v5  ;;  %v233_v9 = vld [vmem:[%s1249_s1 + $0x10] sm:$0xff] (!%p188_p2)  ;;  %v234_v10 = vld [vmem:[%s1249_s1 + $0x18] sm:$0xff] (!%p188_p2)  ;;  %v792_v11 = vld [vmem:[%s1249_s1 + $0x60] sm:$0xff] (!%p188_p2) }
   0x8   : > { %951 = vmatprep.subr.bf16.mxu1 (!%p188_p2), %v950_v3  ;;  %v970_v12 = vpack.c.bf16 (!%p188_p2), %v234_v10, %v233_v9  ;;  %v793_v13 = vld [vmem:[%s1249_s1 + $0x68] sm:$0xff] (!%p188_p2)  ;;  %v235_v14 = vld [vmem:[%s1249_s1 + $0x20] sm:$0xff] (!%p188_p2)  ;;  %v794_v18 = vld [vmem:[%s1249_s1 + $0x70] sm:$0xff] (!%p188_p2) }
   0x9   : > { %v236_v15 = vld [vmem:[%s1249_s1 + $0x28] sm:$0xff] (!%p188_p2)  ;;  %967 = vmatprep.subr.bf16.mxu0 (!%p188_p2), %v966_v7  ;;  %953 = vmatpush3.bf16.msra.mxu1 (!%p188_p2), %v950_v3  ;;  %v958_v16 = vpack.c.bf16 (!%p188_p2), %v793_v13, %v792_v11  ;;  %v795_v19 = vld [vmem:[%s1249_s1 + $0x78] sm:$0xff] (!%p188_p2)  ;;  %v237_v20 = vld [vmem:[%s1249_s1 + $0x30] sm:$0xff] (!%p188_p2) }
   0xa   : > { %969 = vmatpush3.bf16.msra.mxu0 (!%p188_p2), %v966_v7  ;;  %955 = vmatprep.subr.bf16.mxu1 (!%p188_p2), %v954_v8  ;;  %v974_v17 = vpack.c.bf16 (!%p188_p2), %v236_v15, %v235_v14  ;;  %v238_v21 = vld [vmem:[%s1249_s1 + $0x38] sm:$0xff] (!%p188_p2)  ;;  %v962_v26 = vpack.c.bf16 (!%p188_p2), %v795_v19, %v794_v18  ;;  %v808_v30 = vld [vmem:[%s1249_s1 + $0x80] sm:$0xff] (!%p188_p2)  ;;  %v809_v31 = vld [vmem:[%s1249_s1 + $0x88] sm:$0xff] (!%p188_p2) }
   0xb   : > { %971 = vmatprep.subr.bf16.mxu0 (!%p188_p2), %v970_v12  ;;  %v978_v28 = vpack.c.bf16 (!%p188_p2), %v238_v21, %v237_v20  ;;  %v982_v34 = vpack.c.bf16 (!%p188_p2), %v809_v31, %v808_v30  ;;  %v810_v36 = vld [vmem:[%s1249_s1 + $0x90] sm:$0xff] (!%p188_p2)  ;;  %v811_v37 = vld [vmem:[%s1249_s1 + $0x98] sm:$0xff] (!%p188_p2)  ;;  %v812_v43 = vld [vmem:[%s1249_s1 + $0xa0] sm:$0xff] (!%p188_p2) }
   0xc   : > { %v986_v42 = vpack.c.bf16 (!%p188_p2), %v811_v37, %v810_v36  ;;  %v813_v44 = vld [vmem:[%s1249_s1 + $0xa8] sm:$0xff] (!%p188_p2)  ;;  %v814_v49 = vld [vmem:[%s1249_s1 + $0xb0] sm:$0xff] (!%p188_p2)  ;;  %v815_v50 = vld [vmem:[%s1249_s1 + $0xb8] sm:$0xff] (!%p188_p2) }
   0xd   : > { %s1255_s19 = smov (!%p215_p3, %s781_s19), 1  ;;  %957 = vmatpush3.bf16.msra.mxu1 %v954_v8  ;;  %v990_v48 = vpack.c.bf16 %v813_v44, %v812_v43  ;;  %v994_v56 = vpack.c.bf16 %v815_v50, %v814_v49  ;;  %v822_v14 = vld [vmem:[%s1250_s2] ss:$0 sm:$0xff] }
   0xe   : > { %s1018_s21 = smul.u32 48, %s1255_s19  ;;  %973 = vmatpush3.bf16.msra.mxu0 %v970_v12  ;;  %959 = vmatprep.subr.bf16.mxu1 %v958_v16  ;;  %v823_v36 = vld [vmem:[%s1251_s3] ss:$0 sm:$0xff] }
   0xf   : > { %975 = vmatprep.subr.bf16.mxu0 %v974_v17 }
  0x10   : > { %s1138_s30 = scalar_lea.vmem %s1248_s0, %s1018_s21  ;;  %s224_s10 = scalar_lea.vmem %s1253_s5, %s1018_s21 }
  0x11   : > { %v1144_v22 = vld [vmem:[%s1138_s30] sm:$0xff]  ;;  %v1147_v23 = vld [vmem:[%s1138_s30 + $0x8] sm:$0xff]  ;;  %v1154_v27 = vld [vmem:[%s1138_s30 + $0x10] sm:$0xff]  ;;  %961 = vmatpush3.bf16.msra.mxu1 %v958_v16 }
  0x12   : > { %v255_v24 = vrot.slane %v1144_v22, 1  ;;  %v256_v25 = vrot.slane %v1147_v23, 1  ;;  %916 = vmatprep.mubr.msk.f32.mxu0 %vm266_vm0, %v1144_v22  ;;  %v258_v32 = vrot.slane %v1154_v27, 1  ;;  %v1166_v33 = vld [vmem:[%s1138_s30 + $0x18] sm:$0xff]  ;;  %977 = vmatpush3.bf16.msra.mxu0 %v974_v17  ;;  %v229_v35 = vld [vmem:[%s1138_s30 + $0x20] sm:$0xff]  ;;  %v491_v52 = vrot.slane %v1144_v22, 2 }
  0x13   : > { %963 = vmatprep.subr.bf16.mxu1 %v962_v26  ;;  %979 = vmatprep.subr.bf16.mxu0 %v978_v28  ;;  %v260_v38 = vrot.slane %v1166_v33, 1  ;;  %v262_v40 = vrot.slane %v229_v35, 1  ;;  %v230_v41 = vld [vmem:[%s1138_s30 + $0x28] sm:$0x3f]  ;;  %v492_v53 = vrot.slane %v1147_v23, 2  ;;  %v494_v54 = vrot.slane %v1154_v27, 2 }
  0x14   : > { %v257_v29 = vsel %vm254_vm1, %v255_v24, %v256_v25  ;;  %v259_v39 = vsel %vm254_vm1, %v256_v25, %v258_v32  ;;  %v264_v46 = vrot.slane %v230_v41, 1  ;;  %v496_v55 = vrot.slane %v1166_v33, 2 }
  0x15   : > { %891 = vmatprep.mubr.msk.f32.mxu1 %vm266_vm0, %v257_v29  ;;  %965 = vmatpush3.bf16.msra.mxu1 %v962_v26  ;;  %v261_v45 = vsel %vm254_vm1, %v258_v32, %v260_v38  ;;  %v263_v47 = vsel %vm254_vm1, %v260_v38, %v262_v40  ;;  %v493_v57 = vsel %vm490_vm2, %v491_v52, %v492_v53  ;;  %v498_v58 = vrot.slane %v229_v35, 2 }
  0x16   : > { %981 = vmatpush3.bf16.msra.mxu0 %v978_v28  ;;  %998 = vmatprep.subr.bf16.mxu1 %v982_v34  ;;  %v265_v51 = vsel %vm254_vm1, %v262_v40, %v264_v46  ;;  %v497_v59 = vsel %vm490_vm2, %v494_v54, %v496_v55  ;;  %v500_v60 = vrot.slane %v230_v41, 2  ;;  %v495_v62 = vsel %vm490_vm2, %v492_v53, %v494_v54 }
  0x17   : > { %983 = vmatprep.subr.bf16.mxu0 %v982_v34  ;;  %v499_v61 = vsel %vm490_vm2, %v496_v55, %v498_v58 }
  0x18   : > { %892 = vmatmul.mubr.msk.f32.vlgmr.msra.gmra.mrb[0].mxu1 %vm266_vm0, %v259_v39  ;;  %v501_v63 = vsel %vm490_vm2, %v498_v58, %v500_v60 }
  0x19   : > { %917 = vmatmul.mubr.msk.f32.vlgmr.msra.gmra.mrb[0].mxu0 %vm266_vm0, %v1147_v23  ;;  %1002 = vmatpush3.bf16.msra.mxu1 %v982_v34 }
  0x1a   : > { %985 = vmatpush3.bf16.msra.mxu0 %v982_v34  ;;  %999 = vmatprep.subr.bf16.mxu1 %v986_v42 }
  0x1b   : > { %987 = vmatprep.subr.bf16.mxu0 %v986_v42  ;;  %894 = vmatprep.mubr.msk.f32.mxu1 %vm266_vm0, %v261_v45  ;;  %v824_v45 = vld [vmem:[%s1252_s4] ss:$0 sm:$0xff] }
  0x1c   : > { %919 = vmatprep.mubr.msk.f32.mxu0 %vm266_vm0, %v1154_v27  ;;  %895 = vmatmul.mubr.msk.f32.gmra.mrb[2].mxu1 %vm266_vm0, %v263_v47 }
  0x1d   : > { %1003 = vmatpush3.bf16.msra.mxu1 %v986_v42  ;;  %920 = vmatmul.mubr.msk.f32.gmra.mrb[2].mxu0 %vm266_vm0, %v1166_v33 }
  0x1e   : > { %989 = vmatpush3.bf16.msra.mxu0 %v986_v42  ;;  %1000 = vmatprep.subr.bf16.mxu1 %v990_v48 }
  0x1f   : > { %991 = vmatprep.subr.bf16.mxu0 %v990_v48  ;;  %897 = vmatprep.mubr.msk.f32.mxu1 %vm266_vm0, %v265_v51 }
  0x20   : > { %922 = vmatprep.mubr.msk.f32.mxu0 %vm266_vm0, %v229_v35  ;;  %898 = vmatmul.mubr.msk.f32.gmra.mrb[4].mxu1 %vm266_vm0, %v264_v46 }
  0x21   : > { %1004 = vmatpush3.bf16.msra.mxu1 %v990_v48  ;;  %923 = vmatmul.mubr.msk.f32.gmra.mrb[4].mxu0 %vm266_vm0, %v230_v41 }
  0x22   : > { %993 = vmatpush3.bf16.msra.mxu0 %v990_v48  ;;  %1001 = vmatprep.subr.bf16.mxu1 %v994_v56 }
  0x23   : > { %995 = vmatprep.subr.bf16.mxu0 %v994_v56  ;;  %941 = vmatprep.mubr.msk.f32.mxu0 %vm266_vm0, %v493_v57 }
  0x24   : > { %944 = vmatprep.mubr.msk.f32.mxu1 %vm266_vm0, %v497_v59 }
  0x25   : > { %1005 = vmatpush3.bf16.msra.mxu1 %v994_v56 }
  0x26   : > { %997 = vmatpush3.bf16.msra.mxu0 %v994_v56 }
  0x28   : > { %945 = vmatmul.mubr.msk.f32.vlgmr.msra.gmra.mrb[6].mxu1 %vm266_vm0, %v499_v61 }
  0x29   : > { %942 = vmatmul.mubr.msk.f32.vlgmr.msra.gmra.mrb[0].mxu0 %vm266_vm0, %v495_v62  ;;  %947 = vmatprep.mubr.msk.f32.mxu1 %vm266_vm0, %v501_v63 }
  0x2c   : > { %948 = vmatmul.mubr.msk.f32.gmra.mrb[8].mxu1 %vm266_vm0, %v500_v60 }
  0xeb   : > { %v893_v0 = vpop.f32.mrb[0].mxu1 }
  0xec   : > { %v345_v1 = vpop.f32.mrb[1].mxu1 }
  0xef   : > { %v896_v2 = vpop.f32.mrb[2].mxu1 }
  0xf0   : > { %v921_v3 = vpop.f32.mrb[2].mxu0  ;;  %v355_v4 = vpop.f32.mrb[3].mxu1 }
  0xf1   : > { %v468_v5 = vadd.f32 %v921_v3, %v896_v2  ;;  %v462_v6 = vpop.f32.mrb[3].mxu0 }
  0xf2   : > { %v463_v7 = vadd.f32 %v462_v6, %v355_v4 }
  0xf3   : > { %v899_v8 = vpop.f32.mrb[4].mxu1 }
  0xf4   : > { %v924_v9 = vpop.f32.mrb[4].mxu0  ;;  %v365_v10 = vpop.f32.mrb[5].mxu1 }
  0xf5   : > { %v478_v11 = vadd.f32 %v924_v9, %v899_v8  ;;  %v472_v12 = vpop.f32.mrb[5].mxu0 }
  0xf6   : > { %v473_v13 = vadd.f32 %v472_v12, %v365_v10 }
  0xfb   : > { %v946_v15 = vpop.f32.mrb[6].mxu1 }
  0xfc   : > { %v943_v16 = vpop.f32.mrb[0].mxu0  ;;  %v612_v17 = vadd.f32 %v946_v15, %v468_v5  ;;  %v590_v18 = vpop.f32.mrb[7].mxu1 }
  0xfd   : > { %v1006_v19 = vadd.f32 %v943_v16, %v893_v0  ;;  %v580_v20 = vpop.f32.mrb[1].mxu0  ;;  %v611_v21 = vadd.f32 %v590_v18, %v463_v7 }
  0xfe   : > { %v625_v22 = vadd.f32 %v822_v14, %v612_v17  ;;  %v1007_v23 = vadd.f32 %v580_v20, %v345_v1 }
  0xff   : > { %v623_v24 = vadd.f32 %v1006_v19, %v822_v14  ;;  %v624_v25 = vadd.f32 %v822_v14, %v611_v21  ;;  %v949_v26 = vpop.f32.mrb[8].mxu1 }
 0x100   : > { %v639_v27 = vrot.slane %v625_v22, 1  ;;  %v622_v28 = vadd.f32 %v1007_v23, %v822_v14  ;;  %v614_v29 = vadd.f32 %v949_v26, %v478_v11  ;;  %v600_v30 = vpop.f32.mrb[9].mxu1 }
 0x101   : > { %v635_v31 = vrot.slane %v623_v24, 1  ;;  %v637_v32 = vrot.slane %v624_v25, 1  ;;  %v613_v33 = vadd.f32 %v600_v30, %v473_v13 }
 0x102   : > { %v634_v34 = vrot.slane %v622_v28, 1  ;;  %v627_v35 = vadd.f32 %v822_v14, %v614_v29 }
 0x103   : > { %v638_v37 = vsel %vm254_vm1, %v635_v31, %v637_v32  ;;  %v640_v38 = vsel %vm254_vm1, %v637_v32, %v639_v27  ;;  %v626_v39 = vadd.f32 %v822_v14, %v613_v33 }
 0x104   : > { %v636_v40 = vsel %vm254_vm1, %v634_v34, %v635_v31  ;;  %v652_v41 = vmax.f32 %v623_v24, %v638_v37  ;;  %v653_v42 = vmax.f32 %v624_v25, %v640_v38  ;;  %v643_v43 = vrot.slane %v627_v35, 1 }
 0x105   : > { %v651_v44 = vmax.f32 %v622_v28, %v636_v40  ;;  %v641_v46 = vrot.slane %v626_v39, 1 }
 0x106   : > { %v665_v47 = vmul.f32 %v823_v36, %v652_v41  ;;  %v666_v48 = vmul.f32 %v823_v36, %v653_v42  ;;  %v656_v49 = vmax.f32 %v627_v35, %v643_v43 }
 0x107   : > { %v664_v50 = vmul.f32 %v823_v36, %v651_v44  ;;  %v642_v51 = vsel %vm254_vm1, %v639_v27, %v641_v46  ;;  %v644_v52 = vsel %vm254_vm1, %v641_v46, %v643_v43 }
 0x108   : > { %v678_v53 = vadd.f32 %v824_v45, %v665_v47  ;;  %v679_v54 = vadd.f32 %v824_v45, %v666_v48  ;;  %v669_v55 = vmul.f32 %v823_v36, %v656_v49  ;;  %v654_v56 = vmax.f32 %v625_v22, %v642_v51 }
 0x109   : > { %v677_v57 = vadd.f32 %v824_v45, %v664_v50  ;;  %v655_v58 = vmax.f32 %v626_v39, %v644_v52 }
 0x10a   : > { %v690_v59 = vmin.f32 %v678_v53, 0.0  ;;  %v691_v60 = vmin.f32 %v679_v54, 0.0  ;;  %v682_v62 = vadd.f32 %v824_v45, %v669_v55  ;;  %v667_v63 = vmul.f32 %v823_v36, %v654_v56 }
 0x10b   : > { %v689_v61 = vmin.f32 %v677_v57, 0.0  ;;  %v668_v2 = vmul.f32 %v823_v36, %v655_v58  ;;  %vm684_vm3 = vcmp.gt.f32.partialorder %v678_v53, 0.0  ;;  %vm683_vm4 = vcmp.gt.f32.partialorder %v677_v57, 0.0 }
 0x10c   : > { %v697_v0 = vmul.f32 1.442695, %v690_v59  ;;  %v699_v1 = vmul.f32 1.442695, %v691_v60  ;;  %v694_v4 = vmin.f32 %v682_v62, 0.0  ;;  %v680_v5 = vadd.f32 %v824_v45, %v667_v63 }
 0x10d   : > { %v695_v3 = vmul.f32 1.442695, %v689_v61  ;;  %v681_v6 = vadd.f32 %v824_v45, %v668_v2  ;;  %vm685_vm5 = vcmp.gt.f32.partialorder %v679_v54, 0.0  ;;  %vm688_vm7 = vcmp.gt.f32.partialorder %v682_v62, 0.0 }
 0x10e   : > { %1027 = vpow2.f32 %v697_v0  ;;  %v705_v7 = vmul.f32 1.442695, %v694_v4  ;;  %v692_v8 = vmin.f32 %v680_v5, 0.0  ;;  %vm686_vm8 = vcmp.gt.f32.partialorder %v680_v5, 0.0 }
 0x10f   : > { %1029 = vpow2.f32 %v695_v3  ;;  %v693_v9 = vmin.f32 %v681_v6, 0.0  ;;  %vm687_vm9 = vcmp.gt.f32.partialorder %v681_v6, 0.0 }
 0x110   : > { %1031 = vpow2.f32 %v699_v1  ;;  %v701_v10 = vmul.f32 1.442695, %v692_v8 }
 0x111   : > { %1033 = vpow2.f32 %v705_v7  ;;  %v703_v11 = vmul.f32 1.442695, %v693_v9 }
 0x112   : > { %1035 = vpow2.f32 %v701_v10 }
 0x113   : > { %1037 = vpow2.f32 %v703_v11 }
 0x118   : > { %v1028_v12 = vpop.eup %1027 }
 0x119   : > { %v1030_v13 = vpop.eup %1029  ;;  %v826_v14 = vadd.f32 -1.0, %v1028_v12 }
 0x11a   : > { %v1032_v15 = vpop.eup %1031  ;;  %v825_v16 = vadd.f32 -1.0, %v1030_v13 }
 0x11b   : > { %v1034_v17 = vpop.eup %1033  ;;  %v827_v18 = vadd.f32 -1.0, %v1032_v15  ;;  %v714_v19 = vsel %vm684_vm3, %v678_v53, %v826_v14 }
 0x11c   : > { %v713_v20 = vsel %vm683_vm4, %v677_v57, %v825_v16  ;;  %720 = vst.msk [vmem:[%s224_s10 + $0x8] sm:$0xff] %vm266_vm0, %v714_v19  ;;  %v830_v21 = vadd.f32 -1.0, %v1034_v17  ;;  %v1036_v22 = vpop.eup %1035 }
 0x11d   : > { %719 = vst.msk [vmem:[%s224_s10] sm:$0xff] %vm266_vm0, %v713_v20  ;;  %v715_v23 = vsel %vm685_vm5, %v679_v54, %v827_v18  ;;  %v1038_v24 = vpop.eup %1037  ;;  %v828_v26 = vadd.f32 -1.0, %v1036_v22 }
 0x11e   : > { %721 = vst.msk [vmem:[%s224_s10 + $0x10] sm:$0xff] %vm266_vm0, %v715_v23  ;;  %v718_v25 = vsel %vm688_vm7, %v682_v62, %v830_v21  ;;  %v829_v27 = vadd.f32 -1.0, %v1038_v24 }
 0x11f   : > { %725 = vst.msk [vmem:[%s224_s10 + $0x28] sm:$0x7] %vm724_vm6, %v718_v25  ;;  %v716_v28 = vsel %vm686_vm8, %v680_v5, %v828_v26 }
 0x120   : > { %v717_v29 = vsel %vm687_vm9, %v681_v6, %v829_v27  ;;  %722 = vst.msk [vmem:[%s224_s10 + $0x18] sm:$0xff] %vm266_vm0, %v716_v28 }
 0x121   : > { %723 = vst.msk [vmem:[%s224_s10 + $0x20] sm:$0xff] %vm266_vm0, %v717_v29 }
 0x122 PF: > { %s15_s18 = sadd.s32 1, %s1045_s18  }
 0x123   : > { %p12_p4 = scmp.ge.s32.totalorder %s15_s18, 4  }
 0x125   :  { %14 = sbr.rel (!%p12_p4) target bundleno = 1 (0x1), region = 72 }

// kernel: snr_forward.23
= control target key start
LH: loop header
LB: loop body
LE: loop exit
PB: predicated region body
PF: predicated region fallthrough
CT: control target
= control target key end

     0   :  { %s1025_s18 = smov 0   ;;  %s1234_s0 = inlined_call_operand.vmem [shape: f32[2,39,64], index: 0, kind: input, shape index: {}]   ;;  %s1235_s1 = inlined_call_operand.vmem [shape: f32[3,64,64], index: 1, kind: input, shape index: {}]   ;;  %s1236_s2 = inlined_call_operand.vmem [shape: f32[1,64], index: 2, kind: input, shape index: {}]   ;;  %s1237_s3 = inlined_call_operand.vmem [shape: f32[1,64], index: 3, kind: input, shape index: {}]   ;;  %s1238_s4 = inlined_call_operand.vmem [shape: f32[1,64], index: 4, kind: input, shape index: {}]   ;;  %s1239_s5 = inlined_call_operand.vmem [shape: f32[2,36,64], index: 5, kind: output, shape index: {}]  }
   0x1 LB: > { %s738_s19 = sadd.s32 4294967295, %s990_s18   ;;  %p742_p0 = scmp.ge.s32.totalorder %s990_s18, 1  ;;  %s990_s18 = sphi %s1025_s18, %s15_s18  }
   0x2   : > { %p187_p1 = scmp.lt.s32.totalorder %s990_s18, 3 }
   0x4   : > { %p188_p2 = pnand %p742_p0, %p187_p1 }
   0x5   : > { %v745_v0 = vld [vmem:[%s1235_s1 + $0x40] sm:$0xff] (!%p188_p2)  ;;  %v746_v1 = vld [vmem:[%s1235_s1 + $0x48] sm:$0xff] (!%p188_p2)  ;;  %v992_v3 = vmov (!%p188_p2), 0.0|0.0   ;;  %v747_v6 = vld [vmem:[%s1235_s1 + $0x50] sm:$0xff] (!%p188_p2)  ;;  %p215_p3 = scmp.lt.s32.totalorder (!%p188_p2), %s738_s19, 1  ;;  %vm993_vm0 = vmmov (!%p188_p2), 0  }
   0x6   : > { %191 = sbr.rel (%p188_p2) target bundleno = 296 (0x128), region = 40  ;;  %v230_v2 = vld [vmem:[%s1235_s1] sm:$0xff] (!%p188_p2)  ;;  %918 = vmatprep.subr.bf16.mxu0 (!%p188_p2), %v992_v3  ;;  %930 = vmatprep.subr.bf16.mxu1 (!%p188_p2), %v992_v3  ;;  %v919_v4 = vpack.c.bf16 (!%p188_p2), %v746_v1, %v745_v0  ;;  %v231_v5 = vld [vmem:[%s1235_s1 + $0x8] sm:$0xff] (!%p188_p2)  ;;  %v748_v7 = vld [vmem:[%s1235_s1 + $0x58] sm:$0xff] (!%p188_p2)  ;;  %v994_v11 = vmov (!%p188_p2), 0.0   ;;  %vm252_vm1 = vcmask (!%p188_p2), 1046528  }
   0x7   : > { %v931_v8 = vpack.c.bf16 (!%p188_p2), %v231_v5, %v230_v2  ;;  %v232_v9 = vld [vmem:[%s1235_s1 + $0x10] sm:$0xff] (!%p188_p2)  ;;  %v233_v10 = vld [vmem:[%s1235_s1 + $0x18] sm:$0xff] (!%p188_p2)  ;;  %841 = vmatprep.mubr.msk.f32.mxu0 (!%p188_p2), %vm993_vm0, %v994_v11  ;;  %872 = vmatprep.mubr.msk.f32.mxu1 (!%p188_p2), %vm993_vm0, %v994_v11  ;;  %v922_v12 = vpack.c.bf16 (!%p188_p2), %v748_v7, %v747_v6  ;;  %v749_v14 = vld [vmem:[%s1235_s1 + $0x60] sm:$0xff] (!%p188_p2)  ;;  %vm262_vm2 = vcmask (!%p188_p2), 523264   ;;  %vm472_vm3 = vcmask (!%p188_p2), 1045504  }
   0x8   : > { %920 = vmatpush3.bf16.msra.mxu0 (!%p188_p2), %v919_v4  ;;  %v934_v13 = vpack.c.bf16 (!%p188_p2), %v233_v10, %v232_v9  ;;  %v750_v15 = vld [vmem:[%s1235_s1 + $0x68] sm:$0xff] (!%p188_p2)  ;;  %v234_v16 = vld [vmem:[%s1235_s1 + $0x20] sm:$0xff] (!%p188_p2)  ;;  %v751_v19 = vld [vmem:[%s1235_s1 + $0x70] sm:$0xff] (!%p188_p2)  ;;  %vm681_vm6 = vcmask (!%p188_p2), 519168  }
   0x9   : > { %932 = vmatpush3.bf16.msra.mxu1 (!%p188_p2), %v931_v8  ;;  %921 = vmatprep.subr.bf16.mxu0 (!%p188_p2), %v992_v3  ;;  %v235_v17 = vld [vmem:[%s1235_s1 + $0x28] sm:$0xff] (!%p188_p2)  ;;  %v925_v18 = vpack.c.bf16 (!%p188_p2), %v750_v15, %v749_v14  ;;  %v752_v21 = vld [vmem:[%s1235_s1 + $0x78] sm:$0xff] (!%p188_p2)  ;;  %v236_v24 = vld [vmem:[%s1235_s1 + $0x30] sm:$0xff] (!%p188_p2) }
   0xa   : > { %933 = vmatprep.subr.bf16.mxu1 (!%p188_p2), %v992_v3  ;;  %v937_v20 = vpack.c.bf16 (!%p188_p2), %v235_v17, %v234_v16  ;;  %v237_v25 = vld [vmem:[%s1235_s1 + $0x38] sm:$0xff] (!%p188_p2)  ;;  %v928_v26 = vpack.c.bf16 (!%p188_p2), %v752_v21, %v751_v19  ;;  %v763_v30 = vld [vmem:[%s1235_s1 + $0x80] sm:$0xff] (!%p188_p2)  ;;  %v764_v31 = vld [vmem:[%s1235_s1 + $0x88] sm:$0xff] (!%p188_p2) }
   0xb   : > { %v940_v29 = vpack.c.bf16 (!%p188_p2), %v237_v25, %v236_v24  ;;  %v943_v34 = vpack.c.bf16 (!%p188_p2), %v764_v31, %v763_v30  ;;  %v765_v36 = vld [vmem:[%s1235_s1 + $0x90] sm:$0xff] (!%p188_p2)  ;;  %v766_v37 = vld [vmem:[%s1235_s1 + $0x98] sm:$0xff] (!%p188_p2)  ;;  %v767_v43 = vld [vmem:[%s1235_s1 + $0xa0] sm:$0xff] (!%p188_p2) }
   0xc   : > { %923 = vmatpush3.bf16.msra.mxu0 (!%p188_p2), %v922_v12  ;;  %v946_v40 = vpack.c.bf16 (!%p188_p2), %v766_v37, %v765_v36  ;;  %v768_v44 = vld [vmem:[%s1235_s1 + $0xa8] sm:$0xff] (!%p188_p2)  ;;  %v769_v48 = vld [vmem:[%s1235_s1 + $0xb0] sm:$0xff] (!%p188_p2)  ;;  %v770_v49 = vld [vmem:[%s1235_s1 + $0xb8] sm:$0xff] (!%p188_p2) }
   0xd   : > { %s1241_s19 = smov (!%p215_p3, %s738_s19), 1  ;;  %935 = vmatpush3.bf16.msra.mxu1 %v934_v13  ;;  %924 = vmatprep.subr.bf16.mxu0 %v992_v3  ;;  %v949_v47 = vpack.c.bf16 %v768_v44, %v767_v43  ;;  %v952_v51 = vpack.c.bf16 %v770_v49, %v769_v48 }
   0xe   : > { %s962_s21 = smul.u32 40, %s1241_s19  ;;  %936 = vmatprep.subr.bf16.mxu1 %v992_v3 }
  0x10   : > { %s1088_s26 = scalar_lea.vmem %s1234_s0, %s962_s21  ;;  %926 = vmatpush3.bf16.msra.mxu0 %v925_v18  ;;  %s224_s10 = scalar_lea.vmem %s1239_s5, %s962_s21 }
  0x11   : > { %v1095_v22 = vld [vmem:[%s1088_s26] sm:$0xff]  ;;  %v1098_v23 = vld [vmem:[%s1088_s26 + $0x8] sm:$0xff]  ;;  %938 = vmatpush3.bf16.msra.mxu1 %v937_v20  ;;  %927 = vmatprep.subr.bf16.mxu0 %v992_v3  ;;  %v1117_v32 = vld [vmem:[%s1088_s26 + $0x10] sm:$0xff] }
  0x12   : > { %v253_v27 = vrot.slane %v1095_v22, 1  ;;  %v254_v28 = vrot.slane %v1098_v23, 1  ;;  %939 = vmatprep.subr.bf16.mxu1 %v992_v3  ;;  %v256_v35 = vrot.slane %v1117_v32, 1  ;;  %v1130_v38 = vld [vmem:[%s1088_s26 + $0x18] sm:$0xff]  ;;  %v229_v42 = vld [vmem:[%s1088_s26 + $0x20] sm:$0x7f] }
  0x13   : > { %v258_v41 = vrot.slane %v1130_v38, 1  ;;  %v260_v46 = vrot.slane %v229_v42, 1  ;;  %v473_v52 = vrot.slane %v1095_v22, 2  ;;  %v474_v53 = vrot.slane %v1098_v23, 2 }
  0x14   : > { %929 = vmatpush3.bf16.msra.mxu0 %v928_v26  ;;  %v255_v33 = vsel %vm252_vm1, %v253_v27, %v254_v28  ;;  %v257_v39 = vsel %vm252_vm1, %v254_v28, %v256_v35  ;;  %v478_v54 = vrot.slane %v1130_v38, 2  ;;  %v480_v55 = vrot.slane %v229_v42, 2  ;;  %v776_v26 = vld [vmem:[%s1236_s2] ss:$0 sm:$0xff] }
  0x15   : > { %941 = vmatpush3.bf16.msra.mxu1 %v940_v29  ;;  %942 = vmatprep.subr.bf16.mxu0 %v992_v3  ;;  %v259_v45 = vsel %vm252_vm1, %v256_v35, %v258_v41  ;;  %v261_v50 = vsel %vm252_vm1, %v258_v41, %v260_v46  ;;  %v475_v56 = vsel %vm472_vm3, %v473_v52, %v474_v53  ;;  %v476_v57 = vrot.slane %v1117_v32, 2  ;;  %v778_v52 = vld [vmem:[%s1238_s4] ss:$0 sm:$0xff] }
  0x16   : > { %954 = vmatprep.subr.bf16.mxu1 %v992_v3  ;;  %v481_v58 = vsel %vm472_vm3, %v478_v54, %v480_v55 }
  0x17   : > { %842 = vmatmul.mubr.msk.f32.vlgmr.msra.gmra.mrb[0].mxu0 %vm262_vm2, %v255_v33  ;;  %v477_v59 = vsel %vm472_vm3, %v474_v53, %v476_v57  ;;  %v479_v60 = vsel %vm472_vm3, %v476_v57, %v478_v54 }
  0x18   : > { %873 = vmatmul.mubr.msk.f32.vlgmr.msra.gmra.mrb[0].mxu1 %vm262_vm2, %v1095_v22  ;;  %944 = vmatpush3.bf16.msra.mxu0 %v943_v34 }
  0x19   : > { %844 = vmatprep.mubr.msk.f32.mxu0 %vm993_vm0, %v994_v11  ;;  %875 = vmatprep.mubr.msk.f32.mxu1 %vm993_vm0, %v994_v11 }
  0x1a   : > { %958 = vmatpush3.bf16.msra.mxu1 %v943_v34  ;;  %945 = vmatprep.subr.bf16.mxu0 %v992_v3 }
  0x1b   : > { %845 = vmatmul.mubr.msk.f32.gmra.mrb[2].mxu0 %vm262_vm2, %v257_v39  ;;  %955 = vmatprep.subr.bf16.mxu1 %v992_v3 }
  0x1c   : > { %876 = vmatmul.mubr.msk.f32.gmra.mrb[2].mxu1 %vm262_vm2, %v1098_v23  ;;  %947 = vmatpush3.bf16.msra.mxu0 %v946_v40 }
  0x1d   : > { %847 = vmatprep.mubr.msk.f32.mxu0 %vm993_vm0, %v994_v11  ;;  %878 = vmatprep.mubr.msk.f32.mxu1 %vm993_vm0, %v994_v11 }
  0x1e   : > { %959 = vmatpush3.bf16.msra.mxu1 %v946_v40  ;;  %948 = vmatprep.subr.bf16.mxu0 %v992_v3 }
  0x1f   : > { %848 = vmatmul.mubr.msk.f32.gmra.mrb[4].mxu0 %vm262_vm2, %v259_v45  ;;  %956 = vmatprep.subr.bf16.mxu1 %v992_v3 }
  0x20   : > { %879 = vmatmul.mubr.msk.f32.gmra.mrb[4].mxu1 %vm262_vm2, %v1117_v32  ;;  %850 = vmatprep.mubr.msk.f32.mxu0 %vm993_vm0, %v994_v11 }
  0x21   : > { %881 = vmatprep.mubr.msk.f32.mxu1 %vm993_vm0, %v994_v11  ;;  %950 = vmatpush3.bf16.msra.mxu0 %v949_v47 }
  0x22   : > { %960 = vmatpush3.bf16.msra.mxu1 %v949_v47  ;;  %951 = vmatprep.subr.bf16.mxu0 %v992_v3  ;;  %v777_v47 = vld [vmem:[%s1237_s3] ss:$0 sm:$0xff] }
  0x23   : > { %851 = vmatmul.mubr.msk.f32.gmra.mrb[6].mxu0 %vm262_vm2, %v261_v50  ;;  %957 = vmatprep.subr.bf16.mxu1 %v992_v3 }
  0x24   : > { %882 = vmatmul.mubr.msk.f32.gmra.mrb[6].mxu1 %vm262_vm2, %v1130_v38  ;;  %853 = vmatprep.mubr.msk.f32.mxu0 %vm993_vm0, %v994_v11 }
  0x25   : > { %884 = vmatprep.mubr.msk.f32.mxu1 %vm993_vm0, %v994_v11  ;;  %953 = vmatpush3.bf16.msra.mxu0 %v952_v51 }
  0x26   : > { %961 = vmatpush3.bf16.msra.mxu1 %v952_v51 }
  0x27   : > { %854 = vmatmul.mubr.msk.f32.gmra.mrb[8].mxu0 %vm262_vm2, %v260_v46 }
  0x28   : > { %885 = vmatmul.mubr.msk.f32.gmra.mrb[8].mxu1 %vm262_vm2, %v229_v42  ;;  %903 = vmatprep.mubr.msk.f32.mxu0 %vm993_vm0, %v994_v11 }
  0x29   : > { %912 = vmatprep.mubr.msk.f32.mxu1 %vm993_vm0, %v994_v11 }
  0x2b   : > { %904 = vmatmul.mubr.msk.f32.vlgmr.msra.gmra.mrb[10].mxu0 %vm262_vm2, %v475_v56 }
  0x2c   : > { %913 = vmatmul.mubr.msk.f32.vlgmr.msra.gmra.mrb[10].mxu1 %vm262_vm2, %v481_v58  ;;  %906 = vmatprep.mubr.msk.f32.mxu0 %vm993_vm0, %v994_v11 }
  0x2d   : > { %915 = vmatprep.mubr.msk.f32.mxu1 %vm993_vm0, %v994_v11 }
  0x2f   : > { %907 = vmatmul.mubr.msk.f32.gmra.mrb[12].mxu0 %vm262_vm2, %v477_v59 }
  0x30   : > { %916 = vmatmul.mubr.msk.f32.gmra.mrb[12].mxu1 %vm262_vm2, %v480_v55  ;;  %909 = vmatprep.mubr.msk.f32.mxu0 %vm993_vm0, %v994_v11 }
  0x33   : > { %910 = vmatmul.mubr.msk.f32.gmra.mrb[14].mxu0 %vm262_vm2, %v479_v60 }
  0xea   : > { %v339_v61 = vpop.f32.mrb[0].mxu0 }
  0xeb   : > { %v843_v62 = vpop.f32.mrb[1].mxu0  ;;  %v439_v63 = vpop.f32.mrb[0].mxu1 }
  0xec   : > { %v440_v0 = vadd.f32 %v439_v63, %v339_v61  ;;  %v874_v1 = vpop.f32.mrb[1].mxu1 }
  0xee   : > { %v344_v2 = vpop.f32.mrb[2].mxu0 }
  0xef   : > { %v846_v3 = vpop.f32.mrb[3].mxu0  ;;  %v444_v4 = vpop.f32.mrb[2].mxu1 }
  0xf0   : > { %v445_v5 = vadd.f32 %v444_v4, %v344_v2  ;;  %v877_v6 = vpop.f32.mrb[3].mxu1 }
  0xf2   : > { %v349_v7 = vpop.f32.mrb[4].mxu0 }
  0xf3   : > { %v849_v8 = vpop.f32.mrb[5].mxu0  ;;  %v449_v9 = vpop.f32.mrb[4].mxu1 }
  0xf4   : > { %v450_v10 = vadd.f32 %v449_v9, %v349_v7  ;;  %v880_v12 = vpop.f32.mrb[5].mxu1 }
  0xf6   : > { %v354_v11 = vpop.f32.mrb[6].mxu0 }
  0xf7   : > { %v852_v13 = vpop.f32.mrb[7].mxu0  ;;  %v454_v14 = vpop.f32.mrb[6].mxu1 }
  0xf8   : > { %v455_v15 = vadd.f32 %v454_v14, %v354_v11  ;;  %v883_v16 = vpop.f32.mrb[7].mxu1 }
  0xfa   : > { %v359_v17 = vpop.f32.mrb[8].mxu0 }
  0xfb   : > { %v855_v18 = vpop.f32.mrb[9].mxu0  ;;  %v459_v19 = vpop.f32.mrb[8].mxu1 }
  0xfc   : > { %v460_v20 = vadd.f32 %v459_v19, %v359_v17  ;;  %v886_v21 = vpop.f32.mrb[9].mxu1 }
  0xfe   : > { %v558_v22 = vpop.f32.mrb[10].mxu0 }
  0xff   : > { %v582_v23 = vadd.f32 %v558_v22, %v440_v0  ;;  %v573_v24 = vpop.f32.mrb[10].mxu1  ;;  %v905_v25 = vpop.f32.mrb[11].mxu0 }
 0x100   : > { %v585_v27 = vadd.f32 %v573_v24, %v455_v15  ;;  %v914_v28 = vpop.f32.mrb[11].mxu1 }
 0x101   : > { %v594_v30 = vadd.f32 %v776_v26, %v582_v23 }
 0x102   : > { %v563_v29 = vpop.f32.mrb[12].mxu0  ;;  %v597_v34 = vadd.f32 %v776_v26, %v585_v27 }
 0x103   : > { %v583_v31 = vadd.f32 %v563_v29, %v445_v5  ;;  %v578_v32 = vpop.f32.mrb[12].mxu1  ;;  %v908_v33 = vpop.f32.mrb[13].mxu0  ;;  %v604_v40 = vrot.slane %v594_v30, 1 }
 0x104   : > { %v586_v35 = vadd.f32 %v578_v32, %v460_v20  ;;  %v917_v36 = vpop.f32.mrb[13].mxu1  ;;  %v609_v44 = vrot.slane %v597_v34, 1 }
 0x105   : > { %v595_v37 = vadd.f32 %v776_v26, %v583_v31 }
 0x106   : > { %v598_v38 = vadd.f32 %v776_v26, %v586_v35  ;;  %v568_v39 = vpop.f32.mrb[14].mxu0 }
 0x107   : > { %v605_v41 = vrot.slane %v595_v37, 1  ;;  %v584_v42 = vadd.f32 %v568_v39, %v450_v10  ;;  %v911_v43 = vpop.f32.mrb[15].mxu0 }
 0x108   : > { %v611_v45 = vrot.slane %v598_v38, 1 }
 0x109   : > { %v606_v46 = vsel %vm252_vm1, %v604_v40, %v605_v41  ;;  %v596_v48 = vadd.f32 %v776_v26, %v584_v42 }
 0x10a   : > { %v618_v49 = vmax.f32 %v594_v30, %v606_v46  ;;  %v612_v50 = vsel %vm252_vm1, %v609_v44, %v611_v45  ;;  %v622_v51 = vmax.f32 %v598_v38, %v611_v45 }
 0x10b   : > { %v621_v53 = vmax.f32 %v597_v34, %v612_v50  ;;  %v607_v54 = vrot.slane %v596_v48, 1 }
 0x10c   : > { %v630_v55 = vmul.f32 %v777_v47, %v618_v49  ;;  %v634_v56 = vmul.f32 %v777_v47, %v622_v51 }
 0x10d   : > { %v633_v57 = vmul.f32 %v777_v47, %v621_v53  ;;  %v608_v58 = vsel %vm252_vm1, %v605_v41, %v607_v54  ;;  %v610_v59 = vsel %vm252_vm1, %v607_v54, %v609_v44 }
 0x10e   : > { %v642_v60 = vadd.f32 %v778_v52, %v630_v55  ;;  %v646_v61 = vadd.f32 %v778_v52, %v634_v56  ;;  %v619_v62 = vmax.f32 %v595_v37, %v608_v58  ;;  %v620_v63 = vmax.f32 %v596_v48, %v610_v59 }
 0x10f   : > { %v645_v0 = vadd.f32 %v778_v52, %v633_v57 }
 0x110   : > { %v652_v1 = vmin.f32 %v642_v60, 0.0  ;;  %v656_v2 = vmin.f32 %v646_v61, 0.0  ;;  %v631_v4 = vmul.f32 %v777_v47, %v619_v62  ;;  %v632_v5 = vmul.f32 %v777_v47, %v620_v63 }
 0x111   : > { %v655_v3 = vmin.f32 %v645_v0, 0.0  ;;  %vm647_vm4 = vcmp.gt.f32.partialorder %v642_v60, 0.0  ;;  %vm650_vm5 = vcmp.gt.f32.partialorder %v645_v0, 0.0  ;;  %vm651_vm7 = vcmp.gt.f32.partialorder %v646_v61, 0.0 }
 0x112   : > { %v657_v6 = vmul.f32 1.442695, %v652_v1  ;;  %v665_v7 = vmul.f32 1.442695, %v656_v2  ;;  %v643_v9 = vadd.f32 %v778_v52, %v631_v4  ;;  %v644_v10 = vadd.f32 %v778_v52, %v632_v5 }
 0x113   : > { %v663_v8 = vmul.f32 1.442695, %v655_v3 }
 0x114   : > { %974 = vpow2.f32 %v657_v6  ;;  %v653_v12 = vmin.f32 %v643_v9, 0.0  ;;  %v654_v11 = vmin.f32 %v644_v10, 0.0  ;;  %vm648_vm8 = vcmp.gt.f32.partialorder %v643_v9, 0.0 }
 0x115   : > { %976 = vpow2.f32 %v663_v8  ;;  %vm649_vm9 = vcmp.gt.f32.partialorder %v644_v10, 0.0 }
 0x116   : > { %978 = vpow2.f32 %v665_v7  ;;  %v659_v13 = vmul.f32 1.442695, %v653_v12  ;;  %v661_v14 = vmul.f32 1.442695, %v654_v11 }
 0x118   : > { %980 = vpow2.f32 %v659_v13 }
 0x119   : > { %982 = vpow2.f32 %v661_v14 }
 0x11e   : > { %v975_v15 = vpop.eup %974 }
 0x11f   : > { %v977_v16 = vpop.eup %976  ;;  %v779_v17 = vadd.f32 -1.0, %v975_v15 }
 0x120   : > { %v979_v18 = vpop.eup %978  ;;  %v782_v19 = vadd.f32 -1.0, %v977_v16 }
 0x121   : > { %v672_v20 = vsel %vm647_vm4, %v642_v60, %v779_v17  ;;  %v783_v21 = vadd.f32 -1.0, %v979_v18 }
 0x122   : > { %677 = vst.msk [vmem:[%s224_s10] sm:$0xff] %vm262_vm2, %v672_v20  ;;  %v675_v22 = vsel %vm650_vm5, %v645_v0, %v782_v19  ;;  %v981_v23 = vpop.eup %980 }
 0x123   : > { %v676_v24 = vsel %vm651_vm7, %v646_v61, %v783_v21  ;;  %680 = vst.msk [vmem:[%s224_s10 + $0x18] sm:$0xff] %vm262_vm2, %v675_v22  ;;  %v983_v25 = vpop.eup %982  ;;  %v780_v26 = vadd.f32 -1.0, %v981_v23 }
 0x124   : > { %682 = vst.msk [vmem:[%s224_s10 + $0x20] sm:$0xf] %vm681_vm6, %v676_v24  ;;  %v781_v27 = vadd.f32 -1.0, %v983_v25 }
 0x125   : > { %v673_v28 = vsel %vm648_vm8, %v643_v9, %v780_v26 }
 0x126   : > { %v674_v29 = vsel %vm649_vm9, %v644_v10, %v781_v27  ;;  %678 = vst.msk [vmem:[%s224_s10 + $0x8] sm:$0xff] %vm262_vm2, %v673_v28 }
 0x127   : > { %679 = vst.msk [vmem:[%s224_s10 + $0x10] sm:$0xff] %vm262_vm2, %v674_v29 }
 0x128 PF: > { %s15_s18 = sadd.s32 1, %s990_s18  }
 0x129   : > { %p12_p4 = scmp.ge.s32.totalorder %s15_s18, 4  }
 0x12b   :  { %14 = sbr.rel (!%p12_p4) target bundleno = 1 (0x1), region = 72 }

</bundles_post_ra>
